<compile_context>
chip_gen: v7x
topology: tpu7x:2x2x1
jax: 0.10.0
libtpu: 0.0.40
codegen_flags: <defaults>
</compile_context>

<pallas_src>
import functools
import math

import jax
import jax.numpy as jnp
from jax.experimental import pallas as pl
from jax.experimental.pallas import tpu as pltpu


def _chip_info():
    """(physical VMEM bytes, multi-TensorCore chip?) with conservative fallbacks."""
    vmem = None
    multicore = False
    try:
        info = pltpu.get_tpu_info()
        v = int(getattr(info, "vmem_capacity_bytes", 0))
        if v > 0:
            vmem = v
    except Exception:
        pass
    try:
        kind = jax.devices()[0].device_kind.lower()
        multicore = ("v7" in kind) or ("7x" in kind)
    except Exception:
        pass
    if vmem is None:
        vmem = 64 * 1024 * 1024  # assume the smallest (v7x) if the query fails
    return vmem, multicore


def _nearest_code_kernel(x_ref, emb_ref, e2_ref, idx_ref, min_s, idx_s, *,
                         tile_k, resident, dist_dtype):
    """Grid: (row tiles i ["parallel"], codebook K-blocks j ["arbitrary"])."""
    j = pl.program_id(1)

    @pl.when(j == 0)
    def _init():
        min_s[...] = jnp.full_like(min_s, jnp.inf)
        idx_s[...] = jnp.zeros_like(idx_s)

    if resident:
        # Codebook (and pre-halved norms) stay VMEM-resident for the whole grid
        # (constant index_map, fetched once); slice out this step's K-block.
        k0 = pl.multiple_of(j * tile_k, 128)
        e_blk = emb_ref[:, pl.ds(k0, tile_k)]            # (Dp, TK)
        e2_blk = e2_ref[:, pl.ds(k0, tile_k)]            # (1,  TK) f32
    else:
        e_blk = emb_ref[...]
        e2_blk = e2_ref[...]

    # (loop-invariant casts; cheap vs. the matmul -- caching in scratch skipped)
    xd = x_ref[...].astype(dist_dtype)
    ed = e_blk.astype(dist_dtype)
    # Reduced, pre-halved squared distance: 0.5*||e||^2 - x.e  (same argmin).
    xe = jnp.dot(xd, ed, preferred_element_type=jnp.float32)     # (TN, TK) MXU
    dist = e2_blk - xe                                           # (TN, TK) VPU

    blk_min = jnp.min(dist, axis=1, keepdims=True)               # (TN, 1)
    # First-minimum index inside the block (explicit construction: ties -> lowest k).
    iota_k = jax.lax.broadcasted_iota(jnp.int32, dist.shape, 1)
    blk_idx = jnp.min(jnp.where(dist == blk_min, iota_k, tile_k),
                      axis=1, keepdims=True)                      # (TN, 1) int32

    # Strict '<' keeps the earliest K-block on cross-block ties -> global
    # first-minimum semantics (matches jnp.argmin over the full codebook).
    better = blk_min < min_s[...]
    min_s[...] = jnp.where(better, blk_min, min_s[...])
    idx_s[...] = jnp.where(better, blk_idx + j * tile_k, idx_s[...])

    @pl.when(j == pl.num_programs(1) - 1)
    def _finalize():
        # Fold the (TN, 1) running index into the lane-dense (TN//128, 128)
        # output tile: out[r, c] = idx_s[128*r + c]. Integer-exact, no MXU:
        # spread each row's index to lane (row % 128), then sum groups of 128
        # consecutive rows along the sublane axis.
        tn = idx_s.shape[0]
        rows = idx_ref.shape[0]
        row_i = jax.lax.broadcasted_iota(jnp.int32, (tn, 128), 0)
        lane_c = jax.lax.broadcasted_iota(jnp.int32, (tn, 128), 1)
        spread = jnp.where((row_i % 128) == lane_c, idx_s[...], 0)   # (TN, 128)
        idx_ref[...] = jnp.sum(spread.reshape(rows, 128, 128), axis=1)


def nearest_embed_pallas(x, emb, *, tile_n=1024, tile_k=1024, distance_dtype=None):
    """Forward of NearestEmbedFunc.

    x: (B, emb_dim, *spatial), emb: (emb_dim, num_emb).
    Returns (quantized (B, emb_dim, *spatial) in emb.dtype, argmin (B, *spatial) int32).
    """
    if x.ndim < 2:
        raise ValueError("x must have at least 2 dims (batch, emb_dim, ...)")
    D, K = emb.shape
    if x.shape[1] != D:
        raise RuntimeError(
            "invalid argument: input.size(1) ({}) must be equal to emb.size(0) ({})"
            .format(x.shape[1], D))

    B = x.shape[0]
    spatial = tuple(x.shape[2:])
    N = B * int(math.prod(spatial))

    if distance_dtype is None:
        # bf16 distances are the fast path on v6e/v7x (~4x MXU rate) but can
        # flip near-tie argmins; default to f32 for parity with the reference.
        distance_dtype = jnp.bfloat16 if x.dtype == jnp.bfloat16 else jnp.float32
    dist_dtype = jnp.dtype(distance_dtype)

    vmem_phys, multicore = _chip_info()
    vmem_cap = max(32 * 1024 * 1024, int(0.72 * vmem_phys))

    # ---- tiling -------------------------------------------------------------
    Dp = 128 * pl.cdiv(D, 128)                    # lane-align the contraction dim

    # Row tile: multiple of 1024 so the (tile_n//128, 128) index block keeps a
    # sublane-aligned (multiple-of-8) second-minor dim.
    tile_n = 1024 * max(1, int(tile_n) // 1024)
    tile_n = min(tile_n, 1024 * pl.cdiv(N, 1024))           # don't exceed the data
    if multicore and N > 1024:
        # >= 2 row steps so both v7x TensorCores get work (skip on 1-TC chips).
        tile_n = min(tile_n, max(1024, 1024 * pl.cdiv(pl.cdiv(N, 2), 1024)))
    Np = tile_n * pl.cdiv(N, tile_n)
    rows = tile_n // 128

    tile_k = 128 * pl.cdiv(max(128, int(tile_k)), 128)
    tile_k = min(tile_k, 128 * pl.cdiv(K, 128))

    x_item = jnp.dtype(x.dtype).itemsize
    e_item = jnp.dtype(emb.dtype).itemsize

    def vmem_estimate(resident, tk):
        kp = tk * pl.cdiv(K, tk)
        emb_cols = kp if resident else tk
        return (2 * tile_n * Dp * x_item         # x input blocks (double-buffered)
                + 2 * Dp * emb_cols * e_item     # codebook (resident: fetched once)
                + 2 * 8 * emb_cols * 4           # pre-halved norms (sublane-padded)
                + 2 * rows * 128 * 4             # idx output blocks
                + 2 * tile_n * 128 * 4           # min/idx scratch (lane-padded)
                + 6 * tile_n * tk * 4)           # dist/compare intermediates

    resident = False
    tk = tile_k
    while True:
        if vmem_estimate(True, tk) <= vmem_cap:
            resident = True
            break
        if tk <= 256:
            break
        tk //= 2
    if not resident:
        tk = tile_k
        while tk > 256 and vmem_estimate(False, tk) > vmem_cap:
            tk //= 2
    tile_k = tk
    Kp = tile_k * pl.cdiv(K, tile_k)

    # ---- plain-JAX glue: layout + padding -----------------------------------
    x_flat = jnp.moveaxis(x, 1, -1).reshape(N, D)
    x_pad = jnp.pad(x_flat, ((0, Np - N), (0, Dp - D)))
    emb_pad = jnp.pad(emb, ((0, Dp - D), (0, Kp - K)))
    # Pre-halved codebook norms (hoisted out of the kernel). For bf16 distances,
    # compute them from the bf16-rounded codebook so both distance terms are
    # consistent. Padded columns get a huge norm so they can never win.
    if dist_dtype != jnp.dtype(jnp.float32):
        emb_for_norm = emb.astype(dist_dtype).astype(jnp.float32)
    else:
        emb_for_norm = emb.astype(jnp.float32)
    e2h = 0.5 * jnp.sum(jnp.square(emb_for_norm), axis=0)
    e2h = jnp.pad(e2h, (0, Kp - K), constant_values=1e30).reshape(1, Kp)

    grid = (Np // tile_n, Kp // tile_k)

    if resident:
        emb_spec = pl.BlockSpec((Dp, Kp), lambda i, j: (0, 0))
        e2_spec = pl.BlockSpec((1, Kp), lambda i, j: (0, 0))
    else:
        # Streamed codebook (huge K*D): deeper pipelining hides the refetch.
        emb_spec = pl.BlockSpec((Dp, tile_k), lambda i, j: (0, j),
                                pipeline_mode=pl.Buffered(3))
        e2_spec = pl.BlockSpec((1, tile_k), lambda i, j: (0, j))

    kernel = functools.partial(_nearest_code_kernel, tile_k=tile_k,
                               resident=resident, dist_dtype=dist_dtype)

    cost = pl.CostEstimate(
        flops=int(2 * Np * Dp * Kp + 6 * Np * Kp),
        transcendentals=0,
        bytes_accessed=int(Np * Dp * x_item + Dp * Kp * e_item + Kp * 4 + Np * 4),
    )

    idx_pad = pl.pallas_call(
        kernel,
        out_shape=jax.ShapeDtypeStruct((Np // 128, 128), jnp.int32),
        grid_spec=pltpu.PrefetchScalarGridSpec(
            num_scalar_prefetch=0,
            grid=grid,
            in_specs=[
                pl.BlockSpec((tile_n, Dp), lambda i, j: (i, 0)),
                emb_spec,
                e2_spec,
            ],
            out_specs=pl.BlockSpec((rows, 128), lambda i, j: (i, 0)),
            scratch_shapes=[
                pltpu.VMEM((tile_n, 1), jnp.float32),   # running min distance
                pltpu.VMEM((tile_n, 1), jnp.int32),     # running argmin
            ],
        ),
        compiler_params=pltpu.CompilerParams(
            dimension_semantics=("parallel", "arbitrary"),
            vmem_limit_bytes=vmem_cap,
        ),
        cost_estimate=cost,
    )(x_pad, emb_pad, e2h)

    idx_flat = idx_pad.reshape(Np)[:N]

    # O(N*D) codeword gather done in plain JAX: doing it in-kernel as a one-hot
    # matmul would cost as much MXU work as the distance matmul itself, so the
    # flop-minimal choice is an XLA gather; it also yields exact codebook values
    # in the codebook dtype (matching the PyTorch module).
    q_flat = jnp.take(emb.T, idx_flat, axis=0)                    # (N, D), emb.dtype
    quantized = jnp.moveaxis(q_flat.reshape((B,) + spatial + (D,)), -1, 1)
    argmin = idx_flat.reshape((B,) + spatial)
    return quantized, argmin


class NearestEmbed:
    """JAX/Pallas mirror of the PyTorch NearestEmbed module (forward only)."""

    def __init__(self, num_embeddings, embeddings_dim, key):
        # torch.rand(embeddings_dim, num_embeddings) -> uniform [0, 1)
        self.weight = jax.random.uniform(
            key, (embeddings_dim, num_embeddings), dtype=jnp.float32)

    def __call__(self, x, weight_sg=False):
        # TODO(synk): backward (straight-through grad_input + count-averaged
        # codebook grad from NearestEmbedFunc.backward) needs a custom_vjp; only
        # the forward pass is implemented here.
        w = jax.lax.stop_gradient(self.weight) if weight_sg else self.weight
        return nearest_embed_pallas(x, w)


def _reference(x, emb):
    """Pure-JAX reference of NearestEmbedFunc.forward (sanity check only)."""
    B, D = x.shape[0], x.shape[1]
    spatial = tuple(x.shape[2:])
    x_flat = jnp.moveaxis(x, 1, -1).reshape(-1, D)                        # (N, D)
    d2 = jnp.sum((x_flat[:, :, None] - emb[None, :, :]) ** 2, axis=1)     # (N, K)
    argmin = jnp.argmin(d2, axis=1).astype(jnp.int32)
    q = jnp.take(emb.T, argmin, axis=0).reshape((B,) + spatial + (D,))
    return jnp.moveaxis(q, -1, 1), argmin.reshape((B,) + spatial), d2


def _check(x, emb, quantized, argmin):
    q_ref, idx_ref, d2 = _reference(x, emb)
    assert quantized.shape == x.shape and quantized.dtype == emb.dtype
    assert argmin.shape == (x.shape[0],) + tuple(x.shape[2:])
    assert argmin.dtype == jnp.int32

    idx_k = argmin.reshape(-1)
    idx_r = idx_ref.reshape(-1)
    rr = jnp.arange(idx_k.shape[0])
    d_k = d2[rr, idx_k]
    d_r = d2[rr, idx_r]
    # The kernel-selected code must be (near-)optimal. With f32 distances this
    # matches jnp.argmin exactly; the tolerance only covers near-tie flips from
    # float accumulation-order differences.
    assert bool(jnp.all(d_k <= d_r + 2e-2 + 1e-3 * d_r)), "non-optimal code selected"
    if bool(jnp.array_equal(idx_k, idx_r)):
        assert bool(jnp.array_equal(quantized, q_ref)), "quantized mismatch"


if __name__ == "__main__":
    key = jax.random.PRNGKey(0)
    k_w1, k_x1, k_w2, k_x2 = jax.random.split(key, 4)

    # Case 1: the module at small VQ-VAE shapes (B, emb_dim, H, W) = (2, 4, 16, 16).
    B, D, H, W, K = 2, 4, 16, 16, 16
    module = NearestEmbed(num_embeddings=K, embeddings_dim=D, key=k_w1)
    x1 = jax.random.normal(k_x1, (B, D, H, W), dtype=jnp.float32)
    q1, i1 = module(x1)
    q1 = jax.block_until_ready(q1)
    i1 = jax.block_until_ready(i1)
    _check(x1, module.weight, q1, i1)

    # Case 2: >1 row tile (N=2048) and >1 codebook K-block (K=1300 -> Kp=2048):
    # exercises the running min/argmin carry across blocks + padded columns.
    emb2 = jax.random.uniform(k_w2, (4, 1300), dtype=jnp.float32)
    x2 = jax.random.normal(k_x2, (2, 4, 32, 32), dtype=jnp.float32)
    q2, i2 = nearest_embed_pallas(x2, emb2)
    q2 = jax.block_until_ready(q2)
    i2 = jax.block_until_ready(i2)
    _check(x2, emb2, q2, i2)

    print("KERNEL_OK")
</pallas_src>

<mosaic_0001>
module attributes {stable_mosaic.version = 11 : i64} {
  func.func @_nearest_code_kernel(%arg0: i32, %arg1: i32, %arg2: memref<1024x128xf32, #tpu.memory_space<vmem>>, %arg3: memref<128x128xf32, #tpu.memory_space<vmem>>, %arg4: memref<1x128xf32, #tpu.memory_space<vmem>>, %arg5: memref<8x128xi32, #tpu.memory_space<vmem>>, %arg6: memref<1024x1xf32, #tpu.memory_space<vmem>>, %arg7: memref<1024x1xi32, #tpu.memory_space<vmem>>) attributes {dimension_semantics = [#tpu.dimension_semantics<parallel>, #tpu.dimension_semantics<arbitrary>], iteration_bounds = array<i64: 1, 1>, scalar_prefetch = 0 : i64, scratch_operands = 2 : i64, tpu.core_type = #tpu.core_type<tc>, window_params = [{transform_indices = @transform_0, window_bounds = array<i64: 1024, 128>}, {pipeline_mode = #tpu.pipeline_mode<synchronous>, transform_indices = @transform_1, window_bounds = array<i64: 128, 128>}, {pipeline_mode = #tpu.pipeline_mode<synchronous>, transform_indices = @transform_2, window_bounds = array<i64: 1, 128>}, {transform_indices = @transform_3, window_bounds = array<i64: 8, 128>}]} {
    %c0_i32 = arith.constant 0 : i32
    %0 = arith.cmpi eq, %arg1, %c0_i32 : i32
    %1 = arith.extui %0 : i1 to i32
    %c0_i32_0 = arith.constant 0 : i32
    %2 = arith.cmpi ne, %1, %c0_i32_0 : i32
    scf.if %2 {
      %cst_20 = arith.constant 0x7F800000 : f32
      %36 = vector.broadcast %cst_20 : f32 to vector<1024x1xf32>
      %c0_21 = arith.constant 0 : index
      %c0_22 = arith.constant 0 : index
      %37 = vector.load %arg6[%c0_21, %c0_22] : memref<1024x1xf32, #tpu.memory_space<vmem>>, vector<1024x1xf32>
      tpu.vector_store %arg6[%c0_21, %c0_22], %36 {strides = array<i32>} : memref<1024x1xf32, #tpu.memory_space<vmem>>, vector<1024x1xf32>,
      %c0_i32_23 = arith.constant 0 : i32
      %38 = vector.broadcast %c0_i32_23 : i32 to vector<1024x1xi32>
      %c0_24 = arith.constant 0 : index
      %c0_25 = arith.constant 0 : index
      %39 = vector.load %arg7[%c0_24, %c0_25] : memref<1024x1xi32, #tpu.memory_space<vmem>>, vector<1024x1xi32>
      tpu.vector_store %arg7[%c0_24, %c0_25], %38 {strides = array<i32>} : memref<1024x1xi32, #tpu.memory_space<vmem>>, vector<1024x1xi32>,
    } else {
    }
    %c128_i32 = arith.constant 128 : i32
    %3 = arith.muli %arg1, %c128_i32 : i32
    %4 = tpu.assume_multiple %3, 128 : i32
    %c0 = arith.constant 0 : index
    %5 = arith.index_cast %4 : i32 to index
    %6 = vector.load %arg3[%c0, %5] : memref<128x128xf32, #tpu.memory_space<vmem>>, vector<128x128xf32>
    %c0_1 = arith.constant 0 : index
    %7 = arith.index_cast %4 : i32 to index
    %8 = vector.load %arg4[%c0_1, %7] : memref<1x128xf32, #tpu.memory_space<vmem>>, vector<1x128xf32>
    %c0_2 = arith.constant 0 : index
    %c0_3 = arith.constant 0 : index
    %9 = vector.load %arg2[%c0_2, %c0_3] : memref<1024x128xf32, #tpu.memory_space<vmem>>, vector<1024x128xf32>
    %cst = arith.constant dense<0.000000e+00> : vector<1024x128xf32>
    %10 = tpu.matmul %9, %6, %cst {dimension_numbers = #tpu.dot_dimension_numbers<[1], [0], [0], [1], [0, 0, 1, 1], [], []>} : vector<1024x128xf32>, vector<128x128xf32>, vector<1024x128xf32> -> vector<1024x128xf32>
    %11 = vector.broadcast %8 : vector<1x128xf32> to vector<1024x128xf32>
    %12 = arith.subf %11, %10 : vector<1024x128xf32>
    %cst_4 = arith.constant dense<0x7F800000> : vector<1024xf32>
    %13 = vector.multi_reduction <minimumf>, %12, %cst_4 [1] : vector<1024x128xf32> to vector<1024xf32>
    %14 = vector.shape_cast %13 : vector<1024xf32> to vector<1024x1xf32>
    %15 = tpu.iota {dimensions = array<i32: 1>} : vector<1024x128xi32>
    %16 = vector.broadcast %14 : vector<1024x1xf32> to vector<1024x128xf32>
    %17 = arith.cmpf oeq, %12, %16 : vector<1024x128xf32>
    %c128_i32_5 = arith.constant 128 : i32
    %18 = vector.broadcast %c128_i32_5 : i32 to vector<1024x128xi32>
    %19 = arith.select %17, %15, %18 : vector<1024x128xi1>, vector<1024x128xi32>
    %cst_6 = arith.constant dense<2147483647> : vector<1024xi32>
    %20 = vector.multi_reduction <minsi>, %19, %cst_6 [1] : vector<1024x128xi32> to vector<1024xi32>
    %21 = vector.shape_cast %20 : vector<1024xi32> to vector<1024x1xi32>
    %c0_7 = arith.constant 0 : index
    %c0_8 = arith.constant 0 : index
    %22 = vector.load %arg6[%c0_7, %c0_8] : memref<1024x1xf32, #tpu.memory_space<vmem>>, vector<1024x1xf32>
    %23 = arith.cmpf olt, %14, %22 : vector<1024x1xf32>
    %c0_9 = arith.constant 0 : index
    %c0_10 = arith.constant 0 : index
    %24 = vector.load %arg6[%c0_9, %c0_10] : memref<1024x1xf32, #tpu.memory_space<vmem>>, vector<1024x1xf32>
    %25 = arith.select %23, %14, %24 : vector<1024x1xi1>, vector<1024x1xf32>
    %c0_11 = arith.constant 0 : index
    %c0_12 = arith.constant 0 : index
    %26 = vector.load %arg6[%c0_11, %c0_12] : memref<1024x1xf32, #tpu.memory_space<vmem>>, vector<1024x1xf32>
    tpu.vector_store %arg6[%c0_11, %c0_12], %25 {strides = array<i32>} : memref<1024x1xf32, #tpu.memory_space<vmem>>, vector<1024x1xf32>,
    %c128_i32_13 = arith.constant 128 : i32
    %27 = arith.muli %arg1, %c128_i32_13 : i32
    %28 = vector.broadcast %27 : i32 to vector<1024x1xi32>
    %29 = arith.addi %21, %28 : vector<1024x1xi32>
    %c0_14 = arith.constant 0 : index
    %c0_15 = arith.constant 0 : index
    %30 = vector.load %arg7[%c0_14, %c0_15] : memref<1024x1xi32, #tpu.memory_space<vmem>>, vector<1024x1xi32>
    %31 = arith.select %23, %29, %30 : vector<1024x1xi1>, vector<1024x1xi32>
    %c0_16 = arith.constant 0 : index
    %c0_17 = arith.constant 0 : index
    %32 = vector.load %arg7[%c0_16, %c0_17] : memref<1024x1xi32, #tpu.memory_space<vmem>>, vector<1024x1xi32>
    tpu.vector_store %arg7[%c0_16, %c0_17], %31 {strides = array<i32>} : memref<1024x1xi32, #tpu.memory_space<vmem>>, vector<1024x1xi32>,
    %c0_i32_18 = arith.constant 0 : i32
    %33 = arith.cmpi eq, %arg1, %c0_i32_18 : i32
    %34 = arith.extui %33 : i1 to i32
    %c0_i32_19 = arith.constant 0 : i32
    %35 = arith.cmpi ne, %34, %c0_i32_19 : i32
    scf.if %35 {
      %36 = tpu.iota {dimensions = array<i32: 0>} : vector<1024x128xi32>
      %37 = tpu.iota {dimensions = array<i32: 1>} : vector<1024x128xi32>
      %c128_i32_20 = arith.constant 128 : i32
      %c0_i32_21 = arith.constant 0 : i32
      %38 = arith.cmpi eq, %c128_i32_20, %c0_i32_21 : i32
      %c1_i32 = arith.constant 1 : i32
      %39 = arith.select %38, %c1_i32, %c128_i32_20 : i32
      %40 = vector.broadcast %39 : i32 to vector<1024x128xi32>
      %41 = arith.remsi %36, %40 : vector<1024x128xi32>
      %c0_i32_22 = arith.constant 0 : i32
      %42 = vector.broadcast %c0_i32_22 : i32 to vector<1024x128xi32>
      %43 = arith.cmpi ne, %41, %42 : vector<1024x128xi32>
      %c0_i32_23 = arith.constant 0 : i32
      %44 = vector.broadcast %c0_i32_23 : i32 to vector<1024x128xi32>
      %45 = arith.cmpi slt, %41, %44 : vector<1024x128xi32>
      %c0_i32_24 = arith.constant 0 : i32
      %46 = arith.cmpi slt, %39, %c0_i32_24 : i32
      %47 = vector.broadcast %46 : i1 to vector<1024x128xi1>
      %48 = vector.broadcast %47 : vector<1024x128xi1> to vector<1024x128xi1>
      %49 = arith.xori %45, %48 : vector<1024x128xi1>
      %50 = arith.andi %49, %43 : vector<1024x128xi1>
      %51 = vector.broadcast %39 : i32 to vector<1024x128xi32>
      %52 = arith.addi %41, %51 : vector<1024x128xi32>
      %53 = arith.select %50, %52, %41 : vector<1024x128xi1>, vector<1024x128xi32>
      %54 = arith.cmpi eq, %53, %37 : vector<1024x128xi32>
      %c0_25 = arith.constant 0 : index
      %c0_26 = arith.constant 0 : index
      %55 = vector.load %arg7[%c0_25, %c0_26] : memref<1024x1xi32, #tpu.memory_space<vmem>>, vector<1024x1xi32>
      %c0_i32_27 = arith.constant 0 : i32
      %56 = vector.shape_cast %55 : vector<1024x1xi32> to vector<1024x1xi32>
      %57 = vector.broadcast %56 : vector<1024x1xi32> to vector<1024x128xi32>
      %58 = vector.broadcast %c0_i32_27 : i32 to vector<1024x128xi32>
      %59 = arith.select %54, %57, %58 : vector<1024x128xi1>, vector<1024x128xi32>
      %60 = vector.shape_cast %59 : vector<1024x128xi32> to vector<8x128x128xi32>
      %cst_28 = arith.constant dense<0> : vector<8x128xi32>
      %61 = vector.multi_reduction <add>, %60, %cst_28 [1] : vector<8x128x128xi32> to vector<8x128xi32>
      %c0_29 = arith.constant 0 : index
      %c0_30 = arith.constant 0 : index
      %62 = vector.load %arg5[%c0_29, %c0_30] : memref<8x128xi32, #tpu.memory_space<vmem>>, vector<8x128xi32>
      tpu.vector_store %arg5[%c0_29, %c0_30], %61 {strides = array<i32>} : memref<8x128xi32, #tpu.memory_space<vmem>>, vector<8x128xi32>,
    } else {
    }
    return
  }
  func.func @transform_0(%arg0: i32, %arg1: i32) -> (i32, i32) {
    %c0_i32 = arith.constant 0 : i32
    %c0_i32_0 = arith.constant 0 : i32
    return %arg0, %c0_i32 : i32, i32
  }
  func.func @transform_1(%arg0: i32, %arg1: i32) -> (i32, i32) {
    %c0_i32 = arith.constant 0 : i32
    %c0_i32_0 = arith.constant 0 : i32
    %c0_i32_1 = arith.constant 0 : i32
    return %c0_i32, %c0_i32_0 : i32, i32
  }
  func.func @transform_2(%arg0: i32, %arg1: i32) -> (i32, i32) {
    %c0_i32 = arith.constant 0 : i32
    %c0_i32_0 = arith.constant 0 : i32
    %c0_i32_1 = arith.constant 0 : i32
    return %c0_i32, %c0_i32_0 : i32, i32
  }
  func.func @transform_3(%arg0: i32, %arg1: i32) -> (i32, i32) {
    %c0_i32 = arith.constant 0 : i32
    %c0_i32_0 = arith.constant 0 : i32
    return %arg0, %c0_i32 : i32, i32
  }
}

</mosaic_0001>

<bundles_post_ra>
// kernel: tpu_custom_call.1
= control target key start
LH: loop header
LB: loop body
LE: loop exit
PB: predicated region body
PF: predicated region fallthrough
CT: control target
= control target key end

     0   :  { %8 = vsyncpa [#allocation5], 0  ;;  %s14291_s0 = inlined_call_operand.hbm [shape: f32[1024,128], index: 0, kind: input, shape index: {}]   ;;  %s14292_s1 = inlined_call_operand.hbm [shape: f32[128,128], index: 1, kind: input, shape index: {}]   ;;  %s14293_s2 = inlined_call_operand.vmem [shape: f32[1,128], index: 2, kind: input, shape index: {}]   ;;  %s14294_s3 = inlined_call_operand.hbm [shape: s32[8,128], index: 3, kind: output, shape index: {}]  }
   0x1   :  { %9 = vsyncpa [#allocation8], 0 }
   0x2   :  { %10 = vsyncpa [#allocation6], 0  ;;  %s7761_s12 = smov [#allocation4]   ;;  %s7689_s16 = scalar_lea.hbm %s14291_s0, 16384 }
   0x3   :  { %s16_s13 = sshll.u32 %s7761_s12, 4  ;;  %p7690_p0 = scmp.ne.s32.totalorder %s14291_s0, %s7689_s16  ;;  %s17_s13 = int_to_ptr.vmem [resolvable:$true] %s16_s13 }
   0x4   :  { %p7693_p1 = scmp.lt.u32.totalorder %s7689_s16, %s14291_s0 }
   0x6   :  { %p7695_p2 = pnand %p7693_p1, %p7690_p0 }
   0x8   :  { %7698 = shalt.err (!%p7695_p2)
}
   0x9   :  { %s7699_s21 = scalar_lea.vmem %s17_s13, 16384  ;;  %p7704_p4 = scmp.lt.s32.totalorder %s17_s13, %s17_s13 }
   0xa   :  { %p7700_p3 = scmp.ne.s32.totalorder %s17_s13, %s7699_s21  ;;  %p7705_p5 = scmp.lt.s32.totalorder %s7699_s21, %s7699_s21 }
   0xc   :  { %p7706_p6 = por %p7705_p5, %p7704_p4 }
   0xe   :  { %p7707_p7 = pnand %p7706_p6, %p7700_p3 }
  0x10   :  { %7710 = shalt.err (!%p7707_p7)
}
  0x11   :  { %s7762_s22 = smov 128   ;;  %s7763_s23 = smov 8  }
  0x12   :  { %22 = dma.hbm_to_vmem [thread:$0]  %s14291_s0, 16384, %s17_s13, [#allocation5], %s7762_s22, %s7762_s22, %s7763_s23  }
  0x13   :  { %s7764_s26 = smov [#allocation7]   ;;  %s7711_s30 = scalar_lea.hbm %s14292_s1, 2048 }
  0x14   :  { %s28_s27 = sshll.u32 %s7764_s26, 4  ;;  %p7712_p8 = scmp.ne.s32.totalorder %s14292_s1, %s7711_s30  ;;  %s29_s27 = int_to_ptr.vmem [resolvable:$true] %s28_s27 }
  0x15   :  { %p7715_p9 = scmp.lt.u32.totalorder %s7711_s30, %s14292_s1 }
  0x17   :  { %p7717_p10 = pnand %p7715_p9, %p7712_p8 }
  0x19   :  { %7720 = shalt.err (!%p7717_p10)
}
  0x1a   :  { %s7721_s8 = scalar_lea.vmem %s29_s27, 2048  ;;  %p7726_p12 = scmp.lt.s32.totalorder %s29_s27, %s29_s27 }
  0x1b   :  { %p7722_p11 = scmp.ne.s32.totalorder %s29_s27, %s7721_s8  ;;  %p7727_p13 = scmp.lt.s32.totalorder %s7721_s8, %s7721_s8 }
  0x1d   :  { %p7728_p0 = por %p7727_p13, %p7726_p12 }
  0x1f   :  { %p7729_p1 = pnand %p7728_p0, %p7722_p11 }
  0x21   :  { %7732 = shalt.err (!%p7729_p1)
}
  0x22   :  { %34 = dma.hbm_to_vmem [thread:$0]  %s14292_s1, 2048, %s29_s27, [#allocation8], %s7762_s22, %s7762_s22, %s7763_s23  }
  0x23   :  { %7755 = dma.done.wait [#allocation5], 16384  }
  0x24   :  { %7756 = vsyncadd [#allocation5], 4294950912 }
  0x25   :  { %7757 = dma.done.wait [#allocation8], 2048  }
  0x26   :  { %7758 = vsyncadd [#allocation8], 4294965248  ;;  %v308_v0 = vld [vmem:[#allocation7] sm:$0xff]  ;;  %v309_v1 = vld [vmem:[#allocation7 + $0x8] sm:$0xff]  ;;  %vm47_vm0 = vcmask 7168  }
  0x27   :  { %v310_v2 = vld [vmem:[#allocation7 + $0x10] sm:$0xff]  ;;  %v7631_v3 = vpack.c.bf16 %v309_v1, %v308_v0  ;;  %v311_v4 = vld [vmem:[#allocation7 + $0x18] sm:$0xff]  ;;  %v312_v6 = vld [vmem:[#allocation7 + $0x20] sm:$0xff] }
  0x28   :  { %v7635_v5 = vpack.c.bf16 %v311_v4, %v310_v2  ;;  %v313_v7 = vld [vmem:[#allocation7 + $0x28] sm:$0xff]  ;;  %v326_v9 = vld [vmem:[#allocation4] sm:$0xff]  ;;  %v314_v11 = vld [vmem:[#allocation7 + $0x30] sm:$0xff] }
  0x29   :  { %7632 = vmatprep.subr.bf16.mxu0 %v7631_v3  ;;  %7663 = vmatprep.subr.bf16.mxu1 %v7631_v3  ;;  %v7639_v8 = vpack.c.bf16 %v313_v7, %v312_v6  ;;  %v390_v10 = vld [vmem:[#allocation4 + $0x200] sm:$0xff]  ;;  %v315_v12 = vld [vmem:[#allocation7 + $0x38] sm:$0xff]  ;;  %v317_v15 = vld [vmem:[#allocation7 + $0x48] sm:$0xff] }
  0x2a   :  { %7634 = vmatpush3.bf16.msra.mxu0 %v7631_v3  ;;  %7671 = vmatpush3.bf16.msra.mxu1 %v7631_v3  ;;  %v7643_v13 = vpack.c.bf16 %v315_v12, %v314_v11  ;;  %v316_v14 = vld [vmem:[#allocation7 + $0x40] sm:$0xff]  ;;  %v318_v17 = vld [vmem:[#allocation7 + $0x50] sm:$0xff]  ;;  %v319_v18 = vld [vmem:[#allocation7 + $0x58] sm:$0xff] }
  0x2b   :  { %7636 = vmatprep.subr.bf16.mxu0 %v7635_v5  ;;  %7664 = vmatprep.subr.bf16.mxu1 %v7635_v5  ;;  %v7647_v16 = vpack.c.bf16 %v317_v15, %v316_v14  ;;  %v7651_v19 = vpack.c.bf16 %v319_v18, %v318_v17  ;;  %v320_v20 = vld [vmem:[#allocation7 + $0x60] sm:$0xff]  ;;  %v321_v21 = vld [vmem:[#allocation7 + $0x68] sm:$0xff]  ;;  %v322_v23 = vld [vmem:[#allocation7 + $0x70] sm:$0xff] }
  0x2c   :  { %7439 = vmatprep.mubr.f32.mxu0 %v326_v9  ;;  %7535 = vmatprep.mubr.f32.mxu1 %v390_v10  ;;  %v7655_v22 = vpack.c.bf16 %v321_v21, %v320_v20  ;;  %v323_v24 = vld [vmem:[#allocation7 + $0x78] sm:$0xff]  ;;  %v327_v26 = vld [vmem:[#allocation4 + $0x8] sm:$0xff]  ;;  %v328_v28 = vld [vmem:[#allocation4 + $0x10] sm:$0xff] }
  0x2d   :  { %v7659_v25 = vpack.c.bf16 %v323_v24, %v322_v23  ;;  %v391_v27 = vld [vmem:[#allocation4 + $0x208] sm:$0xff]  ;;  %v392_v29 = vld [vmem:[#allocation4 + $0x210] sm:$0xff]  ;;  %v329_v30 = vld [vmem:[#allocation4 + $0x18] sm:$0xff] }
  0x2e   :  { %7638 = vmatpush3.bf16.msra.mxu0 %v7635_v5  ;;  %7672 = vmatpush3.bf16.msra.mxu1 %v7635_v5  ;;  %v393_v31 = vld [vmem:[#allocation4 + $0x218] sm:$0xff]  ;;  %v330_v32 = vld [vmem:[#allocation4 + $0x20] sm:$0xff]  ;;  %v331_v34 = vld [vmem:[#allocation4 + $0x28] sm:$0xff] }
  0x2f   :  { %7640 = vmatprep.subr.bf16.mxu0 %v7639_v8  ;;  %7665 = vmatprep.subr.bf16.mxu1 %v7639_v8  ;;  %v394_v33 = vld [vmem:[#allocation4 + $0x220] sm:$0xff]  ;;  %v395_v35 = vld [vmem:[#allocation4 + $0x228] sm:$0xff]  ;;  %v332_v36 = vld [vmem:[#allocation4 + $0x30] sm:$0xff] }
  0x30   :  { %v396_v37 = vld [vmem:[#allocation4 + $0x230] sm:$0xff]  ;;  %v333_v38 = vld [vmem:[#allocation4 + $0x38] sm:$0xff]  ;;  %v334_v40 = vld [vmem:[#allocation4 + $0x40] sm:$0xff] }
  0x31   :  { %v397_v39 = vld [vmem:[#allocation4 + $0x238] sm:$0xff]  ;;  %v398_v41 = vld [vmem:[#allocation4 + $0x240] sm:$0xff]  ;;  %v335_v42 = vld [vmem:[#allocation4 + $0x48] sm:$0xff] }
  0x32   :  { %7642 = vmatpush3.bf16.msra.mxu0 %v7639_v8  ;;  %7673 = vmatpush3.bf16.msra.mxu1 %v7639_v8  ;;  %v399_v43 = vld [vmem:[#allocation4 + $0x248] sm:$0xff]  ;;  %v336_v44 = vld [vmem:[#allocation4 + $0x50] sm:$0xff]  ;;  %v337_v46 = vld [vmem:[#allocation4 + $0x58] sm:$0xff] }
  0x33   :  { %7644 = vmatprep.subr.bf16.mxu0 %v7643_v13  ;;  %7666 = vmatprep.subr.bf16.mxu1 %v7643_v13  ;;  %v400_v45 = vld [vmem:[#allocation4 + $0x250] sm:$0xff]  ;;  %v401_v47 = vld [vmem:[#allocation4 + $0x258] sm:$0xff]  ;;  %v338_v48 = vld [vmem:[#allocation4 + $0x60] sm:$0xff] }
  0x34   :  { %v402_v49 = vld [vmem:[#allocation4 + $0x260] sm:$0xff]  ;;  %v339_v50 = vld [vmem:[#allocation4 + $0x68] sm:$0xff]  ;;  %v340_v52 = vld [vmem:[#allocation4 + $0x70] sm:$0xff] }
  0x35   :  { %v403_v51 = vld [vmem:[#allocation4 + $0x268] sm:$0xff]  ;;  %v404_v53 = vld [vmem:[#allocation4 + $0x270] sm:$0xff]  ;;  %v341_v54 = vld [vmem:[#allocation4 + $0x78] sm:$0xff] }
  0x36   :  { %7646 = vmatpush3.bf16.msra.mxu0 %v7643_v13  ;;  %7674 = vmatpush3.bf16.msra.mxu1 %v7643_v13  ;;  %v405_v55 = vld [vmem:[#allocation4 + $0x278] sm:$0xff]  ;;  %v342_v56 = vld [vmem:[#allocation4 + $0x80] sm:$0xff]  ;;  %v343_v58 = vld [vmem:[#allocation4 + $0x88] sm:$0xff] }
  0x37   :  { %7648 = vmatprep.subr.bf16.mxu0 %v7647_v16  ;;  %7667 = vmatprep.subr.bf16.mxu1 %v7647_v16  ;;  %v406_v57 = vld [vmem:[#allocation4 + $0x280] sm:$0xff]  ;;  %v407_v59 = vld [vmem:[#allocation4 + $0x288] sm:$0xff]  ;;  %v344_v60 = vld [vmem:[#allocation4 + $0x90] sm:$0xff] }
  0x38   :  { %v408_v61 = vld [vmem:[#allocation4 + $0x290] sm:$0xff]  ;;  %v345_v62 = vld [vmem:[#allocation4 + $0x98] sm:$0xff]  ;;  %v346_v0 = vld [vmem:[#allocation4 + $0xa0] sm:$0xff] }
  0x39   :  { %v409_v63 = vld [vmem:[#allocation4 + $0x298] sm:$0xff]  ;;  %v410_v1 = vld [vmem:[#allocation4 + $0x2a0] sm:$0xff]  ;;  %v347_v2 = vld [vmem:[#allocation4 + $0xa8] sm:$0xff] }
  0x3a   :  { %7650 = vmatpush3.bf16.msra.mxu0 %v7647_v16  ;;  %7675 = vmatpush3.bf16.msra.mxu1 %v7647_v16  ;;  %v411_v3 = vld [vmem:[#allocation4 + $0x2a8] sm:$0xff]  ;;  %v348_v4 = vld [vmem:[#allocation4 + $0xb0] sm:$0xff]  ;;  %v349_v6 = vld [vmem:[#allocation4 + $0xb8] sm:$0xff] }
  0x3b   :  { %7652 = vmatprep.subr.bf16.mxu0 %v7651_v19  ;;  %7668 = vmatprep.subr.bf16.mxu1 %v7651_v19  ;;  %v412_v5 = vld [vmem:[#allocation4 + $0x2b0] sm:$0xff]  ;;  %v413_v7 = vld [vmem:[#allocation4 + $0x2b8] sm:$0xff]  ;;  %v350_v8 = vld [vmem:[#allocation4 + $0xc0] sm:$0xff] }
  0x3c   :  { %v414_v9 = vld [vmem:[#allocation4 + $0x2c0] sm:$0xff]  ;;  %v351_v10 = vld [vmem:[#allocation4 + $0xc8] sm:$0xff]  ;;  %v352_v12 = vld [vmem:[#allocation4 + $0xd0] sm:$0xff] }
  0x3d   :  { %v415_v11 = vld [vmem:[#allocation4 + $0x2c8] sm:$0xff]  ;;  %v416_v13 = vld [vmem:[#allocation4 + $0x2d0] sm:$0xff]  ;;  %v353_v14 = vld [vmem:[#allocation4 + $0xd8] sm:$0xff] }
  0x3e   :  { %7654 = vmatpush3.bf16.msra.mxu0 %v7651_v19  ;;  %7676 = vmatpush3.bf16.msra.mxu1 %v7651_v19  ;;  %v417_v15 = vld [vmem:[#allocation4 + $0x2d8] sm:$0xff]  ;;  %v354_v16 = vld [vmem:[#allocation4 + $0xe0] sm:$0xff]  ;;  %v355_v18 = vld [vmem:[#allocation4 + $0xe8] sm:$0xff] }
  0x3f   :  { %7656 = vmatprep.subr.bf16.mxu0 %v7655_v22  ;;  %7669 = vmatprep.subr.bf16.mxu1 %v7655_v22  ;;  %v418_v17 = vld [vmem:[#allocation4 + $0x2e0] sm:$0xff]  ;;  %v419_v19 = vld [vmem:[#allocation4 + $0x2e8] sm:$0xff]  ;;  %v356_v20 = vld [vmem:[#allocation4 + $0xf0] sm:$0xff] }
  0x40   :  { %v420_v21 = vld [vmem:[#allocation4 + $0x2f0] sm:$0xff]  ;;  %v421_v23 = vld [vmem:[#allocation4 + $0x2f8] sm:$0xff]  ;;  %v358_v24 = vld [vmem:[#allocation4 + $0x100] sm:$0xff] }
  0x42   :  { %7658 = vmatpush3.bf16.msra.mxu0 %v7655_v22  ;;  %7677 = vmatpush3.bf16.msra.mxu1 %v7655_v22  ;;  %v357_v22 = vld [vmem:[#allocation4 + $0xf8] sm:$0xff] }
  0x43   :  { %7660 = vmatprep.subr.bf16.mxu0 %v7659_v25  ;;  %7670 = vmatprep.subr.bf16.mxu1 %v7659_v25 }
  0x46   :  { %7662 = vmatpush3.bf16.msra.mxu0 %v7659_v25  ;;  %7678 = vmatpush3.bf16.msra.mxu1 %v7659_v25  ;;  %v422_v25 = vld [vmem:[#allocation4 + $0x300] sm:$0xff] }
  0x49   :  { %7440 = vmatmul.mubr.f32.vlgmr.msra.gmra.mrb[0].mxu0 %v327_v26  ;;  %7536 = vmatmul.mubr.f32.vlgmr.msra.gmra.mrb[0].mxu1 %v391_v27  ;;  %v359_v26 = vld [vmem:[#allocation4 + $0x108] sm:$0xff] }
  0x4a   :  { %7442 = vmatprep.mubr.f32.mxu0 %v328_v28  ;;  %7538 = vmatprep.mubr.f32.mxu1 %v392_v29  ;;  %v423_v27 = vld [vmem:[#allocation4 + $0x308] sm:$0xff]  ;;  %v360_v28 = vld [vmem:[#allocation4 + $0x110] sm:$0xff] }
  0x4b   :  { %v424_v29 = vld [vmem:[#allocation4 + $0x310] sm:$0xff] }
  0x4d   :  { %7443 = vmatmul.mubr.f32.gmra.mrb[2].mxu0 %v329_v30  ;;  %7539 = vmatmul.mubr.f32.gmra.mrb[2].mxu1 %v393_v31  ;;  %v361_v30 = vld [vmem:[#allocation4 + $0x118] sm:$0xff] }
  0x4e   :  { %7445 = vmatprep.mubr.f32.mxu0 %v330_v32  ;;  %7541 = vmatprep.mubr.f32.mxu1 %v394_v33  ;;  %v425_v31 = vld [vmem:[#allocation4 + $0x318] sm:$0xff]  ;;  %v362_v32 = vld [vmem:[#allocation4 + $0x120] sm:$0xff] }
  0x4f   :  { %v426_v33 = vld [vmem:[#allocation4 + $0x320] sm:$0xff] }
  0x51   :  { %7446 = vmatmul.mubr.f32.gmra.mrb[4].mxu0 %v331_v34  ;;  %7542 = vmatmul.mubr.f32.gmra.mrb[4].mxu1 %v395_v35  ;;  %v363_v34 = vld [vmem:[#allocation4 + $0x128] sm:$0xff] }
  0x52   :  { %7448 = vmatprep.mubr.f32.mxu0 %v332_v36  ;;  %7544 = vmatprep.mubr.f32.mxu1 %v396_v37  ;;  %v427_v35 = vld [vmem:[#allocation4 + $0x328] sm:$0xff]  ;;  %v364_v36 = vld [vmem:[#allocation4 + $0x130] sm:$0xff] }
  0x53   :  { %v428_v37 = vld [vmem:[#allocation4 + $0x330] sm:$0xff] }
  0x55   :  { %7449 = vmatmul.mubr.f32.gmra.mrb[6].mxu0 %v333_v38  ;;  %7545 = vmatmul.mubr.f32.gmra.mrb[6].mxu1 %v397_v39  ;;  %v365_v38 = vld [vmem:[#allocation4 + $0x138] sm:$0xff] }
  0x56   :  { %7451 = vmatprep.mubr.f32.mxu0 %v334_v40  ;;  %7547 = vmatprep.mubr.f32.mxu1 %v398_v41  ;;  %v429_v39 = vld [vmem:[#allocation4 + $0x338] sm:$0xff]  ;;  %v366_v40 = vld [vmem:[#allocation4 + $0x140] sm:$0xff] }
  0x57   :  { %v430_v41 = vld [vmem:[#allocation4 + $0x340] sm:$0xff] }
  0x59   :  { %7452 = vmatmul.mubr.f32.gmra.mrb[8].mxu0 %v335_v42  ;;  %7548 = vmatmul.mubr.f32.gmra.mrb[8].mxu1 %v399_v43  ;;  %v367_v42 = vld [vmem:[#allocation4 + $0x148] sm:$0xff] }
  0x5a   :  { %7454 = vmatprep.mubr.f32.mxu0 %v336_v44  ;;  %7550 = vmatprep.mubr.f32.mxu1 %v400_v45  ;;  %v431_v43 = vld [vmem:[#allocation4 + $0x348] sm:$0xff]  ;;  %v368_v44 = vld [vmem:[#allocation4 + $0x150] sm:$0xff] }
  0x5b   :  { %v432_v45 = vld [vmem:[#allocation4 + $0x350] sm:$0xff] }
  0x5d   :  { %7455 = vmatmul.mubr.f32.gmra.mrb[10].mxu0 %v337_v46  ;;  %7551 = vmatmul.mubr.f32.gmra.mrb[10].mxu1 %v401_v47  ;;  %v369_v46 = vld [vmem:[#allocation4 + $0x158] sm:$0xff] }
  0x5e   :  { %7457 = vmatprep.mubr.f32.mxu0 %v338_v48  ;;  %7553 = vmatprep.mubr.f32.mxu1 %v402_v49  ;;  %v433_v47 = vld [vmem:[#allocation4 + $0x358] sm:$0xff]  ;;  %v370_v48 = vld [vmem:[#allocation4 + $0x160] sm:$0xff] }
  0x5f   :  { %v434_v49 = vld [vmem:[#allocation4 + $0x360] sm:$0xff] }
  0x61   :  { %7458 = vmatmul.mubr.f32.gmra.mrb[12].mxu0 %v339_v50  ;;  %7554 = vmatmul.mubr.f32.gmra.mrb[12].mxu1 %v403_v51  ;;  %v371_v50 = vld [vmem:[#allocation4 + $0x168] sm:$0xff] }
  0x62   :  { %7460 = vmatprep.mubr.f32.mxu0 %v340_v52  ;;  %7556 = vmatprep.mubr.f32.mxu1 %v404_v53  ;;  %v435_v51 = vld [vmem:[#allocation4 + $0x368] sm:$0xff]  ;;  %v372_v52 = vld [vmem:[#allocation4 + $0x170] sm:$0xff] }
  0x63   :  { %v436_v53 = vld [vmem:[#allocation4 + $0x370] sm:$0xff] }
  0x65   :  { %7461 = vmatmul.mubr.f32.gmra.mrb[14].mxu0 %v341_v54  ;;  %7557 = vmatmul.mubr.f32.gmra.mrb[14].mxu1 %v405_v55  ;;  %v373_v54 = vld [vmem:[#allocation4 + $0x178] sm:$0xff] }
  0x66   :  { %7463 = vmatprep.mubr.f32.mxu0 %v342_v56  ;;  %7559 = vmatprep.mubr.f32.mxu1 %v406_v57  ;;  %v437_v55 = vld [vmem:[#allocation4 + $0x378] sm:$0xff]  ;;  %v374_v56 = vld [vmem:[#allocation4 + $0x180] sm:$0xff] }
  0x67   :  { %v438_v57 = vld [vmem:[#allocation4 + $0x380] sm:$0xff] }
  0x69   :  { %7464 = vmatmul.mubr.f32.gmra.mrb[16].mxu0 %v343_v58  ;;  %7560 = vmatmul.mubr.f32.gmra.mrb[16].mxu1 %v407_v59  ;;  %v375_v58 = vld [vmem:[#allocation4 + $0x188] sm:$0xff] }
  0x6a   :  { %7466 = vmatprep.mubr.f32.mxu0 %v344_v60  ;;  %7562 = vmatprep.mubr.f32.mxu1 %v408_v61  ;;  %v439_v59 = vld [vmem:[#allocation4 + $0x388] sm:$0xff]  ;;  %v376_v60 = vld [vmem:[#allocation4 + $0x190] sm:$0xff] }
  0x6b   :  { %v440_v61 = vld [vmem:[#allocation4 + $0x390] sm:$0xff] }
  0x6d   :  { %7467 = vmatmul.mubr.f32.gmra.mrb[18].mxu0 %v345_v62  ;;  %7563 = vmatmul.mubr.f32.gmra.mrb[18].mxu1 %v409_v63  ;;  %v377_v62 = vld [vmem:[#allocation4 + $0x198] sm:$0xff] }
  0x6e   :  { %7469 = vmatprep.mubr.f32.mxu0 %v346_v0  ;;  %7565 = vmatprep.mubr.f32.mxu1 %v410_v1  ;;  %v441_v63 = vld [vmem:[#allocation4 + $0x398] sm:$0xff]  ;;  %v378_v0 = vld [vmem:[#allocation4 + $0x1a0] sm:$0xff] }
  0x6f   :  { %v442_v1 = vld [vmem:[#allocation4 + $0x3a0] sm:$0xff] }
  0x71   :  { %7470 = vmatmul.mubr.f32.gmra.mrb[20].mxu0 %v347_v2  ;;  %7566 = vmatmul.mubr.f32.gmra.mrb[20].mxu1 %v411_v3  ;;  %v379_v2 = vld [vmem:[#allocation4 + $0x1a8] sm:$0xff] }
  0x72   :  { %7472 = vmatprep.mubr.f32.mxu0 %v348_v4  ;;  %7568 = vmatprep.mubr.f32.mxu1 %v412_v5  ;;  %v443_v3 = vld [vmem:[#allocation4 + $0x3a8] sm:$0xff]  ;;  %v380_v4 = vld [vmem:[#allocation4 + $0x1b0] sm:$0xff] }
  0x73   :  { %v444_v5 = vld [vmem:[#allocation4 + $0x3b0] sm:$0xff] }
  0x75   :  { %7473 = vmatmul.mubr.f32.gmra.mrb[22].mxu0 %v349_v6  ;;  %7569 = vmatmul.mubr.f32.gmra.mrb[22].mxu1 %v413_v7  ;;  %v381_v6 = vld [vmem:[#allocation4 + $0x1b8] sm:$0xff] }
  0x76   :  { %7475 = vmatprep.mubr.f32.mxu0 %v350_v8  ;;  %7571 = vmatprep.mubr.f32.mxu1 %v414_v9  ;;  %v445_v7 = vld [vmem:[#allocation4 + $0x3b8] sm:$0xff]  ;;  %v382_v8 = vld [vmem:[#allocation4 + $0x1c0] sm:$0xff] }
  0x77   :  { %v446_v9 = vld [vmem:[#allocation4 + $0x3c0] sm:$0xff] }
  0x79   :  { %7476 = vmatmul.mubr.f32.gmra.mrb[24].mxu0 %v351_v10  ;;  %7572 = vmatmul.mubr.f32.gmra.mrb[24].mxu1 %v415_v11  ;;  %v383_v10 = vld [vmem:[#allocation4 + $0x1c8] sm:$0xff] }
  0x7a   :  { %7478 = vmatprep.mubr.f32.mxu0 %v352_v12  ;;  %7574 = vmatprep.mubr.f32.mxu1 %v416_v13  ;;  %v447_v11 = vld [vmem:[#allocation4 + $0x3c8] sm:$0xff]  ;;  %v384_v12 = vld [vmem:[#allocation4 + $0x1d0] sm:$0xff] }
  0x7b   :  { %v448_v13 = vld [vmem:[#allocation4 + $0x3d0] sm:$0xff] }
  0x7d   :  { %7479 = vmatmul.mubr.f32.gmra.mrb[26].mxu0 %v353_v14  ;;  %7575 = vmatmul.mubr.f32.gmra.mrb[26].mxu1 %v417_v15  ;;  %v385_v14 = vld [vmem:[#allocation4 + $0x1d8] sm:$0xff] }
  0x7e   :  { %7481 = vmatprep.mubr.f32.mxu0 %v354_v16  ;;  %7577 = vmatprep.mubr.f32.mxu1 %v418_v17  ;;  %v449_v15 = vld [vmem:[#allocation4 + $0x3d8] sm:$0xff]  ;;  %v386_v16 = vld [vmem:[#allocation4 + $0x1e0] sm:$0xff] }
  0x7f   :  { %v450_v17 = vld [vmem:[#allocation4 + $0x3e0] sm:$0xff] }
  0x81   :  { %7482 = vmatmul.mubr.f32.gmra.mrb[28].mxu0 %v355_v18  ;;  %7578 = vmatmul.mubr.f32.gmra.mrb[28].mxu1 %v419_v19  ;;  %v387_v18 = vld [vmem:[#allocation4 + $0x1e8] sm:$0xff] }
  0x82   :  { %7484 = vmatprep.mubr.f32.mxu0 %v356_v20  ;;  %7580 = vmatprep.mubr.f32.mxu1 %v420_v21  ;;  %v451_v19 = vld [vmem:[#allocation4 + $0x3e8] sm:$0xff]  ;;  %v388_v20 = vld [vmem:[#allocation4 + $0x1f0] sm:$0xff] }
  0x83   :  { %v452_v21 = vld [vmem:[#allocation4 + $0x3f0] sm:$0xff] }
  0x85   :  { %7485 = vmatmul.mubr.f32.gmra.mrb[30].mxu0 %v357_v22  ;;  %7581 = vmatmul.mubr.f32.gmra.mrb[30].mxu1 %v421_v23  ;;  %v389_v22 = vld [vmem:[#allocation4 + $0x1f8] sm:$0xff] }
  0x86   :  { %7487 = vmatprep.mubr.f32.mxu0 %v358_v24  ;;  %7583 = vmatprep.mubr.f32.mxu1 %v422_v25  ;;  %v453_v23 = vld [vmem:[#allocation4 + $0x3f8] sm:$0xff]  ;;  %v7815_v24 = vld [vmem:[%s14293_s2] ss:$0 sm:$0xff] }
  0x89   :  { %7488 = vmatmul.mubr.f32.gmra.mrb[32].mxu0 %v359_v26  ;;  %7584 = vmatmul.mubr.f32.gmra.mrb[32].mxu1 %v423_v27 }
  0x8a   :  { %7490 = vmatprep.mubr.f32.mxu0 %v360_v28  ;;  %7586 = vmatprep.mubr.f32.mxu1 %v424_v29 }
  0x8d   :  { %7491 = vmatmul.mubr.f32.gmra.mrb[34].mxu0 %v361_v30  ;;  %7587 = vmatmul.mubr.f32.gmra.mrb[34].mxu1 %v425_v31 }
  0x8e   :  { %7493 = vmatprep.mubr.f32.mxu0 %v362_v32  ;;  %7589 = vmatprep.mubr.f32.mxu1 %v426_v33 }
  0x91   :  { %7494 = vmatmul.mubr.f32.gmra.mrb[36].mxu0 %v363_v34  ;;  %7590 = vmatmul.mubr.f32.gmra.mrb[36].mxu1 %v427_v35 }
  0x92   :  { %7496 = vmatprep.mubr.f32.mxu0 %v364_v36  ;;  %7592 = vmatprep.mubr.f32.mxu1 %v428_v37 }
  0x95   :  { %7497 = vmatmul.mubr.f32.gmra.mrb[38].mxu0 %v365_v38  ;;  %7593 = vmatmul.mubr.f32.gmra.mrb[38].mxu1 %v429_v39 }
  0x96   :  { %7499 = vmatprep.mubr.f32.mxu0 %v366_v40  ;;  %7595 = vmatprep.mubr.f32.mxu1 %v430_v41 }
  0x99   :  { %7500 = vmatmul.mubr.f32.gmra.mrb[40].mxu0 %v367_v42  ;;  %7596 = vmatmul.mubr.f32.gmra.mrb[40].mxu1 %v431_v43  ;;  %v7765_v43 = vmov inf  }
  0x9a   :  { %7502 = vmatprep.mubr.f32.mxu0 %v368_v44  ;;  %7598 = vmatprep.mubr.f32.mxu1 %v432_v45  ;;  %113 = vst.msk [vmem:[#allocation2 + $0x208] sm:$0xff] %vm47_vm0, %v7765_v43  ;;  %48 = vst.msk [vmem:[#allocation2] sm:$0xff] %vm47_vm0, %v7765_v43 }
  0x9b   :  { %49 = vst.msk [vmem:[#allocation2 + $0x8] sm:$0xff] %vm47_vm0, %v7765_v43  ;;  %50 = vst.msk [vmem:[#allocation2 + $0x10] sm:$0xff] %vm47_vm0, %v7765_v43 }
  0x9c   :  { %51 = vst.msk [vmem:[#allocation2 + $0x18] sm:$0xff] %vm47_vm0, %v7765_v43  ;;  %52 = vst.msk [vmem:[#allocation2 + $0x20] sm:$0xff] %vm47_vm0, %v7765_v43 }
  0x9d   :  { %7503 = vmatmul.mubr.f32.gmra.mrb[42].mxu0 %v369_v46  ;;  %7599 = vmatmul.mubr.f32.gmra.mrb[42].mxu1 %v433_v47  ;;  %53 = vst.msk [vmem:[#allocation2 + $0x28] sm:$0xff] %vm47_vm0, %v7765_v43  ;;  %54 = vst.msk [vmem:[#allocation2 + $0x30] sm:$0xff] %vm47_vm0, %v7765_v43 }
  0x9e   :  { %7505 = vmatprep.mubr.f32.mxu0 %v370_v48  ;;  %7601 = vmatprep.mubr.f32.mxu1 %v434_v49  ;;  %55 = vst.msk [vmem:[#allocation2 + $0x38] sm:$0xff] %vm47_vm0, %v7765_v43  ;;  %56 = vst.msk [vmem:[#allocation2 + $0x40] sm:$0xff] %vm47_vm0, %v7765_v43 }
  0x9f   :  { %57 = vst.msk [vmem:[#allocation2 + $0x48] sm:$0xff] %vm47_vm0, %v7765_v43  ;;  %58 = vst.msk [vmem:[#allocation2 + $0x50] sm:$0xff] %vm47_vm0, %v7765_v43 }
  0xa0   :  { %59 = vst.msk [vmem:[#allocation2 + $0x58] sm:$0xff] %vm47_vm0, %v7765_v43  ;;  %60 = vst.msk [vmem:[#allocation2 + $0x60] sm:$0xff] %vm47_vm0, %v7765_v43 }
  0xa1   :  { %7506 = vmatmul.mubr.f32.gmra.mrb[44].mxu0 %v371_v50  ;;  %7602 = vmatmul.mubr.f32.gmra.mrb[44].mxu1 %v435_v51  ;;  %61 = vst.msk [vmem:[#allocation2 + $0x68] sm:$0xff] %vm47_vm0, %v7765_v43  ;;  %62 = vst.msk [vmem:[#allocation2 + $0x70] sm:$0xff] %vm47_vm0, %v7765_v43 }
  0xa2   :  { %7508 = vmatprep.mubr.f32.mxu0 %v372_v52  ;;  %7604 = vmatprep.mubr.f32.mxu1 %v436_v53  ;;  %63 = vst.msk [vmem:[#allocation2 + $0x78] sm:$0xff] %vm47_vm0, %v7765_v43  ;;  %64 = vst.msk [vmem:[#allocation2 + $0x80] sm:$0xff] %vm47_vm0, %v7765_v43 }
  0xa3   :  { %65 = vst.msk [vmem:[#allocation2 + $0x88] sm:$0xff] %vm47_vm0, %v7765_v43  ;;  %66 = vst.msk [vmem:[#allocation2 + $0x90] sm:$0xff] %vm47_vm0, %v7765_v43 }
  0xa4   :  { %67 = vst.msk [vmem:[#allocation2 + $0x98] sm:$0xff] %vm47_vm0, %v7765_v43  ;;  %68 = vst.msk [vmem:[#allocation2 + $0xa0] sm:$0xff] %vm47_vm0, %v7765_v43 }
  0xa5   :  { %7509 = vmatmul.mubr.f32.gmra.mrb[46].mxu0 %v373_v54  ;;  %7605 = vmatmul.mubr.f32.gmra.mrb[46].mxu1 %v437_v55  ;;  %69 = vst.msk [vmem:[#allocation2 + $0xa8] sm:$0xff] %vm47_vm0, %v7765_v43  ;;  %70 = vst.msk [vmem:[#allocation2 + $0xb0] sm:$0xff] %vm47_vm0, %v7765_v43 }
  0xa6   :  { %7511 = vmatprep.mubr.f32.mxu0 %v374_v56  ;;  %7607 = vmatprep.mubr.f32.mxu1 %v438_v57  ;;  %71 = vst.msk [vmem:[#allocation2 + $0xb8] sm:$0xff] %vm47_vm0, %v7765_v43  ;;  %72 = vst.msk [vmem:[#allocation2 + $0xc0] sm:$0xff] %vm47_vm0, %v7765_v43 }
  0xa7   :  { %73 = vst.msk [vmem:[#allocation2 + $0xc8] sm:$0xff] %vm47_vm0, %v7765_v43  ;;  %74 = vst.msk [vmem:[#allocation2 + $0xd0] sm:$0xff] %vm47_vm0, %v7765_v43 }
  0xa8   :  { %75 = vst.msk [vmem:[#allocation2 + $0xd8] sm:$0xff] %vm47_vm0, %v7765_v43  ;;  %76 = vst.msk [vmem:[#allocation2 + $0xe0] sm:$0xff] %vm47_vm0, %v7765_v43 }
  0xa9   :  { %7512 = vmatmul.mubr.f32.gmra.mrb[48].mxu0 %v375_v58  ;;  %7608 = vmatmul.mubr.f32.gmra.mrb[48].mxu1 %v439_v59  ;;  %77 = vst.msk [vmem:[#allocation2 + $0xe8] sm:$0xff] %vm47_vm0, %v7765_v43  ;;  %78 = vst.msk [vmem:[#allocation2 + $0xf0] sm:$0xff] %vm47_vm0, %v7765_v43 }
  0xaa   :  { %7514 = vmatprep.mubr.f32.mxu0 %v376_v60  ;;  %7610 = vmatprep.mubr.f32.mxu1 %v440_v61  ;;  %79 = vst.msk [vmem:[#allocation2 + $0xf8] sm:$0xff] %vm47_vm0, %v7765_v43  ;;  %80 = vst.msk [vmem:[#allocation2 + $0x100] sm:$0xff] %vm47_vm0, %v7765_v43 }
  0xab   :  { %81 = vst.msk [vmem:[#allocation2 + $0x108] sm:$0xff] %vm47_vm0, %v7765_v43  ;;  %82 = vst.msk [vmem:[#allocation2 + $0x110] sm:$0xff] %vm47_vm0, %v7765_v43 }
  0xac   :  { %83 = vst.msk [vmem:[#allocation2 + $0x118] sm:$0xff] %vm47_vm0, %v7765_v43  ;;  %84 = vst.msk [vmem:[#allocation2 + $0x120] sm:$0xff] %vm47_vm0, %v7765_v43 }
  0xad   :  { %7515 = vmatmul.mubr.f32.gmra.mrb[50].mxu0 %v377_v62  ;;  %7611 = vmatmul.mubr.f32.gmra.mrb[50].mxu1 %v441_v63  ;;  %85 = vst.msk [vmem:[#allocation2 + $0x128] sm:$0xff] %vm47_vm0, %v7765_v43  ;;  %86 = vst.msk [vmem:[#allocation2 + $0x130] sm:$0xff] %vm47_vm0, %v7765_v43 }
  0xae   :  { %7517 = vmatprep.mubr.f32.mxu0 %v378_v0  ;;  %7613 = vmatprep.mubr.f32.mxu1 %v442_v1  ;;  %87 = vst.msk [vmem:[#allocation2 + $0x138] sm:$0xff] %vm47_vm0, %v7765_v43  ;;  %88 = vst.msk [vmem:[#allocation2 + $0x140] sm:$0xff] %vm47_vm0, %v7765_v43 }
  0xaf   :  { %89 = vst.msk [vmem:[#allocation2 + $0x148] sm:$0xff] %vm47_vm0, %v7765_v43  ;;  %90 = vst.msk [vmem:[#allocation2 + $0x150] sm:$0xff] %vm47_vm0, %v7765_v43 }
  0xb0   :  { %91 = vst.msk [vmem:[#allocation2 + $0x158] sm:$0xff] %vm47_vm0, %v7765_v43  ;;  %92 = vst.msk [vmem:[#allocation2 + $0x160] sm:$0xff] %vm47_vm0, %v7765_v43 }
  0xb1   :  { %7518 = vmatmul.mubr.f32.gmra.mrb[52].mxu0 %v379_v2  ;;  %7614 = vmatmul.mubr.f32.gmra.mrb[52].mxu1 %v443_v3  ;;  %93 = vst.msk [vmem:[#allocation2 + $0x168] sm:$0xff] %vm47_vm0, %v7765_v43  ;;  %94 = vst.msk [vmem:[#allocation2 + $0x170] sm:$0xff] %vm47_vm0, %v7765_v43 }
  0xb2   :  { %7520 = vmatprep.mubr.f32.mxu0 %v380_v4  ;;  %7616 = vmatprep.mubr.f32.mxu1 %v444_v5  ;;  %95 = vst.msk [vmem:[#allocation2 + $0x178] sm:$0xff] %vm47_vm0, %v7765_v43  ;;  %96 = vst.msk [vmem:[#allocation2 + $0x180] sm:$0xff] %vm47_vm0, %v7765_v43 }
  0xb3   :  { %97 = vst.msk [vmem:[#allocation2 + $0x188] sm:$0xff] %vm47_vm0, %v7765_v43  ;;  %98 = vst.msk [vmem:[#allocation2 + $0x190] sm:$0xff] %vm47_vm0, %v7765_v43 }
  0xb4   :  { %99 = vst.msk [vmem:[#allocation2 + $0x198] sm:$0xff] %vm47_vm0, %v7765_v43  ;;  %100 = vst.msk [vmem:[#allocation2 + $0x1a0] sm:$0xff] %vm47_vm0, %v7765_v43 }
  0xb5   :  { %7521 = vmatmul.mubr.f32.gmra.mrb[54].mxu0 %v381_v6  ;;  %7617 = vmatmul.mubr.f32.gmra.mrb[54].mxu1 %v445_v7  ;;  %101 = vst.msk [vmem:[#allocation2 + $0x1a8] sm:$0xff] %vm47_vm0, %v7765_v43  ;;  %102 = vst.msk [vmem:[#allocation2 + $0x1b0] sm:$0xff] %vm47_vm0, %v7765_v43 }
  0xb6   :  { %7523 = vmatprep.mubr.f32.mxu0 %v382_v8  ;;  %7619 = vmatprep.mubr.f32.mxu1 %v446_v9  ;;  %103 = vst.msk [vmem:[#allocation2 + $0x1b8] sm:$0xff] %vm47_vm0, %v7765_v43  ;;  %104 = vst.msk [vmem:[#allocation2 + $0x1c0] sm:$0xff] %vm47_vm0, %v7765_v43 }
  0xb7   :  { %105 = vst.msk [vmem:[#allocation2 + $0x1c8] sm:$0xff] %vm47_vm0, %v7765_v43  ;;  %106 = vst.msk [vmem:[#allocation2 + $0x1d0] sm:$0xff] %vm47_vm0, %v7765_v43 }
  0xb8   :  { %107 = vst.msk [vmem:[#allocation2 + $0x1d8] sm:$0xff] %vm47_vm0, %v7765_v43  ;;  %108 = vst.msk [vmem:[#allocation2 + $0x1e0] sm:$0xff] %vm47_vm0, %v7765_v43 }
  0xb9   :  { %7524 = vmatmul.mubr.f32.gmra.mrb[56].mxu0 %v383_v10  ;;  %7620 = vmatmul.mubr.f32.gmra.mrb[56].mxu1 %v447_v11  ;;  %109 = vst.msk [vmem:[#allocation2 + $0x1e8] sm:$0xff] %vm47_vm0, %v7765_v43  ;;  %110 = vst.msk [vmem:[#allocation2 + $0x1f0] sm:$0xff] %vm47_vm0, %v7765_v43 }
  0xba   :  { %7526 = vmatprep.mubr.f32.mxu0 %v384_v12  ;;  %7622 = vmatprep.mubr.f32.mxu1 %v448_v13  ;;  %111 = vst.msk [vmem:[#allocation2 + $0x1f8] sm:$0xff] %vm47_vm0, %v7765_v43  ;;  %112 = vst.msk [vmem:[#allocation2 + $0x200] sm:$0xff] %vm47_vm0, %v7765_v43 }
  0xbb   :  { %114 = vst.msk [vmem:[#allocation2 + $0x210] sm:$0xff] %vm47_vm0, %v7765_v43  ;;  %115 = vst.msk [vmem:[#allocation2 + $0x218] sm:$0xff] %vm47_vm0, %v7765_v43 }
  0xbc   :  { %116 = vst.msk [vmem:[#allocation2 + $0x220] sm:$0xff] %vm47_vm0, %v7765_v43  ;;  %117 = vst.msk [vmem:[#allocation2 + $0x228] sm:$0xff] %vm47_vm0, %v7765_v43 }
  0xbd   :  { %7527 = vmatmul.mubr.f32.gmra.mrb[58].mxu0 %v385_v14  ;;  %7623 = vmatmul.mubr.f32.gmra.mrb[58].mxu1 %v449_v15  ;;  %118 = vst.msk [vmem:[#allocation2 + $0x230] sm:$0xff] %vm47_vm0, %v7765_v43  ;;  %119 = vst.msk [vmem:[#allocation2 + $0x238] sm:$0xff] %vm47_vm0, %v7765_v43 }
  0xbe   :  { %7529 = vmatprep.mubr.f32.mxu0 %v386_v16  ;;  %7625 = vmatprep.mubr.f32.mxu1 %v450_v17  ;;  %120 = vst.msk [vmem:[#allocation2 + $0x240] sm:$0xff] %vm47_vm0, %v7765_v43  ;;  %121 = vst.msk [vmem:[#allocation2 + $0x248] sm:$0xff] %vm47_vm0, %v7765_v43 }
  0xbf   :  { %122 = vst.msk [vmem:[#allocation2 + $0x250] sm:$0xff] %vm47_vm0, %v7765_v43  ;;  %123 = vst.msk [vmem:[#allocation2 + $0x258] sm:$0xff] %vm47_vm0, %v7765_v43 }
  0xc0   :  { %124 = vst.msk [vmem:[#allocation2 + $0x260] sm:$0xff] %vm47_vm0, %v7765_v43  ;;  %125 = vst.msk [vmem:[#allocation2 + $0x268] sm:$0xff] %vm47_vm0, %v7765_v43 }
  0xc1   :  { %7530 = vmatmul.mubr.f32.gmra.mrb[60].mxu0 %v387_v18  ;;  %7626 = vmatmul.mubr.f32.gmra.mrb[60].mxu1 %v451_v19  ;;  %126 = vst.msk [vmem:[#allocation2 + $0x270] sm:$0xff] %vm47_vm0, %v7765_v43  ;;  %127 = vst.msk [vmem:[#allocation2 + $0x278] sm:$0xff] %vm47_vm0, %v7765_v43 }
  0xc2   :  { %7532 = vmatprep.mubr.f32.mxu0 %v388_v20  ;;  %7628 = vmatprep.mubr.f32.mxu1 %v452_v21  ;;  %128 = vst.msk [vmem:[#allocation2 + $0x280] sm:$0xff] %vm47_vm0, %v7765_v43  ;;  %129 = vst.msk [vmem:[#allocation2 + $0x288] sm:$0xff] %vm47_vm0, %v7765_v43 }
  0xc3   :  { %130 = vst.msk [vmem:[#allocation2 + $0x290] sm:$0xff] %vm47_vm0, %v7765_v43  ;;  %131 = vst.msk [vmem:[#allocation2 + $0x298] sm:$0xff] %vm47_vm0, %v7765_v43 }
  0xc4   :  { %132 = vst.msk [vmem:[#allocation2 + $0x2a0] sm:$0xff] %vm47_vm0, %v7765_v43  ;;  %133 = vst.msk [vmem:[#allocation2 + $0x2a8] sm:$0xff] %vm47_vm0, %v7765_v43 }
  0xc5   :  { %7533 = vmatmul.mubr.f32.gmra.mrb[62].mxu0 %v389_v22  ;;  %7629 = vmatmul.mubr.f32.gmra.mrb[62].mxu1 %v453_v23  ;;  %134 = vst.msk [vmem:[#allocation2 + $0x2b0] sm:$0xff] %vm47_vm0, %v7765_v43  ;;  %135 = vst.msk [vmem:[#allocation2 + $0x2b8] sm:$0xff] %vm47_vm0, %v7765_v43 }
  0xc6   :  { %136 = vst.msk [vmem:[#allocation2 + $0x2c0] sm:$0xff] %vm47_vm0, %v7765_v43  ;;  %137 = vst.msk [vmem:[#allocation2 + $0x2c8] sm:$0xff] %vm47_vm0, %v7765_v43 }
  0xc7   :  { %138 = vst.msk [vmem:[#allocation2 + $0x2d0] sm:$0xff] %vm47_vm0, %v7765_v43  ;;  %139 = vst.msk [vmem:[#allocation2 + $0x2d8] sm:$0xff] %vm47_vm0, %v7765_v43 }
  0xc8   :  { %140 = vst.msk [vmem:[#allocation2 + $0x2e0] sm:$0xff] %vm47_vm0, %v7765_v43  ;;  %141 = vst.msk [vmem:[#allocation2 + $0x2e8] sm:$0xff] %vm47_vm0, %v7765_v43 }
  0xc9   :  { %142 = vst.msk [vmem:[#allocation2 + $0x2f0] sm:$0xff] %vm47_vm0, %v7765_v43  ;;  %143 = vst.msk [vmem:[#allocation2 + $0x2f8] sm:$0xff] %vm47_vm0, %v7765_v43 }
  0xca   :  { %144 = vst.msk [vmem:[#allocation2 + $0x300] sm:$0xff] %vm47_vm0, %v7765_v43  ;;  %145 = vst.msk [vmem:[#allocation2 + $0x308] sm:$0xff] %vm47_vm0, %v7765_v43 }
  0xcb   :  { %146 = vst.msk [vmem:[#allocation2 + $0x310] sm:$0xff] %vm47_vm0, %v7765_v43  ;;  %147 = vst.msk [vmem:[#allocation2 + $0x318] sm:$0xff] %vm47_vm0, %v7765_v43 }
  0xcc   :  { %148 = vst.msk [vmem:[#allocation2 + $0x320] sm:$0xff] %vm47_vm0, %v7765_v43  ;;  %149 = vst.msk [vmem:[#allocation2 + $0x328] sm:$0xff] %vm47_vm0, %v7765_v43 }
  0xcd   :  { %150 = vst.msk [vmem:[#allocation2 + $0x330] sm:$0xff] %vm47_vm0, %v7765_v43  ;;  %151 = vst.msk [vmem:[#allocation2 + $0x338] sm:$0xff] %vm47_vm0, %v7765_v43 }
  0xce   :  { %152 = vst.msk [vmem:[#allocation2 + $0x340] sm:$0xff] %vm47_vm0, %v7765_v43  ;;  %153 = vst.msk [vmem:[#allocation2 + $0x348] sm:$0xff] %vm47_vm0, %v7765_v43 }
  0xcf   :  { %154 = vst.msk [vmem:[#allocation2 + $0x350] sm:$0xff] %vm47_vm0, %v7765_v43  ;;  %155 = vst.msk [vmem:[#allocation2 + $0x358] sm:$0xff] %vm47_vm0, %v7765_v43 }
  0xd0   :  { %156 = vst.msk [vmem:[#allocation2 + $0x360] sm:$0xff] %vm47_vm0, %v7765_v43  ;;  %157 = vst.msk [vmem:[#allocation2 + $0x368] sm:$0xff] %vm47_vm0, %v7765_v43 }
  0xd1   :  { %158 = vst.msk [vmem:[#allocation2 + $0x370] sm:$0xff] %vm47_vm0, %v7765_v43  ;;  %159 = vst.msk [vmem:[#allocation2 + $0x378] sm:$0xff] %vm47_vm0, %v7765_v43 }
  0xd2   :  { %160 = vst.msk [vmem:[#allocation2 + $0x380] sm:$0xff] %vm47_vm0, %v7765_v43  ;;  %161 = vst.msk [vmem:[#allocation2 + $0x388] sm:$0xff] %vm47_vm0, %v7765_v43 }
  0xd3   :  { %162 = vst.msk [vmem:[#allocation2 + $0x390] sm:$0xff] %vm47_vm0, %v7765_v43  ;;  %163 = vst.msk [vmem:[#allocation2 + $0x398] sm:$0xff] %vm47_vm0, %v7765_v43 }
  0xd4   :  { %164 = vst.msk [vmem:[#allocation2 + $0x3a0] sm:$0xff] %vm47_vm0, %v7765_v43  ;;  %165 = vst.msk [vmem:[#allocation2 + $0x3a8] sm:$0xff] %vm47_vm0, %v7765_v43 }
  0xd5   :  { %166 = vst.msk [vmem:[#allocation2 + $0x3b0] sm:$0xff] %vm47_vm0, %v7765_v43  ;;  %167 = vst.msk [vmem:[#allocation2 + $0x3b8] sm:$0xff] %vm47_vm0, %v7765_v43 }
  0xd6   :  { %168 = vst.msk [vmem:[#allocation2 + $0x3c0] sm:$0xff] %vm47_vm0, %v7765_v43  ;;  %169 = vst.msk [vmem:[#allocation2 + $0x3c8] sm:$0xff] %vm47_vm0, %v7765_v43 }
  0xd7   :  { %170 = vst.msk [vmem:[#allocation2 + $0x3d0] sm:$0xff] %vm47_vm0, %v7765_v43  ;;  %171 = vst.msk [vmem:[#allocation2 + $0x3d8] sm:$0xff] %vm47_vm0, %v7765_v43 }
  0xd8   :  { %172 = vst.msk [vmem:[#allocation2 + $0x3e0] sm:$0xff] %vm47_vm0, %v7765_v43  ;;  %173 = vst.msk [vmem:[#allocation2 + $0x3e8] sm:$0xff] %vm47_vm0, %v7765_v43 }
  0xd9   :  { %174 = vst.msk [vmem:[#allocation2 + $0x3f0] sm:$0xff] %vm47_vm0, %v7765_v43  ;;  %175 = vst.msk [vmem:[#allocation2 + $0x3f8] sm:$0xff] %vm47_vm0, %v7765_v43 }
 0x11c   :  { %v7441_v25 = vpop.f32.mrb[0].mxu0  ;;  %v7537_v26 = vpop.f32.mrb[0].mxu1 }
 0x11d   :  { %v7818_v27 = vsub.f32 %v7815_v24, %v7441_v25  ;;  %v7821_v28 = vsub.f32 %v7815_v24, %v7537_v26  ;;  %v520_v29 = vpop.f32.mrb[1].mxu0  ;;  %v840_v30 = vpop.f32.mrb[1].mxu1 }
 0x11e   :  { %v7826_v33 = vsub.f32 %v7815_v24, %v520_v29  ;;  %v7836_v37 = vsub.f32 %v7815_v24, %v840_v30 }
 0x11f   :  { %15079 = vst [vmem:[#allocation13_spill] sm:$0xff] %v7818_v27  ;;  %15080 = vst [vmem:[#allocation14_spill] sm:$0xff] %v7821_v28  ;;  %1423 = vmin.xlane.f32.xlu1 %v7821_v28  ;;  %1295 = vmin.xlane.f32.xlu0 %v7818_v27 }
 0x120   :  { %v7444_v31 = vpop.f32.mrb[2].mxu0  ;;  %v7540_v32 = vpop.f32.mrb[2].mxu1  ;;  %15081 = vst [vmem:[#allocation15_spill] sm:$0xff] %v7826_v33  ;;  %15083 = vst [vmem:[#allocation17_spill] sm:$0xff] %v7836_v37 }
 0x121   :  { %v7829_v34 = vsub.f32 %v7815_v24, %v7444_v31  ;;  %v7831_v35 = vpop.f32.mrb[3].mxu1  ;;  %v7833_v36 = vpop.f32.mrb[3].mxu0  ;;  %v7841_v38 = vsub.f32 %v7815_v24, %v7540_v32 }
 0x122   :  { %v8109_v44 = vsub.f32 %v7815_v24, %v7831_v35  ;;  %v8115_v45 = vsub.f32 %v7815_v24, %v7833_v36 }
 0x123   :  { %15082 = vst [vmem:[#allocation16_spill] sm:$0xff] %v7829_v34  ;;  %1293 = vmin.xlane.f32.xlu0 %v7826_v33  ;;  %1299 = vmin.xlane.f32.xlu1 %v7829_v34  ;;  %15084 = vst [vmem:[#allocation18_spill] sm:$0xff] %v7841_v38 }
 0x124   :  { %v7843_v39 = vpop.f32.mrb[4].mxu0  ;;  %v7845_v40 = vpop.f32.mrb[4].mxu1  ;;  %15085 = vst [vmem:[#allocation19_spill] sm:$0xff] %v8109_v44  ;;  %15086 = vst [vmem:[#allocation20_spill] sm:$0xff] %v8115_v45 }
 0x125   :  { %v7847_v41 = vpop.f32.mrb[5].mxu0  ;;  %v7849_v42 = vpop.f32.mrb[5].mxu1  ;;  %v8119_v50 = vsub.f32 %v7815_v24, %v7843_v39  ;;  %v8129_v56 = vsub.f32 %v7815_v24, %v7845_v40 }
 0x126   :  { %v8125_v51 = vsub.f32 %v7815_v24, %v7847_v41  ;;  %v8133_v57 = vsub.f32 %v7815_v24, %v7849_v42 }
 0x127   :  { %1421 = vmin.xlane.f32.xlu0 %v7836_v37  ;;  %1427 = vmin.xlane.f32.xlu1 %v7841_v38  ;;  %15087 = vst [vmem:[#allocation21_spill] sm:$0xff] %v8119_v50  ;;  %15089 = vst [vmem:[#allocation23_spill] sm:$0xff] %v8129_v56 }
 0x128   :  { %v7450_v46 = vpop.f32.mrb[6].mxu0  ;;  %v7546_v47 = vpop.f32.mrb[6].mxu1  ;;  %15088 = vst [vmem:[#allocation22_spill] sm:$0xff] %v8125_v51  ;;  %15090 = vst [vmem:[#allocation24_spill] sm:$0xff] %v8133_v57 }
 0x129   :  { %v550_v48 = vpop.f32.mrb[7].mxu0  ;;  %v870_v49 = vpop.f32.mrb[7].mxu1  ;;  %v8138_v62 = vsub.f32 %v7815_v24, %v7450_v46  ;;  %v8146_v4 = vsub.f32 %v7815_v24, %v7546_v47 }
 0x12a   :  { %v8143_v63 = vsub.f32 %v7815_v24, %v550_v48  ;;  %v8149_v5 = vsub.f32 %v7815_v24, %v870_v49 }
 0x12b   :  { %1425 = vmin.xlane.f32.xlu0 %v8109_v44  ;;  %1297 = vmin.xlane.f32.xlu1 %v8115_v45  ;;  %15091 = vst [vmem:[#allocation25_spill] sm:$0xff] %v8138_v62  ;;  %15093 = vst [vmem:[#allocation27_spill] sm:$0xff] %v8146_v4 }
 0x12c   :  { %v7453_v52 = vpop.f32.mrb[8].mxu0  ;;  %v7549_v53 = vpop.f32.mrb[8].mxu1  ;;  %15092 = vst [vmem:[#allocation26_spill] sm:$0xff] %v8143_v63  ;;  %15094 = vst [vmem:[#allocation28_spill] sm:$0xff] %v8149_v5 }
 0x12d   :  { %v560_v54 = vpop.f32.mrb[9].mxu0  ;;  %v880_v55 = vpop.f32.mrb[9].mxu1  ;;  %v8154_v10 = vsub.f32 %v7815_v24, %v7453_v52  ;;  %v8166_v16 = vsub.f32 %v7815_v24, %v7549_v53 }
 0x12e   :  { %v8159_v11 = vsub.f32 %v7815_v24, %v560_v54  ;;  %v8169_v17 = vsub.f32 %v7815_v24, %v880_v55 }
 0x12f   :  { %1303 = vmin.xlane.f32.xlu1 %v8119_v50  ;;  %1301 = vmin.xlane.f32.xlu0 %v8125_v51  ;;  %15095 = vst [vmem:[#allocation29_spill] sm:$0xff] %v8154_v10  ;;  %15097 = vst [vmem:[#allocation31_spill] sm:$0xff] %v8166_v16 }
 0x130   :  { %v7456_v58 = vpop.f32.mrb[10].mxu0  ;;  %v7552_v59 = vpop.f32.mrb[10].mxu1  ;;  %15096 = vst [vmem:[#allocation30_spill] sm:$0xff] %v8159_v11  ;;  %15098 = vst [vmem:[#allocation32_spill] sm:$0xff] %v8169_v17 }
 0x131   :  { %v570_v60 = vpop.f32.mrb[11].mxu0  ;;  %v890_v61 = vpop.f32.mrb[11].mxu1  ;;  %v8182_v22 = vsub.f32 %v7815_v24, %v7456_v58  ;;  %v8198_v31 = vsub.f32 %v7815_v24, %v7552_v59 }
 0x132   :  { %v8187_v23 = vsub.f32 %v7815_v24, %v570_v60  ;;  %v8201_v32 = vsub.f32 %v7815_v24, %v890_v61 }
 0x133   :  { %1431 = vmin.xlane.f32.xlu1 %v8129_v56  ;;  %1429 = vmin.xlane.f32.xlu0 %v8133_v57  ;;  %15099 = vst [vmem:[#allocation33_spill] sm:$0xff] %v8182_v22  ;;  %15101 = vst [vmem:[#allocation35_spill] sm:$0xff] %v8198_v31 }
 0x134   :  { %v7459_v0 = vpop.f32.mrb[12].mxu0  ;;  %v7555_v1 = vpop.f32.mrb[12].mxu1  ;;  %15100 = vst [vmem:[#allocation34_spill] sm:$0xff] %v8187_v23  ;;  %15102 = vst [vmem:[#allocation36_spill] sm:$0xff] %v8201_v32 }
 0x135   :  { %v580_v2 = vpop.f32.mrb[13].mxu0  ;;  %v900_v3 = vpop.f32.mrb[13].mxu1  ;;  %v8214_v41 = vsub.f32 %v7815_v24, %v7459_v0  ;;  %v8230_v49 = vsub.f32 %v7815_v24, %v7555_v1 }
 0x136   :  { %v8219_v42 = vsub.f32 %v7815_v24, %v580_v2  ;;  %v8233_v52 = vsub.f32 %v7815_v24, %v900_v3 }
 0x137   :  { %1307 = vmin.xlane.f32.xlu1 %v8138_v62  ;;  %1305 = vmin.xlane.f32.xlu0 %v8143_v63  ;;  %15103 = vst [vmem:[#allocation37_spill] sm:$0xff] %v8214_v41  ;;  %15105 = vst [vmem:[#allocation39_spill] sm:$0xff] %v8230_v49 }
 0x138   :  { %v7462_v6 = vpop.f32.mrb[14].mxu0  ;;  %v7558_v7 = vpop.f32.mrb[14].mxu1  ;;  %15104 = vst [vmem:[#allocation38_spill] sm:$0xff] %v8219_v42  ;;  %15106 = vst [vmem:[#allocation40_spill] sm:$0xff] %v8233_v52 }
 0x139   :  { %v590_v8 = vpop.f32.mrb[15].mxu0  ;;  %v910_v9 = vpop.f32.mrb[15].mxu1  ;;  %v8246_v59 = vsub.f32 %v7815_v24, %v7462_v6  ;;  %v8262_v3 = vsub.f32 %v7815_v24, %v7558_v7 }
 0x13a   :  { %v8251_v60 = vsub.f32 %v7815_v24, %v590_v8  ;;  %v8265_v6 = vsub.f32 %v7815_v24, %v910_v9 }
 0x13b   :  { %1435 = vmin.xlane.f32.xlu1 %v8146_v4  ;;  %1433 = vmin.xlane.f32.xlu0 %v8149_v5  ;;  %15107 = vst [vmem:[#allocation41_spill] sm:$0xff] %v8246_v59  ;;  %15109 = vst [vmem:[#allocation43_spill] sm:$0xff] %v8262_v3 }
 0x13c   :  { %v7465_v12 = vpop.f32.mrb[16].mxu0  ;;  %v8161_v13 = vpop.f32.mrb[16].mxu1  ;;  %15108 = vst [vmem:[#allocation42_spill] sm:$0xff] %v8251_v60  ;;  %15110 = vst [vmem:[#allocation44_spill] sm:$0xff] %v8265_v6 }
 0x13d   :  { %v600_v14 = vpop.f32.mrb[17].mxu0  ;;  %v8163_v15 = vpop.f32.mrb[17].mxu1  ;;  %v8295_v5 = vsub.f32 %v7815_v24, %v8161_v13 }
 0x13e   :  { %v8283_v7 = vsub.f32 %v7815_v24, %v600_v14 }
 0x13f   :  { %1311 = vmin.xlane.f32.xlu1 %v8154_v10  ;;  %1309 = vmin.xlane.f32.xlu0 %v8159_v11  ;;  %15113 = vst [vmem:[#allocation47_spill] sm:$0xff] %v8295_v5 }
 0x140   :  { %v8173_v18 = vpop.f32.mrb[18].mxu0  ;;  %v8175_v19 = vpop.f32.mrb[18].mxu1  ;;  %15112 = vst [vmem:[#allocation46_spill] sm:$0xff] %v8283_v7 }
 0x141   :  { %v8177_v20 = vpop.f32.mrb[19].mxu0  ;;  %v8179_v21 = vpop.f32.mrb[19].mxu1  ;;  %v8313_v13 = vsub.f32 %v7815_v24, %v8173_v18  ;;  %v8331_v18 = vsub.f32 %v7815_v24, %v8175_v19 }
 0x143   :  { %1439 = vmin.xlane.f32.xlu1 %v8166_v16  ;;  %1437 = vmin.xlane.f32.xlu0 %v8169_v17  ;;  %15115 = vst [vmem:[#allocation49_spill] sm:$0xff] %v8313_v13  ;;  %15117 = vst [vmem:[#allocation51_spill] sm:$0xff] %v8331_v18 }
 0x144   :  { %v8189_v25 = vpop.f32.mrb[20].mxu0  ;;  %v8191_v26 = vpop.f32.mrb[20].mxu1 }
 0x145   :  { %v8193_v29 = vpop.f32.mrb[21].mxu0  ;;  %v8195_v30 = vpop.f32.mrb[21].mxu1  ;;  %v8349_v19 = vsub.f32 %v7815_v24, %v8189_v25  ;;  %v8367_v25 = vsub.f32 %v7815_v24, %v8191_v26 }
 0x147   :  { %1315 = vmin.xlane.f32.xlu1 %v8182_v22  ;;  %1313 = vmin.xlane.f32.xlu0 %v8187_v23  ;;  %15119 = vst [vmem:[#allocation53_spill] sm:$0xff] %v8349_v19  ;;  %15121 = vst [vmem:[#allocation55_spill] sm:$0xff] %v8367_v25 }
 0x148   :  { %v8205_v35 = vpop.f32.mrb[22].mxu0  ;;  %v8207_v36 = vpop.f32.mrb[22].mxu1 }
 0x149   :  { %v8209_v39 = vpop.f32.mrb[23].mxu0  ;;  %v8211_v40 = vpop.f32.mrb[23].mxu1  ;;  %v8385_v26 = vsub.f32 %v7815_v24, %v8205_v35  ;;  %v8403_v35 = vsub.f32 %v7815_v24, %v8207_v36 }
 0x14b   :  { %1443 = vmin.xlane.f32.xlu1 %v8198_v31  ;;  %1441 = vmin.xlane.f32.xlu0 %v8201_v32  ;;  %v8278_v32 = vsub.f32 %v7815_v24, %v7465_v12  ;;  %v8299_v12 = vsub.f32 %v7815_v24, %v8163_v15  ;;  %v8319_v15 = vsub.f32 %v7815_v24, %v8177_v20 }
 0x14c   :  { %v8221_v43 = vpop.f32.mrb[24].mxu0  ;;  %v8223_v46 = vpop.f32.mrb[24].mxu1  ;;  %15123 = vst [vmem:[#allocation57_spill] sm:$0xff] %v8385_v26  ;;  %15125 = vst [vmem:[#allocation59_spill] sm:$0xff] %v8403_v35 }
 0x14d   :  { %v8225_v47 = vpop.f32.mrb[25].mxu0  ;;  %v8227_v48 = vpop.f32.mrb[25].mxu1  ;;  %15111 = vst [vmem:[#allocation45_spill] sm:$0xff] %v8278_v32  ;;  %15114 = vst [vmem:[#allocation48_spill] sm:$0xff] %v8299_v12  ;;  %v8421_v36 = vsub.f32 %v7815_v24, %v8221_v43  ;;  %v8439_v43 = vsub.f32 %v7815_v24, %v8223_v46 }
 0x14e   :  { %15116 = vst [vmem:[#allocation50_spill] sm:$0xff] %v8319_v15 }
 0x14f   :  { %1319 = vmin.xlane.f32.xlu1 %v8214_v41  ;;  %1317 = vmin.xlane.f32.xlu0 %v8219_v42  ;;  %15127 = vst [vmem:[#allocation61_spill] sm:$0xff] %v8421_v36  ;;  %15129 = vst [vmem:[#allocation63_spill] sm:$0xff] %v8439_v43 }
 0x150   :  { %v8237_v53 = vpop.f32.mrb[26].mxu0  ;;  %v8239_v54 = vpop.f32.mrb[26].mxu1 }
 0x151   :  { %v8241_v55 = vpop.f32.mrb[27].mxu0  ;;  %v8243_v58 = vpop.f32.mrb[27].mxu1  ;;  %v8457_v46 = vsub.f32 %v7815_v24, %v8237_v53  ;;  %v8475_v53 = vsub.f32 %v7815_v24, %v8239_v54 }
 0x153   :  { %1447 = vmin.xlane.f32.xlu1 %v8230_v49  ;;  %1445 = vmin.xlane.f32.xlu0 %v8233_v52  ;;  %15131 = vst [vmem:[#allocation65_spill] sm:$0xff] %v8457_v46  ;;  %15133 = vst [vmem:[#allocation67_spill] sm:$0xff] %v8475_v53 }
 0x154   :  { %v8253_v61 = vpop.f32.mrb[28].mxu0  ;;  %v8255_v0 = vpop.f32.mrb[28].mxu1 }
 0x155   :  { %v8257_v1 = vpop.f32.mrb[29].mxu0  ;;  %v8259_v2 = vpop.f32.mrb[29].mxu1  ;;  %v8493_v54 = vsub.f32 %v7815_v24, %v8253_v61  ;;  %v8511_v61 = vsub.f32 %v7815_v24, %v8255_v0 }
 0x157   :  { %1323 = vmin.xlane.f32.xlu1 %v8246_v59  ;;  %1321 = vmin.xlane.f32.xlu0 %v8251_v60  ;;  %15136 = vst [vmem:[#allocation70_spill] sm:$0xff] %v8493_v54  ;;  %15140 = vst [vmem:[#allocation74_spill] sm:$0xff] %v8511_v61 }
 0x158   :  { %v8269_v8 = vpop.f32.mrb[30].mxu0  ;;  %v8271_v49 = vpop.f32.mrb[30].mxu1 }
 0x159   :  { %v8273_v52 = vpop.f32.mrb[31].mxu0  ;;  %v8275_v31 = vpop.f32.mrb[31].mxu1  ;;  %v8529_v0 = vsub.f32 %v7815_v24, %v8269_v8  ;;  %v8547_v8 = vsub.f32 %v7815_v24, %v8271_v49 }
 0x15b   :  { %1451 = vmin.xlane.f32.xlu1 %v8262_v3  ;;  %1449 = vmin.xlane.f32.xlu0 %v8265_v6  ;;  %15144 = vst [vmem:[#allocation78_spill] sm:$0xff] %v8529_v0  ;;  %15148 = vst [vmem:[#allocation82_spill] sm:$0xff] %v8547_v8 }
 0x15c   :  { %v8285_v9 = vpop.f32.mrb[32].mxu0  ;;  %v8287_v16 = vpop.f32.mrb[32].mxu1 }
 0x15d   :  { %v8289_v17 = vpop.f32.mrb[33].mxu0  ;;  %v8291_v4 = vpop.f32.mrb[33].mxu1  ;;  %v8565_v49 = vsub.f32 %v7815_v24, %v8285_v9 }
 0x15f   :  { %1327 = vmin.xlane.f32.xlu1 %v8278_v32  ;;  %1325 = vmin.xlane.f32.xlu0 %v8283_v7 }
 0x160   :  { %v8303_v14 = vpop.f32.mrb[34].mxu0  ;;  %v8305_v3 = vpop.f32.mrb[34].mxu1 }
 0x161   :  { %v8307_v6 = vpop.f32.mrb[35].mxu0  ;;  %v8309_v56 = vpop.f32.mrb[35].mxu1  ;;  %v8585_v9 = vsub.f32 %v7815_v24, %v8303_v14  ;;  %v8603_v14 = vld [vmem:[#allocation2 + $0x208] sm:$0xff] }
 0x162   :  { %15154 = vst [vmem:[#allocation88_spill] sm:$0xff] %v8603_v14 }
 0x163   :  { %1455 = vmin.xlane.f32.xlu1 %v8295_v5  ;;  %1453 = vmin.xlane.f32.xlu0 %v8299_v12  ;;  %v8335_v5 = vsub.f32 %v7815_v24, %v8179_v21  ;;  %v8355_v21 = vsub.f32 %v7815_v24, %v8193_v29 }
 0x164   :  { %v8321_v7 = vpop.f32.mrb[36].mxu0  ;;  %v8323_v32 = vpop.f32.mrb[36].mxu1 }
 0x165   :  { %v8325_v60 = vpop.f32.mrb[37].mxu0  ;;  %v8327_v59 = vpop.f32.mrb[37].mxu1  ;;  %15118 = vst [vmem:[#allocation52_spill] sm:$0xff] %v8335_v5  ;;  %15120 = vst [vmem:[#allocation54_spill] sm:$0xff] %v8355_v21 }
 0x167   :  { %1331 = vmin.xlane.f32.xlu1 %v8313_v13  ;;  %1329 = vmin.xlane.f32.xlu0 %v8319_v15 }
 0x168   :  { %v8339_v20 = vpop.f32.mrb[38].mxu0  ;;  %v8341_v12 = vpop.f32.mrb[38].mxu1 }
 0x169   :  { %v8343_v42 = vpop.f32.mrb[39].mxu0  ;;  %v8345_v41 = vpop.f32.mrb[39].mxu1 }
 0x16b   :  { %1459 = vmin.xlane.f32.xlu1 %v8331_v18  ;;  %1457 = vmin.xlane.f32.xlu0 %v8335_v5  ;;  %v8371_v18 = vsub.f32 %v7815_v24, %v8195_v30  ;;  %v8391_v30 = vsub.f32 %v7815_v24, %v8209_v39 }
 0x16c   :  { %v8357_v15 = vpop.f32.mrb[40].mxu0  ;;  %v8359_v13 = vpop.f32.mrb[40].mxu1 }
 0x16d   :  { %v8361_v23 = vpop.f32.mrb[41].mxu0  ;;  %v8363_v22 = vpop.f32.mrb[41].mxu1  ;;  %15122 = vst [vmem:[#allocation56_spill] sm:$0xff] %v8371_v18  ;;  %15124 = vst [vmem:[#allocation58_spill] sm:$0xff] %v8391_v30 }
 0x16f   :  { %1335 = vmin.xlane.f32.xlu1 %v8349_v19  ;;  %1333 = vmin.xlane.f32.xlu0 %v8355_v21 }
 0x170   :  { %v8375_v29 = vpop.f32.mrb[42].mxu0  ;;  %v8377_v5 = vpop.f32.mrb[42].mxu1 }
 0x171   :  { %v8379_v11 = vpop.f32.mrb[43].mxu0  ;;  %v8381_v10 = vpop.f32.mrb[43].mxu1 }
 0x173   :  { %1463 = vmin.xlane.f32.xlu1 %v8367_v25  ;;  %1461 = vmin.xlane.f32.xlu0 %v8371_v18  ;;  %v8407_v25 = vsub.f32 %v7815_v24, %v8211_v40  ;;  %v8427_v40 = vsub.f32 %v7815_v24, %v8225_v47 }
 0x174   :  { %v8393_v21 = vpop.f32.mrb[44].mxu0  ;;  %v8395_v19 = vpop.f32.mrb[44].mxu1 }
 0x175   :  { %v8397_v63 = vpop.f32.mrb[45].mxu0  ;;  %v8399_v62 = vpop.f32.mrb[45].mxu1  ;;  %15126 = vst [vmem:[#allocation60_spill] sm:$0xff] %v8407_v25  ;;  %15128 = vst [vmem:[#allocation62_spill] sm:$0xff] %v8427_v40 }
 0x177   :  { %1339 = vmin.xlane.f32.xlu1 %v8385_v26  ;;  %1337 = vmin.xlane.f32.xlu0 %v8391_v30 }
 0x178   :  { %v8411_v39 = vpop.f32.mrb[46].mxu0  ;;  %v8413_v18 = vpop.f32.mrb[46].mxu1 }
 0x179   :  { %v8415_v57 = vpop.f32.mrb[47].mxu0  ;;  %v8417_v51 = vpop.f32.mrb[47].mxu1 }
 0x17b   :  { %1467 = vmin.xlane.f32.xlu1 %v8403_v35  ;;  %1465 = vmin.xlane.f32.xlu0 %v8407_v25  ;;  %v8443_v35 = vsub.f32 %v7815_v24, %v8227_v48  ;;  %v8463_v48 = vsub.f32 %v7815_v24, %v8241_v55 }
 0x17c   :  { %v8429_v30 = vpop.f32.mrb[48].mxu0  ;;  %v8431_v26 = vpop.f32.mrb[48].mxu1 }
 0x17d   :  { %v8433_v50 = vpop.f32.mrb[49].mxu0  ;;  %v8435_v44 = vpop.f32.mrb[49].mxu1  ;;  %15130 = vst [vmem:[#allocation64_spill] sm:$0xff] %v8443_v35  ;;  %15132 = vst [vmem:[#allocation66_spill] sm:$0xff] %v8463_v48 }
 0x17f   :  { %1343 = vmin.xlane.f32.xlu1 %v8421_v36  ;;  %1341 = vmin.xlane.f32.xlu0 %v8427_v40 }
 0x180   :  { %v8447_v47 = vpop.f32.mrb[50].mxu0  ;;  %v8449_v25 = vpop.f32.mrb[50].mxu1 }
 0x181   :  { %v8451_v45 = vpop.f32.mrb[51].mxu0  ;;  %v8453_v38 = vpop.f32.mrb[51].mxu1 }
 0x183   :  { %1471 = vmin.xlane.f32.xlu1 %v8439_v43  ;;  %1469 = vmin.xlane.f32.xlu0 %v8443_v35  ;;  %v8479_v43 = vsub.f32 %v7815_v24, %v8243_v58  ;;  %v8499_v58 = vsub.f32 %v7815_v24, %v8257_v1 }
 0x184   :  { %v8465_v40 = vpop.f32.mrb[52].mxu0  ;;  %v8467_v36 = vpop.f32.mrb[52].mxu1 }
 0x185   :  { %v8469_v34 = vpop.f32.mrb[53].mxu0  ;;  %v8471_v37 = vpop.f32.mrb[53].mxu1  ;;  %15134 = vst [vmem:[#allocation68_spill] sm:$0xff] %v8479_v43  ;;  %15137 = vst [vmem:[#allocation71_spill] sm:$0xff] %v8499_v58 }
 0x187   :  { %1347 = vmin.xlane.f32.xlu1 %v8457_v46  ;;  %1345 = vmin.xlane.f32.xlu0 %v8463_v48 }
 0x188   :  { %v8483_v55 = vpop.f32.mrb[54].mxu0  ;;  %v8485_v35 = vpop.f32.mrb[54].mxu1 }
 0x189   :  { %15135 = vst [vmem:[#allocation69_spill] sm:$0xff] %v8485_v35  ;;  %v8487_v33 = vpop.f32.mrb[55].mxu0  ;;  %v8489_v28 = vpop.f32.mrb[55].mxu1 }
 0x18b   :  { %1475 = vmin.xlane.f32.xlu1 %v8475_v53  ;;  %1473 = vmin.xlane.f32.xlu0 %v8479_v43  ;;  %v8515_v53 = vsub.f32 %v7815_v24, %v8259_v2  ;;  %v8535_v2 = vsub.f32 %v7815_v24, %v8273_v52 }
 0x18c   :  { %v8501_v48 = vpop.f32.mrb[56].mxu0  ;;  %v8503_v46 = vpop.f32.mrb[56].mxu1 }
 0x18d   :  { %15138 = vst [vmem:[#allocation72_spill] sm:$0xff] %v8503_v46  ;;  %v8505_v27 = vpop.f32.mrb[57].mxu0  ;;  %v8507_v35 = vpop.f32.mrb[57].mxu1  ;;  %15141 = vst [vmem:[#allocation75_spill] sm:$0xff] %v8515_v53 }
 0x18e   :  { %15139 = vst [vmem:[#allocation73_spill] sm:$0xff] %v8505_v27  ;;  %15145 = vst [vmem:[#allocation79_spill] sm:$0xff] %v8535_v2 }
 0x18f   :  { %1351 = vmin.xlane.f32.xlu1 %v8493_v54  ;;  %1349 = vmin.xlane.f32.xlu0 %v8499_v58 }
 0x190   :  { %v8519_v1 = vpop.f32.mrb[58].mxu0  ;;  %v8521_v43 = vpop.f32.mrb[58].mxu1 }
 0x191   :  { %15142 = vst [vmem:[#allocation76_spill] sm:$0xff] %v8521_v43  ;;  %v8523_v46 = vpop.f32.mrb[59].mxu0  ;;  %v8525_v27 = vpop.f32.mrb[59].mxu1 }
 0x192   :  { %15143 = vst [vmem:[#allocation77_spill] sm:$0xff] %v8523_v46 }
 0x193   :  { %1479 = vmin.xlane.f32.xlu1 %v8511_v61  ;;  %1477 = vmin.xlane.f32.xlu0 %v8515_v53  ;;  %v8551_v61 = vsub.f32 %v7815_v24, %v8275_v31  ;;  %v8571_v31 = vsub.f32 %v7815_v24, %v8289_v17  ;;  %v8599_v17 = vsub.f32 %v7815_v24, %v8309_v56 }
 0x194   :  { %v8537_v58 = vpop.f32.mrb[60].mxu0  ;;  %v8539_v54 = vpop.f32.mrb[60].mxu1  ;;  %v8615_v56 = vsub.f32 %v7815_v24, %v8325_v60 }
 0x195   :  { %15146 = vst [vmem:[#allocation80_spill] sm:$0xff] %v8539_v54  ;;  %v8541_v43 = vpop.f32.mrb[61].mxu0  ;;  %v8543_v46 = vpop.f32.mrb[61].mxu1  ;;  %15149 = vst [vmem:[#allocation83_spill] sm:$0xff] %v8551_v61 }
 0x196   :  { %15147 = vst [vmem:[#allocation81_spill] sm:$0xff] %v8541_v43  ;;  %15153 = vst [vmem:[#allocation87_spill] sm:$0xff] %v8599_v17 }
 0x197   :  { %1355 = vmin.xlane.f32.xlu1 %v8529_v0  ;;  %1353 = vmin.xlane.f32.xlu0 %v8535_v2  ;;  %v8575_v2 = vsub.f32 %v7815_v24, %v8287_v16  ;;  %v8579_v0 = vsub.f32 %v7815_v24, %v8291_v4  ;;  %v8591_v16 = vsub.f32 %v7815_v24, %v8307_v6 }
 0x198   :  { %v8555_v52 = vpop.f32.mrb[62].mxu0  ;;  %v8557_v53 = vpop.f32.mrb[62].mxu1  ;;  %v8595_v4 = vsub.f32 %v7815_v24, %v8305_v3  ;;  %v8609_v6 = vsub.f32 %v7815_v24, %v8321_v7  ;;  %15157 = vst [vmem:[#allocation91_spill] sm:$0xff] %v8615_v56 }
 0x199   :  { %v8559_v54 = vpop.f32.mrb[63].mxu0  ;;  %v8561_v43 = vpop.f32.mrb[63].mxu1  ;;  %15150 = vst [vmem:[#allocation84_spill] sm:$0xff] %v8575_v2  ;;  %15151 = vst [vmem:[#allocation85_spill] sm:$0xff] %v8579_v0 }
 0x19a   :  { %15152 = vst [vmem:[#allocation86_spill] sm:$0xff] %v8595_v4  ;;  %15156 = vst [vmem:[#allocation90_spill] sm:$0xff] %v8609_v6 }
 0x19b   :  { %1483 = vmin.xlane.f32.xlu1 %v8547_v8  ;;  %1481 = vmin.xlane.f32.xlu0 %v8551_v61  ;;  %v8643_v8 = vsub.f32 %v7815_v24, %v8323_v32  ;;  %v8647_v61 = vsub.f32 %v7815_v24, %v8327_v59 }
 0x19d   :  { %15162 = vst [vmem:[#allocation96_spill] sm:$0xff] %v8643_v8  ;;  %15163 = vst [vmem:[#allocation97_spill] sm:$0xff] %v8647_v61 }
 0x19f   :  { %1359 = vmin.xlane.f32.xlu1 %v8565_v49  ;;  %1357 = vmin.xlane.f32.xlu0 %v8571_v31 }
 0x1a3   :  { %1487 = vmin.xlane.f32.xlu1 %v8575_v2  ;;  %1485 = vmin.xlane.f32.xlu0 %v8579_v0  ;;  %v8605_v2 = vld [vmem:[#allocation2 + $0x8] sm:$0xff] }
 0x1a4   :  { %15155 = vst [vmem:[#allocation89_spill] sm:$0xff] %v8605_v2 }
 0x1a7   :  { %1363 = vmin.xlane.f32.xlu1 %v8585_v9  ;;  %1361 = vmin.xlane.f32.xlu0 %v8591_v16 }
 0x1ab   :  { %1491 = vmin.xlane.f32.xlu1 %v8595_v4  ;;  %1489 = vmin.xlane.f32.xlu0 %v8599_v17  ;;  %v8635_v4 = vld [vmem:[#allocation2] sm:$0xff]  ;;  %v8637_v17 = vld [vmem:[#allocation2 + $0x18] sm:$0xff] }
 0x1ac   :  { %v8617_v3 = vpop.xlane.xlu1 %1423  ;;  %v8619_v0 = vpop.xlane.xlu0 %1295  ;;  %15160 = vst [vmem:[#allocation94_spill] sm:$0xff] %v8635_v4  ;;  %15161 = vst [vmem:[#allocation95_spill] sm:$0xff] %v8637_v17 }
 0x1ad   :  { %15158 = vst [vmem:[#allocation92_spill] sm:$0xff] %v8617_v3  ;;  %15159 = vst [vmem:[#allocation93_spill] sm:$0xff] %v8619_v0  ;;  %vm3792_vm1 = vcmp.lt.f32.partialorder %v8617_v3, %v8603_v14  ;;  %vm3728_vm2 = vcmp.lt.f32.partialorder %v8619_v0, %v8605_v2 }
 0x1ae   :  { %v3920_v7 = vsel %vm3792_vm1, %v8617_v3, %v8603_v14  ;;  %v3856_v60 = vsel %vm3728_vm2, %v8619_v0, %v8605_v2 }
 0x1af   :  { %4049 = vst.msk [vmem:[#allocation2 + $0x208] sm:$0xff] %vm47_vm0, %v3920_v7  ;;  %3985 = vst.msk [vmem:[#allocation2 + $0x8] sm:$0xff] %vm47_vm0, %v3856_v60  ;;  %1367 = vmin.xlane.f32.xlu1 %v8609_v6  ;;  %1365 = vmin.xlane.f32.xlu0 %v8615_v56  ;;  %v8669_v7 = vld [vmem:[#allocation2 + $0x200] sm:$0xff]  ;;  %v8671_v60 = vld [vmem:[#allocation2 + $0x218] sm:$0xff]  ;;  %v8677_v56 = vsub.f32 %v7815_v24, %v8339_v20 }
 0x1b0   :  { %v8651_v14 = vpop.xlane.xlu0 %1293  ;;  %v8653_v2 = vpop.xlane.xlu1 %1299  ;;  %15166 = vst [vmem:[#allocation100_spill] sm:$0xff] %v8669_v7  ;;  %15167 = vst [vmem:[#allocation101_spill] sm:$0xff] %v8671_v60 }
 0x1b1   :  { %15164 = vst [vmem:[#allocation98_spill] sm:$0xff] %v8651_v14  ;;  %15165 = vst [vmem:[#allocation99_spill] sm:$0xff] %v8653_v2  ;;  %vm3727_vm3 = vcmp.lt.f32.partialorder %v8651_v14, %v8635_v4  ;;  %vm3730_vm4 = vcmp.lt.f32.partialorder %v8653_v2, %v8637_v17 }
 0x1b2   :  { %v3855_v32 = vsel %vm3727_vm3, %v8651_v14, %v8635_v4  ;;  %v3858_v59 = vsel %vm3730_vm4, %v8653_v2, %v8637_v17  ;;  %15168 = vst [vmem:[#allocation102_spill] sm:$0xff] %v8677_v56  ;;  %v8683_v4 = vsub.f32 %v7815_v24, %v8343_v42 }
 0x1b3   :  { %3984 = vst.msk [vmem:[#allocation2] sm:$0xff] %vm47_vm0, %v3855_v32  ;;  %3987 = vst.msk [vmem:[#allocation2 + $0x18] sm:$0xff] %vm47_vm0, %v3858_v59  ;;  %1495 = vmin.xlane.f32.xlu1 %v8643_v8  ;;  %1493 = vmin.xlane.f32.xlu0 %v8647_v61  ;;  %v8703_v32 = vld [vmem:[#allocation2 + $0x210] sm:$0xff]  ;;  %v8711_v8 = vsub.f32 %v7815_v24, %v8341_v12  ;;  %v8715_v61 = vsub.f32 %v7815_v24, %v8345_v41 }
 0x1b4   :  { %15169 = vst [vmem:[#allocation103_spill] sm:$0xff] %v8683_v4  ;;  %v8685_v17 = vpop.xlane.xlu0 %1421  ;;  %v8687_v6 = vpop.xlane.xlu1 %1427  ;;  %15172 = vst [vmem:[#allocation106_spill] sm:$0xff] %v8703_v32  ;;  %v8705_v59 = vld [vmem:[#allocation2 + $0x10] sm:$0xff] }
 0x1b5   :  { %15170 = vst [vmem:[#allocation104_spill] sm:$0xff] %v8685_v17  ;;  %15171 = vst [vmem:[#allocation105_spill] sm:$0xff] %v8687_v6  ;;  %vm3791_vm5 = vcmp.lt.f32.partialorder %v8685_v17, %v8669_v7  ;;  %vm3794_vm6 = vcmp.lt.f32.partialorder %v8687_v6, %v8671_v60 }
 0x1b6   :  { %v3919_v20 = vsel %vm3791_vm5, %v8685_v17, %v8669_v7  ;;  %v3922_v42 = vsel %vm3794_vm6, %v8687_v6, %v8671_v60  ;;  %15173 = vst [vmem:[#allocation107_spill] sm:$0xff] %v8705_v59  ;;  %15174 = vst [vmem:[#allocation108_spill] sm:$0xff] %v8711_v8 }
 0x1b7   :  { %4048 = vst.msk [vmem:[#allocation2 + $0x200] sm:$0xff] %vm47_vm0, %v3919_v20  ;;  %4051 = vst.msk [vmem:[#allocation2 + $0x218] sm:$0xff] %vm47_vm0, %v3922_v42  ;;  %1371 = vmin.xlane.f32.xlu1 %v8677_v56  ;;  %1369 = vmin.xlane.f32.xlu0 %v8683_v4  ;;  %v8737_v20 = vld [vmem:[#allocation2 + $0x28] sm:$0xff]  ;;  %v8739_v42 = vld [vmem:[#allocation2 + $0x20] sm:$0xff]  ;;  %v8745_v4 = vsub.f32 %v7815_v24, %v8357_v15 }
 0x1b8   :  { %15175 = vst [vmem:[#allocation109_spill] sm:$0xff] %v8715_v61  ;;  %v8719_v60 = vpop.xlane.xlu0 %1425  ;;  %v8721_v7 = vpop.xlane.xlu1 %1297  ;;  %15178 = vst [vmem:[#allocation112_spill] sm:$0xff] %v8737_v20 }
 0x1b9   :  { %15176 = vst [vmem:[#allocation110_spill] sm:$0xff] %v8719_v60  ;;  %15177 = vst [vmem:[#allocation111_spill] sm:$0xff] %v8721_v7  ;;  %vm3793_vm7 = vcmp.lt.f32.partialorder %v8719_v60, %v8703_v32  ;;  %vm3729_vm8 = vcmp.lt.f32.partialorder %v8721_v7, %v8705_v59 }
 0x1ba   :  { %v3921_v41 = vsel %vm3793_vm7, %v8719_v60, %v8703_v32  ;;  %v3857_v12 = vsel %vm3729_vm8, %v8721_v7, %v8705_v59  ;;  %15179 = vst [vmem:[#allocation113_spill] sm:$0xff] %v8739_v42  ;;  %v8751_v32 = vsub.f32 %v7815_v24, %v8361_v23 }
 0x1bb   :  { %4050 = vst.msk [vmem:[#allocation2 + $0x210] sm:$0xff] %vm47_vm0, %v3921_v41  ;;  %3986 = vst.msk [vmem:[#allocation2 + $0x10] sm:$0xff] %vm47_vm0, %v3857_v12  ;;  %1499 = vmin.xlane.f32.xlu1 %v8711_v8  ;;  %1497 = vmin.xlane.f32.xlu0 %v8715_v61  ;;  %v8771_v41 = vld [vmem:[#allocation2 + $0x228] sm:$0xff]  ;;  %v8773_v12 = vld [vmem:[#allocation2 + $0x220] sm:$0xff]  ;;  %v8779_v8 = vsub.f32 %v7815_v24, %v8359_v13  ;;  %v8783_v61 = vsub.f32 %v7815_v24, %v8363_v22 }
 0x1bc   :  { %15180 = vst [vmem:[#allocation114_spill] sm:$0xff] %v8751_v32  ;;  %v8753_v59 = vpop.xlane.xlu1 %1303  ;;  %v8755_v56 = vpop.xlane.xlu0 %1301  ;;  %15183 = vst [vmem:[#allocation117_spill] sm:$0xff] %v8771_v41 }
 0x1bd   :  { %15181 = vst [vmem:[#allocation115_spill] sm:$0xff] %v8753_v59  ;;  %15182 = vst [vmem:[#allocation116_spill] sm:$0xff] %v8755_v56  ;;  %vm3732_vm9 = vcmp.lt.f32.partialorder %v8753_v59, %v8737_v20  ;;  %vm3731_vm10 = vcmp.lt.f32.partialorder %v8755_v56, %v8739_v42 }
 0x1be   :  { %v3860_v15 = vsel %vm3732_vm9, %v8753_v59, %v8737_v20  ;;  %v3859_v23 = vsel %vm3731_vm10, %v8755_v56, %v8739_v42  ;;  %15184 = vst [vmem:[#allocation118_spill] sm:$0xff] %v8773_v12  ;;  %15185 = vst [vmem:[#allocation119_spill] sm:$0xff] %v8779_v8 }
 0x1bf   :  { %3989 = vst.msk [vmem:[#allocation2 + $0x28] sm:$0xff] %vm47_vm0, %v3860_v15  ;;  %3988 = vst.msk [vmem:[#allocation2 + $0x20] sm:$0xff] %vm47_vm0, %v3859_v23  ;;  %1375 = vmin.xlane.f32.xlu1 %v8745_v4  ;;  %1373 = vmin.xlane.f32.xlu0 %v8751_v32  ;;  %v8805_v15 = vld [vmem:[#allocation2 + $0x38] sm:$0xff]  ;;  %v8807_v23 = vld [vmem:[#allocation2 + $0x30] sm:$0xff]  ;;  %v8813_v32 = vsub.f32 %v7815_v24, %v8375_v29 }
 0x1c0   :  { %15186 = vst [vmem:[#allocation120_spill] sm:$0xff] %v8783_v61  ;;  %v8787_v42 = vpop.xlane.xlu1 %1431  ;;  %v8789_v20 = vpop.xlane.xlu0 %1429  ;;  %15189 = vst [vmem:[#allocation123_spill] sm:$0xff] %v8805_v15 }
 0x1c1   :  { %15187 = vst [vmem:[#allocation121_spill] sm:$0xff] %v8787_v42  ;;  %15188 = vst [vmem:[#allocation122_spill] sm:$0xff] %v8789_v20  ;;  %vm3796_vm11 = vcmp.lt.f32.partialorder %v8787_v42, %v8771_v41  ;;  %vm14545_vm12 = vcmp.lt.f32.partialorder %v8789_v20, %v8773_v12 }
 0x1c2   :  { %v3924_v22 = vsel %vm3796_vm11, %v8787_v42, %v8771_v41  ;;  %v3923_v13 = vsel %vm14545_vm12, %v8789_v20, %v8773_v12  ;;  %15190 = vst [vmem:[#allocation124_spill] sm:$0xff] %v8807_v23  ;;  %15191 = vst [vmem:[#allocation125_spill] sm:$0xff] %v8813_v32  ;;  %v8819_v41 = vsub.f32 %v7815_v24, %v8379_v11 }
 0x1c3   :  { %4053 = vst.msk [vmem:[#allocation2 + $0x228] sm:$0xff] %vm47_vm0, %v3924_v22  ;;  %4052 = vst.msk [vmem:[#allocation2 + $0x220] sm:$0xff] %vm47_vm0, %v3923_v13  ;;  %1503 = vmin.xlane.f32.xlu1 %v8779_v8  ;;  %1501 = vmin.xlane.f32.xlu0 %v8783_v61  ;;  %v8839_v22 = vld [vmem:[#allocation2 + $0x238] sm:$0xff]  ;;  %v8841_v13 = vld [vmem:[#allocation2 + $0x230] sm:$0xff]  ;;  %v8847_v8 = vsub.f32 %v7815_v24, %v8377_v5 }
 0x1c4   :  { %15192 = vst [vmem:[#allocation126_spill] sm:$0xff] %v8819_v41  ;;  %v8821_v12 = vpop.xlane.xlu1 %1307  ;;  %v8823_v42 = vpop.xlane.xlu0 %1305  ;;  %15195 = vst [vmem:[#allocation129_spill] sm:$0xff] %v8839_v22 }
 0x1c5   :  { %15193 = vst [vmem:[#allocation127_spill] sm:$0xff] %v8821_v12  ;;  %15194 = vst [vmem:[#allocation128_spill] sm:$0xff] %v8823_v42  ;;  %vm14536_vm13 = vcmp.lt.f32.partialorder %v8821_v12, %v8805_v15  ;;  %vm14399_vm14 = vcmp.lt.f32.partialorder %v8823_v42, %v8807_v23 }
 0x1c6   :  { %v3862_v29 = vsel %vm14536_vm13, %v8821_v12, %v8805_v15  ;;  %v3861_v11 = vsel %vm14399_vm14, %v8823_v42, %v8807_v23  ;;  %15196 = vst [vmem:[#allocation130_spill] sm:$0xff] %v8841_v13  ;;  %15197 = vst [vmem:[#allocation131_spill] sm:$0xff] %v8847_v8  ;;  %v8851_v15 = vsub.f32 %v7815_v24, %v8381_v10  ;;  %v8873_v10 = vld [vmem:[#allocation2 + $0x48] sm:$0xff] }
 0x1c7   :  { %3991 = vst.msk [vmem:[#allocation2 + $0x38] sm:$0xff] %vm47_vm0, %v3862_v29  ;;  %3990 = vst.msk [vmem:[#allocation2 + $0x30] sm:$0xff] %vm47_vm0, %v3861_v11  ;;  %1379 = vmin.xlane.f32.xlu1 %v8813_v32  ;;  %1377 = vmin.xlane.f32.xlu0 %v8819_v41  ;;  %v8875_v29 = vld [vmem:[#allocation2 + $0x40] sm:$0xff] }
 0x1c8   :  { %15198 = vst [vmem:[#allocation132_spill] sm:$0xff] %v8851_v15  ;;  %v8855_v23 = vpop.xlane.xlu1 %1435  ;;  %v8857_v61 = vpop.xlane.xlu0 %1433  ;;  %15201 = vst [vmem:[#allocation135_spill] sm:$0xff] %v8873_v10  ;;  %v8882_v11 = vld [vmem:[%s14293_s2] ss:$0 sm:$0xff]  ;;  %s7767_s2 = smov [#allocation9]  }
 0x1c9   :  { %15199 = vst [vmem:[#allocation133_spill] sm:$0xff] %v8855_v23  ;;  %15200 = vst [vmem:[#allocation134_spill] sm:$0xff] %v8857_v61  ;;  %vm14403_vm15 = vcmp.lt.f32.partialorder %v8855_v23, %v8839_v22  ;;  %vm14402_vm14 = vcmp.lt.f32.partialorder %v8857_v61, %v8841_v13  ;;  %v9839_v32 = vld [vmem:[#allocation2 + $0x120] sm:$0xff]  ;;  %s7250_s13 = sshll.u32 %s7767_s2, 4  ;;  %s7251_s13 = int_to_ptr.vmem [resolvable:$true] %s7250_s13 }
 0x1ca   :  { %v3926_v24 = vsel %vm14403_vm15, %v8855_v23, %v8839_v22  ;;  %v3925_v5 = vsel %vm14402_vm14, %v8857_v61, %v8841_v13  ;;  %15202 = vst [vmem:[#allocation136_spill] sm:$0xff] %v8875_v29  ;;  %v8886_v22 = vsub.f32 %v8882_v11, %v8393_v21  ;;  %v8892_v13 = vsub.f32 %v8882_v11, %v8397_v63  ;;  %s7733_s14 = scalar_lea.vmem %s7251_s13, 128  ;;  %p7738_p3 = scmp.lt.s32.totalorder %s7251_s13, %s7251_s13 }
 0x1cb   :  { %4055 = vst.msk [vmem:[#allocation2 + $0x238] sm:$0xff] %vm47_vm0, %v3926_v24  ;;  %4054 = vst.msk [vmem:[#allocation2 + $0x230] sm:$0xff] %vm47_vm0, %v3925_v5  ;;  %1507 = vmin.xlane.f32.xlu1 %v8847_v8  ;;  %1505 = vmin.xlane.f32.xlu0 %v8851_v15  ;;  %v8912_v8 = vld [vmem:[#allocation2 + $0x248] sm:$0xff]  ;;  %v8914_v15 = vld [vmem:[#allocation2 + $0x240] sm:$0xff]  ;;  %v8920_v23 = vsub.f32 %v8882_v11, %v8395_v19  ;;  %p7734_p2 = scmp.ne.s32.totalorder %s7251_s13, %s7733_s14  ;;  %p7739_p4 = scmp.lt.s32.totalorder %s7733_s14, %s7733_s14 }
 0x1cc   :  { %15203 = vst [vmem:[#allocation137_spill] sm:$0xff] %v8886_v22  ;;  %15204 = vst [vmem:[#allocation138_spill] sm:$0xff] %v8892_v13  ;;  %v8894_v24 = vpop.xlane.xlu1 %1311  ;;  %v8896_v5 = vpop.xlane.xlu0 %1309 }
 0x1cd   :  { %15205 = vst [vmem:[#allocation139_spill] sm:$0xff] %v8894_v24  ;;  %15206 = vst [vmem:[#allocation140_spill] sm:$0xff] %v8896_v5  ;;  %vm14413_vm14 = vcmp.lt.f32.partialorder %v8894_v24, %v8873_v10  ;;  %vm14412_vm15 = vcmp.lt.f32.partialorder %v8896_v5, %v8875_v29  ;;  %p7740_p5 = por %p7739_p4, %p7738_p3 }
 0x1ce   :  { %v3864_v21 = vsel %vm14413_vm14, %v8894_v24, %v8873_v10  ;;  %v3863_v63 = vsel %vm14412_vm15, %v8896_v5, %v8875_v29  ;;  %15207 = vst [vmem:[#allocation141_spill] sm:$0xff] %v8912_v8  ;;  %15208 = vst [vmem:[#allocation142_spill] sm:$0xff] %v8914_v15  ;;  %v8924_v10 = vsub.f32 %v8882_v11, %v8399_v62 }
 0x1cf   :  { %3993 = vst.msk [vmem:[#allocation2 + $0x48] sm:$0xff] %vm47_vm0, %v3864_v21  ;;  %3992 = vst.msk [vmem:[#allocation2 + $0x40] sm:$0xff] %vm47_vm0, %v3863_v63  ;;  %1383 = vmin.xlane.f32.xlu1 %v8886_v22  ;;  %1381 = vmin.xlane.f32.xlu0 %v8892_v13  ;;  %v8946_v21 = vld [vmem:[#allocation2 + $0x58] sm:$0xff]  ;;  %v8948_v63 = vld [vmem:[#allocation2 + $0x50] sm:$0xff]  ;;  %v8954_v13 = vsub.f32 %v8882_v11, %v8411_v39  ;;  %p7741_p6 = pnand %p7740_p5, %p7734_p2 }
 0x1d0   :  { %15209 = vst [vmem:[#allocation143_spill] sm:$0xff] %v8920_v23  ;;  %15210 = vst [vmem:[#allocation144_spill] sm:$0xff] %v8924_v10  ;;  %v8928_v29 = vpop.xlane.xlu1 %1439  ;;  %v8930_v61 = vpop.xlane.xlu0 %1437  ;;  %v15369_v22 = vld [vmem:[#allocation22_spill] sm:$0xff] }
 0x1d1   :  { %15211 = vst [vmem:[#allocation145_spill] sm:$0xff] %v8928_v29  ;;  %15212 = vst [vmem:[#allocation146_spill] sm:$0xff] %v8930_v61  ;;  %vm14420_vm15 = vcmp.lt.f32.partialorder %v8928_v29, %v8912_v8  ;;  %vm14419_vm14 = vcmp.lt.f32.partialorder %v8930_v61, %v8914_v15 }
 0x1d2   :  { %v3928_v62 = vsel %vm14420_vm15, %v8928_v29, %v8912_v8  ;;  %v3927_v19 = vsel %vm14419_vm14, %v8930_v61, %v8914_v15  ;;  %15213 = vst [vmem:[#allocation147_spill] sm:$0xff] %v8946_v21  ;;  %15214 = vst [vmem:[#allocation148_spill] sm:$0xff] %v8948_v63  ;;  %v8960_v8 = vsub.f32 %v8882_v11, %v8415_v57 }
 0x1d3   :  { %4057 = vst.msk [vmem:[#allocation2 + $0x248] sm:$0xff] %vm47_vm0, %v3928_v62  ;;  %4056 = vst.msk [vmem:[#allocation2 + $0x240] sm:$0xff] %vm47_vm0, %v3927_v19  ;;  %1511 = vmin.xlane.f32.xlu1 %v8920_v23  ;;  %1509 = vmin.xlane.f32.xlu0 %v8924_v10  ;;  %v8980_v62 = vld [vmem:[#allocation2 + $0x258] sm:$0xff]  ;;  %v8982_v19 = vld [vmem:[#allocation2 + $0x250] sm:$0xff]  ;;  %v8988_v23 = vsub.f32 %v8882_v11, %v8413_v18  ;;  %v9022_v61 = vsub.f32 %v8882_v11, %v8429_v30 }
 0x1d4   :  { %15215 = vst [vmem:[#allocation149_spill] sm:$0xff] %v8954_v13  ;;  %15216 = vst [vmem:[#allocation150_spill] sm:$0xff] %v8960_v8  ;;  %v8962_v15 = vpop.xlane.xlu1 %1315  ;;  %v8964_v29 = vpop.xlane.xlu0 %1313 }
 0x1d5   :  { %15217 = vst [vmem:[#allocation151_spill] sm:$0xff] %v8962_v15  ;;  %15218 = vst [vmem:[#allocation152_spill] sm:$0xff] %v8964_v29  ;;  %vm14426_vm14 = vcmp.lt.f32.partialorder %v8962_v15, %v8946_v21  ;;  %vm14425_vm15 = vcmp.lt.f32.partialorder %v8964_v29, %v8948_v63 }
 0x1d6   :  { %v3866_v39 = vsel %vm14426_vm14, %v8962_v15, %v8946_v21  ;;  %v3865_v57 = vsel %vm14425_vm15, %v8964_v29, %v8948_v63  ;;  %15219 = vst [vmem:[#allocation153_spill] sm:$0xff] %v8980_v62  ;;  %15220 = vst [vmem:[#allocation154_spill] sm:$0xff] %v8982_v19  ;;  %v8992_v21 = vsub.f32 %v8882_v11, %v8417_v51 }
 0x1d7   :  { %3995 = vst.msk [vmem:[#allocation2 + $0x58] sm:$0xff] %vm47_vm0, %v3866_v39  ;;  %3994 = vst.msk [vmem:[#allocation2 + $0x50] sm:$0xff] %vm47_vm0, %v3865_v57  ;;  %1387 = vmin.xlane.f32.xlu1 %v8954_v13  ;;  %1385 = vmin.xlane.f32.xlu0 %v8960_v8  ;;  %v9014_v39 = vld [vmem:[#allocation2 + $0x68] sm:$0xff]  ;;  %v9016_v57 = vld [vmem:[#allocation2 + $0x60] sm:$0xff] }
 0x1d8   :  { %15221 = vst [vmem:[#allocation155_spill] sm:$0xff] %v8988_v23  ;;  %15222 = vst [vmem:[#allocation156_spill] sm:$0xff] %v8992_v21  ;;  %v8996_v63 = vpop.xlane.xlu1 %1443  ;;  %v8998_v10 = vpop.xlane.xlu0 %1441  ;;  %v9773_v8 = vld [vmem:[#allocation2 + $0x110] sm:$0xff]  ;;  %v15363_v13 = vld [vmem:[#allocation21_spill] sm:$0xff] }
 0x1d9   :  { %15223 = vst [vmem:[#allocation157_spill] sm:$0xff] %v8996_v63  ;;  %15224 = vst [vmem:[#allocation158_spill] sm:$0xff] %v8998_v10  ;;  %vm14434_vm15 = vcmp.lt.f32.partialorder %v8996_v63, %v8980_v62  ;;  %vm14433_vm14 = vcmp.lt.f32.partialorder %v8998_v10, %v8982_v19 }
 0x1da   :  { %v3930_v51 = vsel %vm14434_vm15, %v8996_v63, %v8980_v62  ;;  %v3929_v18 = vsel %vm14433_vm14, %v8998_v10, %v8982_v19  ;;  %15225 = vst [vmem:[#allocation159_spill] sm:$0xff] %v9014_v39  ;;  %15226 = vst [vmem:[#allocation160_spill] sm:$0xff] %v9016_v57  ;;  %v9028_v62 = vsub.f32 %v8882_v11, %v8433_v50 }
 0x1db   :  { %4059 = vst.msk [vmem:[#allocation2 + $0x258] sm:$0xff] %vm47_vm0, %v3930_v51  ;;  %4058 = vst.msk [vmem:[#allocation2 + $0x250] sm:$0xff] %vm47_vm0, %v3929_v18  ;;  %1515 = vmin.xlane.f32.xlu1 %v8988_v23  ;;  %1513 = vmin.xlane.f32.xlu0 %v8992_v21  ;;  %v9048_v51 = vld [vmem:[#allocation2 + $0x268] sm:$0xff]  ;;  %v9050_v18 = vld [vmem:[#allocation2 + $0x260] sm:$0xff]  ;;  %v9056_v23 = vsub.f32 %v8882_v11, %v8431_v26  ;;  %v9090_v10 = vsub.f32 %v8882_v11, %v8447_v47 }
 0x1dc   :  { %15227 = vst [vmem:[#allocation161_spill] sm:$0xff] %v9022_v61  ;;  %15228 = vst [vmem:[#allocation162_spill] sm:$0xff] %v9028_v62  ;;  %v9030_v19 = vpop.xlane.xlu1 %1319  ;;  %v9032_v63 = vpop.xlane.xlu0 %1317 }
 0x1dd   :  { %15229 = vst [vmem:[#allocation163_spill] sm:$0xff] %v9030_v19  ;;  %15230 = vst [vmem:[#allocation164_spill] sm:$0xff] %v9032_v63  ;;  %vm14440_vm14 = vcmp.lt.f32.partialorder %v9030_v19, %v9014_v39  ;;  %vm14439_vm15 = vcmp.lt.f32.partialorder %v9032_v63, %v9016_v57 }
 0x1de   :  { %v3868_v30 = vsel %vm14440_vm14, %v9030_v19, %v9014_v39  ;;  %v3867_v50 = vsel %vm14439_vm15, %v9032_v63, %v9016_v57  ;;  %15231 = vst [vmem:[#allocation165_spill] sm:$0xff] %v9048_v51  ;;  %15232 = vst [vmem:[#allocation166_spill] sm:$0xff] %v9050_v18  ;;  %v9060_v39 = vsub.f32 %v8882_v11, %v8435_v44 }
 0x1df   :  { %3997 = vst.msk [vmem:[#allocation2 + $0x68] sm:$0xff] %vm47_vm0, %v3868_v30  ;;  %3996 = vst.msk [vmem:[#allocation2 + $0x60] sm:$0xff] %vm47_vm0, %v3867_v50  ;;  %1391 = vmin.xlane.f32.xlu1 %v9022_v61  ;;  %1389 = vmin.xlane.f32.xlu0 %v9028_v62  ;;  %v9082_v30 = vld [vmem:[#allocation2 + $0x78] sm:$0xff]  ;;  %v9084_v50 = vld [vmem:[#allocation2 + $0x70] sm:$0xff] }
 0x1e0   :  { %15233 = vst [vmem:[#allocation167_spill] sm:$0xff] %v9056_v23  ;;  %15234 = vst [vmem:[#allocation168_spill] sm:$0xff] %v9060_v39  ;;  %v9064_v57 = vpop.xlane.xlu1 %1447  ;;  %v9066_v21 = vpop.xlane.xlu0 %1445  ;;  %v15358_v62 = vld [vmem:[#allocation19_spill] sm:$0xff] }
 0x1e1   :  { %15235 = vst [vmem:[#allocation169_spill] sm:$0xff] %v9064_v57  ;;  %15236 = vst [vmem:[#allocation170_spill] sm:$0xff] %v9066_v21  ;;  %vm14448_vm15 = vcmp.lt.f32.partialorder %v9064_v57, %v9048_v51  ;;  %vm14447_vm14 = vcmp.lt.f32.partialorder %v9066_v21, %v9050_v18 }
 0x1e2   :  { %v3932_v44 = vsel %vm14448_vm15, %v9064_v57, %v9048_v51  ;;  %v3931_v26 = vsel %vm14447_vm14, %v9066_v21, %v9050_v18  ;;  %15237 = vst [vmem:[#allocation171_spill] sm:$0xff] %v9082_v30  ;;  %15238 = vst [vmem:[#allocation172_spill] sm:$0xff] %v9084_v50  ;;  %v9096_v51 = vsub.f32 %v8882_v11, %v8451_v45 }
 0x1e3   :  { %4061 = vst.msk [vmem:[#allocation2 + $0x268] sm:$0xff] %vm47_vm0, %v3932_v44  ;;  %4060 = vst.msk [vmem:[#allocation2 + $0x260] sm:$0xff] %vm47_vm0, %v3931_v26  ;;  %1519 = vmin.xlane.f32.xlu1 %v9056_v23  ;;  %1517 = vmin.xlane.f32.xlu0 %v9060_v39  ;;  %v9116_v44 = vld [vmem:[#allocation2 + $0x278] sm:$0xff]  ;;  %v9118_v26 = vld [vmem:[#allocation2 + $0x270] sm:$0xff]  ;;  %v9124_v23 = vsub.f32 %v8882_v11, %v8449_v25  ;;  %v9158_v21 = vsub.f32 %v8882_v11, %v8465_v40 }
 0x1e4   :  { %15239 = vst [vmem:[#allocation173_spill] sm:$0xff] %v9090_v10  ;;  %15240 = vst [vmem:[#allocation174_spill] sm:$0xff] %v9096_v51  ;;  %v9098_v18 = vpop.xlane.xlu1 %1323  ;;  %v9100_v57 = vpop.xlane.xlu0 %1321 }
 0x1e5   :  { %15241 = vst [vmem:[#allocation175_spill] sm:$0xff] %v9098_v18  ;;  %15242 = vst [vmem:[#allocation176_spill] sm:$0xff] %v9100_v57  ;;  %vm14454_vm14 = vcmp.lt.f32.partialorder %v9098_v18, %v9082_v30  ;;  %vm14453_vm15 = vcmp.lt.f32.partialorder %v9100_v57, %v9084_v50 }
 0x1e6   :  { %v3870_v47 = vsel %vm14454_vm14, %v9098_v18, %v9082_v30  ;;  %v3869_v45 = vsel %vm14453_vm15, %v9100_v57, %v9084_v50  ;;  %15243 = vst [vmem:[#allocation177_spill] sm:$0xff] %v9116_v44  ;;  %15244 = vst [vmem:[#allocation178_spill] sm:$0xff] %v9118_v26  ;;  %v9128_v30 = vsub.f32 %v8882_v11, %v8453_v38 }
 0x1e7   :  { %3999 = vst.msk [vmem:[#allocation2 + $0x78] sm:$0xff] %vm47_vm0, %v3870_v47  ;;  %3998 = vst.msk [vmem:[#allocation2 + $0x70] sm:$0xff] %vm47_vm0, %v3869_v45  ;;  %1395 = vmin.xlane.f32.xlu1 %v9090_v10  ;;  %1393 = vmin.xlane.f32.xlu0 %v9096_v51  ;;  %v9150_v47 = vld [vmem:[#allocation2 + $0x88] sm:$0xff]  ;;  %v9152_v45 = vld [vmem:[#allocation2 + $0x80] sm:$0xff] }
 0x1e8   :  { %15245 = vst [vmem:[#allocation179_spill] sm:$0xff] %v9124_v23  ;;  %15246 = vst [vmem:[#allocation180_spill] sm:$0xff] %v9128_v30  ;;  %v9132_v50 = vpop.xlane.xlu1 %1451  ;;  %v9134_v39 = vpop.xlane.xlu0 %1449  ;;  %v9707_v51 = vld [vmem:[#allocation2 + $0x100] sm:$0xff] }
 0x1e9   :  { %15247 = vst [vmem:[#allocation181_spill] sm:$0xff] %v9132_v50  ;;  %15248 = vst [vmem:[#allocation182_spill] sm:$0xff] %v9134_v39  ;;  %vm14462_vm15 = vcmp.lt.f32.partialorder %v9132_v50, %v9116_v44  ;;  %vm14461_vm14 = vcmp.lt.f32.partialorder %v9134_v39, %v9118_v26  ;;  %v15353_v10 = vld [vmem:[#allocation20_spill] sm:$0xff] }
 0x1ea   :  { %v3934_v38 = vsel %vm14462_vm15, %v9132_v50, %v9116_v44  ;;  %v3933_v25 = vsel %vm14461_vm14, %v9134_v39, %v9118_v26  ;;  %15249 = vst [vmem:[#allocation183_spill] sm:$0xff] %v9150_v47  ;;  %15250 = vst [vmem:[#allocation184_spill] sm:$0xff] %v9152_v45  ;;  %v9164_v44 = vsub.f32 %v8882_v11, %v8469_v34 }
 0x1eb   :  { %4063 = vst.msk [vmem:[#allocation2 + $0x278] sm:$0xff] %vm47_vm0, %v3934_v38  ;;  %4062 = vst.msk [vmem:[#allocation2 + $0x270] sm:$0xff] %vm47_vm0, %v3933_v25  ;;  %1523 = vmin.xlane.f32.xlu1 %v9124_v23  ;;  %1521 = vmin.xlane.f32.xlu0 %v9128_v30  ;;  %v9184_v38 = vld [vmem:[#allocation2 + $0x288] sm:$0xff]  ;;  %v9186_v25 = vld [vmem:[#allocation2 + $0x280] sm:$0xff]  ;;  %v9192_v23 = vsub.f32 %v8882_v11, %v8467_v36  ;;  %v9226_v39 = vsub.f32 %v8882_v11, %v8483_v55 }
 0x1ec   :  { %15251 = vst [vmem:[#allocation185_spill] sm:$0xff] %v9158_v21  ;;  %15252 = vst [vmem:[#allocation186_spill] sm:$0xff] %v9164_v44  ;;  %v9166_v26 = vpop.xlane.xlu1 %1327  ;;  %v9168_v50 = vpop.xlane.xlu0 %1325 }
 0x1ed   :  { %15253 = vst [vmem:[#allocation187_spill] sm:$0xff] %v9166_v26  ;;  %15254 = vst [vmem:[#allocation188_spill] sm:$0xff] %v9168_v50  ;;  %vm14468_vm14 = vcmp.lt.f32.partialorder %v9166_v26, %v9150_v47  ;;  %vm14467_vm15 = vcmp.lt.f32.partialorder %v9168_v50, %v9152_v45 }
 0x1ee   :  { %v3872_v40 = vsel %vm14468_vm14, %v9166_v26, %v9150_v47  ;;  %v3871_v34 = vsel %vm14467_vm15, %v9168_v50, %v9152_v45  ;;  %15255 = vst [vmem:[#allocation189_spill] sm:$0xff] %v9184_v38  ;;  %15256 = vst [vmem:[#allocation190_spill] sm:$0xff] %v9186_v25  ;;  %v9196_v47 = vsub.f32 %v8882_v11, %v8471_v37 }
 0x1ef   :  { %4001 = vst.msk [vmem:[#allocation2 + $0x88] sm:$0xff] %vm47_vm0, %v3872_v40  ;;  %4000 = vst.msk [vmem:[#allocation2 + $0x80] sm:$0xff] %vm47_vm0, %v3871_v34  ;;  %1399 = vmin.xlane.f32.xlu1 %v9158_v21  ;;  %1397 = vmin.xlane.f32.xlu0 %v9164_v44  ;;  %v9218_v40 = vld [vmem:[#allocation2 + $0x98] sm:$0xff]  ;;  %v9220_v34 = vld [vmem:[#allocation2 + $0x90] sm:$0xff] }
 0x1f0   :  { %15257 = vst [vmem:[#allocation191_spill] sm:$0xff] %v9192_v23  ;;  %15258 = vst [vmem:[#allocation192_spill] sm:$0xff] %v9196_v47  ;;  %v9200_v45 = vpop.xlane.xlu1 %1455  ;;  %v9202_v30 = vpop.xlane.xlu0 %1453 }
 0x1f1   :  { %15259 = vst [vmem:[#allocation193_spill] sm:$0xff] %v9200_v45  ;;  %15260 = vst [vmem:[#allocation194_spill] sm:$0xff] %v9202_v30  ;;  %vm14476_vm15 = vcmp.lt.f32.partialorder %v9200_v45, %v9184_v38  ;;  %vm14475_vm14 = vcmp.lt.f32.partialorder %v9202_v30, %v9186_v25 }
 0x1f2   :  { %v3936_v37 = vsel %vm14476_vm15, %v9200_v45, %v9184_v38  ;;  %v3935_v36 = vsel %vm14475_vm14, %v9202_v30, %v9186_v25  ;;  %15261 = vst [vmem:[#allocation195_spill] sm:$0xff] %v9218_v40  ;;  %15262 = vst [vmem:[#allocation196_spill] sm:$0xff] %v9220_v34  ;;  %v9232_v38 = vsub.f32 %v8882_v11, %v8487_v33 }
 0x1f3   :  { %4065 = vst.msk [vmem:[#allocation2 + $0x288] sm:$0xff] %vm47_vm0, %v3936_v37  ;;  %4064 = vst.msk [vmem:[#allocation2 + $0x280] sm:$0xff] %vm47_vm0, %v3935_v36  ;;  %1527 = vmin.xlane.f32.xlu1 %v9192_v23  ;;  %1525 = vmin.xlane.f32.xlu0 %v9196_v47  ;;  %v9252_v37 = vld [vmem:[#allocation2 + $0x298] sm:$0xff]  ;;  %v9254_v36 = vld [vmem:[#allocation2 + $0x290] sm:$0xff] }
 0x1f4   :  { %15263 = vst [vmem:[#allocation197_spill] sm:$0xff] %v9226_v39  ;;  %15264 = vst [vmem:[#allocation198_spill] sm:$0xff] %v9232_v38  ;;  %v9234_v25 = vpop.xlane.xlu1 %1331  ;;  %v9236_v45 = vpop.xlane.xlu0 %1329  ;;  %v15269_v23 = vld [vmem:[#allocation69_spill] sm:$0xff] }
 0x1f5   :  { %15265 = vst [vmem:[#allocation199_spill] sm:$0xff] %v9234_v25  ;;  %15266 = vst [vmem:[#allocation200_spill] sm:$0xff] %v9236_v45  ;;  %vm14484_vm14 = vcmp.lt.f32.partialorder %v9234_v25, %v9218_v40  ;;  %vm14483_vm15 = vcmp.lt.f32.partialorder %v9236_v45, %v9220_v34  ;;  %v9260_v47 = vsub.f32 %v8882_v11, %v15269_v23 }
 0x1f6   :  { %v3874_v55 = vsel %vm14484_vm14, %v9234_v25, %v9218_v40  ;;  %v3873_v33 = vsel %vm14483_vm15, %v9236_v45, %v9220_v34  ;;  %15267 = vst [vmem:[#allocation201_spill] sm:$0xff] %v9252_v37  ;;  %15268 = vst [vmem:[#allocation202_spill] sm:$0xff] %v9254_v36  ;;  %v9264_v40 = vsub.f32 %v8882_v11, %v8489_v28 }
 0x1f7   :  { %4003 = vst.msk [vmem:[#allocation2 + $0x98] sm:$0xff] %vm47_vm0, %v3874_v55  ;;  %4002 = vst.msk [vmem:[#allocation2 + $0x90] sm:$0xff] %vm47_vm0, %v3873_v33  ;;  %1403 = vmin.xlane.f32.xlu1 %v9226_v39  ;;  %1401 = vmin.xlane.f32.xlu0 %v9232_v38  ;;  %v9286_v55 = vld [vmem:[#allocation2 + $0xa8] sm:$0xff]  ;;  %v9288_v33 = vld [vmem:[#allocation2 + $0xa0] sm:$0xff]  ;;  %v9294_v38 = vsub.f32 %v8882_v11, %v8501_v48 }
 0x1f8   :  { %15270 = vst [vmem:[#allocation69_spill] sm:$0xff] %v9260_v47  ;;  %15271 = vst [vmem:[#allocation203_spill] sm:$0xff] %v9264_v40  ;;  %v9268_v34 = vpop.xlane.xlu1 %1459  ;;  %v9270_v30 = vpop.xlane.xlu0 %1457 }
 0x1f9   :  { %15272 = vst [vmem:[#allocation204_spill] sm:$0xff] %v9268_v34  ;;  %15273 = vst [vmem:[#allocation205_spill] sm:$0xff] %v9270_v30  ;;  %vm14493_vm15 = vcmp.lt.f32.partialorder %v9268_v34, %v9252_v37  ;;  %vm14492_vm14 = vcmp.lt.f32.partialorder %v9270_v30, %v9254_v36 }
 0x1fa   :  { %v3938_v28 = vsel %vm14493_vm15, %v9268_v34, %v9252_v37  ;;  %v3937_v23 = vsel %vm14492_vm14, %v9270_v30, %v9254_v36  ;;  %15274 = vst [vmem:[#allocation206_spill] sm:$0xff] %v9286_v55  ;;  %15275 = vst [vmem:[#allocation207_spill] sm:$0xff] %v9288_v33  ;;  %v15277_v37 = vld [vmem:[#allocation73_spill] sm:$0xff] }
 0x1fb   :  { %4067 = vst.msk [vmem:[#allocation2 + $0x298] sm:$0xff] %vm47_vm0, %v3938_v28  ;;  %4066 = vst.msk [vmem:[#allocation2 + $0x290] sm:$0xff] %vm47_vm0, %v3937_v23  ;;  %1531 = vmin.xlane.f32.xlu1 %v9260_v47  ;;  %1529 = vmin.xlane.f32.xlu0 %v9264_v40  ;;  %v9300_v34 = vsub.f32 %v8882_v11, %v15277_v37  ;;  %v9320_v28 = vld [vmem:[#allocation2 + $0x2a8] sm:$0xff]  ;;  %v9322_v23 = vld [vmem:[#allocation2 + $0x2a0] sm:$0xff] }
 0x1fc   :  { %15276 = vst [vmem:[#allocation208_spill] sm:$0xff] %v9294_v38  ;;  %v9302_v36 = vpop.xlane.xlu1 %1335  ;;  %v9304_v30 = vpop.xlane.xlu0 %1333  ;;  %15281 = vst [vmem:[#allocation211_spill] sm:$0xff] %v9320_v28  ;;  %v15283_v47 = vld [vmem:[#allocation72_spill] sm:$0xff] }
 0x1fd   :  { %15278 = vst [vmem:[#allocation73_spill] sm:$0xff] %v9300_v34  ;;  %15279 = vst [vmem:[#allocation209_spill] sm:$0xff] %v9302_v36  ;;  %vm14500_vm14 = vcmp.lt.f32.partialorder %v9302_v36, %v9286_v55  ;;  %vm14499_vm15 = vcmp.lt.f32.partialorder %v9304_v30, %v9288_v33  ;;  %v9328_v40 = vsub.f32 %v8882_v11, %v15283_v47 }
 0x1fe   :  { %15280 = vst [vmem:[#allocation210_spill] sm:$0xff] %v9304_v30  ;;  %v3876_v48 = vsel %vm14500_vm14, %v9302_v36, %v9286_v55  ;;  %v3875_v37 = vsel %vm14499_vm15, %v9304_v30, %v9288_v33  ;;  %15282 = vst [vmem:[#allocation212_spill] sm:$0xff] %v9322_v23  ;;  %v9332_v55 = vsub.f32 %v8882_v11, %v8507_v35 }
 0x1ff   :  { %4005 = vst.msk [vmem:[#allocation2 + $0xa8] sm:$0xff] %vm47_vm0, %v3876_v48  ;;  %4004 = vst.msk [vmem:[#allocation2 + $0xa0] sm:$0xff] %vm47_vm0, %v3875_v37  ;;  %1407 = vmin.xlane.f32.xlu1 %v9294_v38  ;;  %1405 = vmin.xlane.f32.xlu0 %v9300_v34  ;;  %v9354_v48 = vld [vmem:[#allocation2 + $0xb8] sm:$0xff]  ;;  %v9356_v37 = vld [vmem:[#allocation2 + $0xb0] sm:$0xff]  ;;  %v9362_v34 = vsub.f32 %v8882_v11, %v8519_v1 }
 0x200   :  { %15284 = vst [vmem:[#allocation72_spill] sm:$0xff] %v9328_v40  ;;  %15285 = vst [vmem:[#allocation213_spill] sm:$0xff] %v9332_v55  ;;  %v9336_v33 = vpop.xlane.xlu1 %1463  ;;  %v9338_v39 = vpop.xlane.xlu0 %1461 }
 0x201   :  { %15286 = vst [vmem:[#allocation214_spill] sm:$0xff] %v9336_v33  ;;  %15287 = vst [vmem:[#allocation215_spill] sm:$0xff] %v9338_v39  ;;  %vm14509_vm15 = vcmp.lt.f32.partialorder %v9336_v33, %v9320_v28  ;;  %vm14508_vm14 = vcmp.lt.f32.partialorder %v9338_v39, %v9322_v23 }
 0x202   :  { %v3940_v35 = vsel %vm14509_vm15, %v9336_v33, %v9320_v28  ;;  %v3939_v47 = vsel %vm14508_vm14, %v9338_v39, %v9322_v23  ;;  %15288 = vst [vmem:[#allocation216_spill] sm:$0xff] %v9354_v48  ;;  %15289 = vst [vmem:[#allocation217_spill] sm:$0xff] %v9356_v37  ;;  %v15291_v28 = vld [vmem:[#allocation77_spill] sm:$0xff] }
 0x203   :  { %4069 = vst.msk [vmem:[#allocation2 + $0x2a8] sm:$0xff] %vm47_vm0, %v3940_v35  ;;  %4068 = vst.msk [vmem:[#allocation2 + $0x2a0] sm:$0xff] %vm47_vm0, %v3939_v47  ;;  %1535 = vmin.xlane.f32.xlu1 %v9328_v40  ;;  %1533 = vmin.xlane.f32.xlu0 %v9332_v55  ;;  %v9368_v33 = vsub.f32 %v8882_v11, %v15291_v28  ;;  %v9388_v35 = vld [vmem:[#allocation2 + $0x2b8] sm:$0xff]  ;;  %v9390_v47 = vld [vmem:[#allocation2 + $0x2b0] sm:$0xff] }
 0x204   :  { %15290 = vst [vmem:[#allocation218_spill] sm:$0xff] %v9362_v34  ;;  %v9370_v23 = vpop.xlane.xlu1 %1339  ;;  %v9372_v39 = vpop.xlane.xlu0 %1337  ;;  %15295 = vst [vmem:[#allocation221_spill] sm:$0xff] %v9388_v35  ;;  %v15297_v40 = vld [vmem:[#allocation76_spill] sm:$0xff] }
 0x205   :  { %15292 = vst [vmem:[#allocation77_spill] sm:$0xff] %v9368_v33  ;;  %15293 = vst [vmem:[#allocation219_spill] sm:$0xff] %v9370_v23  ;;  %vm14516_vm14 = vcmp.lt.f32.partialorder %v9370_v23, %v9354_v48  ;;  %vm14515_vm15 = vcmp.lt.f32.partialorder %v9372_v39, %v9356_v37  ;;  %v9396_v55 = vsub.f32 %v8882_v11, %v15297_v40 }
 0x206   :  { %15294 = vst [vmem:[#allocation220_spill] sm:$0xff] %v9372_v39  ;;  %v3878_v1 = vsel %vm14516_vm14, %v9370_v23, %v9354_v48  ;;  %v3877_v28 = vsel %vm14515_vm15, %v9372_v39, %v9356_v37  ;;  %15296 = vst [vmem:[#allocation222_spill] sm:$0xff] %v9390_v47  ;;  %v9400_v48 = vsub.f32 %v8882_v11, %v8525_v27 }
 0x207   :  { %4007 = vst.msk [vmem:[#allocation2 + $0xb8] sm:$0xff] %vm47_vm0, %v3878_v1  ;;  %4006 = vst.msk [vmem:[#allocation2 + $0xb0] sm:$0xff] %vm47_vm0, %v3877_v28  ;;  %1411 = vmin.xlane.f32.xlu1 %v9362_v34  ;;  %1409 = vmin.xlane.f32.xlu0 %v9368_v33  ;;  %v9422_v1 = vld [vmem:[#allocation2 + $0xc8] sm:$0xff]  ;;  %v9424_v28 = vld [vmem:[#allocation2 + $0xc0] sm:$0xff]  ;;  %v9430_v33 = vsub.f32 %v8882_v11, %v8537_v58 }
 0x208   :  { %15298 = vst [vmem:[#allocation76_spill] sm:$0xff] %v9396_v55  ;;  %15299 = vst [vmem:[#allocation223_spill] sm:$0xff] %v9400_v48  ;;  %v9404_v37 = vpop.xlane.xlu1 %1467  ;;  %v9406_v38 = vpop.xlane.xlu0 %1465 }
 0x209   :  { %15300 = vst [vmem:[#allocation224_spill] sm:$0xff] %v9404_v37  ;;  %15301 = vst [vmem:[#allocation225_spill] sm:$0xff] %v9406_v38  ;;  %vm14525_vm15 = vcmp.lt.f32.partialorder %v9404_v37, %v9388_v35  ;;  %vm14524_vm14 = vcmp.lt.f32.partialorder %v9406_v38, %v9390_v47 }
 0x20a   :  { %v3942_v27 = vsel %vm14525_vm15, %v9404_v37, %v9388_v35  ;;  %v3941_v40 = vsel %vm14524_vm14, %v9406_v38, %v9390_v47  ;;  %15302 = vst [vmem:[#allocation226_spill] sm:$0xff] %v9422_v1  ;;  %15303 = vst [vmem:[#allocation227_spill] sm:$0xff] %v9424_v28  ;;  %v15305_v35 = vld [vmem:[#allocation81_spill] sm:$0xff] }
 0x20b   :  { %4071 = vst.msk [vmem:[#allocation2 + $0x2b8] sm:$0xff] %vm47_vm0, %v3942_v27  ;;  %4070 = vst.msk [vmem:[#allocation2 + $0x2b0] sm:$0xff] %vm47_vm0, %v3941_v40  ;;  %1539 = vmin.xlane.f32.xlu1 %v9396_v55  ;;  %1537 = vmin.xlane.f32.xlu0 %v9400_v48  ;;  %v9436_v37 = vsub.f32 %v8882_v11, %v15305_v35  ;;  %v9456_v27 = vld [vmem:[#allocation2 + $0x2c8] sm:$0xff]  ;;  %v9458_v40 = vld [vmem:[#allocation2 + $0x2c0] sm:$0xff]  ;;  %v14539_v55 = vlaneseq }
 0x20c   :  { %15304 = vst [vmem:[#allocation228_spill] sm:$0xff] %v9430_v33  ;;  %v9438_v47 = vpop.xlane.xlu1 %1343  ;;  %v9440_v38 = vpop.xlane.xlu0 %1341  ;;  %15309 = vst [vmem:[#allocation231_spill] sm:$0xff] %v9456_v27  ;;  %v15311_v48 = vld [vmem:[#allocation80_spill] sm:$0xff] }
 0x20d   :  { %15306 = vst [vmem:[#allocation81_spill] sm:$0xff] %v9436_v37  ;;  %15307 = vst [vmem:[#allocation229_spill] sm:$0xff] %v9438_v47  ;;  %vm14533_vm14 = vcmp.lt.f32.partialorder %v9438_v47, %v9422_v1  ;;  %vm14532_vm15 = vcmp.lt.f32.partialorder %v9440_v38, %v9424_v28  ;;  %v9464_v34 = vsub.f32 %v8882_v11, %v15311_v48 }
 0x20e   :  { %15308 = vst [vmem:[#allocation230_spill] sm:$0xff] %v9440_v38  ;;  %v3880_v58 = vsel %vm14533_vm14, %v9438_v47, %v9422_v1  ;;  %v3879_v35 = vsel %vm14532_vm15, %v9440_v38, %v9424_v28  ;;  %15310 = vst [vmem:[#allocation232_spill] sm:$0xff] %v9458_v40  ;;  %v9468_v1 = vsub.f32 %v8882_v11, %v8543_v46 }
 0x20f   :  { %4009 = vst.msk [vmem:[#allocation2 + $0xc8] sm:$0xff] %vm47_vm0, %v3880_v58  ;;  %4008 = vst.msk [vmem:[#allocation2 + $0xc0] sm:$0xff] %vm47_vm0, %v3879_v35  ;;  %1415 = vmin.xlane.f32.xlu1 %v9430_v33  ;;  %1413 = vmin.xlane.f32.xlu0 %v9436_v37  ;;  %v9490_v58 = vld [vmem:[#allocation2 + $0xd8] sm:$0xff]  ;;  %v9492_v35 = vld [vmem:[#allocation2 + $0xd0] sm:$0xff]  ;;  %v9495_v37 = vand.u32 127, %v14539_v55 }
 0x210   :  { %15312 = vst [vmem:[#allocation80_spill] sm:$0xff] %v9464_v34  ;;  %15313 = vst [vmem:[#allocation233_spill] sm:$0xff] %v9468_v1  ;;  %v9472_v28 = vpop.xlane.xlu1 %1471  ;;  %v9474_v44 = vpop.xlane.xlu0 %1469  ;;  %v15319_v33 = vld [vmem:[#allocation13_spill] sm:$0xff] }
 0x211   :  { %15314 = vst [vmem:[#allocation234_spill] sm:$0xff] %v9472_v28  ;;  %15315 = vst [vmem:[#allocation235_spill] sm:$0xff] %v9474_v44  ;;  %vm14543_vm15 = vcmp.lt.f32.partialorder %v9472_v28, %v9456_v27  ;;  %vm14542_vm14 = vcmp.lt.f32.partialorder %v9474_v44, %v9458_v40  ;;  %vm1552_vm13 = vcmp.eq.f32.partialorder %v15319_v33, %v8619_v0  ;;  %v9529_v33 = vld [vmem:[#allocation2 + $0x2d8] sm:$0xff] }
 0x212   :  { %v3944_v46 = vsel %vm14543_vm15, %v9472_v28, %v9456_v27  ;;  %v3943_v48 = vsel %vm14542_vm14, %v9474_v44, %v9458_v40  ;;  %15316 = vst [vmem:[#allocation236_spill] sm:$0xff] %v9490_v58  ;;  %15317 = vst [vmem:[#allocation237_spill] sm:$0xff] %v9492_v35  ;;  %v9503_v27 = vsub.f32 %v8882_v11, %v8555_v52 }
 0x213   :  { %15318 = vst [vmem:[#allocation238_spill] sm:$0xff] %v9495_v37  ;;  %4073 = vst.msk [vmem:[#allocation2 + $0x2c8] sm:$0xff] %vm47_vm0, %v3944_v46  ;;  %1543 = vmin.xlane.f32.xlu1 %v9464_v34  ;;  %1541 = vmin.xlane.f32.xlu0 %v9468_v1  ;;  %v9509_v40 = vsub.f32 %v8882_v11, %v8559_v54  ;;  %v9531_v46 = vld [vmem:[#allocation2 + $0x2d0] sm:$0xff] }
 0x214   :  { %4072 = vst.msk [vmem:[#allocation2 + $0x2c0] sm:$0xff] %vm47_vm0, %v3943_v48  ;;  %15320 = vst [vmem:[#allocation13_spill] sm:$0xff] %v9503_v27  ;;  %v9511_v55 = vpop.xlane.xlu1 %1347  ;;  %v9513_v28 = vpop.xlane.xlu0 %1345  ;;  %v9534_v48 = vsel %vm1552_vm13, %v9495_v37, 128  ;;  %v15326_v34 = vld [vmem:[#allocation14_spill] sm:$0xff] }
 0x215   :  { %15321 = vst [vmem:[#allocation239_spill] sm:$0xff] %v9509_v40  ;;  %15322 = vst [vmem:[#allocation240_spill] sm:$0xff] %v9511_v55  ;;  %vm14554_vm14 = vcmp.lt.f32.partialorder %v9511_v55, %v9490_v58  ;;  %vm14551_vm15 = vcmp.lt.f32.partialorder %v9513_v28, %v9492_v35  ;;  %vm1616_vm12 = vcmp.eq.f32.partialorder %v15326_v34, %v8617_v3  ;;  %v15343_v3 = vld [vmem:[#allocation16_spill] sm:$0xff] }
 0x216   :  { %15323 = vst [vmem:[#allocation241_spill] sm:$0xff] %v9513_v28  ;;  %v3882_v52 = vsel %vm14554_vm14, %v9511_v55, %v9490_v58  ;;  %v3881_v54 = vsel %vm14551_vm15, %v9513_v28, %v9492_v35  ;;  %15324 = vst [vmem:[#allocation242_spill] sm:$0xff] %v9529_v33  ;;  %v9542_v58 = vsub.f32 %v8882_v11, %v8557_v53  ;;  %v1822_v53 = vshra.s32 %v9534_v48, 16 }
 0x217   :  { %15325 = vst [vmem:[#allocation243_spill] sm:$0xff] %v9531_v46  ;;  %4011 = vst.msk [vmem:[#allocation2 + $0xd8] sm:$0xff] %vm47_vm0, %v3882_v52  ;;  %v9546_v35 = vsub.f32 %v8882_v11, %v8561_v43  ;;  %1419 = vmin.xlane.f32.xlu1 %v9503_v27  ;;  %1417 = vmin.xlane.f32.xlu0 %v9509_v40  ;;  %v9569_v52 = vld [vmem:[#allocation2 + $0xe8] sm:$0xff]  ;;  %v9577_v0 = vsel %vm1616_vm12, %v9495_v37, 128  ;;  %v15333_v40 = vld [vmem:[#allocation15_spill] sm:$0xff] }
 0x218   :  { %4010 = vst.msk [vmem:[#allocation2 + $0xd0] sm:$0xff] %vm47_vm0, %v3881_v54  ;;  %15327 = vst [vmem:[#allocation14_spill] sm:$0xff] %v9542_v58  ;;  %v9550_v1 = vpop.xlane.xlu1 %1475  ;;  %v9552_v44 = vpop.xlane.xlu0 %1473  ;;  %v9571_v54 = vld [vmem:[#allocation2 + $0xe0] sm:$0xff]  ;;  %vm1551_vm14 = vcmp.eq.f32.partialorder %v15333_v40, %v8651_v14  ;;  %v9593_v34 = vcvt.s32.f32 %v1822_v53  ;;  %v2718_v40 = vshra.s32 %v9577_v0, 16  ;;  %v9641_v14 = vld [vmem:[#allocation2 + $0xf0] sm:$0xff] }
 0x219   :  { %15328 = vst [vmem:[#allocation244_spill] sm:$0xff] %v9546_v35  ;;  %15329 = vst [vmem:[#allocation245_spill] sm:$0xff] %v9550_v1  ;;  %vm14562_vm13 = vcmp.lt.f32.partialorder %v9550_v1, %v9529_v33  ;;  %vm14557_vm15 = vcmp.lt.f32.partialorder %v9552_v44, %v9531_v46  ;;  %v9611_v53 = vsel %vm1551_vm14, %v9495_v37, 128  ;;  %v15348_v27 = vld [vmem:[#allocation18_spill] sm:$0xff] }
 0x21a   :  { %15330 = vst [vmem:[#allocation246_spill] sm:$0xff] %v9552_v44  ;;  %v3946_v43 = vsel %vm14562_vm13, %v9550_v1, %v9529_v33  ;;  %v3945_v11 = vsel %vm14557_vm15, %v9552_v44, %v9531_v46  ;;  %15331 = vst [vmem:[#allocation247_spill] sm:$0xff] %v9569_v52  ;;  %v15338_v1 = vld [vmem:[#allocation17_spill] sm:$0xff] }
 0x21b   :  { %15332 = vst [vmem:[#allocation248_spill] sm:$0xff] %v9571_v54  ;;  %4075 = vst.msk [vmem:[#allocation2 + $0x2d8] sm:$0xff] %vm47_vm0, %v3946_v43  ;;  %1547 = vmin.xlane.f32.xlu1 %v9542_v58  ;;  %1545 = vmin.xlane.f32.xlu0 %v9546_v35  ;;  %v9606_v58 = vld [vmem:[#allocation2 + $0x2e8] sm:$0xff]  ;;  %v9608_v35 = vld [vmem:[#allocation2 + $0x2e0] sm:$0xff]  ;;  %vm1615_vm13 = vcmp.eq.f32.partialorder %v15338_v1, %v8685_v17  ;;  %v1808_v1 = vshra.s32 %v9611_v53, 16 }
 0x21c   :  { %4074 = vst.msk [vmem:[#allocation2 + $0x2d0] sm:$0xff] %vm47_vm0, %v3945_v11  ;;  %v9585_v46 = vpop.xlane.xlu1 %1351  ;;  %v9587_v33 = vpop.xlane.xlu0 %1349  ;;  %15336 = vst [vmem:[#allocation250_spill] sm:$0xff] %v9606_v58  ;;  %v9639_v17 = vld [vmem:[#allocation2 + $0xf8] sm:$0xff] }
 0x21d   :  { %15334 = vst [vmem:[#allocation15_spill] sm:$0xff] %v9585_v46  ;;  %15335 = vst [vmem:[#allocation249_spill] sm:$0xff] %v9587_v33  ;;  %vm14571_vm15 = vcmp.lt.f32.partialorder %v9585_v46, %v9569_v52  ;;  %vm14566_vm12 = vcmp.lt.f32.partialorder %v9587_v33, %v9571_v54 }
 0x21e   :  { %v3884_v43 = vsel %vm14571_vm15, %v9585_v46, %v9569_v52  ;;  %v3883_v11 = vsel %vm14566_vm12, %v9587_v33, %v9571_v54  ;;  %15337 = vst [vmem:[#allocation251_spill] sm:$0xff] %v9608_v35  ;;  %v9626_v54 = vcvt.s32.f32 %v2718_v40  ;;  %15341 = vst [vmem:[#allocation253_spill] sm:$0xff] %v9639_v17  ;;  %v9644_v40 = vsel %vm1615_vm13, %v9495_v37, 128 }
 0x21f   :  { %4013 = vst.msk [vmem:[#allocation2 + $0xe8] sm:$0xff] %vm47_vm0, %v3884_v43  ;;  %4012 = vst.msk [vmem:[#allocation2 + $0xe0] sm:$0xff] %vm47_vm0, %v3883_v11  ;;  %1825 = vmin.xlane.f32.xlu0 %v9593_v34  ;;  %vm1554_vm15 = vcmp.eq.f32.partialorder %v15343_v3, %v8653_v2  ;;  %v2704_v3 = vshra.s32 %v9644_v40, 16  ;;  %v9674_v2 = vld [vmem:[#allocation2 + $0x2f0] sm:$0xff] }
 0x220   :  { %v9618_v52 = vpop.xlane.xlu1 %1479  ;;  %v9620_v44 = vpop.xlane.xlu0 %1477  ;;  %15342 = vst [vmem:[#allocation254_spill] sm:$0xff] %v9641_v14  ;;  %15347 = vst [vmem:[#allocation257_spill] sm:$0xff] %v9674_v2 }
 0x221   :  { %15339 = vst [vmem:[#allocation17_spill] sm:$0xff] %v9618_v52  ;;  %15340 = vst [vmem:[#allocation252_spill] sm:$0xff] %v9620_v44  ;;  %vm14581_vm12 = vcmp.lt.f32.partialorder %v9618_v52, %v9606_v58  ;;  %vm14575_vm14 = vcmp.lt.f32.partialorder %v9620_v44, %v9608_v35 }
 0x222   :  { %v3948_v43 = vsel %vm14581_vm12, %v9618_v52, %v9606_v58  ;;  %v3947_v11 = vsel %vm14575_vm14, %v9620_v44, %v9608_v35  ;;  %v9659_v35 = vcvt.s32.f32 %v1808_v1  ;;  %v9672_v44 = vld [vmem:[#allocation2 + $0x2f8] sm:$0xff]  ;;  %v9677_v1 = vsel %vm1554_vm15, %v9495_v37, 128  ;;  %15352 = vst [vmem:[#allocation260_spill] sm:$0xff] %v9707_v51  ;;  %15362 = vst [vmem:[#allocation266_spill] sm:$0xff] %v9773_v8 }
 0x223   :  { %4077 = vst.msk [vmem:[#allocation2 + $0x2e8] sm:$0xff] %vm47_vm0, %v3948_v43  ;;  %4076 = vst.msk [vmem:[#allocation2 + $0x2e0] sm:$0xff] %vm47_vm0, %v3947_v11  ;;  %2721 = vmin.xlane.f32.xlu0 %v9626_v54  ;;  %vm1618_vm12 = vcmp.eq.f32.partialorder %v15348_v27, %v8687_v6  ;;  %v1850_v27 = vshra.s32 %v9677_v1, 16  ;;  %v9705_v6 = vld [vmem:[#allocation2 + $0x108] sm:$0xff] }
 0x224   :  { %v9651_v58 = vpop.xlane.xlu1 %1355  ;;  %v9653_v52 = vpop.xlane.xlu0 %1353  ;;  %15346 = vst [vmem:[#allocation256_spill] sm:$0xff] %v9672_v44  ;;  %15351 = vst [vmem:[#allocation259_spill] sm:$0xff] %v9705_v6 }
 0x225   :  { %15344 = vst [vmem:[#allocation16_spill] sm:$0xff] %v9651_v58  ;;  %15345 = vst [vmem:[#allocation255_spill] sm:$0xff] %v9653_v52  ;;  %vm14589_vm14 = vcmp.lt.f32.partialorder %v9651_v58, %v9639_v17  ;;  %vm14584_vm13 = vcmp.lt.f32.partialorder %v9653_v52, %v9641_v14 }
 0x226   :  { %v3886_v43 = vsel %vm14589_vm14, %v9651_v58, %v9639_v17  ;;  %v3885_v11 = vsel %vm14584_vm13, %v9653_v52, %v9641_v14  ;;  %v9692_v14 = vcvt.s32.f32 %v2704_v3  ;;  %v9710_v3 = vsel %vm1618_vm12, %v9495_v37, 128  ;;  %15374 = vst [vmem:[#allocation274_spill] sm:$0xff] %v9839_v32 }
 0x227   :  { %4015 = vst.msk [vmem:[#allocation2 + $0xf8] sm:$0xff] %vm47_vm0, %v3886_v43  ;;  %4014 = vst.msk [vmem:[#allocation2 + $0xf0] sm:$0xff] %vm47_vm0, %v3885_v11  ;;  %1811 = vmin.xlane.f32.xlu0 %v9659_v35  ;;  %vm1553_vm14 = vcmp.eq.f32.partialorder %v15353_v10, %v8721_v7  ;;  %v2746_v10 = vshra.s32 %v9710_v3, 16  ;;  %v9740_v7 = vld [vmem:[#allocation2 + $0x300] sm:$0xff] }
 0x228   :  { %v9684_v17 = vpop.xlane.xlu1 %1483  ;;  %v9686_v21 = vpop.xlane.xlu0 %1481  ;;  %15357 = vst [vmem:[#allocation263_spill] sm:$0xff] %v9740_v7 }
 0x229   :  { %15349 = vst [vmem:[#allocation18_spill] sm:$0xff] %v9684_v17  ;;  %15350 = vst [vmem:[#allocation258_spill] sm:$0xff] %v9686_v21  ;;  %vm14599_vm13 = vcmp.lt.f32.partialorder %v9684_v17, %v9672_v44  ;;  %vm14593_vm15 = vcmp.lt.f32.partialorder %v9686_v21, %v9674_v2 }
 0x22a   :  { %v3950_v43 = vsel %vm14599_vm13, %v9684_v17, %v9672_v44  ;;  %v3949_v11 = vsel %vm14593_vm15, %v9686_v21, %v9674_v2  ;;  %v9725_v2 = vcvt.s32.f32 %v1850_v27  ;;  %v9738_v21 = vld [vmem:[#allocation2 + $0x308] sm:$0xff]  ;;  %v9743_v27 = vsel %vm1553_vm14, %v9495_v37, 128 }
 0x22b   :  { %4079 = vst.msk [vmem:[#allocation2 + $0x2f8] sm:$0xff] %vm47_vm0, %v3950_v43  ;;  %4078 = vst.msk [vmem:[#allocation2 + $0x2f0] sm:$0xff] %vm47_vm0, %v3949_v11  ;;  %2707 = vmin.xlane.f32.xlu0 %v9692_v14  ;;  %vm1617_vm13 = vcmp.eq.f32.partialorder %v15358_v62, %v8719_v60  ;;  %v1836_v62 = vshra.s32 %v9743_v27, 16  ;;  %v9771_v60 = vld [vmem:[#allocation2 + $0x118] sm:$0xff] }
 0x22c   :  { %v9717_v44 = vpop.xlane.xlu1 %1359  ;;  %v9719_v17 = vpop.xlane.xlu0 %1357  ;;  %15356 = vst [vmem:[#allocation262_spill] sm:$0xff] %v9738_v21  ;;  %15361 = vst [vmem:[#allocation265_spill] sm:$0xff] %v9771_v60 }
 0x22d   :  { %15354 = vst [vmem:[#allocation20_spill] sm:$0xff] %v9717_v44  ;;  %15355 = vst [vmem:[#allocation261_spill] sm:$0xff] %v9719_v17  ;;  %vm14607_vm15 = vcmp.lt.f32.partialorder %v9717_v44, %v9705_v6  ;;  %vm14602_vm12 = vcmp.lt.f32.partialorder %v9719_v17, %v9707_v51 }
 0x22e   :  { %v3888_v43 = vsel %vm14607_vm15, %v9717_v44, %v9705_v6  ;;  %v3887_v11 = vsel %vm14602_vm12, %v9719_v17, %v9707_v51  ;;  %v9758_v51 = vcvt.s32.f32 %v2746_v10  ;;  %v9776_v10 = vsel %vm1617_vm13, %v9495_v37, 128 }
 0x22f   :  { %4017 = vst.msk [vmem:[#allocation2 + $0x108] sm:$0xff] %vm47_vm0, %v3888_v43  ;;  %4016 = vst.msk [vmem:[#allocation2 + $0x100] sm:$0xff] %vm47_vm0, %v3887_v11  ;;  %1853 = vmin.xlane.f32.xlu0 %v9725_v2  ;;  %vm1556_vm15 = vcmp.eq.f32.partialorder %v15363_v13, %v8753_v59  ;;  %v2732_v13 = vshra.s32 %v9776_v10, 16  ;;  %v9806_v59 = vld [vmem:[#allocation2 + $0x310] sm:$0xff] }
 0x230   :  { %v9750_v6 = vpop.xlane.xlu1 %1487  ;;  %v9752_v61 = vpop.xlane.xlu0 %1485  ;;  %15367 = vst [vmem:[#allocation269_spill] sm:$0xff] %v9806_v59 }
 0x231   :  { %15359 = vst [vmem:[#allocation19_spill] sm:$0xff] %v9750_v6  ;;  %15360 = vst [vmem:[#allocation264_spill] sm:$0xff] %v9752_v61  ;;  %vm14617_vm12 = vcmp.lt.f32.partialorder %v9750_v6, %v9738_v21  ;;  %vm14611_vm14 = vcmp.lt.f32.partialorder %v9752_v61, %v9740_v7 }
 0x232   :  { %v3952_v43 = vsel %vm14617_vm12, %v9750_v6, %v9738_v21  ;;  %v3951_v11 = vsel %vm14611_vm14, %v9752_v61, %v9740_v7  ;;  %v9791_v7 = vcvt.s32.f32 %v1836_v62  ;;  %v9804_v61 = vld [vmem:[#allocation2 + $0x318] sm:$0xff]  ;;  %v9809_v62 = vsel %vm1556_vm15, %v9495_v37, 128 }
 0x233   :  { %4081 = vst.msk [vmem:[#allocation2 + $0x308] sm:$0xff] %vm47_vm0, %v3952_v43  ;;  %4080 = vst.msk [vmem:[#allocation2 + $0x300] sm:$0xff] %vm47_vm0, %v3951_v11  ;;  %2749 = vmin.xlane.f32.xlu0 %v9758_v51  ;;  %vm1555_vm12 = vcmp.eq.f32.partialorder %v15369_v22, %v8755_v56  ;;  %v1878_v22 = vshra.s32 %v9809_v62, 16  ;;  %v9837_v56 = vld [vmem:[#allocation2 + $0x128] sm:$0xff] }
 0x234   :  { %v9783_v21 = vpop.xlane.xlu1 %1363  ;;  %v9785_v6 = vpop.xlane.xlu0 %1361  ;;  %15366 = vst [vmem:[#allocation268_spill] sm:$0xff] %v9804_v61  ;;  %15368 = vst [vmem:[#allocation270_spill] sm:$0xff] %v9809_v62  ;;  %v15376_v62 = vld [vmem:[#allocation24_spill] sm:$0xff] }
 0x235   :  { %15364 = vst [vmem:[#allocation21_spill] sm:$0xff] %v9783_v21  ;;  %15365 = vst [vmem:[#allocation267_spill] sm:$0xff] %v9785_v6  ;;  %vm14625_vm14 = vcmp.lt.f32.partialorder %v9783_v21, %v9771_v60  ;;  %vm14620_vm13 = vcmp.lt.f32.partialorder %v9785_v6, %v9773_v8 }
 0x236   :  { %v3890_v43 = vsel %vm14625_vm14, %v9783_v21, %v9771_v60  ;;  %v3889_v11 = vsel %vm14620_vm13, %v9785_v6, %v9773_v8  ;;  %v9824_v8 = vcvt.s32.f32 %v2732_v13  ;;  %15373 = vst [vmem:[#allocation273_spill] sm:$0xff] %v9837_v56  ;;  %v9842_v13 = vsel %vm1555_vm12, %v9495_v37, 128 }
 0x237   :  { %4019 = vst.msk [vmem:[#allocation2 + $0x118] sm:$0xff] %vm47_vm0, %v3890_v43  ;;  %4018 = vst.msk [vmem:[#allocation2 + $0x110] sm:$0xff] %vm47_vm0, %v3889_v11  ;;  %1839 = vmin.xlane.f32.xlu0 %v9791_v7  ;;  %vm1619_vm14 = vcmp.eq.f32.partialorder %v15376_v62, %v8789_v20  ;;  %v1864_v62 = vshra.s32 %v9842_v13, 16  ;;  %v9870_v20 = vld [vmem:[#allocation2 + $0x328] sm:$0xff] }
 0x238   :  { %v9816_v60 = vpop.xlane.xlu1 %1491  ;;  %v9818_v41 = vpop.xlane.xlu0 %1489  ;;  %15372 = vst [vmem:[#allocation272_spill] sm:$0xff] %v9824_v8  ;;  %15375 = vst [vmem:[#allocation275_spill] sm:$0xff] %v9842_v13  ;;  %v15383_v13 = vld [vmem:[#allocation25_spill] sm:$0xff] }
 0x239   :  { %15370 = vst [vmem:[#allocation22_spill] sm:$0xff] %v9816_v60  ;;  %15371 = vst [vmem:[#allocation271_spill] sm:$0xff] %v9818_v41  ;;  %vm14635_vm13 = vcmp.lt.f32.partialorder %v9816_v60, %v9804_v61  ;;  %vm14629_vm15 = vcmp.lt.f32.partialorder %v9818_v41, %v9806_v59 }
 0x23a   :  { %v3954_v43 = vsel %vm14635_vm13, %v9816_v60, %v9804_v61  ;;  %v3953_v11 = vsel %vm14629_vm15, %v9818_v41, %v9806_v59  ;;  %v9857_v59 = vcvt.s32.f32 %v1878_v22  ;;  %15380 = vst [vmem:[#allocation278_spill] sm:$0xff] %v9870_v20  ;;  %v9872_v41 = vld [vmem:[#allocation2 + $0x320] sm:$0xff]  ;;  %v9875_v22 = vsel %vm1619_vm14, %v9495_v37, 128 }
 0x23b   :  { %4083 = vst.msk [vmem:[#allocation2 + $0x318] sm:$0xff] %vm47_vm0, %v3954_v43  ;;  %4082 = vst.msk [vmem:[#allocation2 + $0x310] sm:$0xff] %vm47_vm0, %v3953_v11  ;;  %2735 = vmin.xlane.f32.xlu0 %v9824_v8  ;;  %vm1558_vm13 = vcmp.eq.f32.partialorder %v15383_v13, %v8821_v12  ;;  %v2760_v13 = vshra.s32 %v9875_v22, 16  ;;  %v9903_v12 = vld [vmem:[#allocation2 + $0x138] sm:$0xff] }
 0x23c   :  { %v9849_v61 = vpop.xlane.xlu1 %1367  ;;  %v9851_v60 = vpop.xlane.xlu0 %1365  ;;  %15379 = vst [vmem:[#allocation277_spill] sm:$0xff] %v9857_v59  ;;  %15381 = vst [vmem:[#allocation279_spill] sm:$0xff] %v9872_v41 }
 0x23d   :  { %15377 = vst [vmem:[#allocation24_spill] sm:$0xff] %v9849_v61  ;;  %15378 = vst [vmem:[#allocation276_spill] sm:$0xff] %v9851_v60  ;;  %vm14643_vm15 = vcmp.lt.f32.partialorder %v9849_v61, %v9837_v56  ;;  %vm14638_vm12 = vcmp.lt.f32.partialorder %v9851_v60, %v9839_v32 }
 0x23e   :  { %v3892_v43 = vsel %vm14643_vm15, %v9849_v61, %v9837_v56  ;;  %v3891_v11 = vsel %vm14638_vm12, %v9851_v60, %v9839_v32  ;;  %15382 = vst [vmem:[#allocation280_spill] sm:$0xff] %v9875_v22  ;;  %v9890_v32 = vcvt.s32.f32 %v1864_v62  ;;  %15387 = vst [vmem:[#allocation283_spill] sm:$0xff] %v9903_v12  ;;  %v9908_v62 = vsel %vm1558_vm13, %v9495_v37, 128  ;;  %v15390_v22 = vld [vmem:[#allocation26_spill] sm:$0xff] }
 0x23f   :  { %4021 = vst.msk [vmem:[#allocation2 + $0x128] sm:$0xff] %vm47_vm0, %v3892_v43  ;;  %4020 = vst.msk [vmem:[#allocation2 + $0x120] sm:$0xff] %vm47_vm0, %v3891_v11  ;;  %1881 = vmin.xlane.f32.xlu0 %v9857_v59  ;;  %v9905_v59 = vld [vmem:[#allocation2 + $0x130] sm:$0xff]  ;;  %vm1557_vm15 = vcmp.eq.f32.partialorder %v15390_v22, %v8823_v42  ;;  %v1906_v22 = vshra.s32 %v9908_v62, 16  ;;  %v9936_v42 = vld [vmem:[#allocation2 + $0x338] sm:$0xff] }
 0x240   :  { %v9882_v56 = vpop.xlane.xlu1 %1495  ;;  %v9884_v8 = vpop.xlane.xlu0 %1493  ;;  %15386 = vst [vmem:[#allocation282_spill] sm:$0xff] %v9890_v32  ;;  %15388 = vst [vmem:[#allocation284_spill] sm:$0xff] %v9905_v59 }
 0x241   :  { %15384 = vst [vmem:[#allocation25_spill] sm:$0xff] %v9882_v56  ;;  %15385 = vst [vmem:[#allocation281_spill] sm:$0xff] %v9884_v8  ;;  %vm14653_vm12 = vcmp.lt.f32.partialorder %v9882_v56, %v9870_v20  ;;  %vm14647_vm14 = vcmp.lt.f32.partialorder %v9884_v8, %v9872_v41 }
 0x242   :  { %v3956_v43 = vsel %vm14653_vm12, %v9882_v56, %v9870_v20  ;;  %v3955_v11 = vsel %vm14647_vm14, %v9884_v8, %v9872_v41  ;;  %15389 = vst [vmem:[#allocation285_spill] sm:$0xff] %v9908_v62  ;;  %v9923_v41 = vcvt.s32.f32 %v2760_v13  ;;  %15394 = vst [vmem:[#allocation288_spill] sm:$0xff] %v9936_v42  ;;  %v9938_v8 = vld [vmem:[#allocation2 + $0x330] sm:$0xff]  ;;  %v9941_v13 = vsel %vm1557_vm15, %v9495_v37, 128  ;;  %v15397_v62 = vld [vmem:[#allocation29_spill] sm:$0xff] }
 0x243   :  { %4085 = vst.msk [vmem:[#allocation2 + $0x328] sm:$0xff] %vm47_vm0, %v3956_v43  ;;  %4084 = vst.msk [vmem:[#allocation2 + $0x320] sm:$0xff] %vm47_vm0, %v3955_v11  ;;  %1867 = vmin.xlane.f32.xlu0 %v9890_v32  ;;  %vm1560_vm12 = vcmp.eq.f32.partialorder %v15397_v62, %v8894_v24  ;;  %v1892_v62 = vshra.s32 %v9941_v13, 16  ;;  %v9969_v24 = vld [vmem:[#allocation2 + $0x148] sm:$0xff] }
 0x244   :  { %v9915_v20 = vpop.xlane.xlu1 %1371  ;;  %v9917_v56 = vpop.xlane.xlu0 %1369  ;;  %15393 = vst [vmem:[#allocation287_spill] sm:$0xff] %v9923_v41  ;;  %15395 = vst [vmem:[#allocation289_spill] sm:$0xff] %v9938_v8 }
 0x245   :  { %15391 = vst [vmem:[#allocation26_spill] sm:$0xff] %v9915_v20  ;;  %15392 = vst [vmem:[#allocation286_spill] sm:$0xff] %v9917_v56  ;;  %vm14661_vm14 = vcmp.lt.f32.partialorder %v9915_v20, %v9903_v12  ;;  %vm14656_vm13 = vcmp.lt.f32.partialorder %v9917_v56, %v9905_v59 }
 0x246   :  { %v3894_v43 = vsel %vm14661_vm14, %v9915_v20, %v9903_v12  ;;  %v3893_v11 = vsel %vm14656_vm13, %v9917_v56, %v9905_v59  ;;  %15396 = vst [vmem:[#allocation290_spill] sm:$0xff] %v9941_v13  ;;  %v9956_v59 = vcvt.s32.f32 %v1906_v22  ;;  %15401 = vst [vmem:[#allocation293_spill] sm:$0xff] %v9969_v24  ;;  %v9974_v22 = vsel %vm1560_vm12, %v9495_v37, 128  ;;  %v15404_v13 = vld [vmem:[#allocation30_spill] sm:$0xff] }
 0x247   :  { %4023 = vst.msk [vmem:[#allocation2 + $0x138] sm:$0xff] %vm47_vm0, %v3894_v43  ;;  %4022 = vst.msk [vmem:[#allocation2 + $0x130] sm:$0xff] %vm47_vm0, %v3893_v11  ;;  %2763 = vmin.xlane.f32.xlu0 %v9923_v41  ;;  %v9971_v41 = vld [vmem:[#allocation2 + $0x140] sm:$0xff]  ;;  %vm1559_vm14 = vcmp.eq.f32.partialorder %v15404_v13, %v8896_v5  ;;  %v1934_v13 = vshra.s32 %v9974_v22, 16  ;;  %v10002_v5 = vld [vmem:[#allocation2 + $0x348] sm:$0xff] }
 0x248   :  { %v9948_v12 = vpop.xlane.xlu1 %1499  ;;  %v9950_v32 = vpop.xlane.xlu0 %1497  ;;  %15400 = vst [vmem:[#allocation292_spill] sm:$0xff] %v9956_v59  ;;  %15402 = vst [vmem:[#allocation294_spill] sm:$0xff] %v9971_v41 }
 0x249   :  { %15398 = vst [vmem:[#allocation29_spill] sm:$0xff] %v9948_v12  ;;  %15399 = vst [vmem:[#allocation291_spill] sm:$0xff] %v9950_v32  ;;  %vm14671_vm13 = vcmp.lt.f32.partialorder %v9948_v12, %v9936_v42  ;;  %vm14665_vm15 = vcmp.lt.f32.partialorder %v9950_v32, %v9938_v8 }
 0x24a   :  { %v3958_v43 = vsel %vm14671_vm13, %v9948_v12, %v9936_v42  ;;  %v3957_v11 = vsel %vm14665_vm15, %v9950_v32, %v9938_v8  ;;  %15403 = vst [vmem:[#allocation295_spill] sm:$0xff] %v9974_v22  ;;  %v9989_v8 = vcvt.s32.f32 %v1892_v62  ;;  %15408 = vst [vmem:[#allocation298_spill] sm:$0xff] %v10002_v5  ;;  %v10004_v32 = vld [vmem:[#allocation2 + $0x340] sm:$0xff]  ;;  %v10007_v62 = vsel %vm1559_vm14, %v9495_v37, 128  ;;  %v15411_v22 = vld [vmem:[#allocation33_spill] sm:$0xff] }
 0x24b   :  { %4087 = vst.msk [vmem:[#allocation2 + $0x338] sm:$0xff] %vm47_vm0, %v3958_v43  ;;  %4086 = vst.msk [vmem:[#allocation2 + $0x330] sm:$0xff] %vm47_vm0, %v3957_v11  ;;  %1909 = vmin.xlane.f32.xlu0 %v9956_v59  ;;  %vm1562_vm13 = vcmp.eq.f32.partialorder %v15411_v22, %v8962_v15  ;;  %v1920_v22 = vshra.s32 %v10007_v62, 16  ;;  %v10035_v15 = vld [vmem:[#allocation2 + $0x158] sm:$0xff] }
 0x24c   :  { %v9981_v42 = vpop.xlane.xlu1 %1375  ;;  %v9983_v12 = vpop.xlane.xlu0 %1373  ;;  %15407 = vst [vmem:[#allocation297_spill] sm:$0xff] %v9989_v8  ;;  %15409 = vst [vmem:[#allocation299_spill] sm:$0xff] %v10004_v32 }
 0x24d   :  { %15405 = vst [vmem:[#allocation30_spill] sm:$0xff] %v9981_v42  ;;  %15406 = vst [vmem:[#allocation296_spill] sm:$0xff] %v9983_v12  ;;  %vm14679_vm15 = vcmp.lt.f32.partialorder %v9981_v42, %v9969_v24  ;;  %vm14674_vm12 = vcmp.lt.f32.partialorder %v9983_v12, %v9971_v41 }
 0x24e   :  { %v3896_v43 = vsel %vm14679_vm15, %v9981_v42, %v9969_v24  ;;  %v3895_v11 = vsel %vm14674_vm12, %v9983_v12, %v9971_v41  ;;  %15410 = vst [vmem:[#allocation300_spill] sm:$0xff] %v10007_v62  ;;  %v10022_v41 = vcvt.s32.f32 %v1934_v13  ;;  %15415 = vst [vmem:[#allocation303_spill] sm:$0xff] %v10035_v15  ;;  %v10040_v13 = vsel %vm1562_vm13, %v9495_v37, 128  ;;  %v15418_v62 = vld [vmem:[#allocation34_spill] sm:$0xff] }
 0x24f   :  { %4025 = vst.msk [vmem:[#allocation2 + $0x148] sm:$0xff] %vm47_vm0, %v3896_v43  ;;  %4024 = vst.msk [vmem:[#allocation2 + $0x140] sm:$0xff] %vm47_vm0, %v3895_v11  ;;  %1895 = vmin.xlane.f32.xlu0 %v9989_v8  ;;  %v10037_v8 = vld [vmem:[#allocation2 + $0x150] sm:$0xff]  ;;  %vm1561_vm15 = vcmp.eq.f32.partialorder %v15418_v62, %v8964_v29  ;;  %v1962_v62 = vshra.s32 %v10040_v13, 16  ;;  %v10068_v29 = vld [vmem:[#allocation2 + $0x358] sm:$0xff] }
 0x250   :  { %v10014_v24 = vpop.xlane.xlu1 %1503  ;;  %v10016_v59 = vpop.xlane.xlu0 %1501  ;;  %15414 = vst [vmem:[#allocation302_spill] sm:$0xff] %v10022_v41  ;;  %15416 = vst [vmem:[#allocation304_spill] sm:$0xff] %v10037_v8 }
 0x251   :  { %15412 = vst [vmem:[#allocation33_spill] sm:$0xff] %v10014_v24  ;;  %15413 = vst [vmem:[#allocation301_spill] sm:$0xff] %v10016_v59  ;;  %vm14683_vm12 = vcmp.lt.f32.partialorder %v10014_v24, %v10002_v5  ;;  %vm14689_vm14 = vcmp.lt.f32.partialorder %v10016_v59, %v10004_v32 }
 0x252   :  { %v3960_v43 = vsel %vm14683_vm12, %v10014_v24, %v10002_v5  ;;  %v3959_v11 = vsel %vm14689_vm14, %v10016_v59, %v10004_v32  ;;  %15417 = vst [vmem:[#allocation305_spill] sm:$0xff] %v10040_v13  ;;  %v10055_v32 = vcvt.s32.f32 %v1920_v22  ;;  %15422 = vst [vmem:[#allocation308_spill] sm:$0xff] %v10068_v29  ;;  %v10070_v59 = vld [vmem:[#allocation2 + $0x350] sm:$0xff]  ;;  %v10073_v22 = vsel %vm1561_vm15, %v9495_v37, 128  ;;  %v15425_v13 = vld [vmem:[#allocation37_spill] sm:$0xff] }
 0x253   :  { %4089 = vst.msk [vmem:[#allocation2 + $0x348] sm:$0xff] %vm47_vm0, %v3960_v43  ;;  %4088 = vst.msk [vmem:[#allocation2 + $0x340] sm:$0xff] %vm47_vm0, %v3959_v11  ;;  %1937 = vmin.xlane.f32.xlu0 %v10022_v41  ;;  %vm1564_vm14 = vcmp.eq.f32.partialorder %v15425_v13, %v9030_v19  ;;  %v1948_v13 = vshra.s32 %v10073_v22, 16  ;;  %v10101_v19 = vld [vmem:[#allocation2 + $0x168] sm:$0xff] }
 0x254   :  { %v10047_v5 = vpop.xlane.xlu1 %1379  ;;  %v10049_v24 = vpop.xlane.xlu0 %1377  ;;  %15421 = vst [vmem:[#allocation307_spill] sm:$0xff] %v10055_v32  ;;  %15423 = vst [vmem:[#allocation309_spill] sm:$0xff] %v10070_v59 }
 0x255   :  { %15419 = vst [vmem:[#allocation34_spill] sm:$0xff] %v10047_v5  ;;  %15420 = vst [vmem:[#allocation306_spill] sm:$0xff] %v10049_v24  ;;  %vm14697_vm12 = vcmp.lt.f32.partialorder %v10047_v5, %v10035_v15  ;;  %vm14692_vm13 = vcmp.lt.f32.partialorder %v10049_v24, %v10037_v8 }
 0x256   :  { %v3898_v43 = vsel %vm14697_vm12, %v10047_v5, %v10035_v15  ;;  %v3897_v11 = vsel %vm14692_vm13, %v10049_v24, %v10037_v8  ;;  %15424 = vst [vmem:[#allocation310_spill] sm:$0xff] %v10073_v22  ;;  %v10088_v8 = vcvt.s32.f32 %v1962_v62  ;;  %15429 = vst [vmem:[#allocation313_spill] sm:$0xff] %v10101_v19  ;;  %v10106_v62 = vsel %vm1564_vm14, %v9495_v37, 128  ;;  %v15432_v22 = vld [vmem:[#allocation38_spill] sm:$0xff] }
 0x257   :  { %4027 = vst.msk [vmem:[#allocation2 + $0x158] sm:$0xff] %vm47_vm0, %v3898_v43  ;;  %4026 = vst.msk [vmem:[#allocation2 + $0x150] sm:$0xff] %vm47_vm0, %v3897_v11  ;;  %1923 = vmin.xlane.f32.xlu0 %v10055_v32  ;;  %v10103_v32 = vld [vmem:[#allocation2 + $0x160] sm:$0xff]  ;;  %vm1563_vm12 = vcmp.eq.f32.partialorder %v15432_v22, %v9032_v63  ;;  %v1990_v22 = vshra.s32 %v10106_v62, 16  ;;  %v10134_v63 = vld [vmem:[#allocation2 + $0x368] sm:$0xff] }
 0x258   :  { %v10080_v15 = vpop.xlane.xlu1 %1507  ;;  %v10082_v41 = vpop.xlane.xlu0 %1505  ;;  %15428 = vst [vmem:[#allocation312_spill] sm:$0xff] %v10088_v8  ;;  %15430 = vst [vmem:[#allocation314_spill] sm:$0xff] %v10103_v32 }
 0x259   :  { %15426 = vst [vmem:[#allocation37_spill] sm:$0xff] %v10080_v15  ;;  %15427 = vst [vmem:[#allocation311_spill] sm:$0xff] %v10082_v41  ;;  %vm14701_vm13 = vcmp.lt.f32.partialorder %v10080_v15, %v10068_v29  ;;  %vm14707_vm15 = vcmp.lt.f32.partialorder %v10082_v41, %v10070_v59 }
 0x25a   :  { %v3962_v43 = vsel %vm14701_vm13, %v10080_v15, %v10068_v29  ;;  %v3961_v11 = vsel %vm14707_vm15, %v10082_v41, %v10070_v59  ;;  %15431 = vst [vmem:[#allocation315_spill] sm:$0xff] %v10106_v62  ;;  %v10121_v59 = vcvt.s32.f32 %v1948_v13  ;;  %15436 = vst [vmem:[#allocation318_spill] sm:$0xff] %v10134_v63  ;;  %v10136_v41 = vld [vmem:[#allocation2 + $0x360] sm:$0xff]  ;;  %v10139_v13 = vsel %vm1563_vm12, %v9495_v37, 128  ;;  %v15439_v62 = vld [vmem:[#allocation41_spill] sm:$0xff] }
 0x25b   :  { %4091 = vst.msk [vmem:[#allocation2 + $0x358] sm:$0xff] %vm47_vm0, %v3962_v43  ;;  %4090 = vst.msk [vmem:[#allocation2 + $0x350] sm:$0xff] %vm47_vm0, %v3961_v11  ;;  %1965 = vmin.xlane.f32.xlu0 %v10088_v8  ;;  %vm1566_vm15 = vcmp.eq.f32.partialorder %v15439_v62, %v9098_v18  ;;  %v1976_v62 = vshra.s32 %v10139_v13, 16  ;;  %v10167_v18 = vld [vmem:[#allocation2 + $0x178] sm:$0xff] }
 0x25c   :  { %v10113_v29 = vpop.xlane.xlu1 %1383  ;;  %v10115_v15 = vpop.xlane.xlu0 %1381  ;;  %15435 = vst [vmem:[#allocation317_spill] sm:$0xff] %v10121_v59  ;;  %15437 = vst [vmem:[#allocation319_spill] sm:$0xff] %v10136_v41 }
 0x25d   :  { %15433 = vst [vmem:[#allocation38_spill] sm:$0xff] %v10113_v29  ;;  %15434 = vst [vmem:[#allocation316_spill] sm:$0xff] %v10115_v15  ;;  %vm14715_vm13 = vcmp.lt.f32.partialorder %v10113_v29, %v10101_v19  ;;  %vm14710_vm14 = vcmp.lt.f32.partialorder %v10115_v15, %v10103_v32 }
 0x25e   :  { %v3900_v43 = vsel %vm14715_vm13, %v10113_v29, %v10101_v19  ;;  %v3899_v11 = vsel %vm14710_vm14, %v10115_v15, %v10103_v32  ;;  %15438 = vst [vmem:[#allocation320_spill] sm:$0xff] %v10139_v13  ;;  %v10154_v32 = vcvt.s32.f32 %v1990_v22  ;;  %15443 = vst [vmem:[#allocation323_spill] sm:$0xff] %v10167_v18  ;;  %v10172_v22 = vsel %vm1566_vm15, %v9495_v37, 128  ;;  %v15446_v13 = vld [vmem:[#allocation42_spill] sm:$0xff] }
 0x25f   :  { %4029 = vst.msk [vmem:[#allocation2 + $0x168] sm:$0xff] %vm47_vm0, %v3900_v43  ;;  %4028 = vst.msk [vmem:[#allocation2 + $0x160] sm:$0xff] %vm47_vm0, %v3899_v11  ;;  %1951 = vmin.xlane.f32.xlu0 %v10121_v59  ;;  %v10169_v59 = vld [vmem:[#allocation2 + $0x170] sm:$0xff]  ;;  %vm1565_vm13 = vcmp.eq.f32.partialorder %v15446_v13, %v9100_v57  ;;  %v2018_v13 = vshra.s32 %v10172_v22, 16  ;;  %v10200_v57 = vld [vmem:[#allocation2 + $0x378] sm:$0xff] }
 0x260   :  { %v10146_v19 = vpop.xlane.xlu1 %1511  ;;  %v10148_v8 = vpop.xlane.xlu0 %1509  ;;  %15442 = vst [vmem:[#allocation322_spill] sm:$0xff] %v10154_v32  ;;  %15444 = vst [vmem:[#allocation324_spill] sm:$0xff] %v10169_v59 }
 0x261   :  { %15440 = vst [vmem:[#allocation41_spill] sm:$0xff] %v10146_v19  ;;  %15441 = vst [vmem:[#allocation321_spill] sm:$0xff] %v10148_v8  ;;  %vm14719_vm14 = vcmp.lt.f32.partialorder %v10146_v19, %v10134_v63  ;;  %vm14725_vm12 = vcmp.lt.f32.partialorder %v10148_v8, %v10136_v41 }
 0x262   :  { %v3964_v43 = vsel %vm14719_vm14, %v10146_v19, %v10134_v63  ;;  %v3963_v11 = vsel %vm14725_vm12, %v10148_v8, %v10136_v41  ;;  %15445 = vst [vmem:[#allocation325_spill] sm:$0xff] %v10172_v22  ;;  %v10187_v41 = vcvt.s32.f32 %v1976_v62  ;;  %15450 = vst [vmem:[#allocation328_spill] sm:$0xff] %v10200_v57  ;;  %v10202_v8 = vld [vmem:[#allocation2 + $0x370] sm:$0xff]  ;;  %v10205_v62 = vsel %vm1565_vm13, %v9495_v37, 128  ;;  %v15453_v22 = vld [vmem:[#allocation45_spill] sm:$0xff] }
 0x263   :  { %4093 = vst.msk [vmem:[#allocation2 + $0x368] sm:$0xff] %vm47_vm0, %v3964_v43  ;;  %4092 = vst.msk [vmem:[#allocation2 + $0x360] sm:$0xff] %vm47_vm0, %v3963_v11  ;;  %1993 = vmin.xlane.f32.xlu0 %v10154_v32  ;;  %vm1568_vm12 = vcmp.eq.f32.partialorder %v15453_v22, %v9166_v26  ;;  %v2004_v22 = vshra.s32 %v10205_v62, 16  ;;  %v10233_v26 = vld [vmem:[#allocation2 + $0x188] sm:$0xff] }
 0x264   :  { %v10179_v63 = vpop.xlane.xlu1 %1387  ;;  %v10181_v19 = vpop.xlane.xlu0 %1385  ;;  %15449 = vst [vmem:[#allocation327_spill] sm:$0xff] %v10187_v41  ;;  %15451 = vst [vmem:[#allocation329_spill] sm:$0xff] %v10202_v8 }
 0x265   :  { %15447 = vst [vmem:[#allocation42_spill] sm:$0xff] %v10179_v63  ;;  %15448 = vst [vmem:[#allocation326_spill] sm:$0xff] %v10181_v19  ;;  %vm14733_vm14 = vcmp.lt.f32.partialorder %v10179_v63, %v10167_v18  ;;  %vm14728_vm15 = vcmp.lt.f32.partialorder %v10181_v19, %v10169_v59 }
 0x266   :  { %v3902_v43 = vsel %vm14733_vm14, %v10179_v63, %v10167_v18  ;;  %v3901_v11 = vsel %vm14728_vm15, %v10181_v19, %v10169_v59  ;;  %15452 = vst [vmem:[#allocation330_spill] sm:$0xff] %v10205_v62  ;;  %v10220_v59 = vcvt.s32.f32 %v2018_v13  ;;  %15457 = vst [vmem:[#allocation333_spill] sm:$0xff] %v10233_v26  ;;  %v10238_v13 = vsel %vm1568_vm12, %v9495_v37, 128  ;;  %v15460_v62 = vld [vmem:[#allocation46_spill] sm:$0xff] }
 0x267   :  { %4031 = vst.msk [vmem:[#allocation2 + $0x178] sm:$0xff] %vm47_vm0, %v3902_v43  ;;  %4030 = vst.msk [vmem:[#allocation2 + $0x170] sm:$0xff] %vm47_vm0, %v3901_v11  ;;  %1979 = vmin.xlane.f32.xlu0 %v10187_v41  ;;  %v10235_v41 = vld [vmem:[#allocation2 + $0x180] sm:$0xff]  ;;  %vm1567_vm14 = vcmp.eq.f32.partialorder %v15460_v62, %v9168_v50  ;;  %v2046_v62 = vshra.s32 %v10238_v13, 16  ;;  %v10266_v50 = vld [vmem:[#allocation2 + $0x388] sm:$0xff] }
 0x268   :  { %v10212_v18 = vpop.xlane.xlu1 %1515  ;;  %v10214_v32 = vpop.xlane.xlu0 %1513  ;;  %15456 = vst [vmem:[#allocation332_spill] sm:$0xff] %v10220_v59  ;;  %15458 = vst [vmem:[#allocation334_spill] sm:$0xff] %v10235_v41 }
 0x269   :  { %15454 = vst [vmem:[#allocation45_spill] sm:$0xff] %v10212_v18  ;;  %15455 = vst [vmem:[#allocation331_spill] sm:$0xff] %v10214_v32  ;;  %vm14737_vm15 = vcmp.lt.f32.partialorder %v10212_v18, %v10200_v57  ;;  %vm14743_vm13 = vcmp.lt.f32.partialorder %v10214_v32, %v10202_v8 }
 0x26a   :  { %v3966_v43 = vsel %vm14737_vm15, %v10212_v18, %v10200_v57  ;;  %v3965_v11 = vsel %vm14743_vm13, %v10214_v32, %v10202_v8  ;;  %15459 = vst [vmem:[#allocation335_spill] sm:$0xff] %v10238_v13  ;;  %v10253_v8 = vcvt.s32.f32 %v2004_v22  ;;  %15464 = vst [vmem:[#allocation338_spill] sm:$0xff] %v10266_v50  ;;  %v10268_v32 = vld [vmem:[#allocation2 + $0x380] sm:$0xff]  ;;  %v10271_v22 = vsel %vm1567_vm14, %v9495_v37, 128  ;;  %v15467_v13 = vld [vmem:[#allocation49_spill] sm:$0xff] }
 0x26b   :  { %4095 = vst.msk [vmem:[#allocation2 + $0x378] sm:$0xff] %vm47_vm0, %v3966_v43  ;;  %4094 = vst.msk [vmem:[#allocation2 + $0x370] sm:$0xff] %vm47_vm0, %v3965_v11  ;;  %2021 = vmin.xlane.f32.xlu0 %v10220_v59  ;;  %vm1570_vm13 = vcmp.eq.f32.partialorder %v15467_v13, %v9234_v25  ;;  %v2032_v13 = vshra.s32 %v10271_v22, 16  ;;  %v10299_v25 = vld [vmem:[#allocation2 + $0x198] sm:$0xff] }
 0x26c   :  { %v10245_v57 = vpop.xlane.xlu1 %1391  ;;  %v10247_v18 = vpop.xlane.xlu0 %1389  ;;  %15463 = vst [vmem:[#allocation337_spill] sm:$0xff] %v10253_v8  ;;  %15465 = vst [vmem:[#allocation339_spill] sm:$0xff] %v10268_v32 }
 0x26d   :  { %15461 = vst [vmem:[#allocation46_spill] sm:$0xff] %v10245_v57  ;;  %15462 = vst [vmem:[#allocation336_spill] sm:$0xff] %v10247_v18  ;;  %vm14751_vm15 = vcmp.lt.f32.partialorder %v10245_v57, %v10233_v26  ;;  %vm14746_vm12 = vcmp.lt.f32.partialorder %v10247_v18, %v10235_v41 }
 0x26e   :  { %v3904_v43 = vsel %vm14751_vm15, %v10245_v57, %v10233_v26  ;;  %v3903_v11 = vsel %vm14746_vm12, %v10247_v18, %v10235_v41  ;;  %15466 = vst [vmem:[#allocation340_spill] sm:$0xff] %v10271_v22  ;;  %v10286_v41 = vcvt.s32.f32 %v2046_v62  ;;  %15471 = vst [vmem:[#allocation343_spill] sm:$0xff] %v10299_v25  ;;  %v10304_v62 = vsel %vm1570_vm13, %v9495_v37, 128  ;;  %v15474_v22 = vld [vmem:[#allocation50_spill] sm:$0xff] }
 0x26f   :  { %4033 = vst.msk [vmem:[#allocation2 + $0x188] sm:$0xff] %vm47_vm0, %v3904_v43  ;;  %4032 = vst.msk [vmem:[#allocation2 + $0x180] sm:$0xff] %vm47_vm0, %v3903_v11  ;;  %2007 = vmin.xlane.f32.xlu0 %v10253_v8  ;;  %v10301_v8 = vld [vmem:[#allocation2 + $0x190] sm:$0xff]  ;;  %vm1569_vm15 = vcmp.eq.f32.partialorder %v15474_v22, %v9236_v45  ;;  %v2074_v22 = vshra.s32 %v10304_v62, 16  ;;  %v10332_v45 = vld [vmem:[#allocation2 + $0x398] sm:$0xff] }
 0x270   :  { %v10278_v26 = vpop.xlane.xlu1 %1519  ;;  %v10280_v59 = vpop.xlane.xlu0 %1517  ;;  %15470 = vst [vmem:[#allocation342_spill] sm:$0xff] %v10286_v41  ;;  %15472 = vst [vmem:[#allocation344_spill] sm:$0xff] %v10301_v8 }
 0x271   :  { %15468 = vst [vmem:[#allocation49_spill] sm:$0xff] %v10278_v26  ;;  %15469 = vst [vmem:[#allocation341_spill] sm:$0xff] %v10280_v59  ;;  %vm14755_vm12 = vcmp.lt.f32.partialorder %v10278_v26, %v10266_v50  ;;  %vm14761_vm14 = vcmp.lt.f32.partialorder %v10280_v59, %v10268_v32 }
 0x272   :  { %v3968_v43 = vsel %vm14755_vm12, %v10278_v26, %v10266_v50  ;;  %v3967_v11 = vsel %vm14761_vm14, %v10280_v59, %v10268_v32  ;;  %15473 = vst [vmem:[#allocation345_spill] sm:$0xff] %v10304_v62  ;;  %v10319_v32 = vcvt.s32.f32 %v2032_v13  ;;  %15478 = vst [vmem:[#allocation348_spill] sm:$0xff] %v10332_v45  ;;  %v10334_v59 = vld [vmem:[#allocation2 + $0x390] sm:$0xff]  ;;  %v10337_v13 = vsel %vm1569_vm15, %v9495_v37, 128  ;;  %v15481_v62 = vld [vmem:[#allocation53_spill] sm:$0xff] }
 0x273   :  { %4097 = vst.msk [vmem:[#allocation2 + $0x388] sm:$0xff] %vm47_vm0, %v3968_v43  ;;  %4096 = vst.msk [vmem:[#allocation2 + $0x380] sm:$0xff] %vm47_vm0, %v3967_v11  ;;  %2049 = vmin.xlane.f32.xlu0 %v10286_v41  ;;  %vm1572_vm14 = vcmp.eq.f32.partialorder %v15481_v62, %v9302_v36  ;;  %v2060_v62 = vshra.s32 %v10337_v13, 16  ;;  %v10365_v36 = vld [vmem:[#allocation2 + $0x1a8] sm:$0xff] }
 0x274   :  { %v10311_v50 = vpop.xlane.xlu1 %1395  ;;  %v10313_v26 = vpop.xlane.xlu0 %1393  ;;  %15477 = vst [vmem:[#allocation347_spill] sm:$0xff] %v10319_v32  ;;  %15479 = vst [vmem:[#allocation349_spill] sm:$0xff] %v10334_v59 }
 0x275   :  { %15475 = vst [vmem:[#allocation50_spill] sm:$0xff] %v10311_v50  ;;  %15476 = vst [vmem:[#allocation346_spill] sm:$0xff] %v10313_v26  ;;  %vm14769_vm12 = vcmp.lt.f32.partialorder %v10311_v50, %v10299_v25  ;;  %vm14764_vm13 = vcmp.lt.f32.partialorder %v10313_v26, %v10301_v8 }
 0x276   :  { %v3906_v43 = vsel %vm14769_vm12, %v10311_v50, %v10299_v25  ;;  %v3905_v11 = vsel %vm14764_vm13, %v10313_v26, %v10301_v8  ;;  %15480 = vst [vmem:[#allocation350_spill] sm:$0xff] %v10337_v13  ;;  %v10352_v8 = vcvt.s32.f32 %v2074_v22  ;;  %15485 = vst [vmem:[#allocation353_spill] sm:$0xff] %v10365_v36  ;;  %v10370_v22 = vsel %vm1572_vm14, %v9495_v37, 128  ;;  %v15488_v13 = vld [vmem:[#allocation54_spill] sm:$0xff] }
 0x277   :  { %4035 = vst.msk [vmem:[#allocation2 + $0x198] sm:$0xff] %vm47_vm0, %v3906_v43  ;;  %4034 = vst.msk [vmem:[#allocation2 + $0x190] sm:$0xff] %vm47_vm0, %v3905_v11  ;;  %2035 = vmin.xlane.f32.xlu0 %v10319_v32  ;;  %v10367_v32 = vld [vmem:[#allocation2 + $0x1a0] sm:$0xff]  ;;  %vm1571_vm12 = vcmp.eq.f32.partialorder %v15488_v13, %v9304_v30  ;;  %v2102_v13 = vshra.s32 %v10370_v22, 16  ;;  %v10398_v30 = vld [vmem:[#allocation2 + $0x3a8] sm:$0xff] }
 0x278   :  { %v10344_v25 = vpop.xlane.xlu1 %1523  ;;  %v10346_v41 = vpop.xlane.xlu0 %1521  ;;  %15484 = vst [vmem:[#allocation352_spill] sm:$0xff] %v10352_v8  ;;  %15486 = vst [vmem:[#allocation354_spill] sm:$0xff] %v10367_v32 }
 0x279   :  { %15482 = vst [vmem:[#allocation53_spill] sm:$0xff] %v10344_v25  ;;  %15483 = vst [vmem:[#allocation351_spill] sm:$0xff] %v10346_v41  ;;  %vm14773_vm13 = vcmp.lt.f32.partialorder %v10344_v25, %v10332_v45  ;;  %vm14779_vm15 = vcmp.lt.f32.partialorder %v10346_v41, %v10334_v59 }
 0x27a   :  { %v3970_v43 = vsel %vm14773_vm13, %v10344_v25, %v10332_v45  ;;  %v3969_v11 = vsel %vm14779_vm15, %v10346_v41, %v10334_v59  ;;  %15487 = vst [vmem:[#allocation355_spill] sm:$0xff] %v10370_v22  ;;  %v10385_v59 = vcvt.s32.f32 %v2060_v62  ;;  %15492 = vst [vmem:[#allocation358_spill] sm:$0xff] %v10398_v30  ;;  %v10400_v41 = vld [vmem:[#allocation2 + $0x3a0] sm:$0xff]  ;;  %v10403_v62 = vsel %vm1571_vm12, %v9495_v37, 128  ;;  %v15495_v22 = vld [vmem:[#allocation57_spill] sm:$0xff] }
 0x27b   :  { %4099 = vst.msk [vmem:[#allocation2 + $0x398] sm:$0xff] %vm47_vm0, %v3970_v43  ;;  %4098 = vst.msk [vmem:[#allocation2 + $0x390] sm:$0xff] %vm47_vm0, %v3969_v11  ;;  %2077 = vmin.xlane.f32.xlu0 %v10352_v8  ;;  %vm1574_vm15 = vcmp.eq.f32.partialorder %v15495_v22, %v9370_v23  ;;  %v2088_v22 = vshra.s32 %v10403_v62, 16  ;;  %v10431_v23 = vld [vmem:[#allocation2 + $0x1b8] sm:$0xff] }
 0x27c   :  { %v10377_v45 = vpop.xlane.xlu1 %1399  ;;  %v10379_v25 = vpop.xlane.xlu0 %1397  ;;  %15491 = vst [vmem:[#allocation357_spill] sm:$0xff] %v10385_v59  ;;  %15493 = vst [vmem:[#allocation359_spill] sm:$0xff] %v10400_v41 }
 0x27d   :  { %15489 = vst [vmem:[#allocation54_spill] sm:$0xff] %v10377_v45  ;;  %15490 = vst [vmem:[#allocation356_spill] sm:$0xff] %v10379_v25  ;;  %vm14787_vm13 = vcmp.lt.f32.partialorder %v10377_v45, %v10365_v36  ;;  %vm14782_vm14 = vcmp.lt.f32.partialorder %v10379_v25, %v10367_v32 }
 0x27e   :  { %v3908_v43 = vsel %vm14787_vm13, %v10377_v45, %v10365_v36  ;;  %v3907_v11 = vsel %vm14782_vm14, %v10379_v25, %v10367_v32  ;;  %15494 = vst [vmem:[#allocation360_spill] sm:$0xff] %v10403_v62  ;;  %v10418_v32 = vcvt.s32.f32 %v2102_v13  ;;  %15499 = vst [vmem:[#allocation363_spill] sm:$0xff] %v10431_v23  ;;  %v10436_v13 = vsel %vm1574_vm15, %v9495_v37, 128  ;;  %v15502_v62 = vld [vmem:[#allocation58_spill] sm:$0xff] }
 0x27f   :  { %4037 = vst.msk [vmem:[#allocation2 + $0x1a8] sm:$0xff] %vm47_vm0, %v3908_v43  ;;  %4036 = vst.msk [vmem:[#allocation2 + $0x1a0] sm:$0xff] %vm47_vm0, %v3907_v11  ;;  %2063 = vmin.xlane.f32.xlu0 %v10385_v59  ;;  %v10433_v59 = vld [vmem:[#allocation2 + $0x1b0] sm:$0xff]  ;;  %vm1573_vm13 = vcmp.eq.f32.partialorder %v15502_v62, %v9372_v39  ;;  %v2130_v62 = vshra.s32 %v10436_v13, 16  ;;  %v10464_v39 = vld [vmem:[#allocation2 + $0x3b8] sm:$0xff] }
 0x280   :  { %v10410_v36 = vpop.xlane.xlu1 %1527  ;;  %v10412_v8 = vpop.xlane.xlu0 %1525  ;;  %15498 = vst [vmem:[#allocation362_spill] sm:$0xff] %v10418_v32  ;;  %15500 = vst [vmem:[#allocation364_spill] sm:$0xff] %v10433_v59 }
 0x281   :  { %15496 = vst [vmem:[#allocation57_spill] sm:$0xff] %v10410_v36  ;;  %15497 = vst [vmem:[#allocation361_spill] sm:$0xff] %v10412_v8  ;;  %vm14791_vm14 = vcmp.lt.f32.partialorder %v10410_v36, %v10398_v30  ;;  %vm14797_vm12 = vcmp.lt.f32.partialorder %v10412_v8, %v10400_v41 }
 0x282   :  { %v3972_v43 = vsel %vm14791_vm14, %v10410_v36, %v10398_v30  ;;  %v3971_v11 = vsel %vm14797_vm12, %v10412_v8, %v10400_v41  ;;  %15501 = vst [vmem:[#allocation365_spill] sm:$0xff] %v10436_v13  ;;  %v10451_v41 = vcvt.s32.f32 %v2088_v22  ;;  %15506 = vst [vmem:[#allocation368_spill] sm:$0xff] %v10464_v39  ;;  %v10466_v8 = vld [vmem:[#allocation2 + $0x3b0] sm:$0xff]  ;;  %v10469_v22 = vsel %vm1573_vm13, %v9495_v37, 128  ;;  %v15509_v13 = vld [vmem:[#allocation61_spill] sm:$0xff] }
 0x283   :  { %4101 = vst.msk [vmem:[#allocation2 + $0x3a8] sm:$0xff] %vm47_vm0, %v3972_v43  ;;  %4100 = vst.msk [vmem:[#allocation2 + $0x3a0] sm:$0xff] %vm47_vm0, %v3971_v11  ;;  %2105 = vmin.xlane.f32.xlu0 %v10418_v32  ;;  %vm1576_vm12 = vcmp.eq.f32.partialorder %v15509_v13, %v9438_v47  ;;  %v2116_v13 = vshra.s32 %v10469_v22, 16  ;;  %v10497_v47 = vld [vmem:[#allocation2 + $0x1c8] sm:$0xff] }
 0x284   :  { %v10443_v30 = vpop.xlane.xlu1 %1403  ;;  %v10445_v36 = vpop.xlane.xlu0 %1401  ;;  %15505 = vst [vmem:[#allocation367_spill] sm:$0xff] %v10451_v41  ;;  %15507 = vst [vmem:[#allocation369_spill] sm:$0xff] %v10466_v8 }
 0x285   :  { %15503 = vst [vmem:[#allocation58_spill] sm:$0xff] %v10443_v30  ;;  %15504 = vst [vmem:[#allocation366_spill] sm:$0xff] %v10445_v36  ;;  %vm14805_vm14 = vcmp.lt.f32.partialorder %v10443_v30, %v10431_v23  ;;  %vm14800_vm15 = vcmp.lt.f32.partialorder %v10445_v36, %v10433_v59 }
 0x286   :  { %v3910_v43 = vsel %vm14805_vm14, %v10443_v30, %v10431_v23  ;;  %v3909_v11 = vsel %vm14800_vm15, %v10445_v36, %v10433_v59  ;;  %15508 = vst [vmem:[#allocation370_spill] sm:$0xff] %v10469_v22  ;;  %v10484_v59 = vcvt.s32.f32 %v2130_v62  ;;  %15513 = vst [vmem:[#allocation373_spill] sm:$0xff] %v10497_v47  ;;  %v10502_v62 = vsel %vm1576_vm12, %v9495_v37, 128  ;;  %v15516_v22 = vld [vmem:[#allocation62_spill] sm:$0xff] }
 0x287   :  { %4039 = vst.msk [vmem:[#allocation2 + $0x1b8] sm:$0xff] %vm47_vm0, %v3910_v43  ;;  %4038 = vst.msk [vmem:[#allocation2 + $0x1b0] sm:$0xff] %vm47_vm0, %v3909_v11  ;;  %2091 = vmin.xlane.f32.xlu0 %v10451_v41  ;;  %v10499_v41 = vld [vmem:[#allocation2 + $0x1c0] sm:$0xff]  ;;  %vm1575_vm14 = vcmp.eq.f32.partialorder %v15516_v22, %v9440_v38  ;;  %v2158_v22 = vshra.s32 %v10502_v62, 16  ;;  %v10530_v38 = vld [vmem:[#allocation2 + $0x3c8] sm:$0xff] }
 0x288   :  { %v10476_v23 = vpop.xlane.xlu1 %1531  ;;  %v10478_v32 = vpop.xlane.xlu0 %1529  ;;  %15512 = vst [vmem:[#allocation372_spill] sm:$0xff] %v10484_v59  ;;  %15514 = vst [vmem:[#allocation374_spill] sm:$0xff] %v10499_v41 }
 0x289   :  { %15510 = vst [vmem:[#allocation61_spill] sm:$0xff] %v10476_v23  ;;  %15511 = vst [vmem:[#allocation371_spill] sm:$0xff] %v10478_v32  ;;  %vm14809_vm15 = vcmp.lt.f32.partialorder %v10476_v23, %v10464_v39  ;;  %vm14815_vm13 = vcmp.lt.f32.partialorder %v10478_v32, %v10466_v8 }
 0x28a   :  { %v3974_v43 = vsel %vm14809_vm15, %v10476_v23, %v10464_v39  ;;  %v3973_v11 = vsel %vm14815_vm13, %v10478_v32, %v10466_v8  ;;  %15515 = vst [vmem:[#allocation375_spill] sm:$0xff] %v10502_v62  ;;  %v10517_v8 = vcvt.s32.f32 %v2116_v13  ;;  %15520 = vst [vmem:[#allocation378_spill] sm:$0xff] %v10530_v38  ;;  %v10532_v32 = vld [vmem:[#allocation2 + $0x3c0] sm:$0xff]  ;;  %v10535_v13 = vsel %vm1575_vm14, %v9495_v37, 128  ;;  %v15523_v62 = vld [vmem:[#allocation65_spill] sm:$0xff] }
 0x28b   :  { %4103 = vst.msk [vmem:[#allocation2 + $0x3b8] sm:$0xff] %vm47_vm0, %v3974_v43  ;;  %4102 = vst.msk [vmem:[#allocation2 + $0x3b0] sm:$0xff] %vm47_vm0, %v3973_v11  ;;  %2133 = vmin.xlane.f32.xlu0 %v10484_v59  ;;  %vm1578_vm13 = vcmp.eq.f32.partialorder %v15523_v62, %v9511_v55  ;;  %v2144_v62 = vshra.s32 %v10535_v13, 16  ;;  %v10563_v55 = vld [vmem:[#allocation2 + $0x1d8] sm:$0xff] }
 0x28c   :  { %v10509_v39 = vpop.xlane.xlu1 %1407  ;;  %v10511_v23 = vpop.xlane.xlu0 %1405  ;;  %15519 = vst [vmem:[#allocation377_spill] sm:$0xff] %v10517_v8  ;;  %15521 = vst [vmem:[#allocation379_spill] sm:$0xff] %v10532_v32 }
 0x28d   :  { %15517 = vst [vmem:[#allocation62_spill] sm:$0xff] %v10509_v39  ;;  %15518 = vst [vmem:[#allocation376_spill] sm:$0xff] %v10511_v23  ;;  %vm14823_vm15 = vcmp.lt.f32.partialorder %v10509_v39, %v10497_v47  ;;  %vm14818_vm12 = vcmp.lt.f32.partialorder %v10511_v23, %v10499_v41 }
 0x28e   :  { %v3912_v43 = vsel %vm14823_vm15, %v10509_v39, %v10497_v47  ;;  %v3911_v11 = vsel %vm14818_vm12, %v10511_v23, %v10499_v41  ;;  %15522 = vst [vmem:[#allocation380_spill] sm:$0xff] %v10535_v13  ;;  %v10550_v41 = vcvt.s32.f32 %v2158_v22  ;;  %15527 = vst [vmem:[#allocation383_spill] sm:$0xff] %v10563_v55  ;;  %v10568_v22 = vsel %vm1578_vm13, %v9495_v37, 128  ;;  %v15530_v13 = vld [vmem:[#allocation66_spill] sm:$0xff] }
 0x28f   :  { %4041 = vst.msk [vmem:[#allocation2 + $0x1c8] sm:$0xff] %vm47_vm0, %v3912_v43  ;;  %4040 = vst.msk [vmem:[#allocation2 + $0x1c0] sm:$0xff] %vm47_vm0, %v3911_v11  ;;  %2119 = vmin.xlane.f32.xlu0 %v10517_v8  ;;  %v10565_v8 = vld [vmem:[#allocation2 + $0x1d0] sm:$0xff]  ;;  %vm1577_vm15 = vcmp.eq.f32.partialorder %v15530_v13, %v9513_v28  ;;  %v2186_v13 = vshra.s32 %v10568_v22, 16  ;;  %v10596_v28 = vld [vmem:[#allocation2 + $0x3d8] sm:$0xff] }
 0x290   :  { %v10542_v47 = vpop.xlane.xlu1 %1535  ;;  %v10544_v59 = vpop.xlane.xlu0 %1533  ;;  %15526 = vst [vmem:[#allocation382_spill] sm:$0xff] %v10550_v41  ;;  %15528 = vst [vmem:[#allocation384_spill] sm:$0xff] %v10565_v8 }
 0x291   :  { %15524 = vst [vmem:[#allocation65_spill] sm:$0xff] %v10542_v47  ;;  %15525 = vst [vmem:[#allocation381_spill] sm:$0xff] %v10544_v59  ;;  %vm14827_vm12 = vcmp.lt.f32.partialorder %v10542_v47, %v10530_v38  ;;  %vm14833_vm14 = vcmp.lt.f32.partialorder %v10544_v59, %v10532_v32 }
 0x292   :  { %v3976_v43 = vsel %vm14827_vm12, %v10542_v47, %v10530_v38  ;;  %v3975_v11 = vsel %vm14833_vm14, %v10544_v59, %v10532_v32  ;;  %15529 = vst [vmem:[#allocation385_spill] sm:$0xff] %v10568_v22  ;;  %v10583_v32 = vcvt.s32.f32 %v2144_v62  ;;  %15534 = vst [vmem:[#allocation388_spill] sm:$0xff] %v10596_v28  ;;  %v10598_v59 = vld [vmem:[#allocation2 + $0x3d0] sm:$0xff]  ;;  %v10601_v62 = vsel %vm1577_vm15, %v9495_v37, 128 }
 0x293   :  { %4105 = vst.msk [vmem:[#allocation2 + $0x3c8] sm:$0xff] %vm47_vm0, %v3976_v43  ;;  %4104 = vst.msk [vmem:[#allocation2 + $0x3c0] sm:$0xff] %vm47_vm0, %v3975_v11  ;;  %2161 = vmin.xlane.f32.xlu0 %v10550_v41  ;;  %v15537_v22 = vld [vmem:[#allocation70_spill] sm:$0xff] }
 0x294   :  { %v10575_v38 = vpop.xlane.xlu1 %1411  ;;  %v10577_v47 = vpop.xlane.xlu0 %1409  ;;  %15533 = vst [vmem:[#allocation387_spill] sm:$0xff] %v10583_v32  ;;  %15535 = vst [vmem:[#allocation389_spill] sm:$0xff] %v10598_v59  ;;  %vm1580_vm14 = vcmp.eq.f32.partialorder %v15537_v22, %v9585_v46  ;;  %v2172_v22 = vshra.s32 %v10601_v62, 16  ;;  %v10629_v46 = vld [vmem:[#allocation2 + $0x1e8] sm:$0xff] }
 0x295   :  { %15531 = vst [vmem:[#allocation66_spill] sm:$0xff] %v10575_v38  ;;  %15532 = vst [vmem:[#allocation386_spill] sm:$0xff] %v10577_v47  ;;  %vm14841_vm12 = vcmp.lt.f32.partialorder %v10575_v38, %v10563_v55  ;;  %vm14836_vm13 = vcmp.lt.f32.partialorder %v10577_v47, %v10565_v8 }
 0x296   :  { %v3914_v43 = vsel %vm14841_vm12, %v10575_v38, %v10563_v55  ;;  %v3913_v11 = vsel %vm14836_vm13, %v10577_v47, %v10565_v8  ;;  %15536 = vst [vmem:[#allocation390_spill] sm:$0xff] %v10601_v62  ;;  %v10616_v8 = vcvt.s32.f32 %v2186_v13  ;;  %15541 = vst [vmem:[#allocation393_spill] sm:$0xff] %v10629_v46  ;;  %v10634_v13 = vsel %vm1580_vm14, %v9495_v37, 128  ;;  %v15544_v62 = vld [vmem:[#allocation71_spill] sm:$0xff] }
 0x297   :  { %4043 = vst.msk [vmem:[#allocation2 + $0x1d8] sm:$0xff] %vm47_vm0, %v3914_v43  ;;  %4042 = vst.msk [vmem:[#allocation2 + $0x1d0] sm:$0xff] %vm47_vm0, %v3913_v11  ;;  %2147 = vmin.xlane.f32.xlu0 %v10583_v32  ;;  %v10631_v32 = vld [vmem:[#allocation2 + $0x1e0] sm:$0xff]  ;;  %vm1579_vm12 = vcmp.eq.f32.partialorder %v15544_v62, %v9587_v33  ;;  %v2214_v62 = vshra.s32 %v10634_v13, 16  ;;  %v10662_v33 = vld [vmem:[#allocation2 + $0x3e8] sm:$0xff] }
 0x298   :  { %v10608_v55 = vpop.xlane.xlu1 %1539  ;;  %v10610_v41 = vpop.xlane.xlu0 %1537  ;;  %15540 = vst [vmem:[#allocation392_spill] sm:$0xff] %v10616_v8  ;;  %15542 = vst [vmem:[#allocation394_spill] sm:$0xff] %v10631_v32 }
 0x299   :  { %15538 = vst [vmem:[#allocation70_spill] sm:$0xff] %v10608_v55  ;;  %15539 = vst [vmem:[#allocation391_spill] sm:$0xff] %v10610_v41  ;;  %vm14845_vm13 = vcmp.lt.f32.partialorder %v10608_v55, %v10596_v28  ;;  %vm14851_vm15 = vcmp.lt.f32.partialorder %v10610_v41, %v10598_v59 }
 0x29a   :  { %v3978_v43 = vsel %vm14845_vm13, %v10608_v55, %v10596_v28  ;;  %v3977_v11 = vsel %vm14851_vm15, %v10610_v41, %v10598_v59  ;;  %15543 = vst [vmem:[#allocation395_spill] sm:$0xff] %v10634_v13  ;;  %v10649_v59 = vcvt.s32.f32 %v2172_v22  ;;  %15548 = vst [vmem:[#allocation398_spill] sm:$0xff] %v10662_v33  ;;  %v10664_v41 = vld [vmem:[#allocation2 + $0x3e0] sm:$0xff]  ;;  %v10667_v22 = vsel %vm1579_vm12, %v9495_v37, 128  ;;  %v15551_v13 = vld [vmem:[#allocation78_spill] sm:$0xff] }
 0x29b   :  { %4107 = vst.msk [vmem:[#allocation2 + $0x3d8] sm:$0xff] %vm47_vm0, %v3978_v43  ;;  %4106 = vst.msk [vmem:[#allocation2 + $0x3d0] sm:$0xff] %vm47_vm0, %v3977_v11  ;;  %2189 = vmin.xlane.f32.xlu0 %v10616_v8  ;;  %vm1582_vm15 = vcmp.eq.f32.partialorder %v15551_v13, %v9651_v58  ;;  %v2200_v13 = vshra.s32 %v10667_v22, 16  ;;  %v10695_v58 = vld [vmem:[#allocation2 + $0x1f8] sm:$0xff] }
 0x29c   :  { %v10641_v28 = vpop.xlane.xlu1 %1415  ;;  %v10643_v55 = vpop.xlane.xlu0 %1413  ;;  %15547 = vst [vmem:[#allocation397_spill] sm:$0xff] %v10649_v59  ;;  %15549 = vst [vmem:[#allocation399_spill] sm:$0xff] %v10664_v41 }
 0x29d   :  { %15545 = vst [vmem:[#allocation71_spill] sm:$0xff] %v10641_v28  ;;  %15546 = vst [vmem:[#allocation396_spill] sm:$0xff] %v10643_v55  ;;  %vm14859_vm13 = vcmp.lt.f32.partialorder %v10641_v28, %v10629_v46  ;;  %vm14854_vm14 = vcmp.lt.f32.partialorder %v10643_v55, %v10631_v32 }
 0x29e   :  { %v3916_v43 = vsel %vm14859_vm13, %v10641_v28, %v10629_v46  ;;  %v3915_v11 = vsel %vm14854_vm14, %v10643_v55, %v10631_v32  ;;  %15550 = vst [vmem:[#allocation400_spill] sm:$0xff] %v10667_v22  ;;  %v10682_v32 = vcvt.s32.f32 %v2214_v62  ;;  %15555 = vst [vmem:[#allocation403_spill] sm:$0xff] %v10695_v58  ;;  %v10700_v62 = vsel %vm1582_vm15, %v9495_v37, 128  ;;  %v15558_v22 = vld [vmem:[#allocation79_spill] sm:$0xff] }
 0x29f   :  { %4045 = vst.msk [vmem:[#allocation2 + $0x1e8] sm:$0xff] %vm47_vm0, %v3916_v43  ;;  %4044 = vst.msk [vmem:[#allocation2 + $0x1e0] sm:$0xff] %vm47_vm0, %v3915_v11  ;;  %2175 = vmin.xlane.f32.xlu0 %v10649_v59  ;;  %v10697_v59 = vld [vmem:[#allocation2 + $0x1f0] sm:$0xff]  ;;  %vm1581_vm13 = vcmp.eq.f32.partialorder %v15558_v22, %v9653_v52  ;;  %v2242_v22 = vshra.s32 %v10700_v62, 16  ;;  %v10728_v52 = vld [vmem:[#allocation2 + $0x3f8] sm:$0xff] }
 0x2a0   :  { %v10674_v46 = vpop.xlane.xlu1 %1543  ;;  %v10676_v8 = vpop.xlane.xlu0 %1541  ;;  %15554 = vst [vmem:[#allocation402_spill] sm:$0xff] %v10682_v32  ;;  %15556 = vst [vmem:[#allocation404_spill] sm:$0xff] %v10697_v59 }
 0x2a1   :  { %15552 = vst [vmem:[#allocation78_spill] sm:$0xff] %v10674_v46  ;;  %15553 = vst [vmem:[#allocation401_spill] sm:$0xff] %v10676_v8  ;;  %vm14863_vm14 = vcmp.lt.f32.partialorder %v10674_v46, %v10662_v33  ;;  %vm14868_vm12 = vcmp.lt.f32.partialorder %v10676_v8, %v10664_v41 }
 0x2a2   :  { %v3980_v43 = vsel %vm14863_vm14, %v10674_v46, %v10662_v33  ;;  %v3979_v11 = vsel %vm14868_vm12, %v10676_v8, %v10664_v41  ;;  %15557 = vst [vmem:[#allocation405_spill] sm:$0xff] %v10700_v62  ;;  %v10715_v41 = vcvt.s32.f32 %v2200_v13  ;;  %15561 = vst [vmem:[#allocation407_spill] sm:$0xff] %v10728_v52  ;;  %v10730_v8 = vld [vmem:[#allocation2 + $0x3f0] sm:$0xff]  ;;  %v10733_v13 = vsel %vm1581_vm13, %v9495_v37, 128 }
 0x2a3   :  { %4109 = vst.msk [vmem:[#allocation2 + $0x3e8] sm:$0xff] %vm47_vm0, %v3980_v43  ;;  %4108 = vst.msk [vmem:[#allocation2 + $0x3e0] sm:$0xff] %vm47_vm0, %v3979_v11  ;;  %2217 = vmin.xlane.f32.xlu0 %v10682_v32  ;;  %vm1584_vm12 = vcmp.eq.f32.partialorder %v8565_v49, %v9717_v44  ;;  %v10749_v32 = vcvt.s32.f32 %v2242_v22  ;;  %v2228_v49 = vshra.s32 %v10733_v13, 16  ;;  %v2717_v44 = vand.u32 65535, %v9577_v0 }
 0x2a4   :  { %v10707_v33 = vpop.xlane.xlu1 %1419  ;;  %v10709_v46 = vpop.xlane.xlu0 %1417  ;;  %15562 = vst [vmem:[#allocation408_spill] sm:$0xff] %v10730_v8 }
 0x2a5   :  { %15559 = vst [vmem:[#allocation79_spill] sm:$0xff] %v10707_v33  ;;  %15560 = vst [vmem:[#allocation406_spill] sm:$0xff] %v10709_v46  ;;  %vm14874_vm14 = vcmp.lt.f32.partialorder %v10707_v33, %v10695_v58  ;;  %vm14872_vm15 = vcmp.lt.f32.partialorder %v10709_v46, %v10697_v59  ;;  %v2719_v0 = vcvt.s32.f32 %v2717_v44 }
 0x2a6   :  { %v3918_v43 = vsel %vm14874_vm14, %v10707_v33, %v10695_v58  ;;  %v3917_v11 = vsel %vm14872_vm15, %v10709_v46, %v10697_v59  ;;  %v1821_v59 = vand.u32 65535, %v9534_v48  ;;  %vm1583_vm14 = vcmp.eq.f32.partialorder %v8571_v31, %v9719_v17 }
 0x2a7   :  { %4047 = vst.msk [vmem:[#allocation2 + $0x1f8] sm:$0xff] %vm47_vm0, %v3918_v43  ;;  %4046 = vst.msk [vmem:[#allocation2 + $0x1f0] sm:$0xff] %vm47_vm0, %v3917_v11  ;;  %2203 = vmin.xlane.f32.xlu0 %v10715_v41  ;;  %v10763_v11 = vsel %vm1584_vm12, %v9495_v37, 128  ;;  %v10779_v31 = vsel %vm1583_vm14, %v9495_v37, 128  ;;  %vm1585_vm14 = vcmp.eq.f32.partialorder %v8591_v16, %v9785_v6  ;;  %v15565_v16 = vld [vmem:[#allocation90_spill] sm:$0xff] }
 0x2a8   :  { %v10740_v58 = vpop.xlane.xlu1 %1547  ;;  %v10742_v62 = vpop.xlane.xlu0 %1545 }
 0x2a9   :  { %15563 = vst [vmem:[#allocation409_spill] sm:$0xff] %v10740_v58  ;;  %15564 = vst [vmem:[#allocation410_spill] sm:$0xff] %v10742_v62  ;;  %vm14882_vm15 = vcmp.lt.f32.partialorder %v10740_v58, %v10728_v52  ;;  %vm14883_vm13 = vcmp.lt.f32.partialorder %v10742_v62, %v10730_v8 }
 0x2aa   :  { %v3982_v43 = vsel %vm14882_vm15, %v10740_v58, %v10728_v52  ;;  %v3981_v48 = vsel %vm14883_vm13, %v10742_v62, %v10730_v8  ;;  %v1823_v52 = vcvt.s32.f32 %v1821_v59  ;;  %v10773_v58 = vcvt.s32.f32 %v2228_v49 }
 0x2ab   :  { %4111 = vst.msk [vmem:[#allocation2 + $0x3f8] sm:$0xff] %vm47_vm0, %v3982_v43  ;;  %4110 = vst.msk [vmem:[#allocation2 + $0x3f0] sm:$0xff] %vm47_vm0, %v3981_v48  ;;  %2245 = vmin.xlane.f32.xlu0 %v10749_v32  ;;  %v2270_v8 = vshra.s32 %v10763_v11, 16  ;;  %vm1586_vm15 = vcmp.eq.f32.partialorder %v8585_v9, %v9783_v21  ;;  %v1807_v49 = vand.u32 65535, %v9611_v53 }
 0x2ac   :  { %v10770_v22 = vpop.xlane.xlu0 %1825  ;;  %v10793_v48 = vsel %vm1586_vm15, %v9495_v37, 128  ;;  %vm1588_vm15 = vcmp.eq.f32.partialorder %v15565_v16, %v9849_v61  ;;  %v15566_v16 = vld [vmem:[#allocation91_spill] sm:$0xff]  ;;  %v1835_v61 = vand.u32 65535, %v9743_v27 }
 0x2ad   :  { %vm1827_vm12 = vcmp.eq.f32.partialorder %v9593_v34, %v10770_v22  ;;  %v10787_v43 = vcvt.s32.f32 %v2270_v8  ;;  %v1809_v44 = vcvt.s32.f32 %v1807_v49  ;;  %v2703_v8 = vand.u32 65535, %v9644_v40 }
 0x2ae   :  { %v1828_v62 = vsel %vm1827_vm12, %v1823_v52, inf  ;;  %v2256_v52 = vshra.s32 %v10779_v31, 16  ;;  %v10821_v6 = vsel %vm1588_vm15, %v9495_v37, 128  ;;  %v1837_v27 = vcvt.s32.f32 %v1835_v61 }
 0x2af   :  { %2231 = vmin.xlane.f32.xlu0 %v10773_v58  ;;  %1829 = vmin.xlane.f32.xlu1 %v1828_v62  ;;  %v2705_v40 = vcvt.s32.f32 %v2703_v8 }
 0x2b0   :  { %v10784_v59 = vpop.xlane.xlu0 %2721  ;;  %v10801_v53 = vcvt.s32.f32 %v2256_v52  ;;  %v1849_v52 = vand.u32 65535, %v9677_v1 }
 0x2b1   :  { %vm2723_vm13 = vcmp.eq.f32.partialorder %v9626_v54, %v10784_v59  ;;  %v2298_v54 = vshra.s32 %v10793_v48, 16 }
 0x2b2   :  { %v2724_v34 = vsel %vm2723_vm13, %v2719_v0, inf  ;;  %v10807_v0 = vsel %vm1585_vm14, %v9495_v37, 128  ;;  %vm1587_vm14 = vcmp.eq.f32.partialorder %v15566_v16, %v9851_v60  ;;  %v10828_v1 = vcvt.s32.f32 %v1849_v52 }
 0x2b3   :  { %2273 = vmin.xlane.f32.xlu0 %v10787_v43  ;;  %2725 = vmin.xlane.f32.xlu1 %v2724_v34  ;;  %v10815_v34 = vcvt.s32.f32 %v2298_v54  ;;  %v15567_v54 = vld [vmem:[#allocation102_spill] sm:$0xff] }
 0x2b4   :  { %v10798_v9 = vpop.xlane.xlu0 %1811  ;;  %vm1590_vm15 = vcmp.eq.f32.partialorder %v15567_v54, %v9915_v20 }
 0x2b5   :  { %vm1813_vm12 = vcmp.eq.f32.partialorder %v9659_v35, %v10798_v9  ;;  %v2284_v35 = vshra.s32 %v10807_v0, 16  ;;  %v11117_v54 = vsel %vm1590_vm15, %v9495_v37, 128  ;;  %vm1592_vm15 = vcmp.eq.f32.partialorder %v8745_v4, %v9981_v42  ;;  %v15575_v4 = vld [vmem:[#allocation114_spill] sm:$0xff] }
 0x2b6   :  { %v1814_v62 = vsel %vm1813_vm12, %v1809_v44, inf  ;;  %v11145_v21 = vsel %vm1592_vm15, %v9495_v37, 128 }
 0x2b7   :  { %2259 = vmin.xlane.f32.xlu0 %v10801_v53  ;;  %1815 = vmin.xlane.f32.xlu1 %v1814_v62  ;;  %v7766_v62 = vmov 0   ;;  %15574 = vst [vmem:[#allocation102_spill] sm:$0xff] %v11145_v21 }
 0x2b8   :  { %v10812_v49 = vpop.xlane.xlu0 %2707  ;;  %177 = vst.msk [vmem:[#allocation3 + $0x8] sm:$0xff] %vm47_vm0, %v7766_v62  ;;  %176 = vst.msk [vmem:[#allocation3] sm:$0xff] %vm47_vm0, %v7766_v62  ;;  %7686 = vset.pattern.permute.xlu0 %v7766_v62  ;;  %7687 = vset.pattern.permute.xlu1 %v7766_v62 }
 0x2b9   :  { %vm2709_vm13 = vcmp.eq.f32.partialorder %v9692_v14, %v10812_v49  ;;  %178 = vst.msk [vmem:[#allocation3 + $0x10] sm:$0xff] %vm47_vm0, %v7766_v62  ;;  %179 = vst.msk [vmem:[#allocation3 + $0x18] sm:$0xff] %vm47_vm0, %v7766_v62  ;;  %v11091_v14 = vcvt.s32.f32 %v2284_v35 }
 0x2ba   :  { %v2710_v44 = vsel %vm2709_vm13, %v2705_v40, inf  ;;  %180 = vst.msk [vmem:[#allocation3 + $0x20] sm:$0xff] %vm47_vm0, %v7766_v62  ;;  %181 = vst.msk [vmem:[#allocation3 + $0x28] sm:$0xff] %vm47_vm0, %v7766_v62  ;;  %v2326_v40 = vshra.s32 %v10821_v6, 16 }
 0x2bb   :  { %2301 = vmin.xlane.f32.xlu0 %v10815_v34  ;;  %2711 = vmin.xlane.f32.xlu1 %v2710_v44  ;;  %182 = vst.msk [vmem:[#allocation3 + $0x30] sm:$0xff] %vm47_vm0, %v7766_v62  ;;  %183 = vst.msk [vmem:[#allocation3 + $0x38] sm:$0xff] %vm47_vm0, %v7766_v62  ;;  %v11101_v44 = vsel %vm1587_vm14, %v9495_v37, 128 }
 0x2bc   :  { %v10826_v8 = vpop.xlane.xlu0 %1853  ;;  %184 = vst.msk [vmem:[#allocation3 + $0x40] sm:$0xff] %vm47_vm0, %v7766_v62  ;;  %185 = vst.msk [vmem:[#allocation3 + $0x48] sm:$0xff] %vm47_vm0, %v7766_v62  ;;  %v2312_v16 = vshra.s32 %v11101_v44, 16 }
 0x2bd   :  { %186 = vst.msk [vmem:[#allocation3 + $0x50] sm:$0xff] %vm47_vm0, %v7766_v62  ;;  %187 = vst.msk [vmem:[#allocation3 + $0x58] sm:$0xff] %vm47_vm0, %v7766_v62  ;;  %vm1855_vm12 = vcmp.eq.f32.partialorder %v9725_v2, %v10826_v8  ;;  %v15568_v2 = vand.u32 65535, %v9710_v3 }
 0x2be   :  { %188 = vst.msk [vmem:[#allocation3 + $0x60] sm:$0xff] %vm47_vm0, %v7766_v62  ;;  %189 = vst.msk [vmem:[#allocation3 + $0x68] sm:$0xff] %vm47_vm0, %v7766_v62  ;;  %v1856_v52 = vsel %vm1855_vm12, %v10828_v1, inf  ;;  %v11111_v1 = vcvt.s32.f32 %v2326_v40  ;;  %v2731_v40 = vand.u32 65535, %v9776_v10  ;;  %v15571_v10 = vld [vmem:[#allocation270_spill] sm:$0xff] }
 0x2bf   :  { %190 = vst.msk [vmem:[#allocation3 + $0x70] sm:$0xff] %vm47_vm0, %v7766_v62  ;;  %191 = vst.msk [vmem:[#allocation3 + $0x78] sm:$0xff] %vm47_vm0, %v7766_v62  ;;  %2287 = vmin.xlane.f32.xlu0 %v11091_v14  ;;  %1857 = vmin.xlane.f32.xlu1 %v1856_v52  ;;  %v15569_v52 = vld [vmem:[#allocation103_spill] sm:$0xff] }
 0x2c0   :  { %192 = vst.msk [vmem:[#allocation3 + $0x80] sm:$0xff] %vm47_vm0, %v7766_v62  ;;  %193 = vst.msk [vmem:[#allocation3 + $0x88] sm:$0xff] %vm47_vm0, %v7766_v62  ;;  %v11106_v35 = vpop.xlane.xlu0 %2749  ;;  %vm1589_vm14 = vcmp.eq.f32.partialorder %v15569_v52, %v9917_v56 }
 0x2c1   :  { %194 = vst.msk [vmem:[#allocation3 + $0x90] sm:$0xff] %vm47_vm0, %v7766_v62  ;;  %195 = vst.msk [vmem:[#allocation3 + $0x98] sm:$0xff] %vm47_vm0, %v7766_v62  ;;  %vm2751_vm13 = vcmp.eq.f32.partialorder %v9758_v51, %v11106_v35  ;;  %v2354_v51 = vshra.s32 %v11117_v54, 16  ;;  %v11131_v20 = vsel %vm1589_vm14, %v9495_v37, 128  ;;  %vm1591_vm14 = vcmp.eq.f32.partialorder %v15575_v4, %v9983_v12  ;;  %v15579_v4 = vld [vmem:[#allocation125_spill] sm:$0xff] }
 0x2c2   :  { %196 = vst.msk [vmem:[#allocation3 + $0xa0] sm:$0xff] %vm47_vm0, %v7766_v62  ;;  %197 = vst.msk [vmem:[#allocation3 + $0xa8] sm:$0xff] %vm47_vm0, %v7766_v62  ;;  %vm1594_vm15 = vcmp.eq.f32.partialorder %v15579_v4, %v10047_v5  ;;  %v15585_v4 = vld [vmem:[#allocation126_spill] sm:$0xff] }
 0x2c3   :  { %198 = vst.msk [vmem:[#allocation3 + $0xb0] sm:$0xff] %vm47_vm0, %v7766_v62  ;;  %199 = vst.msk [vmem:[#allocation3 + $0xb8] sm:$0xff] %vm47_vm0, %v7766_v62  ;;  %2329 = vmin.xlane.f32.xlu0 %v11111_v1  ;;  %v11139_v52 = vcvt.s32.f32 %v2354_v51  ;;  %v15576_v51 = vld [vmem:[#allocation275_spill] sm:$0xff] }
 0x2c4   :  { %200 = vst.msk [vmem:[#allocation3 + $0xc0] sm:$0xff] %vm47_vm0, %v7766_v62  ;;  %201 = vst.msk [vmem:[#allocation3 + $0xc8] sm:$0xff] %vm47_vm0, %v7766_v62  ;;  %v11122_v3 = vpop.xlane.xlu0 %1839 }
 0x2c5   :  { %202 = vst.msk [vmem:[#allocation3 + $0xd0] sm:$0xff] %vm47_vm0, %v7766_v62  ;;  %203 = vst.msk [vmem:[#allocation3 + $0xd8] sm:$0xff] %vm47_vm0, %v7766_v62  ;;  %vm1841_vm12 = vcmp.eq.f32.partialorder %v9791_v7, %v11122_v3  ;;  %v15573_v7 = vld [vmem:[#allocation272_spill] sm:$0xff] }
 0x2c6   :  { %204 = vst.msk [vmem:[#allocation3 + $0xe0] sm:$0xff] %vm47_vm0, %v7766_v62  ;;  %205 = vst.msk [vmem:[#allocation3 + $0xe8] sm:$0xff] %vm47_vm0, %v7766_v62 }
 0x2c7   :  { %206 = vst.msk [vmem:[#allocation3 + $0xf0] sm:$0xff] %vm47_vm0, %v7766_v62  ;;  %207 = vst.msk [vmem:[#allocation3 + $0xf8] sm:$0xff] %vm47_vm0, %v7766_v62 }
 0x2c8   :  { %208 = vst.msk [vmem:[#allocation3 + $0x100] sm:$0xff] %vm47_vm0, %v7766_v62  ;;  %209 = vst.msk [vmem:[#allocation3 + $0x108] sm:$0xff] %vm47_vm0, %v7766_v62  ;;  %v11136_v61 = vpop.xlane.xlu0 %2735 }
 0x2c9   :  { %210 = vst.msk [vmem:[#allocation3 + $0x110] sm:$0xff] %vm47_vm0, %v7766_v62  ;;  %211 = vst.msk [vmem:[#allocation3 + $0x118] sm:$0xff] %vm47_vm0, %v7766_v62 }
 0x2ca   :  { %212 = vst.msk [vmem:[#allocation3 + $0x120] sm:$0xff] %vm47_vm0, %v7766_v62  ;;  %213 = vst.msk [vmem:[#allocation3 + $0x128] sm:$0xff] %vm47_vm0, %v7766_v62 }
 0x2cb   :  { %214 = vst.msk [vmem:[#allocation3 + $0x130] sm:$0xff] %vm47_vm0, %v7766_v62  ;;  %215 = vst.msk [vmem:[#allocation3 + $0x138] sm:$0xff] %vm47_vm0, %v7766_v62 }
 0x2cc   :  { %216 = vst.msk [vmem:[#allocation3 + $0x140] sm:$0xff] %vm47_vm0, %v7766_v62  ;;  %217 = vst.msk [vmem:[#allocation3 + $0x148] sm:$0xff] %vm47_vm0, %v7766_v62 }
 0x2cd   :  { %218 = vst.msk [vmem:[#allocation3 + $0x150] sm:$0xff] %vm47_vm0, %v7766_v62  ;;  %219 = vst.msk [vmem:[#allocation3 + $0x158] sm:$0xff] %vm47_vm0, %v7766_v62 }
 0x2ce   :  { %220 = vst.msk [vmem:[#allocation3 + $0x160] sm:$0xff] %vm47_vm0, %v7766_v62  ;;  %221 = vst.msk [vmem:[#allocation3 + $0x168] sm:$0xff] %vm47_vm0, %v7766_v62 }
 0x2cf   :  { %222 = vst.msk [vmem:[#allocation3 + $0x170] sm:$0xff] %vm47_vm0, %v7766_v62  ;;  %223 = vst.msk [vmem:[#allocation3 + $0x178] sm:$0xff] %vm47_vm0, %v7766_v62 }
 0x2d0   :  { %224 = vst.msk [vmem:[#allocation3 + $0x180] sm:$0xff] %vm47_vm0, %v7766_v62  ;;  %225 = vst.msk [vmem:[#allocation3 + $0x188] sm:$0xff] %vm47_vm0, %v7766_v62 }
 0x2d1   :  { %226 = vst.msk [vmem:[#allocation3 + $0x190] sm:$0xff] %vm47_vm0, %v7766_v62  ;;  %227 = vst.msk [vmem:[#allocation3 + $0x198] sm:$0xff] %vm47_vm0, %v7766_v62 }
 0x2d2   :  { %228 = vst.msk [vmem:[#allocation3 + $0x1a0] sm:$0xff] %vm47_vm0, %v7766_v62  ;;  %229 = vst.msk [vmem:[#allocation3 + $0x1a8] sm:$0xff] %vm47_vm0, %v7766_v62 }
 0x2d3   :  { %230 = vst.msk [vmem:[#allocation3 + $0x1b0] sm:$0xff] %vm47_vm0, %v7766_v62  ;;  %231 = vst.msk [vmem:[#allocation3 + $0x1b8] sm:$0xff] %vm47_vm0, %v7766_v62 }
 0x2d4   :  { %232 = vst.msk [vmem:[#allocation3 + $0x1c0] sm:$0xff] %vm47_vm0, %v7766_v62  ;;  %233 = vst.msk [vmem:[#allocation3 + $0x1c8] sm:$0xff] %vm47_vm0, %v7766_v62 }
 0x2d5   :  { %234 = vst.msk [vmem:[#allocation3 + $0x1d0] sm:$0xff] %vm47_vm0, %v7766_v62  ;;  %235 = vst.msk [vmem:[#allocation3 + $0x1d8] sm:$0xff] %vm47_vm0, %v7766_v62 }
 0x2d6   :  { %236 = vst.msk [vmem:[#allocation3 + $0x1e0] sm:$0xff] %vm47_vm0, %v7766_v62  ;;  %237 = vst.msk [vmem:[#allocation3 + $0x1e8] sm:$0xff] %vm47_vm0, %v7766_v62 }
 0x2d7   :  { %238 = vst.msk [vmem:[#allocation3 + $0x1f0] sm:$0xff] %vm47_vm0, %v7766_v62  ;;  %239 = vst.msk [vmem:[#allocation3 + $0x1f8] sm:$0xff] %vm47_vm0, %v7766_v62 }
 0x2d8   :  { %240 = vst.msk [vmem:[#allocation3 + $0x200] sm:$0xff] %vm47_vm0, %v7766_v62  ;;  %241 = vst.msk [vmem:[#allocation3 + $0x208] sm:$0xff] %vm47_vm0, %v7766_v62 }
 0x2d9   :  { %242 = vst.msk [vmem:[#allocation3 + $0x210] sm:$0xff] %vm47_vm0, %v7766_v62  ;;  %243 = vst.msk [vmem:[#allocation3 + $0x218] sm:$0xff] %vm47_vm0, %v7766_v62 }
 0x2da   :  { %244 = vst.msk [vmem:[#allocation3 + $0x220] sm:$0xff] %vm47_vm0, %v7766_v62  ;;  %245 = vst.msk [vmem:[#allocation3 + $0x228] sm:$0xff] %vm47_vm0, %v7766_v62 }
 0x2db   :  { %246 = vst.msk [vmem:[#allocation3 + $0x230] sm:$0xff] %vm47_vm0, %v7766_v62  ;;  %247 = vst.msk [vmem:[#allocation3 + $0x238] sm:$0xff] %vm47_vm0, %v7766_v62 }
 0x2dc   :  { %248 = vst.msk [vmem:[#allocation3 + $0x240] sm:$0xff] %vm47_vm0, %v7766_v62  ;;  %249 = vst.msk [vmem:[#allocation3 + $0x248] sm:$0xff] %vm47_vm0, %v7766_v62 }
 0x2dd   :  { %250 = vst.msk [vmem:[#allocation3 + $0x250] sm:$0xff] %vm47_vm0, %v7766_v62  ;;  %251 = vst.msk [vmem:[#allocation3 + $0x258] sm:$0xff] %vm47_vm0, %v7766_v62 }
 0x2de   :  { %252 = vst.msk [vmem:[#allocation3 + $0x260] sm:$0xff] %vm47_vm0, %v7766_v62  ;;  %253 = vst.msk [vmem:[#allocation3 + $0x268] sm:$0xff] %vm47_vm0, %v7766_v62 }
 0x2df   :  { %254 = vst.msk [vmem:[#allocation3 + $0x270] sm:$0xff] %vm47_vm0, %v7766_v62  ;;  %255 = vst.msk [vmem:[#allocation3 + $0x278] sm:$0xff] %vm47_vm0, %v7766_v62 }
 0x2e0   :  { %256 = vst.msk [vmem:[#allocation3 + $0x280] sm:$0xff] %vm47_vm0, %v7766_v62  ;;  %257 = vst.msk [vmem:[#allocation3 + $0x288] sm:$0xff] %vm47_vm0, %v7766_v62 }
 0x2e1   :  { %258 = vst.msk [vmem:[#allocation3 + $0x290] sm:$0xff] %vm47_vm0, %v7766_v62  ;;  %259 = vst.msk [vmem:[#allocation3 + $0x298] sm:$0xff] %vm47_vm0, %v7766_v62 }
 0x2e2   :  { %260 = vst.msk [vmem:[#allocation3 + $0x2a0] sm:$0xff] %vm47_vm0, %v7766_v62  ;;  %261 = vst.msk [vmem:[#allocation3 + $0x2a8] sm:$0xff] %vm47_vm0, %v7766_v62 }
 0x2e3   :  { %262 = vst.msk [vmem:[#allocation3 + $0x2b0] sm:$0xff] %vm47_vm0, %v7766_v62  ;;  %263 = vst.msk [vmem:[#allocation3 + $0x2b8] sm:$0xff] %vm47_vm0, %v7766_v62 }
 0x2e4   :  { %264 = vst.msk [vmem:[#allocation3 + $0x2c0] sm:$0xff] %vm47_vm0, %v7766_v62  ;;  %265 = vst.msk [vmem:[#allocation3 + $0x2c8] sm:$0xff] %vm47_vm0, %v7766_v62 }
 0x2e5   :  { %266 = vst.msk [vmem:[#allocation3 + $0x2d0] sm:$0xff] %vm47_vm0, %v7766_v62  ;;  %267 = vst.msk [vmem:[#allocation3 + $0x2d8] sm:$0xff] %vm47_vm0, %v7766_v62 }
 0x2e6   :  { %268 = vst.msk [vmem:[#allocation3 + $0x2e0] sm:$0xff] %vm47_vm0, %v7766_v62  ;;  %269 = vst.msk [vmem:[#allocation3 + $0x2e8] sm:$0xff] %vm47_vm0, %v7766_v62 }
 0x2e7   :  { %270 = vst.msk [vmem:[#allocation3 + $0x2f0] sm:$0xff] %vm47_vm0, %v7766_v62  ;;  %271 = vst.msk [vmem:[#allocation3 + $0x2f8] sm:$0xff] %vm47_vm0, %v7766_v62 }
 0x2e8   :  { %272 = vst.msk [vmem:[#allocation3 + $0x300] sm:$0xff] %vm47_vm0, %v7766_v62  ;;  %273 = vst.msk [vmem:[#allocation3 + $0x308] sm:$0xff] %vm47_vm0, %v7766_v62 }
 0x2e9   :  { %274 = vst.msk [vmem:[#allocation3 + $0x310] sm:$0xff] %vm47_vm0, %v7766_v62  ;;  %275 = vst.msk [vmem:[#allocation3 + $0x318] sm:$0xff] %vm47_vm0, %v7766_v62 }
 0x2ea   :  { %276 = vst.msk [vmem:[#allocation3 + $0x320] sm:$0xff] %vm47_vm0, %v7766_v62  ;;  %277 = vst.msk [vmem:[#allocation3 + $0x328] sm:$0xff] %vm47_vm0, %v7766_v62 }
 0x2eb   :  { %278 = vst.msk [vmem:[#allocation3 + $0x330] sm:$0xff] %vm47_vm0, %v7766_v62  ;;  %279 = vst.msk [vmem:[#allocation3 + $0x338] sm:$0xff] %vm47_vm0, %v7766_v62 }
 0x2ec   :  { %280 = vst.msk [vmem:[#allocation3 + $0x340] sm:$0xff] %vm47_vm0, %v7766_v62  ;;  %281 = vst.msk [vmem:[#allocation3 + $0x348] sm:$0xff] %vm47_vm0, %v7766_v62 }
 0x2ed   :  { %282 = vst.msk [vmem:[#allocation3 + $0x350] sm:$0xff] %vm47_vm0, %v7766_v62  ;;  %283 = vst.msk [vmem:[#allocation3 + $0x358] sm:$0xff] %vm47_vm0, %v7766_v62 }
 0x2ee   :  { %284 = vst.msk [vmem:[#allocation3 + $0x360] sm:$0xff] %vm47_vm0, %v7766_v62  ;;  %285 = vst.msk [vmem:[#allocation3 + $0x368] sm:$0xff] %vm47_vm0, %v7766_v62 }
 0x2ef   :  { %286 = vst.msk [vmem:[#allocation3 + $0x370] sm:$0xff] %vm47_vm0, %v7766_v62  ;;  %287 = vst.msk [vmem:[#allocation3 + $0x378] sm:$0xff] %vm47_vm0, %v7766_v62 }
 0x2f0   :  { %288 = vst.msk [vmem:[#allocation3 + $0x380] sm:$0xff] %vm47_vm0, %v7766_v62  ;;  %289 = vst.msk [vmem:[#allocation3 + $0x388] sm:$0xff] %vm47_vm0, %v7766_v62 }
 0x2f1   :  { %290 = vst.msk [vmem:[#allocation3 + $0x390] sm:$0xff] %vm47_vm0, %v7766_v62  ;;  %291 = vst.msk [vmem:[#allocation3 + $0x398] sm:$0xff] %vm47_vm0, %v7766_v62 }
 0x2f2   :  { %292 = vst.msk [vmem:[#allocation3 + $0x3a0] sm:$0xff] %vm47_vm0, %v7766_v62  ;;  %293 = vst.msk [vmem:[#allocation3 + $0x3a8] sm:$0xff] %vm47_vm0, %v7766_v62 }
 0x2f3   :  { %294 = vst.msk [vmem:[#allocation3 + $0x3b0] sm:$0xff] %vm47_vm0, %v7766_v62  ;;  %295 = vst.msk [vmem:[#allocation3 + $0x3b8] sm:$0xff] %vm47_vm0, %v7766_v62 }
 0x2f4   :  { %296 = vst.msk [vmem:[#allocation3 + $0x3c0] sm:$0xff] %vm47_vm0, %v7766_v62  ;;  %297 = vst.msk [vmem:[#allocation3 + $0x3c8] sm:$0xff] %vm47_vm0, %v7766_v62 }
 0x2f5   :  { %298 = vst.msk [vmem:[#allocation3 + $0x3d0] sm:$0xff] %vm47_vm0, %v7766_v62  ;;  %299 = vst.msk [vmem:[#allocation3 + $0x3d8] sm:$0xff] %vm47_vm0, %v7766_v62 }
 0x2f6   :  { %300 = vst.msk [vmem:[#allocation3 + $0x3e0] sm:$0xff] %vm47_vm0, %v7766_v62  ;;  %301 = vst.msk [vmem:[#allocation3 + $0x3e8] sm:$0xff] %vm47_vm0, %v7766_v62 }
 0x2f7   :  { %302 = vst.msk [vmem:[#allocation3 + $0x3f0] sm:$0xff] %vm47_vm0, %v7766_v62  ;;  %303 = vst.msk [vmem:[#allocation3 + $0x3f8] sm:$0xff] %vm47_vm0, %v7766_v62  ;;  %v2747_v62 = vcvt.s32.f32 %v15568_v2  ;;  %v11125_v2 = vcvt.s32.f32 %v2312_v16  ;;  %v1877_v16 = vand.u32 65535, %v15571_v10  ;;  %v1863_v10 = vand.u32 65535, %v15576_v51 }
 0x2f8   :  { %15570 = vst [vmem:[#allocation90_spill] sm:$0xff] %v11131_v20  ;;  %15572 = vst [vmem:[#allocation91_spill] sm:$0xff] %v11139_v52 }
 0x2f9   :  { %v2752_v60 = vsel %vm2751_vm13, %v2747_v62, inf  ;;  %v1842_v62 = vsel %vm1841_vm12, %v1837_v27, inf  ;;  %2315 = vmin.xlane.f32.xlu0 %v11125_v2  ;;  %vm2737_vm13 = vcmp.eq.f32.partialorder %v15573_v7, %v11136_v61  ;;  %v2340_v27 = vshra.s32 %v11131_v20, 16  ;;  %v15577_v7 = vld [vmem:[#allocation277_spill] sm:$0xff] }
 0x2fa   :  { %2753 = vmin.xlane.f32.xlu1 %v2752_v60  ;;  %v2733_v60 = vcvt.s32.f32 %v2731_v40  ;;  %v11150_v40 = vpop.xlane.xlu0 %1881  ;;  %v11159_v20 = vsel %vm1591_vm14, %v9495_v37, 128  ;;  %vm1593_vm14 = vcmp.eq.f32.partialorder %v15585_v4, %v10049_v24  ;;  %v15591_v4 = vld [vmem:[#allocation137_spill] sm:$0xff] }
 0x2fb   :  { %v11153_v42 = vcvt.s32.f32 %v2340_v27  ;;  %vm1883_vm12 = vcmp.eq.f32.partialorder %v15577_v7, %v11150_v40  ;;  %15578 = vst [vmem:[#allocation103_spill] sm:$0xff] %v11159_v20  ;;  %v15581_v27 = vld [vmem:[#allocation280_spill] sm:$0xff]  ;;  %v2368_v7 = vshra.s32 %v11159_v20, 16 }
 0x2fc   :  { %v2738_v56 = vsel %vm2737_vm13, %v2733_v60, inf  ;;  %v2382_v60 = vshra.s32 %v11145_v21, 16  ;;  %v2759_v51 = vand.u32 65535, %v15581_v27  ;;  %v11173_v21 = vsel %vm1594_vm15, %v9495_v37, 128 }
 0x2fd   :  { %2357 = vmin.xlane.f32.xlu0 %v11139_v52  ;;  %15583 = vst [vmem:[#allocation272_spill] sm:$0xff] %v11173_v21  ;;  %v11183_v5 = vcvt.s32.f32 %v2368_v7  ;;  %v2410_v20 = vshra.s32 %v11173_v21, 16  ;;  %vm1596_vm15 = vcmp.eq.f32.partialorder %v15591_v4, %v10113_v29  ;;  %v15593_v7 = vld [vmem:[#allocation290_spill] sm:$0xff] }
 0x2fe   :  { %1843 = vmin.xlane.f32.xlu1 %v1842_v62  ;;  %v1879_v62 = vcvt.s32.f32 %v1877_v16  ;;  %v1865_v16 = vcvt.s32.f32 %v1863_v10  ;;  %v11167_v12 = vcvt.s32.f32 %v2382_v60  ;;  %v2761_v10 = vcvt.s32.f32 %v2759_v51  ;;  %v15587_v60 = vld [vmem:[#allocation285_spill] sm:$0xff]  ;;  %v15597_v4 = vld [vmem:[#allocation138_spill] sm:$0xff] }
 0x2ff   :  { %v1905_v27 = vand.u32 65535, %v15587_v60  ;;  %v1891_v24 = vand.u32 65535, %v15593_v7 }
 0x300   :  { %v1884_v17 = vsel %vm1883_vm12, %v1879_v62, inf  ;;  %v15582_v62 = vld [vmem:[#allocation282_spill] sm:$0xff] }
 0x301   :  { %2343 = vmin.xlane.f32.xlu0 %v11153_v42  ;;  %v1907_v60 = vcvt.s32.f32 %v1905_v27  ;;  %v1893_v7 = vcvt.s32.f32 %v1891_v24 }
 0x302   :  { %2739 = vmin.xlane.f32.xlu1 %v2738_v56  ;;  %v11164_v56 = vpop.xlane.xlu0 %1867 }
 0x303   :  { %15580 = vst [vmem:[#allocation270_spill] sm:$0xff] %v11164_v56  ;;  %vm1869_vm13 = vcmp.eq.f32.partialorder %v15582_v62, %v11164_v56  ;;  %v15588_v62 = vld [vmem:[#allocation287_spill] sm:$0xff] }
 0x304   :  { %v11175_v52 = vsel %vm1869_vm13, %v1865_v16, inf  ;;  %v11189_v16 = vsel %vm1593_vm14, %v9495_v37, 128  ;;  %vm1595_vm14 = vcmp.eq.f32.partialorder %v15597_v4, %v10115_v15  ;;  %v15603_v4 = vld [vmem:[#allocation149_spill] sm:$0xff] }
 0x305   :  { %15584 = vst [vmem:[#allocation114_spill] sm:$0xff] %v11175_v52  ;;  %2385 = vmin.xlane.f32.xlu0 %v11167_v12  ;;  %15589 = vst [vmem:[#allocation277_spill] sm:$0xff] %v11189_v16  ;;  %v11199_v52 = vcvt.s32.f32 %v2410_v20  ;;  %v2396_v21 = vshra.s32 %v11189_v16, 16  ;;  %v15599_v20 = vld [vmem:[#allocation295_spill] sm:$0xff] }
 0x306   :  { %1885 = vmin.xlane.f32.xlu1 %v1884_v17  ;;  %v11180_v17 = vpop.xlane.xlu0 %2763  ;;  %v1933_v29 = vand.u32 65535, %v15599_v20 }
 0x307   :  { %15586 = vst [vmem:[#allocation275_spill] sm:$0xff] %v11180_v17  ;;  %vm2765_vm12 = vcmp.eq.f32.partialorder %v15588_v62, %v11180_v17  ;;  %v15594_v62 = vld [vmem:[#allocation292_spill] sm:$0xff] }
 0x308   :  { %v11191_v56 = vsel %vm2765_vm12, %v2761_v10, inf  ;;  %v11205_v10 = vsel %vm1596_vm15, %v9495_v37, 128  ;;  %vm1598_vm15 = vcmp.eq.f32.partialorder %v15603_v4, %v10179_v63  ;;  %v1935_v20 = vcvt.s32.f32 %v1933_v29  ;;  %v15609_v4 = vld [vmem:[#allocation150_spill] sm:$0xff] }
 0x309   :  { %15590 = vst [vmem:[#allocation125_spill] sm:$0xff] %v11191_v56  ;;  %2371 = vmin.xlane.f32.xlu0 %v11183_v5  ;;  %15595 = vst [vmem:[#allocation282_spill] sm:$0xff] %v11205_v10  ;;  %v11215_v56 = vcvt.s32.f32 %v2396_v21  ;;  %v2438_v16 = vshra.s32 %v11205_v10, 16  ;;  %v15605_v21 = vld [vmem:[#allocation300_spill] sm:$0xff] }
 0x30a   :  { %v11196_v51 = vpop.xlane.xlu0 %1909  ;;  %v1919_v15 = vand.u32 65535, %v15605_v21 }
 0x30b   :  { %15592 = vst [vmem:[#allocation280_spill] sm:$0xff] %v11196_v51  ;;  %vm1911_vm13 = vcmp.eq.f32.partialorder %v15594_v62, %v11196_v51  ;;  %v15600_v62 = vld [vmem:[#allocation297_spill] sm:$0xff] }
 0x30c   :  { %v11207_v17 = vsel %vm1911_vm13, %v1907_v60, inf  ;;  %v11221_v60 = vsel %vm1595_vm14, %v9495_v37, 128  ;;  %vm1597_vm14 = vcmp.eq.f32.partialorder %v15609_v4, %v10181_v19  ;;  %v1921_v21 = vcvt.s32.f32 %v1919_v15  ;;  %v15615_v4 = vld [vmem:[#allocation161_spill] sm:$0xff] }
 0x30d   :  { %15596 = vst [vmem:[#allocation126_spill] sm:$0xff] %v11207_v17  ;;  %2413 = vmin.xlane.f32.xlu0 %v11199_v52  ;;  %15601 = vst [vmem:[#allocation287_spill] sm:$0xff] %v11221_v60  ;;  %v11231_v17 = vcvt.s32.f32 %v2438_v16  ;;  %v2424_v10 = vshra.s32 %v11221_v60, 16  ;;  %v15611_v16 = vld [vmem:[#allocation305_spill] sm:$0xff] }
 0x30e   :  { %v11212_v27 = vpop.xlane.xlu0 %1895  ;;  %v1961_v63 = vand.u32 65535, %v15611_v16 }
 0x30f   :  { %15598 = vst [vmem:[#allocation285_spill] sm:$0xff] %v11212_v27  ;;  %vm1897_vm12 = vcmp.eq.f32.partialorder %v15600_v62, %v11212_v27  ;;  %v15606_v62 = vld [vmem:[#allocation302_spill] sm:$0xff] }
 0x310   :  { %v11223_v51 = vsel %vm1897_vm12, %v1893_v7, inf  ;;  %v11237_v7 = vsel %vm1598_vm15, %v9495_v37, 128  ;;  %vm1600_vm15 = vcmp.eq.f32.partialorder %v15615_v4, %v10245_v57  ;;  %v1963_v16 = vcvt.s32.f32 %v1961_v63  ;;  %v15621_v4 = vld [vmem:[#allocation162_spill] sm:$0xff] }
 0x311   :  { %15602 = vst [vmem:[#allocation137_spill] sm:$0xff] %v11223_v51  ;;  %2399 = vmin.xlane.f32.xlu0 %v11215_v56  ;;  %15607 = vst [vmem:[#allocation292_spill] sm:$0xff] %v11237_v7  ;;  %v11247_v51 = vcvt.s32.f32 %v2424_v10  ;;  %v2466_v60 = vshra.s32 %v11237_v7, 16  ;;  %v15617_v10 = vld [vmem:[#allocation310_spill] sm:$0xff] }
 0x312   :  { %v11228_v24 = vpop.xlane.xlu0 %1937  ;;  %v1947_v19 = vand.u32 65535, %v15617_v10 }
 0x313   :  { %15604 = vst [vmem:[#allocation290_spill] sm:$0xff] %v11228_v24  ;;  %vm1939_vm13 = vcmp.eq.f32.partialorder %v15606_v62, %v11228_v24  ;;  %v15612_v62 = vld [vmem:[#allocation307_spill] sm:$0xff] }
 0x314   :  { %v11239_v27 = vsel %vm1939_vm13, %v1935_v20, inf  ;;  %v11253_v20 = vsel %vm1597_vm14, %v9495_v37, 128  ;;  %vm1599_vm14 = vcmp.eq.f32.partialorder %v15621_v4, %v10247_v18  ;;  %v1949_v10 = vcvt.s32.f32 %v1947_v19  ;;  %v15627_v4 = vld [vmem:[#allocation173_spill] sm:$0xff] }
 0x315   :  { %15608 = vst [vmem:[#allocation138_spill] sm:$0xff] %v11239_v27  ;;  %2441 = vmin.xlane.f32.xlu0 %v11231_v17  ;;  %15613 = vst [vmem:[#allocation297_spill] sm:$0xff] %v11253_v20  ;;  %v11263_v27 = vcvt.s32.f32 %v2466_v60  ;;  %v2452_v7 = vshra.s32 %v11253_v20, 16  ;;  %v15623_v60 = vld [vmem:[#allocation315_spill] sm:$0xff] }
 0x316   :  { %v11244_v29 = vpop.xlane.xlu0 %1923  ;;  %v1989_v57 = vand.u32 65535, %v15623_v60 }
 0x317   :  { %15610 = vst [vmem:[#allocation295_spill] sm:$0xff] %v11244_v29  ;;  %vm1925_vm12 = vcmp.eq.f32.partialorder %v15612_v62, %v11244_v29  ;;  %v15618_v62 = vld [vmem:[#allocation312_spill] sm:$0xff] }
 0x318   :  { %v11255_v24 = vsel %vm1925_vm12, %v1921_v21, inf  ;;  %v11269_v21 = vsel %vm1600_vm15, %v9495_v37, 128  ;;  %vm1602_vm15 = vcmp.eq.f32.partialorder %v15627_v4, %v10311_v50  ;;  %v1991_v60 = vcvt.s32.f32 %v1989_v57  ;;  %v15633_v4 = vld [vmem:[#allocation174_spill] sm:$0xff] }
 0x319   :  { %15614 = vst [vmem:[#allocation149_spill] sm:$0xff] %v11255_v24  ;;  %2427 = vmin.xlane.f32.xlu0 %v11247_v51  ;;  %15619 = vst [vmem:[#allocation302_spill] sm:$0xff] %v11269_v21  ;;  %v11279_v24 = vcvt.s32.f32 %v2452_v7  ;;  %v2494_v20 = vshra.s32 %v11269_v21, 16  ;;  %v15629_v7 = vld [vmem:[#allocation320_spill] sm:$0xff] }
 0x31a   :  { %v11260_v15 = vpop.xlane.xlu0 %1965  ;;  %v1975_v18 = vand.u32 65535, %v15629_v7 }
 0x31b   :  { %15616 = vst [vmem:[#allocation300_spill] sm:$0xff] %v11260_v15  ;;  %vm1967_vm13 = vcmp.eq.f32.partialorder %v15618_v62, %v11260_v15  ;;  %v15624_v62 = vld [vmem:[#allocation317_spill] sm:$0xff] }
 0x31c   :  { %v11271_v29 = vsel %vm1967_vm13, %v1963_v16, inf  ;;  %v11285_v16 = vsel %vm1599_vm14, %v9495_v37, 128  ;;  %vm1601_vm14 = vcmp.eq.f32.partialorder %v15633_v4, %v10313_v26  ;;  %v1977_v7 = vcvt.s32.f32 %v1975_v18  ;;  %v15639_v4 = vld [vmem:[#allocation185_spill] sm:$0xff] }
 0x31d   :  { %15620 = vst [vmem:[#allocation150_spill] sm:$0xff] %v11271_v29  ;;  %2469 = vmin.xlane.f32.xlu0 %v11263_v27  ;;  %15625 = vst [vmem:[#allocation307_spill] sm:$0xff] %v11285_v16  ;;  %v11295_v29 = vcvt.s32.f32 %v2494_v20  ;;  %v2480_v21 = vshra.s32 %v11285_v16, 16  ;;  %v15635_v20 = vld [vmem:[#allocation325_spill] sm:$0xff] }
 0x31e   :  { %v11276_v63 = vpop.xlane.xlu0 %1951  ;;  %v2017_v50 = vand.u32 65535, %v15635_v20 }
 0x31f   :  { %15622 = vst [vmem:[#allocation305_spill] sm:$0xff] %v11276_v63  ;;  %vm1953_vm12 = vcmp.eq.f32.partialorder %v15624_v62, %v11276_v63  ;;  %v15630_v62 = vld [vmem:[#allocation322_spill] sm:$0xff] }
 0x320   :  { %v11287_v15 = vsel %vm1953_vm12, %v1949_v10, inf  ;;  %v11301_v10 = vsel %vm1602_vm15, %v9495_v37, 128  ;;  %vm1604_vm15 = vcmp.eq.f32.partialorder %v15639_v4, %v10377_v45  ;;  %v2019_v20 = vcvt.s32.f32 %v2017_v50  ;;  %v15645_v4 = vld [vmem:[#allocation186_spill] sm:$0xff] }
 0x321   :  { %15626 = vst [vmem:[#allocation161_spill] sm:$0xff] %v11287_v15  ;;  %2455 = vmin.xlane.f32.xlu0 %v11279_v24  ;;  %15631 = vst [vmem:[#allocation312_spill] sm:$0xff] %v11301_v10  ;;  %v11311_v15 = vcvt.s32.f32 %v2480_v21  ;;  %v2522_v16 = vshra.s32 %v11301_v10, 16  ;;  %v15641_v21 = vld [vmem:[#allocation330_spill] sm:$0xff] }
 0x322   :  { %v11292_v19 = vpop.xlane.xlu0 %1993  ;;  %v2003_v26 = vand.u32 65535, %v15641_v21 }
 0x323   :  { %15628 = vst [vmem:[#allocation310_spill] sm:$0xff] %v11292_v19  ;;  %vm1995_vm13 = vcmp.eq.f32.partialorder %v15630_v62, %v11292_v19  ;;  %v15636_v62 = vld [vmem:[#allocation327_spill] sm:$0xff] }
 0x324   :  { %v11303_v63 = vsel %vm1995_vm13, %v1991_v60, inf  ;;  %v11317_v60 = vsel %vm1601_vm14, %v9495_v37, 128  ;;  %vm1603_vm14 = vcmp.eq.f32.partialorder %v15645_v4, %v10379_v25  ;;  %v2005_v21 = vcvt.s32.f32 %v2003_v26  ;;  %v15651_v4 = vld [vmem:[#allocation197_spill] sm:$0xff] }
 0x325   :  { %15632 = vst [vmem:[#allocation162_spill] sm:$0xff] %v11303_v63  ;;  %2497 = vmin.xlane.f32.xlu0 %v11295_v29  ;;  %15637 = vst [vmem:[#allocation317_spill] sm:$0xff] %v11317_v60  ;;  %v11327_v63 = vcvt.s32.f32 %v2522_v16  ;;  %v2508_v10 = vshra.s32 %v11317_v60, 16  ;;  %v15647_v16 = vld [vmem:[#allocation335_spill] sm:$0xff] }
 0x326   :  { %v11308_v57 = vpop.xlane.xlu0 %1979  ;;  %v2045_v45 = vand.u32 65535, %v15647_v16 }
 0x327   :  { %15634 = vst [vmem:[#allocation315_spill] sm:$0xff] %v11308_v57  ;;  %vm1981_vm12 = vcmp.eq.f32.partialorder %v15636_v62, %v11308_v57  ;;  %v15642_v62 = vld [vmem:[#allocation332_spill] sm:$0xff] }
 0x328   :  { %v11319_v19 = vsel %vm1981_vm12, %v1977_v7, inf  ;;  %v11333_v7 = vsel %vm1604_vm15, %v9495_v37, 128  ;;  %vm1606_vm15 = vcmp.eq.f32.partialorder %v15651_v4, %v10443_v30  ;;  %v2047_v16 = vcvt.s32.f32 %v2045_v45  ;;  %v15657_v4 = vld [vmem:[#allocation198_spill] sm:$0xff] }
 0x329   :  { %15638 = vst [vmem:[#allocation173_spill] sm:$0xff] %v11319_v19  ;;  %2483 = vmin.xlane.f32.xlu0 %v11311_v15  ;;  %15643 = vst [vmem:[#allocation322_spill] sm:$0xff] %v11333_v7  ;;  %v11343_v19 = vcvt.s32.f32 %v2508_v10  ;;  %v2550_v60 = vshra.s32 %v11333_v7, 16  ;;  %v15653_v10 = vld [vmem:[#allocation340_spill] sm:$0xff] }
 0x32a   :  { %v11324_v18 = vpop.xlane.xlu0 %2021  ;;  %v2031_v25 = vand.u32 65535, %v15653_v10 }
 0x32b   :  { %15640 = vst [vmem:[#allocation320_spill] sm:$0xff] %v11324_v18  ;;  %vm2023_vm13 = vcmp.eq.f32.partialorder %v15642_v62, %v11324_v18  ;;  %v15648_v62 = vld [vmem:[#allocation337_spill] sm:$0xff] }
 0x32c   :  { %v11335_v57 = vsel %vm2023_vm13, %v2019_v20, inf  ;;  %v11349_v20 = vsel %vm1603_vm14, %v9495_v37, 128  ;;  %vm1605_vm14 = vcmp.eq.f32.partialorder %v15657_v4, %v10445_v36  ;;  %v2033_v10 = vcvt.s32.f32 %v2031_v25  ;;  %v15663_v4 = vld [vmem:[#allocation208_spill] sm:$0xff] }
 0x32d   :  { %15644 = vst [vmem:[#allocation174_spill] sm:$0xff] %v11335_v57  ;;  %2525 = vmin.xlane.f32.xlu0 %v11327_v63  ;;  %15649 = vst [vmem:[#allocation327_spill] sm:$0xff] %v11349_v20  ;;  %v11359_v57 = vcvt.s32.f32 %v2550_v60  ;;  %v2536_v7 = vshra.s32 %v11349_v20, 16  ;;  %v15659_v60 = vld [vmem:[#allocation345_spill] sm:$0xff] }
 0x32e   :  { %v11340_v50 = vpop.xlane.xlu0 %2007  ;;  %v2073_v30 = vand.u32 65535, %v15659_v60 }
 0x32f   :  { %15646 = vst [vmem:[#allocation325_spill] sm:$0xff] %v11340_v50  ;;  %vm2009_vm12 = vcmp.eq.f32.partialorder %v15648_v62, %v11340_v50  ;;  %v15654_v62 = vld [vmem:[#allocation342_spill] sm:$0xff] }
 0x330   :  { %v11351_v18 = vsel %vm2009_vm12, %v2005_v21, inf  ;;  %v11365_v21 = vsel %vm1606_vm15, %v9495_v37, 128  ;;  %vm1608_vm15 = vcmp.eq.f32.partialorder %v15663_v4, %v10509_v39  ;;  %v2075_v60 = vcvt.s32.f32 %v2073_v30  ;;  %v15669_v4 = vld [vmem:[#allocation73_spill] sm:$0xff] }
 0x331   :  { %15650 = vst [vmem:[#allocation185_spill] sm:$0xff] %v11351_v18  ;;  %2511 = vmin.xlane.f32.xlu0 %v11343_v19  ;;  %15655 = vst [vmem:[#allocation332_spill] sm:$0xff] %v11365_v21  ;;  %v11375_v18 = vcvt.s32.f32 %v2536_v7  ;;  %v2578_v20 = vshra.s32 %v11365_v21, 16  ;;  %v15665_v7 = vld [vmem:[#allocation350_spill] sm:$0xff] }
 0x332   :  { %v11356_v26 = vpop.xlane.xlu0 %2049  ;;  %v2059_v36 = vand.u32 65535, %v15665_v7 }
 0x333   :  { %15652 = vst [vmem:[#allocation330_spill] sm:$0xff] %v11356_v26  ;;  %vm2051_vm13 = vcmp.eq.f32.partialorder %v15654_v62, %v11356_v26  ;;  %v15660_v62 = vld [vmem:[#allocation347_spill] sm:$0xff] }
 0x334   :  { %v11367_v50 = vsel %vm2051_vm13, %v2047_v16, inf  ;;  %v11381_v16 = vsel %vm1605_vm14, %v9495_v37, 128  ;;  %vm1607_vm14 = vcmp.eq.f32.partialorder %v15669_v4, %v10511_v23  ;;  %v2061_v7 = vcvt.s32.f32 %v2059_v36  ;;  %v15675_v4 = vld [vmem:[#allocation218_spill] sm:$0xff] }
 0x335   :  { %15656 = vst [vmem:[#allocation186_spill] sm:$0xff] %v11367_v50  ;;  %2553 = vmin.xlane.f32.xlu0 %v11359_v57  ;;  %15661 = vst [vmem:[#allocation337_spill] sm:$0xff] %v11381_v16  ;;  %v11391_v50 = vcvt.s32.f32 %v2578_v20  ;;  %v2564_v21 = vshra.s32 %v11381_v16, 16  ;;  %v15671_v20 = vld [vmem:[#allocation355_spill] sm:$0xff] }
 0x336   :  { %v11372_v45 = vpop.xlane.xlu0 %2035  ;;  %v2101_v39 = vand.u32 65535, %v15671_v20 }
 0x337   :  { %15658 = vst [vmem:[#allocation335_spill] sm:$0xff] %v11372_v45  ;;  %vm2037_vm12 = vcmp.eq.f32.partialorder %v15660_v62, %v11372_v45  ;;  %v15666_v62 = vld [vmem:[#allocation352_spill] sm:$0xff] }
 0x338   :  { %v11383_v26 = vsel %vm2037_vm12, %v2033_v10, inf  ;;  %v11397_v10 = vsel %vm1608_vm15, %v9495_v37, 128  ;;  %vm1610_vm15 = vcmp.eq.f32.partialorder %v15675_v4, %v10575_v38  ;;  %v2103_v20 = vcvt.s32.f32 %v2101_v39  ;;  %v15681_v4 = vld [vmem:[#allocation77_spill] sm:$0xff] }
 0x339   :  { %15662 = vst [vmem:[#allocation197_spill] sm:$0xff] %v11383_v26  ;;  %2539 = vmin.xlane.f32.xlu0 %v11375_v18  ;;  %15667 = vst [vmem:[#allocation342_spill] sm:$0xff] %v11397_v10  ;;  %v11407_v26 = vcvt.s32.f32 %v2564_v21  ;;  %v2606_v16 = vshra.s32 %v11397_v10, 16  ;;  %v15677_v21 = vld [vmem:[#allocation360_spill] sm:$0xff] }
 0x33a   :  { %v11388_v25 = vpop.xlane.xlu0 %2077  ;;  %v2087_v23 = vand.u32 65535, %v15677_v21 }
 0x33b   :  { %15664 = vst [vmem:[#allocation340_spill] sm:$0xff] %v11388_v25  ;;  %vm2079_vm13 = vcmp.eq.f32.partialorder %v15666_v62, %v11388_v25  ;;  %v15672_v62 = vld [vmem:[#allocation357_spill] sm:$0xff] }
 0x33c   :  { %v11399_v45 = vsel %vm2079_vm13, %v2075_v60, inf  ;;  %v11413_v60 = vsel %vm1607_vm14, %v9495_v37, 128  ;;  %vm1609_vm14 = vcmp.eq.f32.partialorder %v15681_v4, %v10577_v47  ;;  %v2089_v21 = vcvt.s32.f32 %v2087_v23  ;;  %v15687_v4 = vld [vmem:[#allocation228_spill] sm:$0xff] }
 0x33d   :  { %15668 = vst [vmem:[#allocation198_spill] sm:$0xff] %v11399_v45  ;;  %2581 = vmin.xlane.f32.xlu0 %v11391_v50  ;;  %15673 = vst [vmem:[#allocation347_spill] sm:$0xff] %v11413_v60  ;;  %v11423_v45 = vcvt.s32.f32 %v2606_v16  ;;  %v2592_v10 = vshra.s32 %v11413_v60, 16  ;;  %v15683_v16 = vld [vmem:[#allocation365_spill] sm:$0xff] }
 0x33e   :  { %v11404_v30 = vpop.xlane.xlu0 %2063  ;;  %v2129_v38 = vand.u32 65535, %v15683_v16 }
 0x33f   :  { %15670 = vst [vmem:[#allocation345_spill] sm:$0xff] %v11404_v30  ;;  %vm2065_vm12 = vcmp.eq.f32.partialorder %v15672_v62, %v11404_v30  ;;  %v15678_v62 = vld [vmem:[#allocation362_spill] sm:$0xff] }
 0x340   :  { %v11415_v25 = vsel %vm2065_vm12, %v2061_v7, inf  ;;  %v11429_v7 = vsel %vm1610_vm15, %v9495_v37, 128  ;;  %vm1612_vm15 = vcmp.eq.f32.partialorder %v15687_v4, %v10641_v28  ;;  %v2131_v16 = vcvt.s32.f32 %v2129_v38  ;;  %v15694_v4 = vld [vmem:[#allocation81_spill] sm:$0xff] }
 0x341   :  { %15674 = vst [vmem:[#allocation208_spill] sm:$0xff] %v11415_v25  ;;  %2567 = vmin.xlane.f32.xlu0 %v11407_v26  ;;  %15679 = vst [vmem:[#allocation352_spill] sm:$0xff] %v11429_v7  ;;  %v11439_v25 = vcvt.s32.f32 %v2592_v10  ;;  %v2634_v60 = vshra.s32 %v11429_v7, 16  ;;  %v15689_v10 = vld [vmem:[#allocation370_spill] sm:$0xff] }
 0x342   :  { %v11420_v36 = vpop.xlane.xlu0 %2105  ;;  %v2115_v47 = vand.u32 65535, %v15689_v10 }
 0x343   :  { %15676 = vst [vmem:[#allocation350_spill] sm:$0xff] %v11420_v36  ;;  %vm2107_vm13 = vcmp.eq.f32.partialorder %v15678_v62, %v11420_v36  ;;  %v15684_v62 = vld [vmem:[#allocation367_spill] sm:$0xff] }
 0x344   :  { %v11431_v30 = vsel %vm2107_vm13, %v2103_v20, inf  ;;  %v11445_v20 = vsel %vm1609_vm14, %v9495_v37, 128  ;;  %vm1611_vm14 = vcmp.eq.f32.partialorder %v15694_v4, %v10643_v55  ;;  %v2117_v10 = vcvt.s32.f32 %v2115_v47  ;;  %v15701_v4 = vld [vmem:[#allocation13_spill] sm:$0xff] }
 0x345   :  { %15680 = vst [vmem:[#allocation73_spill] sm:$0xff] %v11431_v30  ;;  %2609 = vmin.xlane.f32.xlu0 %v11423_v45  ;;  %15685 = vst [vmem:[#allocation357_spill] sm:$0xff] %v11445_v20  ;;  %v11455_v30 = vcvt.s32.f32 %v2634_v60  ;;  %v2620_v7 = vshra.s32 %v11445_v20, 16  ;;  %v15696_v60 = vld [vmem:[#allocation375_spill] sm:$0xff] }
 0x346   :  { %v11436_v39 = vpop.xlane.xlu0 %2091  ;;  %v2157_v28 = vand.u32 65535, %v15696_v60 }
 0x347   :  { %15682 = vst [vmem:[#allocation355_spill] sm:$0xff] %v11436_v39  ;;  %vm2093_vm12 = vcmp.eq.f32.partialorder %v15684_v62, %v11436_v39  ;;  %15690 = vst [vmem:[#allocation362_spill] sm:$0xff] %v11455_v30  ;;  %v15691_v62 = vld [vmem:[#allocation372_spill] sm:$0xff] }
 0x348   :  { %v11447_v36 = vsel %vm2093_vm12, %v2089_v21, inf  ;;  %v11461_v21 = vsel %vm1612_vm15, %v9495_v37, 128  ;;  %vm1614_vm15 = vcmp.eq.f32.partialorder %v15701_v4, %v10707_v33  ;;  %v2159_v60 = vcvt.s32.f32 %v2157_v28  ;;  %v15708_v4 = vld [vmem:[#allocation239_spill] sm:$0xff] }
 0x349   :  { %15686 = vst [vmem:[#allocation218_spill] sm:$0xff] %v11447_v36  ;;  %2595 = vmin.xlane.f32.xlu0 %v11439_v25  ;;  %15692 = vst [vmem:[#allocation77_spill] sm:$0xff] %v11461_v21  ;;  %v11471_v36 = vcvt.s32.f32 %v2620_v7  ;;  %v2662_v20 = vshra.s32 %v11461_v21, 16  ;;  %v15703_v7 = vld [vmem:[#allocation380_spill] sm:$0xff] }
 0x34a   :  { %v11452_v23 = vpop.xlane.xlu0 %2133  ;;  %v2143_v55 = vand.u32 65535, %v15703_v7 }
 0x34b   :  { %15688 = vst [vmem:[#allocation360_spill] sm:$0xff] %v11452_v23  ;;  %vm2135_vm13 = vcmp.eq.f32.partialorder %v15691_v62, %v11452_v23  ;;  %15697 = vst [vmem:[#allocation228_spill] sm:$0xff] %v11471_v36  ;;  %v15698_v62 = vld [vmem:[#allocation377_spill] sm:$0xff] }
 0x34c   :  { %v11463_v39 = vsel %vm2135_vm13, %v2131_v16, inf  ;;  %v11477_v16 = vsel %vm1611_vm14, %v9495_v37, 128  ;;  %vm1613_vm14 = vcmp.eq.f32.partialorder %v15708_v4, %v10709_v46  ;;  %v2145_v7 = vcvt.s32.f32 %v2143_v55  ;;  %v15715_v4 = vld [vmem:[#allocation121_spill] sm:$0xff]  ;;  %v15716_v46 = vld [vmem:[#allocation23_spill] sm:$0xff] }
 0x34d   :  { %15693 = vst [vmem:[#allocation365_spill] sm:$0xff] %v11463_v39  ;;  %2637 = vmin.xlane.f32.xlu0 %v11455_v30  ;;  %15699 = vst [vmem:[#allocation370_spill] sm:$0xff] %v11477_v16  ;;  %v11487_v39 = vcvt.s32.f32 %v2662_v20  ;;  %v2648_v21 = vshra.s32 %v11477_v16, 16  ;;  %v15710_v20 = vld [vmem:[#allocation385_spill] sm:$0xff] }
 0x34e   :  { %v11468_v38 = vpop.xlane.xlu0 %2119  ;;  %v2185_v33 = vand.u32 65535, %v15710_v20 }
 0x34f   :  { %15695 = vst [vmem:[#allocation367_spill] sm:$0xff] %v11468_v38  ;;  %vm2121_vm12 = vcmp.eq.f32.partialorder %v15698_v62, %v11468_v38  ;;  %15704 = vst [vmem:[#allocation375_spill] sm:$0xff] %v11487_v39  ;;  %v15705_v62 = vld [vmem:[#allocation382_spill] sm:$0xff] }
 0x350   :  { %v11479_v23 = vsel %vm2121_vm12, %v2117_v10, inf  ;;  %v11493_v10 = vsel %vm1614_vm15, %v9495_v37, 128  ;;  %vm1620_vm15 = vcmp.eq.f32.partialorder %v15716_v46, %v15715_v4  ;;  %v2187_v20 = vcvt.s32.f32 %v2185_v33  ;;  %v15723_v46 = vld [vmem:[#allocation134_spill] sm:$0xff] }
 0x351   :  { %15700 = vst [vmem:[#allocation372_spill] sm:$0xff] %v11479_v23  ;;  %2623 = vmin.xlane.f32.xlu0 %v11471_v36  ;;  %15706 = vst [vmem:[#allocation377_spill] sm:$0xff] %v11493_v10  ;;  %v11503_v23 = vcvt.s32.f32 %v2648_v21  ;;  %v2690_v16 = vshra.s32 %v11493_v10, 16  ;;  %v15718_v21 = vld [vmem:[#allocation390_spill] sm:$0xff]  ;;  %v15742_v36 = vld [vmem:[#allocation31_spill] sm:$0xff] }
 0x352   :  { %v11484_v47 = vpop.xlane.xlu0 %2161 }
 0x353   :  { %15702 = vst [vmem:[#allocation81_spill] sm:$0xff] %v11484_v47  ;;  %vm2163_vm13 = vcmp.eq.f32.partialorder %v15705_v62, %v11484_v47  ;;  %15711 = vst [vmem:[#allocation382_spill] sm:$0xff] %v11503_v23  ;;  %v15712_v62 = vld [vmem:[#allocation387_spill] sm:$0xff] }
 0x354   :  { %v11495_v38 = vsel %vm2163_vm13, %v2159_v60, inf  ;;  %v11509_v60 = vsel %vm1613_vm14, %v9495_v37, 128 }
 0x355   :  { %15707 = vst [vmem:[#allocation13_spill] sm:$0xff] %v11495_v38  ;;  %2665 = vmin.xlane.f32.xlu0 %v11487_v39  ;;  %15713 = vst [vmem:[#allocation239_spill] sm:$0xff] %v11509_v60  ;;  %v2171_v38 = vand.u32 65535, %v15718_v21  ;;  %v11519_v39 = vcvt.s32.f32 %v2690_v16  ;;  %v2676_v10 = vshra.s32 %v11509_v60, 16  ;;  %v15726_v16 = vld [vmem:[#allocation395_spill] sm:$0xff] }
 0x356   :  { %v11500_v28 = vpop.xlane.xlu0 %2147  ;;  %v2213_v4 = vand.u32 65535, %v15726_v16 }
 0x357   :  { %15709 = vst [vmem:[#allocation380_spill] sm:$0xff] %v11500_v28  ;;  %vm2149_vm12 = vcmp.eq.f32.partialorder %v15712_v62, %v11500_v28  ;;  %15719 = vst [vmem:[#allocation23_spill] sm:$0xff] %v11519_v39  ;;  %v15720_v62 = vld [vmem:[#allocation392_spill] sm:$0xff]  ;;  %v2173_v21 = vcvt.s32.f32 %v2171_v38 }
 0x358   :  { %v11511_v47 = vsel %vm2149_vm12, %v2145_v7, inf  ;;  %v11525_v7 = vsel %vm1620_vm15, %v9495_v37, 128  ;;  %v2215_v16 = vcvt.s32.f32 %v2213_v4 }
 0x359   :  { %15714 = vst [vmem:[#allocation385_spill] sm:$0xff] %v11511_v47  ;;  %2651 = vmin.xlane.f32.xlu0 %v11503_v23  ;;  %15721 = vst [vmem:[#allocation390_spill] sm:$0xff] %v11525_v7  ;;  %v15724_v47 = vld [vmem:[#allocation28_spill] sm:$0xff]  ;;  %v11535_v23 = vcvt.s32.f32 %v2676_v10  ;;  %v2774_v60 = vshra.s32 %v11525_v7, 16 }
 0x35a   :  { %v11516_v55 = vpop.xlane.xlu0 %2189  ;;  %vm1621_vm14 = vcmp.eq.f32.partialorder %v15724_v47, %v15723_v46  ;;  %v15734_v10 = vld [vmem:[#allocation400_spill] sm:$0xff] }
 0x35b   :  { %15717 = vst [vmem:[#allocation387_spill] sm:$0xff] %v11516_v55  ;;  %vm2191_vm13 = vcmp.eq.f32.partialorder %v15720_v62, %v11516_v55  ;;  %15727 = vst [vmem:[#allocation395_spill] sm:$0xff] %v11535_v23  ;;  %v15728_v62 = vld [vmem:[#allocation397_spill] sm:$0xff]  ;;  %v2199_v46 = vand.u32 65535, %v15734_v10 }
 0x35c   :  { %v11527_v28 = vsel %vm2191_vm13, %v2187_v20, inf  ;;  %v15729_v55 = vld [vmem:[#allocation133_spill] sm:$0xff]  ;;  %v15730_v20 = vld [vmem:[#allocation27_spill] sm:$0xff] }
 0x35d   :  { %15722 = vst [vmem:[#allocation392_spill] sm:$0xff] %v11527_v28  ;;  %2693 = vmin.xlane.f32.xlu0 %v11519_v39  ;;  %vm1622_vm15 = vcmp.eq.f32.partialorder %v15730_v20, %v15729_v55  ;;  %v11543_v28 = vsel %vm1621_vm14, %v9495_v37, 128  ;;  %v11551_v39 = vcvt.s32.f32 %v2774_v60  ;;  %v15735_v20 = vld [vmem:[#allocation402_spill] sm:$0xff]  ;;  %v2201_v10 = vcvt.s32.f32 %v2199_v46  ;;  %v15740_v55 = vld [vmem:[#allocation405_spill] sm:$0xff] }
 0x35e   :  { %v11532_v33 = vpop.xlane.xlu0 %2175  ;;  %15731 = vst [vmem:[#allocation397_spill] sm:$0xff] %v11543_v28  ;;  %v2788_v7 = vshra.s32 %v11543_v28, 16  ;;  %v2241_v28 = vand.u32 65535, %v15740_v55 }
 0x35f   :  { %15725 = vst [vmem:[#allocation28_spill] sm:$0xff] %v11532_v33  ;;  %vm2177_vm12 = vcmp.eq.f32.partialorder %v15728_v62, %v11532_v33  ;;  %v11555_v62 = vsel %vm1622_vm15, %v9495_v37, 128 }
 0x360   :  { %v11545_v47 = vsel %vm2177_vm12, %v2173_v21, inf  ;;  %v15737_v21 = vld [vmem:[#allocation146_spill] sm:$0xff]  ;;  %v2802_v60 = vshra.s32 %v11555_v62, 16  ;;  %v11570_v30 = vcvt.s32.f32 %v2788_v7  ;;  %v2227_v7 = vand.u32 65535, %v10733_v13 }
 0x361   :  { %15732 = vst [vmem:[#allocation27_spill] sm:$0xff] %v11545_v47  ;;  %2679 = vmin.xlane.f32.xlu0 %v11535_v23  ;;  %v15738_v47 = vld [vmem:[#allocation32_spill] sm:$0xff]  ;;  %v15741_v23 = vld [vmem:[#allocation145_spill] sm:$0xff]  ;;  %v2728_v13 = vcvt.f32.s32 %v10784_v59 }
 0x362   :  { %v11548_v38 = vpop.xlane.xlu0 %2217  ;;  %vm1623_vm14 = vcmp.eq.f32.partialorder %v15738_v47, %v15737_v21  ;;  %vm1624_vm12 = vcmp.eq.f32.partialorder %v15742_v36, %v15741_v23  ;;  %15743 = vst [vmem:[#allocation32_spill] sm:$0xff] %v11570_v30  ;;  %v11582_v46 = vcvt.s32.f32 %v2802_v60  ;;  %v2243_v36 = vcvt.s32.f32 %v2241_v28  ;;  %v15751_v60 = vld [vmem:[#allocation157_spill] sm:$0xff]  ;;  %v1830_v21 = vpop.xlane.xlu1 %1829 }
 0x363   :  { %15733 = vst [vmem:[#allocation411_spill] sm:$0xff] %v11548_v38  ;;  %vm2219_vm13 = vcmp.eq.f32.partialorder %v15735_v20, %v11548_v38  ;;  %v11585_v55 = vsel %vm1624_vm12, %v9495_v37, 128  ;;  %v15748_v38 = vld [vmem:[#allocation158_spill] sm:$0xff]  ;;  %v4242_v23 = vld [vmem:[#allocation3 + $0x8] sm:$0xff] }
 0x364   :  { %v11559_v33 = vsel %vm2219_vm13, %v2215_v16, inf  ;;  %v11575_v16 = vsel %vm1623_vm14, %v9495_v37, 128  ;;  %15747 = vst [vmem:[#allocation413_spill] sm:$0xff] %v11585_v55  ;;  %v2830_v28 = vshra.s32 %v11585_v55, 16 }
 0x365   :  { %15736 = vst [vmem:[#allocation400_spill] sm:$0xff] %v11559_v33  ;;  %2777 = vmin.xlane.f32.xlu0 %v11551_v39  ;;  %15744 = vst [vmem:[#allocation405_spill] sm:$0xff] %v11575_v16  ;;  %v15749_v33 = vld [vmem:[#allocation36_spill] sm:$0xff] }
 0x366   :  { %v11564_v4 = vpop.xlane.xlu0 %2203  ;;  %vm1625_vm13 = vcmp.eq.f32.partialorder %v15749_v33, %v15748_v38  ;;  %v2229_v38 = vcvt.s32.f32 %v2227_v7  ;;  %v11614_v55 = vcvt.s32.f32 %v2830_v28  ;;  %v15758_v7 = vld [vmem:[#allocation40_spill] sm:$0xff]  ;;  %v1818_v28 = vcvt.f32.s32 %v10798_v9 }
 0x367   :  { %15739 = vst [vmem:[#allocation402_spill] sm:$0xff] %v11564_v4  ;;  %vm2205_vm15 = vcmp.eq.f32.partialorder %v10715_v41, %v11564_v4  ;;  %v1832_v41 = vcvt.f32.s32 %v10770_v22  ;;  %v11604_v22 = vsel %vm1625_vm13, %v9495_v37, 128 }
 0x368   :  { %v11577_v47 = vsel %vm2205_vm15, %v2201_v10, inf  ;;  %v2816_v10 = vshra.s32 %v11575_v16, 16  ;;  %15754 = vst [vmem:[#allocation414_spill] sm:$0xff] %v11604_v22 }
 0x369   :  { %15745 = vst [vmem:[#allocation31_spill] sm:$0xff] %v11577_v47  ;;  %2791 = vmin.xlane.f32.xlu0 %v11570_v30  ;;  %v15752_v47 = vld [vmem:[#allocation35_spill] sm:$0xff]  ;;  %v2844_v30 = vshra.s32 %v11604_v22, 16 }
 0x36a   :  { %v11580_v20 = vpop.xlane.xlu0 %2245  ;;  %vm1626_vm15 = vcmp.eq.f32.partialorder %v15752_v47, %v15751_v60  ;;  %v4306_v47 = vld [vmem:[#allocation3 + $0x208] sm:$0xff] }
 0x36b   :  { %15746 = vst [vmem:[#allocation412_spill] sm:$0xff] %v11580_v20  ;;  %vm2247_vm14 = vcmp.eq.f32.partialorder %v10749_v32, %v11580_v20  ;;  %v2269_v32 = vand.u32 65535, %v10763_v11  ;;  %v1831_v20 = vcvt.f32.s32 %v1830_v21  ;;  %v11621_v11 = vsel %vm1626_vm15, %v9495_v37, 128  ;;  %v15757_v21 = vld [vmem:[#allocation170_spill] sm:$0xff]  ;;  %v15763_v60 = vld [vmem:[#allocation169_spill] sm:$0xff] }
 0x36c   :  { %v11594_v4 = vsel %vm2247_vm14, %v2243_v36, inf  ;;  %v1833_v36 = vshll.u32 %v1832_v41, 16  ;;  %vm1627_vm13 = vcmp.eq.f32.partialorder %v15758_v7, %v15757_v21  ;;  %v2726_v41 = vpop.xlane.xlu1 %2725  ;;  %v2858_v9 = vshra.s32 %v11621_v11, 16 }
 0x36d   :  { %15750 = vst [vmem:[#allocation36_spill] sm:$0xff] %v11594_v4  ;;  %2805 = vmin.xlane.f32.xlu0 %v11582_v46  ;;  %v11607_v4 = vcvt.s32.f32 %v2816_v10  ;;  %v2255_v10 = vand.u32 65535, %v10779_v31  ;;  %v2727_v22 = vcvt.f32.s32 %v2726_v41  ;;  %v11640_v31 = vcvt.s32.f32 %v2844_v30 }
 0x36e   :  { %v11601_v33 = vpop.xlane.xlu0 %2231  ;;  %v1834_v59 = vadd.s32 %v1833_v36, %v1831_v20  ;;  %v2271_v20 = vcvt.s32.f32 %v2269_v32  ;;  %v2283_v41 = vand.u32 65535, %v10807_v0  ;;  %v2311_v30 = vand.u32 65535, %v11101_v44 }
 0x36f   :  { %15753 = vst [vmem:[#allocation35_spill] sm:$0xff] %v11601_v33  ;;  %15755 = vst [vmem:[#allocation415_spill] sm:$0xff] %v11607_v4  ;;  %vm2233_vm12 = vcmp.eq.f32.partialorder %v10773_v58, %v11601_v33  ;;  %v2729_v58 = vshll.u32 %v2728_v13, 16 }
 0x370   :  { %v11611_v16 = vsel %vm2233_vm12, %v2229_v38, inf  ;;  %v1816_v33 = vpop.xlane.xlu1 %1815 }
 0x371   :  { %15756 = vst [vmem:[#allocation416_spill] sm:$0xff] %v11611_v16  ;;  %2819 = vmin.xlane.f32.xlu0 %v11607_v4  ;;  %v4370_v16 = vsel %vm3728_vm2, %v1834_v59, %v4242_v23  ;;  %v15764_v4 = vld [vmem:[#allocation39_spill] sm:$0xff]  ;;  %v2730_v32 = vadd.s32 %v2729_v58, %v2727_v22  ;;  %v2714_v23 = vcvt.f32.s32 %v10812_v49  ;;  %v2297_v22 = vand.u32 65535, %v10793_v48  ;;  %v4241_v49 = vld [vmem:[#allocation3] sm:$0xff] }
 0x372   :  { %v11625_v38 = vpop.xlane.xlu0 %2273  ;;  %4498 = vst.msk [vmem:[#allocation3 + $0x8] sm:$0xff] %vm47_vm0, %v4370_v16  ;;  %vm1628_vm15 = vcmp.eq.f32.partialorder %v15764_v4, %v15763_v60  ;;  %v2257_v16 = vcvt.s32.f32 %v2255_v10  ;;  %v1819_v58 = vshll.u32 %v1818_v28, 16  ;;  %v1817_v36 = vcvt.f32.s32 %v1816_v33  ;;  %v4305_v4 = vld [vmem:[#allocation3 + $0x200] sm:$0xff] }
 0x373   :  { %15759 = vst [vmem:[#allocation40_spill] sm:$0xff] %v11625_v38  ;;  %vm2275_vm14 = vcmp.eq.f32.partialorder %v10787_v43, %v11625_v38  ;;  %v11650_v43 = vsel %vm1627_vm13, %v9495_v37, 128  ;;  %v11662_v10 = vcvt.s32.f32 %v2858_v9  ;;  %v11669_v28 = vsel %vm1628_vm15, %v9495_v37, 128 }
 0x374   :  { %v11635_v13 = vsel %vm2275_vm14, %v2271_v20, inf  ;;  %v4434_v20 = vsel %vm3792_vm1, %v2730_v32, %v4306_v47  ;;  %v1820_v7 = vadd.s32 %v1819_v58, %v1817_v36  ;;  %v2872_v48 = vshra.s32 %v11650_v43, 16  ;;  %v15769_v47 = vld [vmem:[#allocation182_spill] sm:$0xff]  ;;  %v2712_v33 = vpop.xlane.xlu1 %2711 }
 0x375   :  { %15762 = vst [vmem:[#allocation93_spill] sm:$0xff] %v11635_v13  ;;  %2833 = vmin.xlane.f32.xlu0 %v11614_v55  ;;  %4562 = vst.msk [vmem:[#allocation3 + $0x208] sm:$0xff] %vm47_vm0, %v4434_v20  ;;  %v2715_v32 = vshll.u32 %v2714_v23, 16  ;;  %v2299_v58 = vcvt.s32.f32 %v2297_v22  ;;  %v1860_v9 = vcvt.f32.s32 %v10826_v8  ;;  %v15776_v13 = vld [vmem:[#allocation43_spill] sm:$0xff]  ;;  %v2886_v8 = vshra.s32 %v11669_v28, 16 }
 0x376   :  { %v11644_v59 = vpop.xlane.xlu0 %2259  ;;  %v4369_v36 = vsel %vm3727_vm3, %v1820_v7, %v4241_v49  ;;  %v11688_v0 = vcvt.s32.f32 %v2872_v48  ;;  %v2756_v49 = vcvt.f32.s32 %v11106_v35  ;;  %v4244_v35 = vld [vmem:[#allocation3 + $0x18] sm:$0xff] }
 0x377   :  { %15765 = vst [vmem:[#allocation89_spill] sm:$0xff] %v11644_v59  ;;  %vm2261_vm2 = vcmp.eq.f32.partialorder %v10801_v53, %v11644_v59  ;;  %v15770_v53 = vld [vmem:[#allocation44_spill] sm:$0xff]  ;;  %v2713_v59 = vcvt.f32.s32 %v2712_v33  ;;  %4497 = vst.msk [vmem:[#allocation3] sm:$0xff] %vm47_vm0, %v4369_v36 }
 0x378   :  { %v11659_v38 = vsel %vm2261_vm2, %v2257_v16, inf  ;;  %vm1629_vm1 = vcmp.eq.f32.partialorder %v15770_v53, %v15769_v47  ;;  %v1858_v7 = vpop.xlane.xlu1 %1857 }
 0x379   :  { %15768 = vst [vmem:[#allocation39_spill] sm:$0xff] %v11659_v38  ;;  %2847 = vmin.xlane.f32.xlu0 %v11640_v31  ;;  %v15775_v38 = vld [vmem:[#allocation181_spill] sm:$0xff]  ;;  %v2716_v22 = vadd.s32 %v2715_v32, %v2713_v59  ;;  %v2325_v59 = vand.u32 65535, %v10821_v6  ;;  %v1861_v32 = vshll.u32 %v1860_v9, 16  ;;  %v1859_v36 = vcvt.f32.s32 %v1858_v7 }
 0x37a   :  { %v11673_v16 = vpop.xlane.xlu0 %2301  ;;  %vm1630_vm13 = vcmp.eq.f32.partialorder %v15776_v13, %v15775_v38  ;;  %v4308_v13 = vld [vmem:[#allocation3 + $0x218] sm:$0xff] }
 0x37b   :  { %15771 = vst [vmem:[#allocation92_spill] sm:$0xff] %v11673_v16  ;;  %vm2303_vm12 = vcmp.eq.f32.partialorder %v10815_v34, %v11673_v16  ;;  %v11698_v34 = vsel %vm1629_vm1, %v9495_v37, 128  ;;  %v4433_v20 = vsel %vm3791_vm5, %v2716_v22, %v4305_v4  ;;  %v1862_v53 = vadd.s32 %v1861_v32, %v1859_v36  ;;  %v15781_v4 = vld [vmem:[#allocation194_spill] sm:$0xff] }
 0x37c   :  { %v11683_v23 = vsel %vm2303_vm12, %v2299_v58, inf  ;;  %v2285_v58 = vcvt.s32.f32 %v2283_v41  ;;  %4561 = vst.msk [vmem:[#allocation3 + $0x200] sm:$0xff] %vm47_vm0, %v4433_v20  ;;  %v11710_v41 = vcvt.s32.f32 %v2886_v8  ;;  %v2900_v6 = vshra.s32 %v11698_v34, 16 }
 0x37d   :  { %15774 = vst [vmem:[#allocation88_spill] sm:$0xff] %v11683_v23  ;;  %2861 = vmin.xlane.f32.xlu0 %v11662_v10  ;;  %v11717_v9 = vsel %vm1630_vm13, %v9495_v37, 128  ;;  %v2757_v22 = vshll.u32 %v2756_v49, 16  ;;  %v2327_v32 = vcvt.s32.f32 %v2325_v59  ;;  %v1846_v8 = vcvt.f32.s32 %v11122_v3  ;;  %v15788_v23 = vld [vmem:[#allocation47_spill] sm:$0xff] }
 0x37e   :  { %v11692_v33 = vpop.xlane.xlu0 %2287  ;;  %v4372_v36 = vsel %vm3730_vm4, %v1862_v53, %v4244_v35  ;;  %v11736_v44 = vcvt.s32.f32 %v2900_v6  ;;  %v2914_v3 = vshra.s32 %v11717_v9, 16  ;;  %v2742_v35 = vcvt.f32.s32 %v11136_v61  ;;  %v4243_v61 = vld [vmem:[#allocation3 + $0x10] sm:$0xff] }
 0x37f   :  { %15777 = vst [vmem:[#allocation44_spill] sm:$0xff] %v11692_v33  ;;  %vm2289_vm3 = vcmp.eq.f32.partialorder %v11091_v14, %v11692_v33  ;;  %v15782_v14 = vld [vmem:[#allocation48_spill] sm:$0xff]  ;;  %4500 = vst.msk [vmem:[#allocation3 + $0x18] sm:$0xff] %vm47_vm0, %v4372_v36 }
 0x380   :  { %v11707_v16 = vsel %vm2289_vm3, %v2285_v58, inf  ;;  %vm1631_vm5 = vcmp.eq.f32.partialorder %v15782_v14, %v15781_v4 }
 0x381   :  { %15780 = vst [vmem:[#allocation98_spill] sm:$0xff] %v11707_v16  ;;  %2875 = vmin.xlane.f32.xlu0 %v11688_v0  ;;  %v15787_v16 = vld [vmem:[#allocation193_spill] sm:$0xff] }
 0x382   :  { %v11721_v58 = vpop.xlane.xlu0 %2329  ;;  %vm1632_vm15 = vcmp.eq.f32.partialorder %v15788_v23, %v15787_v16  ;;  %v15797_v23 = vld [vmem:[#allocation91_spill] sm:$0xff] }
 0x383   :  { %15783 = vst [vmem:[#allocation94_spill] sm:$0xff] %v11721_v58  ;;  %vm2331_vm14 = vcmp.eq.f32.partialorder %v11111_v1, %v11721_v58  ;;  %v11746_v1 = vsel %vm1631_vm5, %v9495_v37, 128 }
 0x384   :  { %v11731_v49 = vsel %vm2331_vm14, %v2327_v32, inf  ;;  %v2313_v32 = vcvt.s32.f32 %v2311_v30  ;;  %v11758_v30 = vcvt.s32.f32 %v2914_v3 }
 0x385   :  { %15786 = vst [vmem:[#allocation43_spill] sm:$0xff] %v11731_v49  ;;  %2889 = vmin.xlane.f32.xlu0 %v11710_v41  ;;  %v15800_v49 = vld [vmem:[#allocation52_spill] sm:$0xff] }
 0x387   :  { %v2754_v7 = vpop.xlane.xlu1 %2753 }
 0x388   :  { %v2755_v33 = vcvt.f32.s32 %v2754_v7  ;;  %v11740_v7 = vpop.xlane.xlu0 %2315 }
 0x389   :  { %15789 = vst [vmem:[#allocation104_spill] sm:$0xff] %v11740_v7  ;;  %vm2317_vm4 = vcmp.eq.f32.partialorder %v11125_v2, %v11740_v7  ;;  %2903 = vmin.xlane.f32.xlu0 %v11736_v44  ;;  %v2928_v2 = vshra.s32 %v11746_v1, 16 }
 0x38a   :  { %v2758_v59 = vadd.s32 %v2757_v22, %v2755_v33  ;;  %v2353_v33 = vand.u32 65535, %v11117_v54  ;;  %v1847_v22 = vshll.u32 %v1846_v8, 16  ;;  %v11755_v58 = vsel %vm2317_vm4, %v2313_v32, inf  ;;  %v15794_v32 = vld [vmem:[#allocation90_spill] sm:$0xff] }
 0x38b   :  { %v1844_v53 = vpop.xlane.xlu1 %1843  ;;  %15792 = vst [vmem:[#allocation100_spill] sm:$0xff] %v11755_v58  ;;  %v11764_v54 = vsel %vm1632_vm15, %v9495_v37, 128  ;;  %v2743_v8 = vshll.u32 %v2742_v35, 16  ;;  %v2339_v48 = vand.u32 65535, %v15794_v32  ;;  %v4307_v35 = vld [vmem:[#allocation3 + $0x210] sm:$0xff]  ;;  %v15799_v58 = vld [vmem:[#allocation205_spill] sm:$0xff]  ;;  %v11784_v6 = vcvt.s32.f32 %v2928_v2 }
 0x38c   :  { %v4436_v20 = vsel %vm3794_vm6, %v2758_v59, %v4308_v13  ;;  %v1845_v36 = vcvt.f32.s32 %v1844_v53  ;;  %v11766_v59 = vpop.xlane.xlu0 %2357  ;;  %v2355_v53 = vcvt.s32.f32 %v2353_v33  ;;  %vm1633_vm2 = vcmp.eq.f32.partialorder %v15800_v49, %v15799_v58  ;;  %v4246_v49 = vld [vmem:[#allocation3 + $0x28] sm:$0xff] }
 0x38d   :  { %4564 = vst.msk [vmem:[#allocation3 + $0x218] sm:$0xff] %vm47_vm0, %v4436_v20  ;;  %15793 = vst [vmem:[#allocation48_spill] sm:$0xff] %v11766_v59  ;;  %vm2359_vm6 = vcmp.eq.f32.partialorder %v15797_v23, %v11766_v59  ;;  %2917 = vmin.xlane.f32.xlu0 %v11758_v30 }
 0x38e   :  { %v1848_v14 = vadd.s32 %v1847_v22, %v1845_v36  ;;  %v1888_v22 = vcvt.f32.s32 %v11150_v40  ;;  %v11777_v7 = vsel %vm2359_vm6, %v2355_v53, inf }
 0x38f   :  { %v2740_v13 = vpop.xlane.xlu1 %2739  ;;  %15798 = vst [vmem:[#allocation99_spill] sm:$0xff] %v11777_v7 }
 0x390   :  { %v4371_v20 = vsel %vm3729_vm8, %v1848_v14, %v4243_v61  ;;  %v2741_v36 = vcvt.f32.s32 %v2740_v13  ;;  %v11782_v32 = vpop.xlane.xlu0 %2343  ;;  %v2942_v61 = vshra.s32 %v11764_v54, 16  ;;  %v2341_v14 = vcvt.s32.f32 %v2339_v48  ;;  %v15802_v13 = vld [vmem:[#allocation102_spill] sm:$0xff]  ;;  %v15806_v48 = vld [vmem:[#allocation204_spill] sm:$0xff] }
 0x391   :  { %4499 = vst.msk [vmem:[#allocation3 + $0x10] sm:$0xff] %vm47_vm0, %v4371_v20  ;;  %15801 = vst [vmem:[#allocation95_spill] sm:$0xff] %v11782_v32  ;;  %v2381_v3 = vand.u32 65535, %v15802_v13  ;;  %v1889_v20 = vshll.u32 %v1888_v22, 16  ;;  %vm2345_vm8 = vcmp.eq.f32.partialorder %v11153_v42, %v11782_v32  ;;  %2931 = vmin.xlane.f32.xlu0 %v11784_v6 }
 0x392   :  { %v2744_v33 = vadd.s32 %v2743_v8, %v2741_v36  ;;  %v11795_v8 = vsel %vm1633_vm2, %v9495_v37, 128  ;;  %v11797_v2 = vsel %vm2345_vm8, %v2341_v14, inf  ;;  %v15807_v36 = vld [vmem:[#allocation51_spill] sm:$0xff]  ;;  %v11808_v53 = vcvt.s32.f32 %v2942_v61 }
 0x393   :  { %v1886_v40 = vpop.xlane.xlu1 %1885  ;;  %15805 = vst [vmem:[#allocation47_spill] sm:$0xff] %v11797_v2  ;;  %vm1634_vm1 = vcmp.eq.f32.partialorder %v15807_v36, %v15806_v48  ;;  %v2956_v14 = vshra.s32 %v11795_v8, 16  ;;  %v15814_v36 = vld [vmem:[#allocation56_spill] sm:$0xff] }
 0x394   :  { %v4435_v59 = vsel %vm3793_vm7, %v2744_v33, %v4307_v35  ;;  %v1887_v7 = vcvt.f32.s32 %v1886_v40  ;;  %v11802_v13 = vpop.xlane.xlu0 %2385  ;;  %v2383_v35 = vcvt.s32.f32 %v2381_v3  ;;  %v15809_v33 = vld [vmem:[#allocation103_spill] sm:$0xff] }
 0x395   :  { %4563 = vst.msk [vmem:[#allocation3 + $0x210] sm:$0xff] %vm47_vm0, %v4435_v59  ;;  %15808 = vst [vmem:[#allocation105_spill] sm:$0xff] %v11802_v13  ;;  %v2367_v40 = vand.u32 65535, %v15809_v33  ;;  %vm2387_vm7 = vcmp.eq.f32.partialorder %v11167_v12, %v11802_v13  ;;  %v15813_v3 = vld [vmem:[#allocation215_spill] sm:$0xff]  ;;  %2945 = vmin.xlane.f32.xlu0 %v11808_v53  ;;  %v11825_v42 = vcvt.s32.f32 %v2956_v14  ;;  %v15821_v14 = vld [vmem:[#allocation277_spill] sm:$0xff] }
 0x396   :  { %v1890_v22 = vadd.s32 %v1889_v20, %v1887_v7  ;;  %v11815_v7 = vsel %vm1634_vm1, %v9495_v37, 128  ;;  %v11817_v20 = vsel %vm2387_vm7, %v2383_v35, inf  ;;  %vm1635_vm12 = vcmp.eq.f32.partialorder %v15814_v36, %v15813_v3  ;;  %v15819_v36 = vld [vmem:[#allocation55_spill] sm:$0xff] }
 0x397   :  { %15812 = vst [vmem:[#allocation101_spill] sm:$0xff] %v11817_v20  ;;  %v2369_v61 = vcvt.s32.f32 %v2367_v40  ;;  %v2970_v12 = vshra.s32 %v11815_v7, 16  ;;  %v11831_v35 = vsel %vm1635_vm12, %v9495_v37, 128  ;;  %v2395_v13 = vand.u32 65535, %v15821_v14 }
 0x398   :  { %v4374_v59 = vsel %vm3732_vm9, %v1890_v22, %v4246_v49  ;;  %v11822_v49 = vpop.xlane.xlu0 %2371  ;;  %v15816_v22 = vld [vmem:[#allocation272_spill] sm:$0xff]  ;;  %v2984_v20 = vshra.s32 %v11831_v35, 16 }
 0x399   :  { %4502 = vst.msk [vmem:[#allocation3 + $0x28] sm:$0xff] %vm47_vm0, %v4374_v59  ;;  %15815 = vst [vmem:[#allocation90_spill] sm:$0xff] %v11822_v49  ;;  %v2409_v33 = vand.u32 65535, %v15816_v22  ;;  %vm2373_vm9 = vcmp.eq.f32.partialorder %v11183_v5, %v11822_v49  ;;  %v15818_v59 = vld [vmem:[#allocation214_spill] sm:$0xff]  ;;  %2959 = vmin.xlane.f32.xlu0 %v11825_v42  ;;  %v11841_v32 = vcvt.s32.f32 %v2970_v12  ;;  %v15824_v49 = vld [vmem:[#allocation60_spill] sm:$0xff]  ;;  %v2397_v14 = vcvt.s32.f32 %v2395_v13 }
 0x39a   :  { %v11833_v23 = vsel %vm2373_vm9, %v2369_v61, inf  ;;  %vm1636_vm13 = vcmp.eq.f32.partialorder %v15819_v36, %v15818_v59  ;;  %v15823_v36 = vld [vmem:[#allocation225_spill] sm:$0xff]  ;;  %v15826_v12 = vld [vmem:[#allocation282_spill] sm:$0xff]  ;;  %v11857_v3 = vcvt.s32.f32 %v2984_v20  ;;  %v15831_v20 = vld [vmem:[#allocation287_spill] sm:$0xff] }
 0x39b   :  { %15817 = vst [vmem:[#allocation111_spill] sm:$0xff] %v11833_v23  ;;  %v2411_v22 = vcvt.s32.f32 %v2409_v33  ;;  %v11847_v5 = vsel %vm1636_vm13, %v9495_v37, 128  ;;  %vm1637_vm5 = vcmp.eq.f32.partialorder %v15824_v49, %v15823_v36  ;;  %v2437_v23 = vand.u32 65535, %v15826_v12  ;;  %v15828_v49 = vld [vmem:[#allocation224_spill] sm:$0xff] }
 0x39c   :  { %v11838_v40 = vpop.xlane.xlu0 %2413  ;;  %v2998_v2 = vshra.s32 %v11847_v5, 16  ;;  %v2423_v36 = vand.u32 65535, %v15831_v20 }
 0x39d   :  { %15820 = vst [vmem:[#allocation107_spill] sm:$0xff] %v11838_v40  ;;  %vm2415_vm3 = vcmp.eq.f32.partialorder %v11199_v52, %v11838_v40  ;;  %2973 = vmin.xlane.f32.xlu0 %v11841_v32  ;;  %v11863_v52 = vsel %vm1637_vm5, %v9495_v37, 128  ;;  %v15829_v40 = vld [vmem:[#allocation59_spill] sm:$0xff]  ;;  %v2439_v12 = vcvt.s32.f32 %v2437_v23 }
 0x39e   :  { %v11849_v61 = vsel %vm2415_vm3, %v2411_v22, inf  ;;  %vm1638_vm15 = vcmp.eq.f32.partialorder %v15829_v40, %v15828_v49  ;;  %v3012_v59 = vshra.s32 %v11863_v52, 16  ;;  %v15833_v40 = vld [vmem:[#allocation235_spill] sm:$0xff]  ;;  %v2425_v20 = vcvt.s32.f32 %v2423_v36 }
 0x39f   :  { %15822 = vst [vmem:[#allocation91_spill] sm:$0xff] %v11849_v61  ;;  %v11873_v61 = vcvt.s32.f32 %v2998_v2  ;;  %v15836_v2 = vld [vmem:[#allocation292_spill] sm:$0xff] }
 0x3a0   :  { %v11854_v33 = vpop.xlane.xlu0 %2399  ;;  %v11889_v49 = vcvt.s32.f32 %v3012_v59  ;;  %v15841_v59 = vld [vmem:[#allocation297_spill] sm:$0xff] }
 0x3a1   :  { %15825 = vst [vmem:[#allocation52_spill] sm:$0xff] %v11854_v33  ;;  %vm2401_vm14 = vcmp.eq.f32.partialorder %v11215_v56, %v11854_v33  ;;  %2987 = vmin.xlane.f32.xlu0 %v11857_v3  ;;  %v11879_v56 = vsel %vm1638_vm15, %v9495_v37, 128  ;;  %v15834_v33 = vld [vmem:[#allocation64_spill] sm:$0xff] }
 0x3a2   :  { %v11865_v22 = vsel %vm2401_vm14, %v2397_v14, inf  ;;  %vm1639_vm6 = vcmp.eq.f32.partialorder %v15834_v33, %v15833_v40  ;;  %v3026_v58 = vshra.s32 %v11879_v56, 16  ;;  %v15838_v33 = vld [vmem:[#allocation234_spill] sm:$0xff]  ;;  %v2451_v40 = vand.u32 65535, %v15841_v59 }
 0x3a3   :  { %15827 = vst [vmem:[#allocation102_spill] sm:$0xff] %v11865_v22  ;;  %v2465_v22 = vand.u32 65535, %v15836_v2 }
 0x3a4   :  { %v11870_v13 = vpop.xlane.xlu0 %2441  ;;  %v2453_v59 = vcvt.s32.f32 %v2451_v40 }
 0x3a5   :  { %15830 = vst [vmem:[#allocation110_spill] sm:$0xff] %v11870_v13  ;;  %vm2443_vm4 = vcmp.eq.f32.partialorder %v11231_v17, %v11870_v13  ;;  %3001 = vmin.xlane.f32.xlu0 %v11873_v61  ;;  %v11895_v17 = vsel %vm1639_vm6, %v9495_v37, 128  ;;  %v15839_v13 = vld [vmem:[#allocation63_spill] sm:$0xff]  ;;  %v2467_v2 = vcvt.s32.f32 %v2465_v22 }
 0x3a6   :  { %v11881_v14 = vsel %vm2443_vm4, %v2439_v12, inf  ;;  %vm1640_vm8 = vcmp.eq.f32.partialorder %v15839_v13, %v15838_v33  ;;  %v3040_v48 = vshra.s32 %v11895_v17, 16  ;;  %v15843_v13 = vld [vmem:[#allocation246_spill] sm:$0xff] }
 0x3a7   :  { %15832 = vst [vmem:[#allocation106_spill] sm:$0xff] %v11881_v14  ;;  %v11905_v14 = vcvt.s32.f32 %v3026_v58  ;;  %v15846_v58 = vld [vmem:[#allocation302_spill] sm:$0xff] }
 0x3a8   :  { %v11886_v23 = vpop.xlane.xlu0 %2427  ;;  %v11921_v33 = vcvt.s32.f32 %v3040_v48  ;;  %v15851_v48 = vld [vmem:[#allocation307_spill] sm:$0xff] }
 0x3a9   :  { %15835 = vst [vmem:[#allocation51_spill] sm:$0xff] %v11886_v23  ;;  %vm2429_vm2 = vcmp.eq.f32.partialorder %v11247_v51, %v11886_v23  ;;  %3015 = vmin.xlane.f32.xlu0 %v11889_v49  ;;  %v11911_v51 = vsel %vm1640_vm8, %v9495_v37, 128  ;;  %v15844_v23 = vld [vmem:[#allocation68_spill] sm:$0xff] }
 0x3aa   :  { %v11897_v12 = vsel %vm2429_vm2, %v2425_v20, inf  ;;  %vm1641_vm7 = vcmp.eq.f32.partialorder %v15844_v23, %v15843_v13  ;;  %v3054_v4 = vshra.s32 %v11911_v51, 16  ;;  %v15848_v23 = vld [vmem:[#allocation245_spill] sm:$0xff]  ;;  %v2479_v13 = vand.u32 65535, %v15851_v48 }
 0x3ab   :  { %15837 = vst [vmem:[#allocation103_spill] sm:$0xff] %v11897_v12  ;;  %v2493_v12 = vand.u32 65535, %v15846_v58 }
 0x3ac   :  { %v11902_v36 = vpop.xlane.xlu0 %2469  ;;  %v2481_v48 = vcvt.s32.f32 %v2479_v13 }
 0x3ad   :  { %15840 = vst [vmem:[#allocation115_spill] sm:$0xff] %v11902_v36  ;;  %vm2471_vm1 = vcmp.eq.f32.partialorder %v11263_v27, %v11902_v36  ;;  %3029 = vmin.xlane.f32.xlu0 %v11905_v14  ;;  %v11927_v27 = vsel %vm1641_vm7, %v9495_v37, 128  ;;  %v15849_v36 = vld [vmem:[#allocation67_spill] sm:$0xff]  ;;  %v2495_v58 = vcvt.s32.f32 %v2493_v12 }
 0x3ae   :  { %v11913_v20 = vsel %vm2471_vm1, %v2467_v2, inf  ;;  %vm1642_vm9 = vcmp.eq.f32.partialorder %v15849_v36, %v15848_v23  ;;  %v3068_v16 = vshra.s32 %v11927_v27, 16  ;;  %v15853_v36 = vld [vmem:[#allocation252_spill] sm:$0xff] }
 0x3af   :  { %15842 = vst [vmem:[#allocation112_spill] sm:$0xff] %v11913_v20  ;;  %v11937_v20 = vcvt.s32.f32 %v3054_v4  ;;  %v15856_v4 = vld [vmem:[#allocation312_spill] sm:$0xff] }
 0x3b0   :  { %v11918_v22 = vpop.xlane.xlu0 %2455  ;;  %v2521_v23 = vand.u32 65535, %v15856_v4 }
 0x3b1   :  { %15845 = vst [vmem:[#allocation56_spill] sm:$0xff] %v11918_v22  ;;  %vm2457_vm12 = vcmp.eq.f32.partialorder %v11279_v24, %v11918_v22  ;;  %3043 = vmin.xlane.f32.xlu0 %v11921_v33  ;;  %v11943_v24 = vsel %vm1642_vm9, %v9495_v37, 128  ;;  %v15854_v22 = vld [vmem:[#allocation75_spill] sm:$0xff] }
 0x3b2   :  { %v11929_v2 = vsel %vm2457_vm12, %v2453_v59, inf  ;;  %vm1643_vm3 = vcmp.eq.f32.partialorder %v15854_v22, %v15853_v36  ;;  %v3082_v47 = vshra.s32 %v11943_v24, 16  ;;  %v15858_v22 = vld [vmem:[#allocation17_spill] sm:$0xff]  ;;  %v2523_v4 = vcvt.s32.f32 %v2521_v23 }
 0x3b3   :  { %15847 = vst [vmem:[#allocation272_spill] sm:$0xff] %v11929_v2  ;;  %v11953_v2 = vcvt.s32.f32 %v3068_v16  ;;  %v15861_v16 = vld [vmem:[#allocation317_spill] sm:$0xff] }
 0x3b4   :  { %v11934_v40 = vpop.xlane.xlu0 %2497  ;;  %v2507_v36 = vand.u32 65535, %v15861_v16 }
 0x3b5   :  { %15850 = vst [vmem:[#allocation55_spill] sm:$0xff] %v11934_v40  ;;  %vm2499_vm13 = vcmp.eq.f32.partialorder %v11295_v29, %v11934_v40  ;;  %3057 = vmin.xlane.f32.xlu0 %v11937_v20  ;;  %v11959_v29 = vsel %vm1643_vm3, %v9495_v37, 128  ;;  %v15859_v40 = vld [vmem:[#allocation74_spill] sm:$0xff] }
 0x3b6   :  { %v11945_v59 = vsel %vm2499_vm13, %v2495_v58, inf  ;;  %vm1644_vm14 = vcmp.eq.f32.partialorder %v15859_v40, %v15858_v22  ;;  %v3096_v38 = vshra.s32 %v11959_v29, 16  ;;  %v15863_v40 = vld [vmem:[#allocation258_spill] sm:$0xff]  ;;  %v2509_v16 = vcvt.s32.f32 %v2507_v36 }
 0x3b7   :  { %15852 = vst [vmem:[#allocation277_spill] sm:$0xff] %v11945_v59  ;;  %v11969_v59 = vcvt.s32.f32 %v3082_v47  ;;  %v15866_v47 = vld [vmem:[#allocation322_spill] sm:$0xff] }
 0x3b8   :  { %v11950_v12 = vpop.xlane.xlu0 %2483  ;;  %v2549_v22 = vand.u32 65535, %v15866_v47 }
 0x3b9   :  { %15855 = vst [vmem:[#allocation60_spill] sm:$0xff] %v11950_v12  ;;  %vm2485_vm5 = vcmp.eq.f32.partialorder %v11311_v15, %v11950_v12  ;;  %3071 = vmin.xlane.f32.xlu0 %v11953_v2  ;;  %v11975_v15 = vsel %vm1644_vm14, %v9495_v37, 128  ;;  %v15864_v12 = vld [vmem:[#allocation83_spill] sm:$0xff] }
 0x3ba   :  { %v11961_v58 = vsel %vm2485_vm5, %v2481_v48, inf  ;;  %vm1645_vm4 = vcmp.eq.f32.partialorder %v15864_v12, %v15863_v40  ;;  %v3110_v21 = vshra.s32 %v11975_v15, 16  ;;  %v15869_v12 = vld [vmem:[#allocation18_spill] sm:$0xff]  ;;  %v2551_v47 = vcvt.s32.f32 %v2549_v22 }
 0x3bb   :  { %15857 = vst [vmem:[#allocation282_spill] sm:$0xff] %v11961_v58  ;;  %v11985_v58 = vcvt.s32.f32 %v3096_v38  ;;  %v15872_v38 = vld [vmem:[#allocation327_spill] sm:$0xff] }
 0x3bc   :  { %v11966_v13 = vpop.xlane.xlu0 %2525  ;;  %v2535_v40 = vand.u32 65535, %v15872_v38 }
 0x3bd   :  { %15860 = vst [vmem:[#allocation59_spill] sm:$0xff] %v11966_v13  ;;  %vm2527_vm15 = vcmp.eq.f32.partialorder %v11327_v63, %v11966_v13  ;;  %3085 = vmin.xlane.f32.xlu0 %v11969_v59  ;;  %v11991_v63 = vsel %vm1645_vm4, %v9495_v37, 128  ;;  %v15870_v13 = vld [vmem:[#allocation82_spill] sm:$0xff] }
 0x3be   :  { %v11977_v48 = vsel %vm2527_vm15, %v2523_v4, inf  ;;  %15867 = vst [vmem:[#allocation292_spill] sm:$0xff] %v11991_v63  ;;  %vm1646_vm2 = vcmp.eq.f32.partialorder %v15870_v13, %v15869_v12  ;;  %v3124_v60 = vshra.s32 %v11991_v63, 16  ;;  %v15875_v13 = vld [vmem:[#allocation264_spill] sm:$0xff]  ;;  %v2537_v38 = vcvt.s32.f32 %v2535_v40 }
 0x3bf   :  { %15862 = vst [vmem:[#allocation287_spill] sm:$0xff] %v11977_v48  ;;  %v12001_v48 = vcvt.s32.f32 %v3110_v21  ;;  %v15878_v21 = vld [vmem:[#allocation332_spill] sm:$0xff] }
 0x3c0   :  { %v11982_v23 = vpop.xlane.xlu0 %2511  ;;  %v2577_v12 = vand.u32 65535, %v15878_v21 }
 0x3c1   :  { %15865 = vst [vmem:[#allocation64_spill] sm:$0xff] %v11982_v23  ;;  %vm2513_vm6 = vcmp.eq.f32.partialorder %v11343_v19, %v11982_v23  ;;  %3099 = vmin.xlane.f32.xlu0 %v11985_v58  ;;  %v12007_v19 = vsel %vm1646_vm2, %v9495_v37, 128  ;;  %v15876_v23 = vld [vmem:[#allocation85_spill] sm:$0xff] }
 0x3c2   :  { %v11993_v4 = vsel %vm2513_vm6, %v2509_v16, inf  ;;  %15873 = vst [vmem:[#allocation68_spill] sm:$0xff] %v12007_v19  ;;  %vm1647_vm1 = vcmp.eq.f32.partialorder %v15876_v23, %v15875_v13  ;;  %v3138_v63 = vshra.s32 %v12007_v19, 16  ;;  %v15881_v23 = vld [vmem:[#allocation19_spill] sm:$0xff]  ;;  %v2579_v21 = vcvt.s32.f32 %v2577_v12 }
 0x3c3   :  { %15868 = vst [vmem:[#allocation63_spill] sm:$0xff] %v11993_v4  ;;  %v12017_v4 = vcvt.s32.f32 %v3124_v60  ;;  %v15884_v60 = vld [vmem:[#allocation337_spill] sm:$0xff] }
 0x3c4   :  { %v11998_v36 = vpop.xlane.xlu0 %2553  ;;  %v2563_v13 = vand.u32 65535, %v15884_v60 }
 0x3c5   :  { %15871 = vst [vmem:[#allocation297_spill] sm:$0xff] %v11998_v36  ;;  %vm2555_vm8 = vcmp.eq.f32.partialorder %v11359_v57, %v11998_v36  ;;  %3113 = vmin.xlane.f32.xlu0 %v12001_v48  ;;  %v12023_v57 = vsel %vm1647_vm1, %v9495_v37, 128  ;;  %v15882_v36 = vld [vmem:[#allocation84_spill] sm:$0xff] }
 0x3c6   :  { %v12009_v16 = vsel %vm2555_vm8, %v2551_v47, inf  ;;  %15879 = vst [vmem:[#allocation307_spill] sm:$0xff] %v12023_v57  ;;  %vm1648_vm12 = vcmp.eq.f32.partialorder %v15882_v36, %v15881_v23  ;;  %v3152_v19 = vshra.s32 %v12023_v57, 16  ;;  %v15887_v36 = vld [vmem:[#allocation271_spill] sm:$0xff]  ;;  %v2565_v60 = vcvt.s32.f32 %v2563_v13 }
 0x3c7   :  { %15874 = vst [vmem:[#allocation302_spill] sm:$0xff] %v12009_v16  ;;  %v12033_v16 = vcvt.s32.f32 %v3138_v63  ;;  %v15890_v63 = vld [vmem:[#allocation342_spill] sm:$0xff] }
 0x3c8   :  { %v12014_v22 = vpop.xlane.xlu0 %2539  ;;  %v2605_v23 = vand.u32 65535, %v15890_v63 }
 0x3c9   :  { %15877 = vst [vmem:[#allocation67_spill] sm:$0xff] %v12014_v22  ;;  %vm2541_vm7 = vcmp.eq.f32.partialorder %v11375_v18, %v12014_v22  ;;  %3127 = vmin.xlane.f32.xlu0 %v12017_v4  ;;  %v12039_v18 = vsel %vm1648_vm12, %v9495_v37, 128  ;;  %v15888_v22 = vld [vmem:[#allocation87_spill] sm:$0xff] }
 0x3ca   :  { %v12025_v47 = vsel %vm2541_vm7, %v2537_v38, inf  ;;  %15885 = vst [vmem:[#allocation74_spill] sm:$0xff] %v12039_v18  ;;  %vm1649_vm13 = vcmp.eq.f32.partialorder %v15888_v22, %v15887_v36  ;;  %v3166_v57 = vshra.s32 %v12039_v18, 16  ;;  %v15894_v22 = vld [vmem:[#allocation22_spill] sm:$0xff]  ;;  %v2607_v63 = vcvt.s32.f32 %v2605_v23 }
 0x3cb   :  { %15880 = vst [vmem:[#allocation75_spill] sm:$0xff] %v12025_v47  ;;  %v12049_v47 = vcvt.s32.f32 %v3152_v19  ;;  %v15897_v19 = vld [vmem:[#allocation347_spill] sm:$0xff] }
 0x3cc   :  { %v12030_v40 = vpop.xlane.xlu0 %2581  ;;  %v2591_v36 = vand.u32 65535, %v15897_v19 }
 0x3cd   :  { %15883 = vst [vmem:[#allocation312_spill] sm:$0xff] %v12030_v40  ;;  %vm2583_vm9 = vcmp.eq.f32.partialorder %v11391_v50, %v12030_v40  ;;  %3141 = vmin.xlane.f32.xlu0 %v12033_v16  ;;  %15891 = vst [vmem:[#allocation322_spill] sm:$0xff] %v12049_v47  ;;  %v12055_v50 = vsel %vm1649_vm13, %v9495_v37, 128  ;;  %v15895_v40 = vld [vmem:[#allocation86_spill] sm:$0xff] }
 0x3ce   :  { %v12041_v38 = vsel %vm2583_vm9, %v2579_v21, inf  ;;  %15892 = vst [vmem:[#allocation82_spill] sm:$0xff] %v12055_v50  ;;  %vm1650_vm5 = vcmp.eq.f32.partialorder %v15895_v40, %v15894_v22  ;;  %v3180_v18 = vshra.s32 %v12055_v50, 16  ;;  %v15900_v40 = vld [vmem:[#allocation281_spill] sm:$0xff]  ;;  %v2593_v19 = vcvt.s32.f32 %v2591_v36 }
 0x3cf   :  { %15886 = vst [vmem:[#allocation317_spill] sm:$0xff] %v12041_v38  ;;  %v12065_v38 = vcvt.s32.f32 %v3166_v57  ;;  %v15903_v57 = vld [vmem:[#allocation352_spill] sm:$0xff] }
 0x3d0   :  { %v12046_v12 = vpop.xlane.xlu0 %2567  ;;  %v2633_v22 = vand.u32 65535, %v15903_v57 }
 0x3d1   :  { %15889 = vst [vmem:[#allocation83_spill] sm:$0xff] %v12046_v12  ;;  %vm2569_vm3 = vcmp.eq.f32.partialorder %v11407_v26, %v12046_v12  ;;  %3155 = vmin.xlane.f32.xlu0 %v12049_v47  ;;  %v12071_v26 = vsel %vm1650_vm5, %v9495_v37, 128  ;;  %v15901_v12 = vld [vmem:[#allocation97_spill] sm:$0xff]  ;;  %v16010_v47 = vld [vmem:[#allocation203_spill] sm:$0xff] }
 0x3d2   :  { %v12057_v21 = vsel %vm2569_vm3, %v2565_v60, inf  ;;  %15898 = vst [vmem:[#allocation332_spill] sm:$0xff] %v12071_v26  ;;  %vm1651_vm15 = vcmp.eq.f32.partialorder %v15901_v12, %v15900_v40  ;;  %v3194_v50 = vshra.s32 %v12071_v26, 16  ;;  %v15907_v12 = vld [vmem:[#allocation25_spill] sm:$0xff]  ;;  %v2635_v57 = vcvt.s32.f32 %v2633_v22 }
 0x3d3   :  { %15893 = vst [vmem:[#allocation327_spill] sm:$0xff] %v12057_v21  ;;  %v12081_v21 = vcvt.s32.f32 %v3180_v18  ;;  %v15910_v18 = vld [vmem:[#allocation357_spill] sm:$0xff] }
 0x3d4   :  { %v12062_v13 = vpop.xlane.xlu0 %2609  ;;  %v2619_v40 = vand.u32 65535, %v15910_v18 }
 0x3d5   :  { %15896 = vst [vmem:[#allocation85_spill] sm:$0xff] %v12062_v13  ;;  %vm2611_vm14 = vcmp.eq.f32.partialorder %v11423_v45, %v12062_v13  ;;  %3169 = vmin.xlane.f32.xlu0 %v12065_v38  ;;  %15904 = vst [vmem:[#allocation87_spill] sm:$0xff] %v12081_v21  ;;  %v12087_v45 = vsel %vm1651_vm15, %v9495_v37, 128  ;;  %v15908_v13 = vld [vmem:[#allocation96_spill] sm:$0xff] }
 0x3d6   :  { %v12073_v60 = vsel %vm2611_vm14, %v2607_v63, inf  ;;  %15905 = vst [vmem:[#allocation342_spill] sm:$0xff] %v12087_v45  ;;  %vm1652_vm6 = vcmp.eq.f32.partialorder %v15908_v13, %v15907_v12  ;;  %v3208_v26 = vshra.s32 %v12087_v45, 16  ;;  %v15915_v13 = vld [vmem:[#allocation291_spill] sm:$0xff]  ;;  %v15916_v12 = vld [vmem:[#allocation109_spill] sm:$0xff]  ;;  %v2621_v18 = vcvt.s32.f32 %v2619_v40 }
 0x3d7   :  { %15899 = vst [vmem:[#allocation84_spill] sm:$0xff] %v12073_v60  ;;  %v12097_v60 = vcvt.s32.f32 %v3194_v50  ;;  %vm1653_vm8 = vcmp.eq.f32.partialorder %v15916_v12, %v15915_v13  ;;  %v15918_v50 = vld [vmem:[#allocation77_spill] sm:$0xff]  ;;  %v15924_v13 = vld [vmem:[#allocation108_spill] sm:$0xff] }
 0x3d8   :  { %v12078_v23 = vpop.xlane.xlu0 %2595  ;;  %v15923_v12 = vld [vmem:[#allocation29_spill] sm:$0xff] }
 0x3d9   :  { %15902 = vst [vmem:[#allocation337_spill] sm:$0xff] %v12078_v23  ;;  %vm2597_vm4 = vcmp.eq.f32.partialorder %v11439_v25, %v12078_v23  ;;  %3183 = vmin.xlane.f32.xlu0 %v12081_v21  ;;  %15911 = vst [vmem:[#allocation97_spill] sm:$0xff] %v12097_v60  ;;  %v15912_v25 = vld [vmem:[#allocation362_spill] sm:$0xff]  ;;  %v12113_v21 = vcvt.s32.f32 %v3208_v26  ;;  %vm1654_vm7 = vcmp.eq.f32.partialorder %v15924_v13, %v15923_v12  ;;  %v15931_v13 = vld [vmem:[#allocation301_spill] sm:$0xff] }
 0x3da   :  { %v12089_v63 = vsel %vm2597_vm4, %v2593_v19, inf  ;;  %v12103_v19 = vsel %vm1652_vm6, %v9495_v37, 128  ;;  %v15926_v26 = vld [vmem:[#allocation370_spill] sm:$0xff]  ;;  %v15932_v12 = vld [vmem:[#allocation120_spill] sm:$0xff] }
 0x3db   :  { %15906 = vst [vmem:[#allocation86_spill] sm:$0xff] %v12089_v63  ;;  %15913 = vst [vmem:[#allocation352_spill] sm:$0xff] %v12103_v19  ;;  %v2661_v63 = vand.u32 65535, %v15918_v50  ;;  %v3222_v45 = vshra.s32 %v12103_v19, 16  ;;  %vm1655_vm9 = vcmp.eq.f32.partialorder %v15932_v12, %v15931_v13  ;;  %v15939_v12 = vld [vmem:[#allocation33_spill] sm:$0xff]  ;;  %v15940_v13 = vld [vmem:[#allocation119_spill] sm:$0xff] }
 0x3dc   :  { %v12094_v36 = vpop.xlane.xlu0 %2637  ;;  %15919 = vst [vmem:[#allocation362_spill] sm:$0xff] %v12113_v21  ;;  %vm1656_vm3 = vcmp.eq.f32.partialorder %v15940_v13, %v15939_v12  ;;  %v15947_v13 = vld [vmem:[#allocation311_spill] sm:$0xff]  ;;  %v15948_v12 = vld [vmem:[#allocation132_spill] sm:$0xff] }
 0x3dd   :  { %15909 = vst [vmem:[#allocation347_spill] sm:$0xff] %v12094_v36  ;;  %vm2639_vm2 = vcmp.eq.f32.partialorder %v15912_v25, %v12094_v36  ;;  %3197 = vmin.xlane.f32.xlu0 %v12097_v60  ;;  %v15920_v25 = vld [vmem:[#allocation228_spill] sm:$0xff]  ;;  %v2663_v50 = vcvt.s32.f32 %v2661_v63  ;;  %v12129_v60 = vcvt.s32.f32 %v3222_v45  ;;  %v15934_v45 = vld [vmem:[#allocation377_spill] sm:$0xff]  ;;  %vm1657_vm14 = vcmp.eq.f32.partialorder %v15948_v12, %v15947_v13  ;;  %v15956_v13 = vld [vmem:[#allocation131_spill] sm:$0xff] }
 0x3de   :  { %v12105_v23 = vsel %vm2639_vm2, %v2635_v57, inf  ;;  %v12119_v57 = vsel %vm1653_vm8, %v9495_v37, 128  ;;  %v15955_v12 = vld [vmem:[#allocation37_spill] sm:$0xff] }
 0x3df   :  { %15914 = vst [vmem:[#allocation96_spill] sm:$0xff] %v12105_v23  ;;  %15921 = vst [vmem:[#allocation109_spill] sm:$0xff] %v12119_v57  ;;  %v2647_v23 = vand.u32 65535, %v15926_v26  ;;  %v3236_v19 = vshra.s32 %v12119_v57, 16  ;;  %vm1658_vm4 = vcmp.eq.f32.partialorder %v15956_v13, %v15955_v12  ;;  %v15963_v12 = vld [vmem:[#allocation41_spill] sm:$0xff] }
 0x3e0   :  { %v12110_v22 = vpop.xlane.xlu0 %2623  ;;  %15927 = vst [vmem:[#allocation108_spill] sm:$0xff] %v12129_v60 }
 0x3e1   :  { %15917 = vst [vmem:[#allocation357_spill] sm:$0xff] %v12110_v22  ;;  %vm2625_vm1 = vcmp.eq.f32.partialorder %v15920_v25, %v12110_v22  ;;  %3211 = vmin.xlane.f32.xlu0 %v12113_v21  ;;  %v15928_v25 = vld [vmem:[#allocation375_spill] sm:$0xff]  ;;  %v2649_v26 = vcvt.s32.f32 %v2647_v23  ;;  %v12145_v21 = vcvt.s32.f32 %v3236_v19 }
 0x3e2   :  { %v12121_v36 = vsel %vm2625_vm1, %v2621_v18, inf  ;;  %v12135_v18 = vsel %vm1654_vm7, %v9495_v37, 128  ;;  %v15942_v19 = vld [vmem:[#allocation239_spill] sm:$0xff] }
 0x3e3   :  { %15922 = vst [vmem:[#allocation77_spill] sm:$0xff] %v12121_v36  ;;  %15929 = vst [vmem:[#allocation370_spill] sm:$0xff] %v12135_v18  ;;  %v2689_v36 = vand.u32 65535, %v15934_v45  ;;  %v3250_v57 = vshra.s32 %v12135_v18, 16 }
 0x3e4   :  { %v12126_v40 = vpop.xlane.xlu0 %2665  ;;  %15935 = vst [vmem:[#allocation377_spill] sm:$0xff] %v12145_v21 }
 0x3e5   :  { %15925 = vst [vmem:[#allocation228_spill] sm:$0xff] %v12126_v40  ;;  %vm2667_vm12 = vcmp.eq.f32.partialorder %v15928_v25, %v12126_v40  ;;  %3225 = vmin.xlane.f32.xlu0 %v12129_v60  ;;  %v15936_v25 = vld [vmem:[#allocation382_spill] sm:$0xff]  ;;  %v2691_v45 = vcvt.s32.f32 %v2689_v36  ;;  %v12161_v60 = vcvt.s32.f32 %v3250_v57 }
 0x3e6   :  { %v12137_v22 = vsel %vm2667_vm12, %v2663_v50, inf  ;;  %v12151_v50 = vsel %vm1655_vm9, %v9495_v37, 128 }
 0x3e7   :  { %15930 = vst [vmem:[#allocation375_spill] sm:$0xff] %v12137_v22  ;;  %15937 = vst [vmem:[#allocation382_spill] sm:$0xff] %v12151_v50  ;;  %v2675_v22 = vand.u32 65535, %v15942_v19  ;;  %v3264_v18 = vshra.s32 %v12151_v50, 16  ;;  %v15950_v19 = vld [vmem:[#allocation390_spill] sm:$0xff] }
 0x3e8   :  { %v12142_v63 = vpop.xlane.xlu0 %2651  ;;  %15943 = vst [vmem:[#allocation239_spill] sm:$0xff] %v12161_v60  ;;  %v2773_v57 = vand.u32 65535, %v15950_v19 }
 0x3e9   :  { %15933 = vst [vmem:[#allocation120_spill] sm:$0xff] %v12142_v63  ;;  %vm2653_vm13 = vcmp.eq.f32.partialorder %v15936_v25, %v12142_v63  ;;  %3239 = vmin.xlane.f32.xlu0 %v12145_v21  ;;  %v15944_v25 = vld [vmem:[#allocation23_spill] sm:$0xff]  ;;  %v12177_v21 = vcvt.s32.f32 %v3264_v18 }
 0x3ea   :  { %v12153_v40 = vsel %vm2653_vm13, %v2649_v26, inf  ;;  %v12167_v26 = vsel %vm1656_vm3, %v9495_v37, 128 }
 0x3eb   :  { %15938 = vst [vmem:[#allocation417_spill] sm:$0xff] %v12153_v40  ;;  %15945 = vst [vmem:[#allocation23_spill] sm:$0xff] %v12167_v26  ;;  %v2677_v40 = vcvt.s32.f32 %v2675_v22  ;;  %v3278_v50 = vshra.s32 %v12167_v26, 16  ;;  %v2775_v22 = vcvt.s32.f32 %v2773_v57 }
 0x3ec   :  { %v12158_v23 = vpop.xlane.xlu0 %2693  ;;  %15951 = vst [vmem:[#allocation390_spill] sm:$0xff] %v12177_v21 }
 0x3ed   :  { %15941 = vst [vmem:[#allocation119_spill] sm:$0xff] %v12158_v23  ;;  %vm2695_vm5 = vcmp.eq.f32.partialorder %v15944_v25, %v12158_v23  ;;  %3253 = vmin.xlane.f32.xlu0 %v12161_v60  ;;  %v15952_v25 = vld [vmem:[#allocation395_spill] sm:$0xff]  ;;  %v12192_v18 = vcvt.s32.f32 %v3278_v50  ;;  %v15990_v60 = vld [vmem:[#allocation180_spill] sm:$0xff] }
 0x3ee   :  { %v12169_v63 = vsel %vm2695_vm5, %v2691_v45, inf  ;;  %v12183_v45 = vsel %vm1657_vm14, %v9495_v37, 128 }
 0x3ef   :  { %15946 = vst [vmem:[#allocation418_spill] sm:$0xff] %v12169_v63  ;;  %15953 = vst [vmem:[#allocation395_spill] sm:$0xff] %v12183_v45  ;;  %v3292_v19 = vshra.s32 %v12183_v45, 16  ;;  %v15965_v45 = vld [vmem:[#allocation114_spill] sm:$0xff] }
 0x3f0   :  { %v12174_v36 = vpop.xlane.xlu0 %2679  ;;  %15957 = vst [vmem:[#allocation131_spill] sm:$0xff] %v12192_v18 }
 0x3f1   :  { %15949 = vst [vmem:[#allocation132_spill] sm:$0xff] %v12174_v36  ;;  %vm2681_vm15 = vcmp.eq.f32.partialorder %v15952_v25, %v12174_v36  ;;  %3267 = vmin.xlane.f32.xlu0 %v12177_v21  ;;  %v12198_v36 = vsel %vm1658_vm4, %v9495_v37, 128  ;;  %v12203_v13 = vcvt.s32.f32 %v3292_v19  ;;  %v15979_v21 = vld [vmem:[#allocation168_spill] sm:$0xff] }
 0x3f2   :  { %v12185_v23 = vsel %vm2681_vm15, %v2677_v40, inf  ;;  %15958 = vst [vmem:[#allocation420_spill] sm:$0xff] %v12198_v36  ;;  %v15959_v40 = vld [vmem:[#allocation321_spill] sm:$0xff]  ;;  %v3306_v50 = vshra.s32 %v12198_v36, 16  ;;  %v15969_v36 = vld [vmem:[#allocation156_spill] sm:$0xff] }
 0x3f3   :  { %15954 = vst [vmem:[#allocation419_spill] sm:$0xff] %v12185_v23  ;;  %v15960_v23 = vld [vmem:[#allocation144_spill] sm:$0xff] }
 0x3f4   :  { %v12190_v63 = vpop.xlane.xlu0 %2777  ;;  %vm1659_vm2 = vcmp.eq.f32.partialorder %v15960_v23, %v15959_v40  ;;  %15961 = vst [vmem:[#allocation144_spill] sm:$0xff] %v12203_v13  ;;  %v12215_v23 = vcvt.s32.f32 %v3306_v50  ;;  %v15968_v40 = vld [vmem:[#allocation331_spill] sm:$0xff] }
 0x3f5   :  { %vm2779_vm6 = vcmp.eq.f32.partialorder %v11551_v39, %v12190_v63  ;;  %3281 = vmin.xlane.f32.xlu0 %v12192_v18  ;;  %v12209_v39 = vsel %vm1659_vm2, %v9495_v37, 128  ;;  %vm1661_vm1 = vcmp.eq.f32.partialorder %v15969_v36, %v15968_v40  ;;  %v15970_v18 = vld [vmem:[#allocation125_spill] sm:$0xff]  ;;  %v15975_v36 = vld [vmem:[#allocation126_spill] sm:$0xff] }
 0x3f6   :  { %v2780_v25 = vsel %vm2779_vm6, %v2775_v22, inf  ;;  %15962 = vst [vmem:[#allocation421_spill] sm:$0xff] %v12209_v39  ;;  %v15964_v22 = vld [vmem:[#allocation143_spill] sm:$0xff]  ;;  %v12232_v50 = vsel %vm1661_vm1, %v9495_v37, 128 }
 0x3f7   :  { %2781 = vmin.xlane.f32.xlu1 %v2780_v25  ;;  %vm1660_vm8 = vcmp.eq.f32.partialorder %v15964_v22, %v15963_v12  ;;  %15966 = vst [vmem:[#allocation143_spill] sm:$0xff] %v12215_v23  ;;  %v3320_v25 = vshra.s32 %v12209_v39, 16  ;;  %v2801_v22 = vand.u32 65535, %v11555_v62  ;;  %15972 = vst [vmem:[#allocation125_spill] sm:$0xff] %v12232_v50  ;;  %v15973_v39 = vld [vmem:[#allocation45_spill] sm:$0xff]  ;;  %v3348_v62 = vshra.s32 %v12232_v50, 16 }
 0x3f8   :  { %v12206_v57 = vpop.xlane.xlu0 %2791  ;;  %v12219_v19 = vsel %vm1660_vm8, %v9495_v37, 128  ;;  %v15984_v50 = vld [vmem:[#allocation167_spill] sm:$0xff] }
 0x3f9   :  { %3295 = vmin.xlane.f32.xlu0 %v12203_v13  ;;  %15967 = vst [vmem:[#allocation114_spill] sm:$0xff] %v12219_v19  ;;  %v12228_v12 = vcvt.s32.f32 %v3320_v25  ;;  %v15974_v13 = vld [vmem:[#allocation155_spill] sm:$0xff] }
 0x3fa   :  { %vm1662_vm7 = vcmp.eq.f32.partialorder %v15974_v13, %v15973_v39  ;;  %v15980_v13 = vld [vmem:[#allocation397_spill] sm:$0xff]  ;;  %v12250_v39 = vcvt.s32.f32 %v3348_v62 }
 0x3fb   :  { %1871 = vmin.xlane.f32.xlu1 %v15965_v45  ;;  %15971 = vst [vmem:[#allocation156_spill] sm:$0xff] %v12228_v12  ;;  %v3334_v45 = vshra.s32 %v12219_v19, 16  ;;  %v12244_v19 = vsel %vm1662_vm7, %v9495_v37, 128 }
 0x3fc   :  { %v12225_v26 = vpop.xlane.xlu0 %2805  ;;  %15977 = vst [vmem:[#allocation126_spill] sm:$0xff] %v12244_v19  ;;  %15981 = vst [vmem:[#allocation168_spill] sm:$0xff] %v12250_v39 }
 0x3fd   :  { %3309 = vmin.xlane.f32.xlu0 %v12215_v23  ;;  %vm2807_vm12 = vcmp.eq.f32.partialorder %v11582_v46, %v12225_v26  ;;  %v12240_v40 = vcvt.s32.f32 %v3334_v45  ;;  %v15978_v23 = vld [vmem:[#allocation341_spill] sm:$0xff]  ;;  %v3362_v46 = vshra.s32 %v12244_v19, 16 }
 0x3fe   :  { %vm1663_vm9 = vcmp.eq.f32.partialorder %v15979_v21, %v15978_v23  ;;  %v15985_v21 = vld [vmem:[#allocation137_spill] sm:$0xff] }
 0x3ff   :  { %2767 = vmin.xlane.f32.xlu1 %v15970_v18  ;;  %v2803_v18 = vcvt.s32.f32 %v2801_v22  ;;  %15976 = vst [vmem:[#allocation155_spill] sm:$0xff] %v12240_v40  ;;  %v12256_v45 = vsel %vm1663_vm9, %v9495_v37, 128  ;;  %v12264_v62 = vcvt.s32.f32 %v3362_v46 }
 0x400   :  { %v12253_v22 = vpop.xlane.xlu0 %2819  ;;  %15982 = vst [vmem:[#allocation397_spill] sm:$0xff] %v12256_v45  ;;  %v3376_v23 = vshra.s32 %v12256_v45, 16  ;;  %v15995_v45 = vld [vmem:[#allocation179_spill] sm:$0xff] }
 0x401   :  { %3323 = vmin.xlane.f32.xlu0 %v12228_v12  ;;  %v2808_v25 = vsel %vm2807_vm12, %v2803_v18, inf  ;;  %v15983_v18 = vld [vmem:[#allocation49_spill] sm:$0xff]  ;;  %15987 = vst [vmem:[#allocation167_spill] sm:$0xff] %v12264_v62  ;;  %v15989_v12 = vld [vmem:[#allocation351_spill] sm:$0xff] }
 0x402   :  { %vm1664_vm13 = vcmp.eq.f32.partialorder %v15984_v50, %v15983_v18  ;;  %vm1665_vm5 = vcmp.eq.f32.partialorder %v15990_v60, %v15989_v12  ;;  %v15996_v60 = vld [vmem:[#allocation138_spill] sm:$0xff] }
 0x403   :  { %1913 = vmin.xlane.f32.xlu1 %v15975_v36  ;;  %v2787_v36 = vand.u32 65535, %v15980_v13  ;;  %v12280_v46 = vsel %vm1665_vm5, %v9495_v37, 128 }
 0x404   :  { %v12273_v50 = vpop.xlane.xlu0 %2833  ;;  %15993 = vst [vmem:[#allocation180_spill] sm:$0xff] %v12280_v46 }
 0x405   :  { %3337 = vmin.xlane.f32.xlu0 %v12240_v40  ;;  %v2789_v13 = vcvt.s32.f32 %v2787_v36  ;;  %v12268_v40 = vsel %vm1664_vm13, %v9495_v37, 128  ;;  %vm2835_vm15 = vcmp.eq.f32.partialorder %v11614_v55, %v12273_v50 }
 0x406   :  { %15988 = vst [vmem:[#allocation137_spill] sm:$0xff] %v12268_v40  ;;  %v3390_v36 = vshra.s32 %v12268_v40, 16 }
 0x407   :  { %2809 = vmin.xlane.f32.xlu1 %v2808_v25  ;;  %v15986_v25 = vld [vmem:[#allocation32_spill] sm:$0xff] }
 0x408   :  { %vm2793_vm3 = vcmp.eq.f32.partialorder %v15986_v25, %v12206_v57  ;;  %v12276_v25 = vcvt.s32.f32 %v3376_v23  ;;  %v12288_v12 = vcvt.s32.f32 %v3390_v36  ;;  %v3404_v23 = vshra.s32 %v12280_v46, 16  ;;  %v16004_v46 = vld [vmem:[#allocation191_spill] sm:$0xff] }
 0x409   :  { %3351 = vmin.xlane.f32.xlu0 %v12250_v39  ;;  %v2794_v19 = vsel %vm2793_vm3, %v2789_v13, inf  ;;  %v15994_v13 = vld [vmem:[#allocation53_spill] sm:$0xff]  ;;  %v16000_v39 = vld [vmem:[#allocation192_spill] sm:$0xff] }
 0x40a   :  { %15992 = vst [vmem:[#allocation32_spill] sm:$0xff] %v12276_v25  ;;  %vm1666_vm14 = vcmp.eq.f32.partialorder %v15995_v45, %v15994_v13  ;;  %v16001_v45 = vld [vmem:[#allocation405_spill] sm:$0xff]  ;;  %v12298_v13 = vcvt.s32.f32 %v3404_v23 }
 0x40b   :  { %1899 = vmin.xlane.f32.xlu1 %v15985_v21  ;;  %v15991_v21 = vld [vmem:[#allocation413_spill] sm:$0xff]  ;;  %v12292_v40 = vsel %vm1666_vm14, %v9495_v37, 128 }
 0x40c   :  { %v2829_v18 = vand.u32 65535, %v15991_v21  ;;  %15997 = vst [vmem:[#allocation413_spill] sm:$0xff] %v12288_v12  ;;  %15998 = vst [vmem:[#allocation179_spill] sm:$0xff] %v12292_v40  ;;  %v3418_v55 = vshra.s32 %v12292_v40, 16 }
 0x40d   :  { %3365 = vmin.xlane.f32.xlu0 %v12264_v62  ;;  %v15999_v62 = vld [vmem:[#allocation361_spill] sm:$0xff] }
 0x40e   :  { %vm1667_vm4 = vcmp.eq.f32.partialorder %v16000_v39, %v15999_v62  ;;  %v16005_v39 = vld [vmem:[#allocation149_spill] sm:$0xff]  ;;  %v12312_v23 = vcvt.s32.f32 %v3418_v55 }
 0x40f   :  { %2795 = vmin.xlane.f32.xlu1 %v2794_v19  ;;  %v2831_v19 = vcvt.s32.f32 %v2829_v18  ;;  %v12301_v18 = vpop.xlane.xlu0 %2847  ;;  %v12304_v36 = vsel %vm1667_vm4, %v9495_v37, 128 }
 0x410   :  { %16002 = vst [vmem:[#allocation138_spill] sm:$0xff] %v12304_v36  ;;  %16007 = vst [vmem:[#allocation192_spill] sm:$0xff] %v12312_v23  ;;  %v3432_v62 = vshra.s32 %v12304_v36, 16  ;;  %v16018_v36 = vld [vmem:[#allocation381_spill] sm:$0xff]  ;;  %vm2849_vm13 = vcmp.eq.f32.partialorder %v11640_v31, %v12301_v18 }
 0x411   :  { %3379 = vmin.xlane.f32.xlu0 %v12276_v25  ;;  %v2836_v21 = vsel %vm2835_vm15, %v2831_v19, inf  ;;  %v16003_v19 = vld [vmem:[#allocation57_spill] sm:$0xff]  ;;  %v16009_v25 = vld [vmem:[#allocation371_spill] sm:$0xff] }
 0x412   :  { %vm1668_vm6 = vcmp.eq.f32.partialorder %v16004_v46, %v16003_v19  ;;  %vm1669_vm8 = vcmp.eq.f32.partialorder %v16010_v47, %v16009_v25  ;;  %v16014_v19 = vld [vmem:[#allocation69_spill] sm:$0xff]  ;;  %v16015_v47 = vld [vmem:[#allocation150_spill] sm:$0xff] }
 0x413   :  { %1941 = vmin.xlane.f32.xlu1 %v15996_v60  ;;  %v2815_v60 = vand.u32 65535, %v16001_v45  ;;  %v12321_v46 = vpop.xlane.xlu0 %2861  ;;  %v12328_v55 = vsel %vm1669_vm8, %v9495_v37, 128 }
 0x414   :  { %16012 = vst [vmem:[#allocation149_spill] sm:$0xff] %v12328_v55  ;;  %vm2863_vm7 = vcmp.eq.f32.partialorder %v11662_v10, %v12321_v46 }
 0x415   :  { %3393 = vmin.xlane.f32.xlu0 %v12288_v12  ;;  %v2817_v45 = vcvt.s32.f32 %v2815_v60  ;;  %v12316_v12 = vsel %vm1668_vm6, %v9495_v37, 128 }
 0x416   :  { %16008 = vst [vmem:[#allocation405_spill] sm:$0xff] %v12316_v12  ;;  %v3446_v60 = vshra.s32 %v12316_v12, 16 }
 0x417   :  { %2837 = vmin.xlane.f32.xlu1 %v2836_v21  ;;  %v16006_v21 = vld [vmem:[#allocation415_spill] sm:$0xff] }
 0x418   :  { %vm2821_vm2 = vcmp.eq.f32.partialorder %v16006_v21, %v12253_v22  ;;  %v12324_v21 = vcvt.s32.f32 %v3432_v62  ;;  %v12336_v25 = vcvt.s32.f32 %v3446_v60 }
 0x419   :  { %3407 = vmin.xlane.f32.xlu0 %v12298_v13  ;;  %v2822_v40 = vsel %vm2821_vm2, %v2817_v45, inf  ;;  %v16013_v45 = vld [vmem:[#allocation61_spill] sm:$0xff] }
 0x41a   :  { %16011 = vst [vmem:[#allocation191_spill] sm:$0xff] %v12324_v21  ;;  %vm1670_vm1 = vcmp.eq.f32.partialorder %v16014_v19, %v16013_v45  ;;  %16016 = vst [vmem:[#allocation415_spill] sm:$0xff] %v12336_v25  ;;  %v16020_v19 = vld [vmem:[#allocation414_spill] sm:$0xff] }
 0x41b   :  { %1927 = vmin.xlane.f32.xlu1 %v16005_v39  ;;  %v2857_v39 = vand.u32 65535, %v11621_v11  ;;  %v3460_v11 = vshra.s32 %v12328_v55, 16  ;;  %v12340_v12 = vsel %vm1670_vm1, %v9495_v37, 128  ;;  %v16023_v55 = vld [vmem:[#allocation72_spill] sm:$0xff] }
 0x41c   :  { %16017 = vst [vmem:[#allocation203_spill] sm:$0xff] %v12340_v12  ;;  %v3474_v10 = vshra.s32 %v12340_v12, 16 }
 0x41d   :  { %3421 = vmin.xlane.f32.xlu0 %v12312_v23  ;;  %v16019_v23 = vld [vmem:[#allocation213_spill] sm:$0xff]  ;;  %v12346_v45 = vcvt.s32.f32 %v3460_v11 }
 0x41e   :  { %vm1671_vm12 = vcmp.eq.f32.partialorder %v16019_v23, %v16018_v36  ;;  %v16024_v23 = vld [vmem:[#allocation161_spill] sm:$0xff]  ;;  %v12360_v11 = vcvt.s32.f32 %v3474_v10 }
 0x41f   :  { %2823 = vmin.xlane.f32.xlu1 %v2822_v40  ;;  %v2859_v40 = vcvt.s32.f32 %v2857_v39  ;;  %v12349_v39 = vpop.xlane.xlu0 %2875  ;;  %v12352_v60 = vsel %vm1671_vm12, %v9495_v37, 128 }
 0x420   :  { %16021 = vst [vmem:[#allocation69_spill] sm:$0xff] %v12352_v60  ;;  %16025 = vst [vmem:[#allocation150_spill] sm:$0xff] %v12360_v11  ;;  %vm2877_vm6 = vcmp.eq.f32.partialorder %v11688_v0, %v12349_v39 }
 0x421   :  { %3435 = vmin.xlane.f32.xlu0 %v12324_v21  ;;  %v2864_v62 = vsel %vm2863_vm7, %v2859_v40, inf  ;;  %v16022_v40 = vld [vmem:[#allocation65_spill] sm:$0xff]  ;;  %v16028_v21 = vld [vmem:[#allocation223_spill] sm:$0xff] }
 0x422   :  { %vm1672_vm9 = vcmp.eq.f32.partialorder %v16023_v55, %v16022_v40  ;;  %v16031_v40 = vld [vmem:[#allocation76_spill] sm:$0xff] }
 0x423   :  { %1969 = vmin.xlane.f32.xlu1 %v16015_v47  ;;  %v2843_v47 = vand.u32 65535, %v16020_v19  ;;  %v3488_v19 = vshra.s32 %v12352_v60, 16  ;;  %v12364_v12 = vsel %vm1672_vm9, %v9495_v37, 128  ;;  %v12369_v55 = vpop.xlane.xlu0 %2889  ;;  %v16035_v60 = vld [vmem:[#allocation401_spill] sm:$0xff] }
 0x424   :  { %16026 = vst [vmem:[#allocation213_spill] sm:$0xff] %v12364_v12  ;;  %vm2891_vm14 = vcmp.eq.f32.partialorder %v11710_v41, %v12369_v55 }
 0x425   :  { %3449 = vmin.xlane.f32.xlu0 %v12336_v25  ;;  %v16027_v25 = vld [vmem:[#allocation391_spill] sm:$0xff]  ;;  %v12372_v31 = vcvt.s32.f32 %v3488_v19 }
 0x426   :  { %vm1673_vm3 = vcmp.eq.f32.partialorder %v16028_v21, %v16027_v25  ;;  %v16032_v21 = vld [vmem:[#allocation162_spill] sm:$0xff] }
 0x427   :  { %2865 = vmin.xlane.f32.xlu1 %v2864_v62  ;;  %v2845_v62 = vcvt.s32.f32 %v2843_v47  ;;  %v3502_v47 = vshra.s32 %v12364_v12, 16  ;;  %v12376_v10 = vsel %vm1673_vm3, %v9495_v37, 128 }
 0x428   :  { %16029 = vst [vmem:[#allocation414_spill] sm:$0xff] %v12376_v10 }
 0x429   :  { %3463 = vmin.xlane.f32.xlu0 %v12346_v45  ;;  %v2850_v36 = vsel %vm2849_vm13, %v2845_v62, inf  ;;  %v16030_v62 = vld [vmem:[#allocation70_spill] sm:$0xff]  ;;  %v12384_v25 = vcvt.s32.f32 %v3502_v47 }
 0x42a   :  { %vm1674_vm5 = vcmp.eq.f32.partialorder %v16031_v40, %v16030_v62  ;;  %v2871_v40 = vand.u32 65535, %v11650_v43  ;;  %v16038_v62 = vld [vmem:[#allocation80_spill] sm:$0xff] }
 0x42b   :  { %1955 = vmin.xlane.f32.xlu1 %v16024_v23  ;;  %v2885_v23 = vand.u32 65535, %v11669_v28  ;;  %16033 = vst [vmem:[#allocation72_spill] sm:$0xff] %v12384_v25  ;;  %v3516_v28 = vshra.s32 %v12376_v10, 16  ;;  %v12388_v12 = vsel %vm1674_vm5, %v9495_v37, 128  ;;  %v16041_v10 = vld [vmem:[#allocation410_spill] sm:$0xff] }
 0x42c   :  { %16034 = vst [vmem:[#allocation161_spill] sm:$0xff] %v12388_v12  ;;  %v3530_v41 = vshra.s32 %v12388_v12, 16  ;;  %v2873_v43 = vcvt.s32.f32 %v2871_v40 }
 0x42d   :  { %3477 = vmin.xlane.f32.xlu0 %v12360_v11  ;;  %v16036_v11 = vld [vmem:[#allocation233_spill] sm:$0xff] }
 0x42e   :  { %vm1675_vm15 = vcmp.eq.f32.partialorder %v16036_v11, %v16035_v60  ;;  %v16039_v11 = vld [vmem:[#allocation173_spill] sm:$0xff]  ;;  %v2878_v60 = vsel %vm2877_vm6, %v2873_v43, inf }
 0x42f   :  { %2851 = vmin.xlane.f32.xlu1 %v2850_v36  ;;  %v2887_v36 = vcvt.s32.f32 %v2885_v23  ;;  %v12397_v23 = vpop.xlane.xlu0 %2903  ;;  %v12400_v47 = vsel %vm1675_vm15, %v9495_v37, 128  ;;  %v16044_v43 = vld [vmem:[#allocation409_spill] sm:$0xff] }
 0x430   :  { %vm2905_vm7 = vcmp.eq.f32.partialorder %v11736_v44, %v12397_v23  ;;  %v2927_v44 = vand.u32 65535, %v11746_v1 }
 0x431   :  { %3491 = vmin.xlane.f32.xlu0 %v12372_v31  ;;  %v2892_v19 = vsel %vm2891_vm14, %v2887_v36, inf  ;;  %v16037_v36 = vld [vmem:[#allocation78_spill] sm:$0xff] }
 0x432   :  { %vm1676_vm4 = vcmp.eq.f32.partialorder %v16038_v62, %v16037_v36  ;;  %v16045_v36 = vld [vmem:[#allocation14_spill] sm:$0xff] }
 0x433   :  { %1997 = vmin.xlane.f32.xlu1 %v16032_v21  ;;  %v12394_v21 = vcvt.s32.f32 %v3516_v28  ;;  %v12408_v28 = vcvt.s32.f32 %v3530_v41  ;;  %v12412_v12 = vsel %vm1676_vm4, %v9495_v37, 128  ;;  %v12417_v62 = vpop.xlane.xlu0 %2917  ;;  %vm1678_vm8 = vcmp.eq.f32.partialorder %v16045_v36, %v16044_v43 }
 0x434   :  { %16040 = vst [vmem:[#allocation223_spill] sm:$0xff] %v12412_v12  ;;  %v3558_v40 = vshra.s32 %v12412_v12, 16  ;;  %vm2919_vm1 = vcmp.eq.f32.partialorder %v11758_v30, %v12417_v62  ;;  %v12436_v12 = vsel %vm1678_vm8, %v9495_v37, 128  ;;  %v2899_v36 = vand.u32 65535, %v11698_v34  ;;  %v16048_v30 = vld [vmem:[#allocation185_spill] sm:$0xff] }
 0x435   :  { %3505 = vmin.xlane.f32.xlu0 %v12384_v25  ;;  %v16042_v25 = vld [vmem:[#allocation244_spill] sm:$0xff]  ;;  %16047 = vst [vmem:[#allocation162_spill] sm:$0xff] %v12436_v12 }
 0x436   :  { %vm1677_vm2 = vcmp.eq.f32.partialorder %v16042_v25, %v16041_v10  ;;  %v16046_v25 = vld [vmem:[#allocation174_spill] sm:$0xff]  ;;  %v12432_v10 = vcvt.s32.f32 %v3558_v40 }
 0x437   :  { %2893 = vmin.xlane.f32.xlu1 %v2892_v19  ;;  %v3544_v19 = vshra.s32 %v12400_v47, 16  ;;  %v12424_v41 = vsel %vm1677_vm2, %v9495_v37, 128 }
 0x439   :  { %3519 = vmin.xlane.f32.xlu0 %v12394_v21  ;;  %v12420_v0 = vcvt.s32.f32 %v3544_v19 }
 0x43b   :  { %1983 = vmin.xlane.f32.xlu1 %v16039_v11  ;;  %v2913_v11 = vand.u32 65535, %v11717_v9  ;;  %16043 = vst [vmem:[#allocation76_spill] sm:$0xff] %v12420_v0  ;;  %v3572_v9 = vshra.s32 %v12424_v41, 16 }
 0x43d   :  { %3533 = vmin.xlane.f32.xlu0 %v12408_v28  ;;  %v12440_v43 = vcvt.s32.f32 %v3572_v9  ;;  %v2941_v9 = vand.u32 65535, %v11764_v54 }
 0x43f   :  { %2879 = vmin.xlane.f32.xlu1 %v2878_v60  ;;  %v2915_v60 = vcvt.s32.f32 %v2913_v11  ;;  %v2901_v11 = vcvt.s32.f32 %v2899_v36 }
 0x441   :  { %3547 = vmin.xlane.f32.xlu0 %v12420_v0  ;;  %v2920_v19 = vsel %vm2919_vm1, %v2915_v60, inf  ;;  %v12443_v0 = vpop.xlane.xlu0 %2931  ;;  %v2906_v60 = vsel %vm2905_vm7, %v2901_v11, inf  ;;  %v2929_v11 = vcvt.s32.f32 %v2927_v44  ;;  %v16053_v44 = vld [vmem:[#allocation208_spill] sm:$0xff] }
 0x442   :  { %vm2933_vm9 = vcmp.eq.f32.partialorder %v11784_v6, %v12443_v0 }
 0x443   :  { %2025 = vmin.xlane.f32.xlu1 %v16046_v25  ;;  %v3586_v25 = vshra.s32 %v12436_v12, 16 }
 0x445   :  { %3561 = vmin.xlane.f32.xlu0 %v12432_v10  ;;  %v12449_v40 = vcvt.s32.f32 %v3586_v25  ;;  %v12452_v34 = vpop.xlane.xlu0 %2945  ;;  %v16051_v25 = vld [vmem:[#allocation197_spill] sm:$0xff] }
 0x446   :  { %vm2947_vm12 = vcmp.eq.f32.partialorder %v11808_v53, %v12452_v34  ;;  %v16052_v53 = vld [vmem:[#allocation198_spill] sm:$0xff] }
 0x447   :  { %2921 = vmin.xlane.f32.xlu1 %v2920_v19  ;;  %16049 = vst [vmem:[#allocation233_spill] sm:$0xff] %v12449_v40  ;;  %v16050_v19 = vld [vmem:[#allocation186_spill] sm:$0xff] }
 0x449   :  { %3575 = vmin.xlane.f32.xlu0 %v12440_v43  ;;  %v12459_v36 = vpop.xlane.xlu0 %2959 }
 0x44a   :  { %vm2961_vm3 = vcmp.eq.f32.partialorder %v11825_v42, %v12459_v36  ;;  %v16055_v42 = vld [vmem:[#allocation218_spill] sm:$0xff] }
 0x44b   :  { %2011 = vmin.xlane.f32.xlu1 %v16048_v30  ;;  %v2943_v30 = vcvt.s32.f32 %v2941_v9 }
 0x44d   :  { %3589 = vmin.xlane.f32.xlu0 %v12449_v40  ;;  %v2948_v37 = vsel %vm2947_vm12, %v2943_v30, inf  ;;  %v12464_v54 = vpop.xlane.xlu0 %2973  ;;  %v2955_v30 = vand.u32 65535, %v11795_v8 }
 0x44e   :  { %vm2975_vm13 = vcmp.eq.f32.partialorder %v11841_v32, %v12464_v54  ;;  %v2997_v32 = vand.u32 65535, %v11847_v5 }
 0x44f   :  { %2907 = vmin.xlane.f32.xlu1 %v2906_v60  ;;  %v2934_v60 = vsel %vm2933_vm9, %v2929_v11, inf }
 0x450   :  { %v2999_v8 = vcvt.s32.f32 %v2997_v32 }
 0x451   :  { %v12471_v6 = vpop.xlane.xlu0 %2987 }
 0x452   :  { %vm2989_vm14 = vcmp.eq.f32.partialorder %v11857_v3, %v12471_v6 }
 0x453   :  { %2053 = vmin.xlane.f32.xlu1 %v16050_v19  ;;  %v2969_v19 = vand.u32 65535, %v11815_v7  ;;  %v2957_v7 = vcvt.s32.f32 %v2955_v30  ;;  %v3025_v30 = vand.u32 65535, %v11879_v56  ;;  %v3011_v56 = vand.u32 65535, %v11863_v52 }
 0x455   :  { %v2971_v1 = vcvt.s32.f32 %v2969_v19  ;;  %v12476_v11 = vpop.xlane.xlu0 %3001 }
 0x456   :  { %vm3003_vm5 = vcmp.eq.f32.partialorder %v11873_v61, %v12476_v11  ;;  %v2784_v61 = vcvt.f32.s32 %v12190_v63  ;;  %v16058_v63 = vld [vmem:[#allocation275_spill] sm:$0xff] }
 0x457   :  { %2949 = vmin.xlane.f32.xlu1 %v2948_v37  ;;  %v6421_v37 = vld [vmem:[#allocation3] sm:$0xff]  ;;  %v2976_v9 = vsel %vm2975_vm13, %v2971_v1, inf  ;;  %v3004_v19 = vsel %vm3003_vm5, %v2999_v8, inf  ;;  %v4310_v8 = vld [vmem:[#allocation3 + $0x228] sm:$0xff] }
 0x45b   :  { %2039 = vmin.xlane.f32.xlu1 %v16051_v25  ;;  %v2962_v25 = vsel %vm2961_vm3, %v2957_v7, inf  ;;  %v3027_v7 = vcvt.s32.f32 %v3025_v30 }
 0x45f   :  { %2935 = vmin.xlane.f32.xlu1 %v2934_v60  ;;  %v16054_v60 = vld [vmem:[#allocation73_spill] sm:$0xff] }
 0x463   :  { %2081 = vmin.xlane.f32.xlu1 %v16052_v53  ;;  %6550 = vperm.xlu0 %7686, %v6421_v37   ;;  %v2983_v53 = vand.u32 65535, %v11831_v35  ;;  %v12483_v37 = vpop.xlane.xlu0 %3015 }
 0x464   :  { %vm3017_vm4 = vcmp.eq.f32.partialorder %v11889_v49, %v12483_v37  ;;  %v3053_v49 = vand.u32 65535, %v11911_v51  ;;  %v16069_v51 = vld [vmem:[#allocation285_spill] sm:$0xff] }
 0x465   :  { %v2985_v1 = vcvt.s32.f32 %v2983_v53 }
 0x467   :  { %2977 = vmin.xlane.f32.xlu1 %v2976_v9  ;;  %v2990_v9 = vsel %vm2989_vm14, %v2985_v1, inf  ;;  %v12488_v5 = vpop.xlane.xlu0 %3029 }
 0x468   :  { %vm3031_vm15 = vcmp.eq.f32.partialorder %v11905_v14, %v12488_v5 }
 0x46b   :  { %2067 = vmin.xlane.f32.xlu1 %v16053_v44  ;;  %v16056_v44 = vld [vmem:[#allocation365_spill] sm:$0xff]  ;;  %v12501_v30 = vpop.xlane.xlu0 %3043 }
 0x46c   :  { %vm3045_vm8 = vcmp.eq.f32.partialorder %v11921_v33, %v12501_v30  ;;  %v3081_v33 = vand.u32 65535, %v11943_v24  ;;  %v16085_v24 = vld [vmem:[#allocation295_spill] sm:$0xff] }
 0x46f   :  { %2963 = vmin.xlane.f32.xlu1 %v2962_v25  ;;  %v16057_v25 = vld [vmem:[#allocation270_spill] sm:$0xff] }
 0x470   :  { %v1874_v32 = vcvt.f32.s32 %v16057_v25  ;;  %v3013_v25 = vcvt.s32.f32 %v3011_v56 }
 0x472   :  { %v1875_v1 = vshll.u32 %v1874_v32, 16 }
 0x473   :  { %2109 = vmin.xlane.f32.xlu1 %v16054_v60  ;;  %v2785_v60 = vshll.u32 %v2784_v61, 16  ;;  %v4245_v61 = vld [vmem:[#allocation3 + $0x20] sm:$0xff] }
 0x477   :  { %3005 = vmin.xlane.f32.xlu1 %v3004_v19  ;;  %v3032_v19 = vsel %vm3031_vm15, %v3027_v7, inf  ;;  %v16061_v7 = vld [vmem:[#allocation372_spill] sm:$0xff] }
 0x47b   :  { %2095 = vmin.xlane.f32.xlu1 %v16055_v42 }
 0x47f   :  { %2991 = vmin.xlane.f32.xlu1 %v2990_v9  ;;  %v2770_v9 = vcvt.f32.s32 %v16058_v63  ;;  %v3018_v63 = vsel %vm3017_vm4, %v3013_v25, inf  ;;  %v16068_v25 = vld [vmem:[#allocation13_spill] sm:$0xff] }
 0x481   :  { %v2771_v32 = vshll.u32 %v2770_v9, 16  ;;  %v2812_v9 = vcvt.f32.s32 %v12225_v26  ;;  %v16070_v26 = vld [vmem:[#allocation127_spill] sm:$0xff] }
 0x483   :  { %2137 = vmin.xlane.f32.xlu1 %v16056_v44  ;;  %v2813_v40 = vshll.u32 %v2812_v9, 16 }
 0x484   :  { %v2782_v35 = vpop.xlane.xlu1 %2781 }
 0x485   :  { %v2783_v3 = vcvt.f32.s32 %v2782_v35 }
 0x487   :  { %v2786_v53 = vadd.s32 %v2785_v60, %v2783_v3  ;;  %3033 = vmin.xlane.f32.xlu1 %v3032_v19  ;;  %v16062_v60 = vld [vmem:[#allocation280_spill] sm:$0xff]  ;;  %v3055_v19 = vcvt.s32.f32 %v3053_v49  ;;  %v2798_v49 = vcvt.f32.s32 %v12206_v57 }
 0x488   :  { %v1872_v42 = vpop.xlane.xlu1 %1871  ;;  %v1916_v3 = vcvt.f32.s32 %v16062_v60 }
 0x489   :  { %v4438_v14 = vsel %vm3796_vm11, %v2786_v53, %v4310_v8  ;;  %v1873_v12 = vcvt.f32.s32 %v1872_v42  ;;  %v4309_v42 = vld [vmem:[#allocation3 + $0x220] sm:$0xff] }
 0x48a   :  { %4566 = vst.msk [vmem:[#allocation3 + $0x228] sm:$0xff] %vm47_vm0, %v4438_v14  ;;  %v1917_v56 = vshll.u32 %v1916_v3, 16  ;;  %v16065_v14 = vld [vmem:[#allocation122_spill] sm:$0xff]  ;;  %v1902_v3 = vcvt.f32.s32 %v16069_v51 }
 0x48b   :  { %v1876_v35 = vadd.s32 %v1875_v1, %v1873_v12  ;;  %2123 = vmin.xlane.f32.xlu1 %v16061_v7  ;;  %v12512_v1 = vpop.xlane.xlu0 %3057  ;;  %v16066_v7 = vld [vmem:[#allocation118_spill] sm:$0xff] }
 0x48c   :  { %v2768_v52 = vpop.xlane.xlu1 %2767  ;;  %vm16067_vm11 = vcmp.lt.f32.partialorder %v16065_v14, %v16066_v7  ;;  %v3039_v14 = vand.u32 65535, %v11895_v17  ;;  %v16073_v7 = vld [vmem:[#allocation133_spill] sm:$0xff]  ;;  %v16077_v51 = vld [vmem:[#allocation290_spill] sm:$0xff] }
 0x48d   :  { %v4373_v8 = vsel %vm3731_vm10, %v1876_v35, %v4245_v61  ;;  %v2769_v53 = vcvt.f32.s32 %v2768_v52  ;;  %v4248_v35 = vld [vmem:[#allocation3 + $0x38] sm:$0xff]  ;;  %vm3059_vm10 = vcmp.eq.f32.partialorder %v11937_v20, %v12512_v1  ;;  %v1903_v20 = vshll.u32 %v1902_v3, 16 }
 0x48e   :  { %4501 = vst.msk [vmem:[#allocation3 + $0x20] sm:$0xff] %vm47_vm0, %v4373_v8  ;;  %v16071_v8 = vld [vmem:[#allocation123_spill] sm:$0xff]  ;;  %v1944_v57 = vcvt.f32.s32 %v16077_v51  ;;  %v2799_v3 = vshll.u32 %v2798_v49, 16  ;;  %v16081_v49 = vld [vmem:[#allocation134_spill] sm:$0xff] }
 0x48f   :  { %v2772_v12 = vadd.s32 %v2771_v32, %v2769_v53  ;;  %3019 = vmin.xlane.f32.xlu1 %v3018_v63  ;;  %vm16072_vm6 = vcmp.lt.f32.partialorder %v16070_v26, %v16071_v8  ;;  %v4312_v63 = vld [vmem:[#allocation3 + $0x238] sm:$0xff]  ;;  %v16079_v26 = vld [vmem:[#allocation124_spill] sm:$0xff] }
 0x490   :  { %v1914_v44 = vpop.xlane.xlu1 %1913 }
 0x491   :  { %v4437_v60 = vsel %vm16067_vm11, %v2772_v12, %v4309_v42  ;;  %v1915_v61 = vcvt.f32.s32 %v1914_v44  ;;  %v3060_v12 = vsel %vm3059_vm10, %v3055_v19, inf  ;;  %v3041_v19 = vcvt.s32.f32 %v3039_v14 }
 0x492   :  { %4565 = vst.msk [vmem:[#allocation3 + $0x220] sm:$0xff] %vm47_vm0, %v4437_v60  ;;  %v16074_v60 = vld [vmem:[#allocation129_spill] sm:$0xff]  ;;  %v1945_v14 = vshll.u32 %v1944_v57, 16  ;;  %v16087_v57 = vld [vmem:[#allocation135_spill] sm:$0xff] }
 0x493   :  { %v1918_v52 = vadd.s32 %v1917_v56, %v1915_v61  ;;  %2165 = vmin.xlane.f32.xlu1 %v16068_v25  ;;  %vm16075_vm2 = vcmp.lt.f32.partialorder %v16073_v7, %v16074_v60  ;;  %v12533_v25 = vpop.xlane.xlu0 %3071  ;;  %v16082_v7 = vld [vmem:[#allocation130_spill] sm:$0xff] }
 0x494   :  { %v2810_v32 = vpop.xlane.xlu1 %2809  ;;  %vm16083_vm7 = vcmp.lt.f32.partialorder %v16081_v49, %v16082_v7  ;;  %v4249_v7 = vld [vmem:[#allocation3 + $0x40] sm:$0xff]  ;;  %vm3073_vm3 = vcmp.eq.f32.partialorder %v11953_v2, %v12533_v25 }
 0x495   :  { %v4376_v53 = vsel %vm16072_vm6, %v1918_v52, %v4248_v35  ;;  %v2811_v42 = vcvt.f32.s32 %v2810_v32  ;;  %v4247_v35 = vld [vmem:[#allocation3 + $0x30] sm:$0xff]  ;;  %v16076_v32 = vld [vmem:[#allocation385_spill] sm:$0xff] }
 0x496   :  { %4504 = vst.msk [vmem:[#allocation3 + $0x38] sm:$0xff] %vm47_vm0, %v4376_v53 }
 0x497   :  { %v2814_v44 = vadd.s32 %v2813_v40, %v2811_v42  ;;  %3061 = vmin.xlane.f32.xlu1 %v3060_v12  ;;  %v16078_v40 = vld [vmem:[#allocation128_spill] sm:$0xff]  ;;  %v4311_v42 = vld [vmem:[#allocation3 + $0x230] sm:$0xff] }
 0x498   :  { %v1900_v56 = vpop.xlane.xlu1 %1899  ;;  %vm16080_vm1 = vcmp.lt.f32.partialorder %v16078_v40, %v16079_v26  ;;  %v4314_v26 = vld [vmem:[#allocation3 + $0x248] sm:$0xff] }
 0x499   :  { %v4440_v9 = vsel %vm16075_vm2, %v2814_v44, %v4312_v63  ;;  %v1901_v61 = vcvt.f32.s32 %v1900_v56  ;;  %v3046_v63 = vsel %vm3045_vm8, %v3041_v19, inf  ;;  %v12544_v44 = vpop.xlane.xlu0 %3085  ;;  %v1930_v19 = vcvt.f32.s32 %v16085_v24 }
 0x49a   :  { %4568 = vst.msk [vmem:[#allocation3 + $0x238] sm:$0xff] %vm47_vm0, %v4440_v9  ;;  %vm3087_vm12 = vcmp.eq.f32.partialorder %v11969_v59, %v12544_v44 }
 0x49b   :  { %v1904_v52 = vadd.s32 %v1903_v20, %v1901_v61  ;;  %2151 = vmin.xlane.f32.xlu1 %v16076_v32  ;;  %v2840_v20 = vcvt.f32.s32 %v12273_v50  ;;  %v4250_v61 = vld [vmem:[#allocation3 + $0x48] sm:$0xff]  ;;  %v16086_v50 = vld [vmem:[#allocation139_spill] sm:$0xff]  ;;  %v1931_v59 = vshll.u32 %v1930_v19, 16 }
 0x49c   :  { %v2796_v17 = vpop.xlane.xlu1 %2795  ;;  %vm16088_vm9 = vcmp.lt.f32.partialorder %v16086_v50, %v16087_v57  ;;  %v4313_v50 = vld [vmem:[#allocation3 + $0x240] sm:$0xff] }
 0x49d   :  { %v4375_v8 = vsel %vm16080_vm1, %v1904_v52, %v4247_v35  ;;  %v2797_v53 = vcvt.f32.s32 %v2796_v17  ;;  %v16084_v52 = vld [vmem:[#allocation392_spill] sm:$0xff]  ;;  %v3083_v17 = vcvt.s32.f32 %v3081_v33  ;;  %v2841_v51 = vshll.u32 %v2840_v20, 16  ;;  %v16090_v33 = vld [vmem:[#allocation141_spill] sm:$0xff]  ;;  %v12565_v49 = vpop.xlane.xlu0 %3099 }
 0x49e   :  { %4503 = vst.msk [vmem:[#allocation3 + $0x30] sm:$0xff] %vm47_vm0, %v4375_v8  ;;  %vm3101_vm10 = vcmp.eq.f32.partialorder %v11985_v58, %v12565_v49 }
 0x49f   :  { %v2800_v12 = vadd.s32 %v2799_v3, %v2797_v53  ;;  %3047 = vmin.xlane.f32.xlu1 %v3046_v63  ;;  %v3088_v8 = vsel %vm3087_vm12, %v3083_v17, inf  ;;  %v3067_v63 = vand.u32 65535, %v11927_v27  ;;  %v16095_v17 = vld [vmem:[#allocation136_spill] sm:$0xff] }
 0x4a0   :  { %v1942_v56 = vpop.xlane.xlu1 %1941 }
 0x4a1   :  { %v4439_v60 = vsel %vm16083_vm7, %v2800_v12, %v4311_v42  ;;  %v1943_v9 = vcvt.f32.s32 %v1942_v56  ;;  %v2826_v12 = vcvt.f32.s32 %v12253_v22  ;;  %v16089_v56 = vld [vmem:[#allocation145_spill] sm:$0xff] }
 0x4a2   :  { %4567 = vst.msk [vmem:[#allocation3 + $0x230] sm:$0xff] %vm47_vm0, %v4439_v60  ;;  %vm16091_vm13 = vcmp.lt.f32.partialorder %v16089_v56, %v16090_v33  ;;  %v4252_v56 = vld [vmem:[#allocation3 + $0x58] sm:$0xff] }
 0x4a3   :  { %v1946_v35 = vadd.s32 %v1945_v14, %v1943_v9  ;;  %2193 = vmin.xlane.f32.xlu1 %v16084_v52  ;;  %v16092_v9 = vld [vmem:[#allocation27_spill] sm:$0xff]  ;;  %v2827_v52 = vshll.u32 %v2826_v12, 16 }
 0x4a4   :  { %v2838_v32 = vpop.xlane.xlu1 %2837 }
 0x4a5   :  { %v4378_v3 = vsel %vm16088_vm9, %v1946_v35, %v4250_v61  ;;  %v2839_v40 = vcvt.f32.s32 %v2838_v32  ;;  %v3069_v61 = vcvt.s32.f32 %v3067_v63  ;;  %v16093_v35 = vld [vmem:[#allocation300_spill] sm:$0xff]  ;;  %v16098_v63 = vld [vmem:[#allocation142_spill] sm:$0xff] }
 0x4a6   :  { %4506 = vst.msk [vmem:[#allocation3 + $0x48] sm:$0xff] %vm47_vm0, %v4378_v3  ;;  %v1972_v22 = vcvt.f32.s32 %v16093_v35  ;;  %v16094_v32 = vld [vmem:[#allocation140_spill] sm:$0xff] }
 0x4a7   :  { %v2842_v53 = vadd.s32 %v2841_v51, %v2839_v40  ;;  %3089 = vmin.xlane.f32.xlu1 %v3088_v8  ;;  %vm16096_vm5 = vcmp.lt.f32.partialorder %v16094_v32, %v16095_v17  ;;  %v3074_v57 = vsel %vm3073_vm3, %v3069_v61, inf  ;;  %v12576_v40 = vpop.xlane.xlu0 %3113 }
 0x4a8   :  { %v1928_v42 = vpop.xlane.xlu1 %1927  ;;  %v1973_v8 = vshll.u32 %v1972_v22, 16  ;;  %vm3115_vm15 = vcmp.eq.f32.partialorder %v12001_v48, %v12576_v40  ;;  %v4316_v22 = vld [vmem:[#allocation3 + $0x258] sm:$0xff] }
 0x4a9   :  { %v4442_v14 = vsel %vm16091_vm13, %v2842_v53, %v4314_v26  ;;  %v1929_v20 = vcvt.f32.s32 %v1928_v42  ;;  %v3109_v26 = vand.u32 65535, %v11975_v15  ;;  %v2868_v53 = vcvt.f32.s32 %v12321_v46  ;;  %v16097_v42 = vld [vmem:[#allocation146_spill] sm:$0xff]  ;;  %v16101_v15 = vld [vmem:[#allocation305_spill] sm:$0xff]  ;;  %v16102_v46 = vld [vmem:[#allocation151_spill] sm:$0xff] }
 0x4aa   :  { %4570 = vst.msk [vmem:[#allocation3 + $0x248] sm:$0xff] %vm47_vm0, %v4442_v14  ;;  %vm16099_vm14 = vcmp.lt.f32.partialorder %v16097_v42, %v16098_v63  ;;  %v16100_v14 = vld [vmem:[#allocation400_spill] sm:$0xff]  ;;  %v16109_v63 = vld [vmem:[#allocation310_spill] sm:$0xff] }
 0x4ab   :  { %v1932_v60 = vadd.s32 %v1931_v59, %v1929_v20  ;;  %2179 = vmin.xlane.f32.xlu1 %v16092_v9  ;;  %v2869_v9 = vshll.u32 %v2868_v53, 16  ;;  %v16108_v53 = vld [vmem:[#allocation31_spill] sm:$0xff] }
 0x4ac   :  { %v2824_v27 = vpop.xlane.xlu1 %2823 }
 0x4ad   :  { %v4377_v24 = vsel %vm16096_vm5, %v1932_v60, %v4249_v7  ;;  %v2825_v19 = vcvt.f32.s32 %v2824_v27  ;;  %v6430_v51 = vld [vmem:[#allocation3 + $0x48] sm:$0xff]  ;;  %v3111_v7 = vcvt.s32.f32 %v3109_v26  ;;  %v1958_v60 = vcvt.f32.s32 %v16101_v15  ;;  %v16103_v27 = vld [vmem:[#allocation147_spill] sm:$0xff]  ;;  %v4251_v26 = vld [vmem:[#allocation3 + $0x50] sm:$0xff] }
 0x4ae   :  { %4505 = vst.msk [vmem:[#allocation3 + $0x40] sm:$0xff] %vm47_vm0, %v4377_v24  ;;  %6577 = vperm.xlu0 %7686, %v6430_v51   ;;  %vm16104_vm4 = vcmp.lt.f32.partialorder %v16102_v46, %v16103_v27  ;;  %v3095_v24 = vand.u32 65535, %v11959_v29  ;;  %v16105_v51 = vld [vmem:[#allocation157_spill] sm:$0xff]  ;;  %v16113_v46 = vld [vmem:[#allocation68_spill] sm:$0xff] }
 0x4af   :  { %v2828_v3 = vadd.s32 %v2827_v52, %v2825_v19  ;;  %3075 = vmin.xlane.f32.xlu1 %v3074_v57  ;;  %v3116_v52 = vsel %vm3115_vm15, %v3111_v7, inf  ;;  %v1959_v48 = vshll.u32 %v1958_v60, 16  ;;  %v2854_v19 = vcvt.f32.s32 %v12301_v18  ;;  %v4315_v7 = vld [vmem:[#allocation3 + $0x250] sm:$0xff] }
 0x4b0   :  { %v1970_v2 = vpop.xlane.xlu1 %1969  ;;  %v3097_v42 = vcvt.s32.f32 %v3095_v24  ;;  %v2000_v18 = vcvt.f32.s32 %v16109_v63  ;;  %v3137_v27 = vand.u32 65535, %v16113_v46  ;;  %v4254_v24 = vld [vmem:[#allocation3 + $0x68] sm:$0xff] }
 0x4b1   :  { %v4441_v59 = vsel %vm16099_vm14, %v2828_v3, %v4313_v50  ;;  %v1971_v12 = vcvt.f32.s32 %v1970_v2  ;;  %v16106_v50 = vld [vmem:[#allocation153_spill] sm:$0xff]  ;;  %v12597_v2 = vpop.xlane.xlu0 %3127 }
 0x4b2   :  { %4569 = vst.msk [vmem:[#allocation3 + $0x240] sm:$0xff] %vm47_vm0, %v4441_v59  ;;  %vm16107_vm11 = vcmp.lt.f32.partialorder %v16105_v51, %v16106_v50  ;;  %v2855_v59 = vshll.u32 %v2854_v19, 16  ;;  %v3102_v15 = vsel %vm3101_vm10, %v3097_v42, inf  ;;  %v16117_v19 = vld [vmem:[#allocation36_spill] sm:$0xff]  ;;  %v3139_v50 = vcvt.s32.f32 %v3137_v27  ;;  %v4318_v42 = vld [vmem:[#allocation3 + $0x268] sm:$0xff] }
 0x4b3   :  { %v1974_v33 = vadd.s32 %v1973_v8, %v1971_v12  ;;  %2221 = vmin.xlane.f32.xlu1 %v16100_v14  ;;  %v16110_v12 = vld [vmem:[#allocation152_spill] sm:$0xff]  ;;  %vm3129_vm12 = vcmp.eq.f32.partialorder %v12017_v4, %v12597_v2 }
 0x4b4   :  { %v2866_v20 = vpop.xlane.xlu1 %2865  ;;  %v16126_v27 = vld [vmem:[#allocation416_spill] sm:$0xff] }
 0x4b5   :  { %v4380_v61 = vsel %vm16104_vm4, %v1974_v33, %v4252_v56  ;;  %v2867_v35 = vcvt.f32.s32 %v2866_v20  ;;  %v16111_v56 = vld [vmem:[#allocation148_spill] sm:$0xff] }
 0x4b6   :  { %4508 = vst.msk [vmem:[#allocation3 + $0x58] sm:$0xff] %vm47_vm0, %v4380_v61  ;;  %vm16112_vm6 = vcmp.lt.f32.partialorder %v16110_v12, %v16111_v56  ;;  %v2001_v61 = vshll.u32 %v2000_v18, 16  ;;  %v16122_v12 = vld [vmem:[#allocation292_spill] sm:$0xff] }
 0x4b7   :  { %v2870_v32 = vadd.s32 %v2869_v9, %v2867_v35  ;;  %3117 = vmin.xlane.f32.xlu1 %v3116_v52  ;;  %v12608_v9 = vpop.xlane.xlu0 %3141  ;;  %v2896_v35 = vcvt.f32.s32 %v12369_v55  ;;  %v16115_v52 = vld [vmem:[#allocation154_spill] sm:$0xff]  ;;  %v16119_v55 = vld [vmem:[#allocation163_spill] sm:$0xff]  ;;  %v3123_v56 = vand.u32 65535, %v16122_v12 }
 0x4b8   :  { %v1956_v17 = vpop.xlane.xlu1 %1955  ;;  %vm3143_vm8 = vcmp.eq.f32.partialorder %v12033_v16, %v12608_v9 }
 0x4b9   :  { %v4444_v57 = vsel %vm16107_vm11, %v2870_v32, %v4316_v22  ;;  %v1957_v3 = vcvt.f32.s32 %v1956_v17  ;;  %v16114_v22 = vld [vmem:[#allocation158_spill] sm:$0xff]  ;;  %v3144_v63 = vsel %vm3143_vm8, %v3139_v50, inf }
 0x4ba   :  { %4572 = vst.msk [vmem:[#allocation3 + $0x258] sm:$0xff] %vm47_vm0, %v4444_v57  ;;  %vm16116_vm2 = vcmp.lt.f32.partialorder %v16114_v22, %v16115_v52  ;;  %v16118_v57 = vld [vmem:[#allocation315_spill] sm:$0xff]  ;;  %v16127_v22 = vld [vmem:[#allocation320_spill] sm:$0xff] }
 0x4bb   :  { %v1960_v8 = vadd.s32 %v1959_v48, %v1957_v3  ;;  %2207 = vmin.xlane.f32.xlu1 %v16108_v53  ;;  %v1986_v3 = vcvt.f32.s32 %v16118_v57 }
 0x4bc   :  { %v2852_v29 = vpop.xlane.xlu1 %2851 }
 0x4bd   :  { %v4379_v33 = vsel %vm16112_vm6, %v1960_v8, %v4251_v26  ;;  %v2853_v14 = vcvt.f32.s32 %v2852_v29  ;;  %v6432_v20 = vld [vmem:[#allocation3 + $0x58] sm:$0xff]  ;;  %v2897_v26 = vshll.u32 %v2896_v35, 16  ;;  %v1987_v16 = vshll.u32 %v1986_v3, 16 }
 0x4be   :  { %4507 = vst.msk [vmem:[#allocation3 + $0x50] sm:$0xff] %vm47_vm0, %v4379_v33  ;;  %6583 = vperm.xlu0 %7686, %v6432_v20   ;;  %v16120_v8 = vld [vmem:[#allocation159_spill] sm:$0xff]  ;;  %v2882_v33 = vcvt.f32.s32 %v12349_v39  ;;  %v16124_v20 = vld [vmem:[#allocation165_spill] sm:$0xff]  ;;  %v3125_v35 = vcvt.s32.f32 %v3123_v56  ;;  %v2028_v39 = vcvt.f32.s32 %v16127_v22 }
 0x4bf   :  { %v2856_v60 = vadd.s32 %v2855_v59, %v2853_v14  ;;  %3103 = vmin.xlane.f32.xlu1 %v3102_v15  ;;  %vm16121_vm1 = vcmp.lt.f32.partialorder %v16119_v55, %v16120_v8  ;;  %v16123_v14 = vld [vmem:[#allocation169_spill] sm:$0xff] }
 0x4c0   :  { %v1998_v58 = vpop.xlane.xlu1 %1997  ;;  %vm16125_vm7 = vcmp.lt.f32.partialorder %v16123_v14, %v16124_v20  ;;  %v2883_v52 = vshll.u32 %v2882_v33, 16  ;;  %v3130_v50 = vsel %vm3129_vm12, %v3125_v35, inf  ;;  %v2029_v8 = vshll.u32 %v2028_v39, 16  ;;  %v16135_v56 = vld [vmem:[#allocation93_spill] sm:$0xff]  ;;  %v16140_v39 = vld [vmem:[#allocation307_spill] sm:$0xff] }
 0x4c1   :  { %v4443_v32 = vsel %vm16116_vm2, %v2856_v60, %v4315_v7  ;;  %v1999_v17 = vcvt.f32.s32 %v1998_v58  ;;  %v12629_v60 = vpop.xlane.xlu0 %3155  ;;  %v4253_v58 = vld [vmem:[#allocation3 + $0x60] sm:$0xff]  ;;  %v16136_v14 = vld [vmem:[#allocation325_spill] sm:$0xff] }
 0x4c2   :  { %4571 = vst.msk [vmem:[#allocation3 + $0x250] sm:$0xff] %vm47_vm0, %v4443_v32  ;;  %v16128_v32 = vld [vmem:[#allocation164_spill] sm:$0xff]  ;;  %v2014_v20 = vcvt.f32.s32 %v16136_v14 }
 0x4c3   :  { %v2002_v48 = vadd.s32 %v2001_v61, %v1999_v17  ;;  %2249 = vmin.xlane.f32.xlu1 %v16117_v19  ;;  %v16129_v17 = vld [vmem:[#allocation160_spill] sm:$0xff] }
 0x4c4   :  { %v2894_v51 = vpop.xlane.xlu1 %2893  ;;  %vm16130_vm9 = vcmp.lt.f32.partialorder %v16128_v32, %v16129_v17  ;;  %v2910_v32 = vcvt.f32.s32 %v12397_v23  ;;  %v16141_v17 = vld [vmem:[#allocation181_spill] sm:$0xff] }
 0x4c5   :  { %v4382_v53 = vsel %vm16121_vm1, %v2002_v48, %v4254_v24  ;;  %v2895_v29 = vcvt.f32.s32 %v2894_v51  ;;  %v4317_v51 = vld [vmem:[#allocation3 + $0x260] sm:$0xff]  ;;  %v12640_v3 = vpop.xlane.xlu0 %3169 }
 0x4c6   :  { %4510 = vst.msk [vmem:[#allocation3 + $0x68] sm:$0xff] %vm47_vm0, %v4382_v53  ;;  %v2924_v53 = vcvt.f32.s32 %v12417_v62  ;;  %vm3171_vm3 = vcmp.eq.f32.partialorder %v12065_v38, %v12640_v3  ;;  %v16137_v62 = vld [vmem:[#allocation175_spill] sm:$0xff]  ;;  %v2015_v38 = vshll.u32 %v2014_v20, 16 }
 0x4c7   :  { %v2898_v18 = vadd.s32 %v2897_v26, %v2895_v29  ;;  %3145 = vmin.xlane.f32.xlu1 %v3144_v63  ;;  %v16131_v26 = vld [vmem:[#allocation74_spill] sm:$0xff] }
 0x4c8   :  { %v1984_v59 = vpop.xlane.xlu1 %1983  ;;  %v3165_v55 = vand.u32 65535, %v16131_v26  ;;  %v16132_v29 = vld [vmem:[#allocation170_spill] sm:$0xff] }
 0x4c9   :  { %v4446_v7 = vsel %vm16125_vm7, %v2898_v18, %v4318_v42  ;;  %v1985_v15 = vcvt.f32.s32 %v1984_v59  ;;  %v16133_v42 = vld [vmem:[#allocation166_spill] sm:$0xff]  ;;  %v4256_v59 = vld [vmem:[#allocation3 + $0x78] sm:$0xff] }
 0x4ca   :  { %4574 = vst.msk [vmem:[#allocation3 + $0x268] sm:$0xff] %vm47_vm0, %v4446_v7  ;;  %vm16134_vm13 = vcmp.lt.f32.partialorder %v16132_v29, %v16133_v42  ;;  %v3167_v33 = vcvt.s32.f32 %v3165_v55  ;;  %v2925_v7 = vshll.u32 %v2924_v53, 16  ;;  %v16145_v26 = vld [vmem:[#allocation322_spill] sm:$0xff]  ;;  %v2911_v29 = vshll.u32 %v2910_v32, 16  ;;  %v16147_v42 = vld [vmem:[#allocation176_spill] sm:$0xff] }
 0x4cb   :  { %v1988_v46 = vadd.s32 %v1987_v16, %v1985_v15  ;;  %2235 = vmin.xlane.f32.xlu1 %v16126_v27  ;;  %v16138_v15 = vld [vmem:[#allocation171_spill] sm:$0xff]  ;;  %vm3157_vm15 = vcmp.eq.f32.partialorder %v16145_v26, %v12629_v60  ;;  %v16146_v53 = vld [vmem:[#allocation330_spill] sm:$0xff]  ;;  %v4322_v26 = vld [vmem:[#allocation3 + $0x288] sm:$0xff] }
 0x4cc   :  { %v2880_v61 = vpop.xlane.xlu1 %2879  ;;  %vm16139_vm5 = vcmp.lt.f32.partialorder %v16137_v62, %v16138_v15  ;;  %v4320_v27 = vld [vmem:[#allocation3 + $0x278] sm:$0xff]  ;;  %v2056_v23 = vcvt.f32.s32 %v16146_v53 }
 0x4cd   :  { %v4381_v24 = vsel %vm16130_vm9, %v1988_v46, %v4253_v58  ;;  %v2881_v48 = vcvt.f32.s32 %v2880_v61  ;;  %v6434_v19 = vld [vmem:[#allocation3 + $0x68] sm:$0xff]  ;;  %v3172_v61 = vsel %vm3171_vm3, %v3167_v33, inf }
 0x4ce   :  { %4509 = vst.msk [vmem:[#allocation3 + $0x60] sm:$0xff] %vm47_vm0, %v4381_v24  ;;  %6589 = vperm.xlu0 %7686, %v6434_v19   ;;  %v16142_v24 = vld [vmem:[#allocation177_spill] sm:$0xff]  ;;  %v2057_v15 = vshll.u32 %v2056_v23, 16  ;;  %v16160_v23 = vld [vmem:[#allocation82_spill] sm:$0xff] }
 0x4cf   :  { %v2884_v57 = vadd.s32 %v2883_v52, %v2881_v48  ;;  %3131 = vmin.xlane.f32.xlu1 %v3130_v50  ;;  %v3151_v52 = vand.u32 65535, %v16140_v39  ;;  %vm16143_vm14 = vcmp.lt.f32.partialorder %v16141_v17, %v16142_v24  ;;  %v4255_v50 = vld [vmem:[#allocation3 + $0x70] sm:$0xff]  ;;  %v16156_v24 = vld [vmem:[#allocation335_spill] sm:$0xff] }
 0x4d0   :  { %v2026_v4 = vpop.xlane.xlu1 %2025 }
 0x4d1   :  { %v4445_v63 = vsel %vm16134_vm13, %v2884_v57, %v4317_v51  ;;  %v2027_v18 = vcvt.f32.s32 %v2026_v4  ;;  %v12661_v51 = vpop.xlane.xlu0 %3183  ;;  %v16144_v4 = vld [vmem:[#allocation39_spill] sm:$0xff] }
 0x4d2   :  { %4573 = vst.msk [vmem:[#allocation3 + $0x260] sm:$0xff] %vm47_vm0, %v4445_v63  ;;  %v16148_v63 = vld [vmem:[#allocation172_spill] sm:$0xff] }
 0x4d3   :  { %v2030_v12 = vadd.s32 %v2029_v8, %v2027_v18  ;;  %2277 = vmin.xlane.f32.xlu1 %v16135_v56  ;;  %v3153_v8 = vcvt.s32.f32 %v3151_v52  ;;  %vm16149_vm4 = vcmp.lt.f32.partialorder %v16147_v42, %v16148_v63  ;;  %v4319_v56 = vld [vmem:[#allocation3 + $0x270] sm:$0xff]  ;;  %v16154_v52 = vld [vmem:[#allocation88_spill] sm:$0xff]  ;;  %v2938_v63 = vcvt.f32.s32 %v12443_v0 }
 0x4d4   :  { %v2922_v16 = vpop.xlane.xlu1 %2921 }
 0x4d5   :  { %v4384_v58 = vsel %vm16139_vm5, %v2030_v12, %v4256_v59  ;;  %v2923_v46 = vcvt.f32.s32 %v2922_v16  ;;  %v3158_v16 = vsel %vm3157_vm15, %v3153_v8, inf  ;;  %v12672_v14 = vpop.xlane.xlu0 %3197 }
 0x4d6   :  { %4512 = vst.msk [vmem:[#allocation3 + $0x78] sm:$0xff] %vm47_vm0, %v4384_v58  ;;  %v2952_v58 = vcvt.f32.s32 %v12452_v34  ;;  %v16157_v34 = vld [vmem:[#allocation187_spill] sm:$0xff] }
 0x4d7   :  { %v2926_v35 = vadd.s32 %v2925_v7, %v2923_v46  ;;  %3173 = vmin.xlane.f32.xlu1 %v3172_v61  ;;  %v16150_v7 = vld [vmem:[#allocation332_spill] sm:$0xff]  ;;  %v16151_v46 = vld [vmem:[#allocation182_spill] sm:$0xff] }
 0x4d8   :  { %v2012_v22 = vpop.xlane.xlu1 %2011  ;;  %v3193_v62 = vand.u32 65535, %v16150_v7  ;;  %v16164_v7 = vld [vmem:[#allocation98_spill] sm:$0xff] }
 0x4d9   :  { %v4448_v48 = vsel %vm16143_vm14, %v2926_v35, %v4320_v27  ;;  %v2013_v19 = vcvt.f32.s32 %v2012_v22  ;;  %v16152_v27 = vld [vmem:[#allocation178_spill] sm:$0xff]  ;;  %v4258_v22 = vld [vmem:[#allocation3 + $0x88] sm:$0xff] }
 0x4da   :  { %4576 = vst.msk [vmem:[#allocation3 + $0x278] sm:$0xff] %vm47_vm0, %v4448_v48  ;;  %vm16153_vm11 = vcmp.lt.f32.partialorder %v16151_v46, %v16152_v27  ;;  %v3195_v17 = vcvt.s32.f32 %v3193_v62  ;;  %v2042_v48 = vcvt.f32.s32 %v16156_v24  ;;  %v16165_v62 = vld [vmem:[#allocation87_spill] sm:$0xff]  ;;  %v16166_v46 = vld [vmem:[#allocation340_spill] sm:$0xff]  ;;  %v2939_v27 = vshll.u32 %v2938_v63, 16 }
 0x4db   :  { %v2016_v57 = vadd.s32 %v2015_v38, %v2013_v19  ;;  %2263 = vmin.xlane.f32.xlu1 %v16144_v4  ;;  %v16155_v38 = vld [vmem:[#allocation97_spill] sm:$0xff]  ;;  %v2953_v19 = vshll.u32 %v2952_v58, 16  ;;  %vm3185_vm8 = vcmp.eq.f32.partialorder %v16165_v62, %v12661_v51  ;;  %v2084_v0 = vcvt.f32.s32 %v16166_v46  ;;  %v4324_v62 = vld [vmem:[#allocation3 + $0x298] sm:$0xff] }
 0x4dc   :  { %v2908_v55 = vpop.xlane.xlu1 %2907  ;;  %vm3199_vm10 = vcmp.eq.f32.partialorder %v16155_v38, %v12672_v14  ;;  %v2043_v42 = vshll.u32 %v2042_v48, 16  ;;  %v4321_v38 = vld [vmem:[#allocation3 + $0x280] sm:$0xff] }
 0x4dd   :  { %v4383_v18 = vsel %vm16149_vm4, %v2016_v57, %v4255_v50  ;;  %v2909_v59 = vcvt.f32.s32 %v2908_v55  ;;  %v6436_v12 = vld [vmem:[#allocation3 + $0x78] sm:$0xff]  ;;  %v3200_v55 = vsel %vm3199_vm10, %v3195_v17, inf }
 0x4de   :  { %4511 = vst.msk [vmem:[#allocation3 + $0x70] sm:$0xff] %vm47_vm0, %v4383_v18  ;;  %6595 = vperm.xlu0 %7686, %v6436_v12   ;;  %v16158_v50 = vld [vmem:[#allocation183_spill] sm:$0xff]  ;;  %v16161_v18 = vld [vmem:[#allocation193_spill] sm:$0xff] }
 0x4df   :  { %v2912_v33 = vadd.s32 %v2911_v29, %v2909_v59  ;;  %3159 = vmin.xlane.f32.xlu1 %v3158_v16  ;;  %vm16159_vm6 = vcmp.lt.f32.partialorder %v16157_v34, %v16158_v50  ;;  %v3179_v29 = vand.u32 65535, %v16160_v23  ;;  %v16162_v59 = vld [vmem:[#allocation189_spill] sm:$0xff]  ;;  %v12693_v16 = vpop.xlane.xlu0 %3211  ;;  %v2085_v50 = vshll.u32 %v2084_v0, 16  ;;  %v16180_v0 = vld [vmem:[#allocation342_spill] sm:$0xff] }
 0x4e0   :  { %v2054_v20 = vpop.xlane.xlu1 %2053  ;;  %vm16163_vm2 = vcmp.lt.f32.partialorder %v16161_v18, %v16162_v59  ;;  %v16176_v59 = vld [vmem:[#allocation345_spill] sm:$0xff] }
 0x4e1   :  { %v4447_v61 = vsel %vm16153_vm11, %v2912_v33, %v4319_v56  ;;  %v2055_v35 = vcvt.f32.s32 %v2054_v20  ;;  %v4257_v33 = vld [vmem:[#allocation3 + $0x80] sm:$0xff]  ;;  %v3181_v58 = vcvt.s32.f32 %v3179_v29  ;;  %v16174_v29 = vld [vmem:[#allocation43_spill] sm:$0xff] }
 0x4e2   :  { %4575 = vst.msk [vmem:[#allocation3 + $0x270] sm:$0xff] %vm47_vm0, %v4447_v61  ;;  %v16167_v61 = vld [vmem:[#allocation188_spill] sm:$0xff] }
 0x4e3   :  { %v2058_v39 = vadd.s32 %v2057_v15, %v2055_v35  ;;  %2305 = vmin.xlane.f32.xlu1 %v16154_v52  ;;  %v16168_v35 = vld [vmem:[#allocation184_spill] sm:$0xff]  ;;  %v12704_v24 = vpop.xlane.xlu0 %3225 }
 0x4e4   :  { %v2950_v32 = vpop.xlane.xlu1 %2949  ;;  %vm16169_vm1 = vcmp.lt.f32.partialorder %v16167_v61, %v16168_v35  ;;  %v2966_v35 = vcvt.f32.s32 %v12459_v36 }
 0x4e5   :  { %v4386_v57 = vsel %vm16159_vm6, %v2058_v39, %v4258_v22  ;;  %v2951_v4 = vcvt.f32.s32 %v2950_v32  ;;  %v3186_v32 = vsel %vm3185_vm8, %v3181_v58, inf }
 0x4e6   :  { %4514 = vst.msk [vmem:[#allocation3 + $0x88] sm:$0xff] %vm47_vm0, %v4386_v57  ;;  %v2980_v57 = vcvt.f32.s32 %v12464_v54  ;;  %v16177_v54 = vld [vmem:[#allocation199_spill] sm:$0xff] }
 0x4e7   :  { %v2954_v8 = vadd.s32 %v2953_v19, %v2951_v4  ;;  %3201 = vmin.xlane.f32.xlu1 %v3200_v55  ;;  %v16170_v19 = vld [vmem:[#allocation352_spill] sm:$0xff]  ;;  %v16171_v4 = vld [vmem:[#allocation194_spill] sm:$0xff] }
 0x4e8   :  { %v2040_v53 = vpop.xlane.xlu1 %2039  ;;  %v3221_v34 = vand.u32 65535, %v16170_v19  ;;  %v16184_v19 = vld [vmem:[#allocation100_spill] sm:$0xff] }
 0x4e9   :  { %v4450_v12 = vsel %vm16163_vm2, %v2954_v8, %v4322_v26  ;;  %v2041_v56 = vcvt.f32.s32 %v2040_v53  ;;  %v16172_v26 = vld [vmem:[#allocation190_spill] sm:$0xff]  ;;  %v4260_v53 = vld [vmem:[#allocation3 + $0x98] sm:$0xff] }
 0x4ea   :  { %4578 = vst.msk [vmem:[#allocation3 + $0x288] sm:$0xff] %vm47_vm0, %v4450_v12  ;;  %vm16173_vm7 = vcmp.lt.f32.partialorder %v16171_v4, %v16172_v26  ;;  %v3223_v18 = vcvt.s32.f32 %v3221_v34  ;;  %v2070_v12 = vcvt.f32.s32 %v16176_v59  ;;  %v16185_v34 = vld [vmem:[#allocation362_spill] sm:$0xff]  ;;  %v2967_v26 = vshll.u32 %v2966_v35, 16 }
 0x4eb   :  { %v2044_v20 = vadd.s32 %v2043_v42, %v2041_v56  ;;  %2291 = vmin.xlane.f32.xlu1 %v16164_v7  ;;  %v16175_v42 = vld [vmem:[#allocation108_spill] sm:$0xff]  ;;  %v2981_v56 = vshll.u32 %v2980_v57, 16  ;;  %vm3213_vm3 = vcmp.eq.f32.partialorder %v16185_v34, %v12693_v16  ;;  %v16186_v4 = vld [vmem:[#allocation350_spill] sm:$0xff]  ;;  %v4326_v34 = vld [vmem:[#allocation3 + $0x2a8] sm:$0xff] }
 0x4ec   :  { %v2936_v15 = vpop.xlane.xlu1 %2935  ;;  %vm3227_vm12 = vcmp.eq.f32.partialorder %v16175_v42, %v12704_v24  ;;  %v2071_v61 = vshll.u32 %v2070_v12, 16  ;;  %v2112_v36 = vcvt.f32.s32 %v16186_v4  ;;  %v4323_v42 = vld [vmem:[#allocation3 + $0x290] sm:$0xff] }
 0x4ed   :  { %v4385_v22 = vsel %vm16169_vm1, %v2044_v20, %v4257_v33  ;;  %v2937_v39 = vcvt.f32.s32 %v2936_v15  ;;  %v6438_v52 = vld [vmem:[#allocation3 + $0x88] sm:$0xff]  ;;  %v16178_v33 = vld [vmem:[#allocation195_spill] sm:$0xff]  ;;  %v3228_v15 = vsel %vm3227_vm12, %v3223_v18, inf }
 0x4ee   :  { %4513 = vst.msk [vmem:[#allocation3 + $0x80] sm:$0xff] %vm47_vm0, %v4385_v22  ;;  %6601 = vperm.xlu0 %7686, %v6438_v52   ;;  %vm16179_vm9 = vcmp.lt.f32.partialorder %v16177_v54, %v16178_v33  ;;  %v16181_v22 = vld [vmem:[#allocation204_spill] sm:$0xff]  ;;  %v2113_v33 = vshll.u32 %v2112_v36, 16  ;;  %v16200_v36 = vld [vmem:[#allocation109_spill] sm:$0xff] }
 0x4ef   :  { %v2940_v17 = vadd.s32 %v2939_v27, %v2937_v39  ;;  %3187 = vmin.xlane.f32.xlu1 %v3186_v32  ;;  %v3207_v27 = vand.u32 65535, %v16180_v0  ;;  %v16182_v39 = vld [vmem:[#allocation201_spill] sm:$0xff]  ;;  %v12725_v32 = vpop.xlane.xlu0 %3239 }
 0x4f0   :  { %v2082_v48 = vpop.xlane.xlu1 %2081  ;;  %vm16183_vm13 = vcmp.lt.f32.partialorder %v16181_v22, %v16182_v39  ;;  %v16196_v39 = vld [vmem:[#allocation355_spill] sm:$0xff] }
 0x4f1   :  { %v4449_v55 = vsel %vm16173_vm7, %v2940_v17, %v4321_v38  ;;  %v2083_v8 = vcvt.f32.s32 %v2082_v48  ;;  %v4259_v17 = vld [vmem:[#allocation3 + $0x90] sm:$0xff]  ;;  %v3209_v57 = vcvt.s32.f32 %v3207_v27  ;;  %v16194_v27 = vld [vmem:[#allocation99_spill] sm:$0xff] }
 0x4f2   :  { %4577 = vst.msk [vmem:[#allocation3 + $0x280] sm:$0xff] %vm47_vm0, %v4449_v55  ;;  %v16187_v55 = vld [vmem:[#allocation200_spill] sm:$0xff] }
 0x4f3   :  { %v2086_v23 = vadd.s32 %v2085_v50, %v2083_v8  ;;  %2333 = vmin.xlane.f32.xlu1 %v16174_v29  ;;  %v16188_v8 = vld [vmem:[#allocation196_spill] sm:$0xff]  ;;  %v12736_v59 = vpop.xlane.xlu0 %3253 }
 0x4f4   :  { %v2978_v63 = vpop.xlane.xlu1 %2977  ;;  %vm16189_vm5 = vcmp.lt.f32.partialorder %v16187_v55, %v16188_v8  ;;  %v2994_v8 = vcvt.f32.s32 %v12471_v6  ;;  %v16207_v6 = vld [vmem:[#allocation210_spill] sm:$0xff] }
 0x4f5   :  { %v4388_v20 = vsel %vm16179_vm9, %v2086_v23, %v4260_v53  ;;  %v2979_v7 = vcvt.f32.s32 %v2978_v63  ;;  %v3214_v63 = vsel %vm3213_vm3, %v3209_v57, inf }
 0x4f6   :  { %4516 = vst.msk [vmem:[#allocation3 + $0x98] sm:$0xff] %vm47_vm0, %v4388_v20  ;;  %v3008_v20 = vcvt.f32.s32 %v12476_v11  ;;  %v16197_v11 = vld [vmem:[#allocation209_spill] sm:$0xff] }
 0x4f7   :  { %v2982_v58 = vadd.s32 %v2981_v56, %v2979_v7  ;;  %3229 = vmin.xlane.f32.xlu1 %v3228_v15  ;;  %v16190_v56 = vld [vmem:[#allocation370_spill] sm:$0xff]  ;;  %v16191_v7 = vld [vmem:[#allocation205_spill] sm:$0xff] }
 0x4f8   :  { %v2068_v46 = vpop.xlane.xlu1 %2067  ;;  %v3249_v54 = vand.u32 65535, %v16190_v56  ;;  %v16205_v56 = vld [vmem:[#allocation377_spill] sm:$0xff] }
 0x4f9   :  { %v4452_v52 = vsel %vm16183_vm13, %v2982_v58, %v4324_v62  ;;  %v2069_v38 = vcvt.f32.s32 %v2068_v46  ;;  %v16192_v62 = vld [vmem:[#allocation202_spill] sm:$0xff]  ;;  %v4262_v46 = vld [vmem:[#allocation3 + $0xa8] sm:$0xff]  ;;  %vm3241_vm10 = vcmp.eq.f32.partialorder %v16205_v56, %v12725_v32 }
 0x4fa   :  { %4580 = vst.msk [vmem:[#allocation3 + $0x298] sm:$0xff] %vm47_vm0, %v4452_v52  ;;  %vm16193_vm14 = vcmp.lt.f32.partialorder %v16191_v7, %v16192_v62  ;;  %v3251_v22 = vcvt.s32.f32 %v3249_v54  ;;  %v2098_v52 = vcvt.f32.s32 %v16196_v39  ;;  %v2995_v62 = vshll.u32 %v2994_v8, 16  ;;  %v16220_v56 = vld [vmem:[#allocation390_spill] sm:$0xff] }
 0x4fb   :  { %v2072_v48 = vadd.s32 %v2071_v61, %v2069_v38  ;;  %2319 = vmin.xlane.f32.xlu1 %v16184_v19  ;;  %v16195_v61 = vld [vmem:[#allocation239_spill] sm:$0xff]  ;;  %v3009_v38 = vshll.u32 %v3008_v20, 16  ;;  %v16206_v20 = vld [vmem:[#allocation360_spill] sm:$0xff] }
 0x4fc   :  { %v2964_v50 = vpop.xlane.xlu1 %2963  ;;  %vm3255_vm15 = vcmp.eq.f32.partialorder %v16195_v61, %v12736_v59  ;;  %v2099_v55 = vshll.u32 %v2098_v52, 16  ;;  %v2140_v7 = vcvt.f32.s32 %v16206_v20  ;;  %v3036_v52 = vcvt.f32.s32 %v12488_v5  ;;  %v16216_v5 = vld [vmem:[#allocation219_spill] sm:$0xff] }
 0x4fd   :  { %v4387_v53 = vsel %vm16189_vm5, %v2072_v48, %v4259_v17  ;;  %v2965_v23 = vcvt.f32.s32 %v2964_v50  ;;  %v6440_v29 = vld [vmem:[#allocation3 + $0x98] sm:$0xff]  ;;  %v16198_v17 = vld [vmem:[#allocation206_spill] sm:$0xff]  ;;  %v3256_v50 = vsel %vm3255_vm15, %v3251_v22, inf }
 0x4fe   :  { %4515 = vst.msk [vmem:[#allocation3 + $0x90] sm:$0xff] %vm47_vm0, %v4387_v53  ;;  %6607 = vperm.xlu0 %7686, %v6440_v29   ;;  %vm16199_vm4 = vcmp.lt.f32.partialorder %v16197_v11, %v16198_v17  ;;  %v16201_v53 = vld [vmem:[#allocation214_spill] sm:$0xff]  ;;  %v2141_v39 = vshll.u32 %v2140_v7, 16  ;;  %v16211_v11 = vld [vmem:[#allocation212_spill] sm:$0xff]  ;;  %v3022_v7 = vcvt.f32.s32 %v12483_v37 }
 0x4ff   :  { %v2968_v18 = vadd.s32 %v2967_v26, %v2965_v23  ;;  %3215 = vmin.xlane.f32.xlu1 %v3214_v63  ;;  %v3235_v26 = vand.u32 65535, %v16200_v36  ;;  %v16202_v23 = vld [vmem:[#allocation211_spill] sm:$0xff]  ;;  %v4261_v63 = vld [vmem:[#allocation3 + $0xa0] sm:$0xff]  ;;  %v16214_v36 = vld [vmem:[#allocation382_spill] sm:$0xff] }
 0x500   :  { %v2110_v12 = vpop.xlane.xlu1 %2109  ;;  %vm16203_vm11 = vcmp.lt.f32.partialorder %v16201_v53, %v16202_v23  ;;  %v3037_v53 = vshll.u32 %v3036_v52, 16  ;;  %v16217_v23 = vld [vmem:[#allocation216_spill] sm:$0xff] }
 0x501   :  { %v4451_v15 = vsel %vm16193_vm14, %v2968_v18, %v4323_v42  ;;  %v2111_v58 = vcvt.f32.s32 %v2110_v12  ;;  %v16204_v12 = vld [vmem:[#allocation47_spill] sm:$0xff]  ;;  %vm16218_vm8 = vcmp.lt.f32.partialorder %v16216_v5, %v16217_v23  ;;  %v16225_v52 = vld [vmem:[#allocation220_spill] sm:$0xff]  ;;  %v4266_v5 = vld [vmem:[#allocation3 + $0xc8] sm:$0xff] }
 0x502   :  { %4579 = vst.msk [vmem:[#allocation3 + $0x290] sm:$0xff] %vm47_vm0, %v4451_v15  ;;  %v16208_v15 = vld [vmem:[#allocation207_spill] sm:$0xff] }
 0x503   :  { %v2114_v0 = vadd.s32 %v2113_v33, %v2111_v58  ;;  %2361 = vmin.xlane.f32.xlu1 %v16194_v27  ;;  %v3237_v33 = vcvt.s32.f32 %v3235_v26  ;;  %vm16209_vm6 = vcmp.lt.f32.partialorder %v16207_v6, %v16208_v15  ;;  %v4325_v27 = vld [vmem:[#allocation3 + $0x2a0] sm:$0xff]  ;;  %v3263_v26 = vand.u32 65535, %v16214_v36  ;;  %v16222_v6 = vld [vmem:[#allocation221_spill] sm:$0xff] }
 0x504   :  { %v3006_v35 = vpop.xlane.xlu1 %3005  ;;  %v3064_v36 = vcvt.f32.s32 %v12512_v1 }
 0x505   :  { %v4390_v48 = vsel %vm16199_vm4, %v2114_v0, %v4262_v46  ;;  %v3007_v19 = vcvt.f32.s32 %v3006_v35  ;;  %v3242_v61 = vsel %vm3241_vm10, %v3237_v33, inf  ;;  %v3265_v33 = vcvt.s32.f32 %v3263_v26  ;;  %v16229_v26 = vld [vmem:[#allocation225_spill] sm:$0xff] }
 0x506   :  { %4518 = vst.msk [vmem:[#allocation3 + $0xa8] sm:$0xff] %vm47_vm0, %v4390_v48 }
 0x507   :  { %v3010_v57 = vadd.s32 %v3009_v38, %v3007_v19  ;;  %3257 = vmin.xlane.f32.xlu1 %v3256_v50  ;;  %v16210_v38 = vld [vmem:[#allocation215_spill] sm:$0xff]  ;;  %v16213_v50 = vld [vmem:[#allocation101_spill] sm:$0xff] }
 0x508   :  { %v2096_v4 = vpop.xlane.xlu1 %2095  ;;  %vm16212_vm2 = vcmp.lt.f32.partialorder %v16210_v38, %v16211_v11  ;;  %v4264_v19 = vld [vmem:[#allocation3 + $0xb8] sm:$0xff]  ;;  %v16226_v38 = vld [vmem:[#allocation217_spill] sm:$0xff] }
 0x509   :  { %v4454_v29 = vsel %vm16203_vm11, %v3010_v57, %v4326_v34  ;;  %v2097_v42 = vcvt.f32.s32 %v2096_v4  ;;  %v12772_v57 = vpop.xlane.xlu0 %3267  ;;  %vm16227_vm12 = vcmp.lt.f32.partialorder %v16225_v52, %v16226_v38  ;;  %v16242_v38 = vld [vmem:[#allocation387_spill] sm:$0xff] }
 0x50a   :  { %4582 = vst.msk [vmem:[#allocation3 + $0x2a8] sm:$0xff] %vm47_vm0, %v4454_v29  ;;  %vm3269_vm1 = vcmp.eq.f32.partialorder %v16220_v56, %v12772_v57  ;;  %v16234_v56 = vld [vmem:[#allocation229_spill] sm:$0xff] }
 0x50b   :  { %v2100_v18 = vadd.s32 %v2099_v55, %v2097_v42  ;;  %2347 = vmin.xlane.f32.xlu1 %v16204_v12  ;;  %v16215_v55 = vld [vmem:[#allocation367_spill] sm:$0xff] }
 0x50c   :  { %v2992_v54 = vpop.xlane.xlu1 %2991  ;;  %v2126_v8 = vcvt.f32.s32 %v16215_v55  ;;  %v16219_v12 = vld [vmem:[#allocation111_spill] sm:$0xff]  ;;  %v16230_v55 = vld [vmem:[#allocation222_spill] sm:$0xff] }
 0x50d   :  { %v4389_v58 = vsel %vm16209_vm6, %v2100_v18, %v4261_v63  ;;  %v2993_v46 = vcvt.f32.s32 %v2992_v54  ;;  %v6442_v0 = vld [vmem:[#allocation3 + $0xa8] sm:$0xff]  ;;  %v4328_v63 = vld [vmem:[#allocation3 + $0x2b8] sm:$0xff]  ;;  %vm16231_vm9 = vcmp.lt.f32.partialorder %v16229_v26, %v16230_v55 }
 0x50e   :  { %4517 = vst.msk [vmem:[#allocation3 + $0xa0] sm:$0xff] %vm47_vm0, %v4389_v58  ;;  %6613 = vperm.xlu0 %7686, %v6442_v0   ;;  %v2127_v20 = vshll.u32 %v2126_v8, 16  ;;  %v3270_v0 = vsel %vm3269_vm1, %v3265_v33, inf }
 0x50f   :  { %v2996_v35 = vadd.s32 %v2995_v62, %v2993_v46  ;;  %3243 = vmin.xlane.f32.xlu1 %v3242_v61  ;;  %v16221_v62 = vld [vmem:[#allocation224_spill] sm:$0xff]  ;;  %v4263_v46 = vld [vmem:[#allocation3 + $0xb0] sm:$0xff] }
 0x510   :  { %v2138_v22 = vpop.xlane.xlu1 %2137  ;;  %vm16223_vm7 = vcmp.lt.f32.partialorder %v16221_v62, %v16222_v6  ;;  %v16237_v62 = vld [vmem:[#allocation106_spill] sm:$0xff] }
 0x511   :  { %v4453_v17 = vsel %vm16212_vm2, %v2996_v35, %v4325_v27  ;;  %v2139_v48 = vcvt.f32.s32 %v2138_v22  ;;  %v16224_v35 = vld [vmem:[#allocation81_spill] sm:$0xff] }
 0x512   :  { %4581 = vst.msk [vmem:[#allocation3 + $0x2a0] sm:$0xff] %vm47_vm0, %v4453_v17  ;;  %v2168_v22 = vcvt.f32.s32 %v16224_v35  ;;  %v4265_v35 = vld [vmem:[#allocation3 + $0xc0] sm:$0xff] }
 0x513   :  { %v2142_v34 = vadd.s32 %v2141_v39, %v2139_v48  ;;  %2389 = vmin.xlane.f32.xlu1 %v16213_v50  ;;  %v3023_v39 = vshll.u32 %v3022_v7, 16  ;;  %v4327_v48 = vld [vmem:[#allocation3 + $0x2b0] sm:$0xff] }
 0x514   :  { %v3034_v4 = vpop.xlane.xlu1 %3033 }
 0x515   :  { %v4392_v29 = vsel %vm16218_vm8, %v2142_v34, %v4264_v19  ;;  %v3035_v42 = vcvt.f32.s32 %v3034_v4  ;;  %v16228_v34 = vld [vmem:[#allocation91_spill] sm:$0xff]  ;;  %v2169_v4 = vshll.u32 %v2168_v22, 16 }
 0x516   :  { %4520 = vst.msk [vmem:[#allocation3 + $0xb8] sm:$0xff] %vm47_vm0, %v4392_v29  ;;  %v16232_v29 = vld [vmem:[#allocation102_spill] sm:$0xff] }
 0x517   :  { %v3038_v18 = vadd.s32 %v3037_v53, %v3035_v42  ;;  %2375 = vmin.xlane.f32.xlu1 %v16219_v12  ;;  %v3065_v12 = vshll.u32 %v3064_v36, 16  ;;  %v16246_v36 = vld [vmem:[#allocation112_spill] sm:$0xff] }
 0x518   :  { %v2124_v54 = vpop.xlane.xlu1 %2123 }
 0x519   :  { %v4456_v15 = vsel %vm16223_vm7, %v3038_v18, %v4328_v63  ;;  %v2125_v58 = vcvt.f32.s32 %v2124_v54  ;;  %v16233_v63 = vld [vmem:[#allocation380_spill] sm:$0xff]  ;;  %v16235_v54 = vld [vmem:[#allocation226_spill] sm:$0xff] }
 0x51a   :  { %4584 = vst.msk [vmem:[#allocation3 + $0x2b8] sm:$0xff] %vm47_vm0, %v4456_v15  ;;  %v2154_v18 = vcvt.f32.s32 %v16233_v63  ;;  %vm16236_vm13 = vcmp.lt.f32.partialorder %v16234_v56, %v16235_v54  ;;  %v16251_v56 = vld [vmem:[#allocation28_spill] sm:$0xff] }
 0x51b   :  { %v2128_v27 = vadd.s32 %v2127_v20, %v2125_v58  ;;  %3271 = vmin.xlane.f32.xlu1 %v3270_v0  ;;  %v4330_v20 = vld [vmem:[#allocation3 + $0x2c8] sm:$0xff]  ;;  %v3050_v58 = vcvt.f32.s32 %v12501_v30  ;;  %v16239_v0 = vld [vmem:[#allocation231_spill] sm:$0xff]  ;;  %v2182_v54 = vcvt.f32.s32 %v16251_v56 }
 0x51c   :  { %v3020_v61 = vpop.xlane.xlu1 %3019  ;;  %v2155_v15 = vshll.u32 %v2154_v18, 16  ;;  %v16250_v18 = vld [vmem:[#allocation272_spill] sm:$0xff] }
 0x51d   :  { %v4391_v11 = vsel %vm16227_vm12, %v2128_v27, %v4263_v46  ;;  %v3021_v37 = vcvt.f32.s32 %v3020_v61  ;;  %v6444_v17 = vld [vmem:[#allocation3 + $0xb8] sm:$0xff]  ;;  %v16238_v46 = vld [vmem:[#allocation234_spill] sm:$0xff] }
 0x51e   :  { %4519 = vst.msk [vmem:[#allocation3 + $0xb0] sm:$0xff] %vm47_vm0, %v4391_v11  ;;  %6619 = vperm.xlu0 %7686, %v6444_v17   ;;  %vm16240_vm3 = vcmp.lt.f32.partialorder %v16238_v46, %v16239_v0  ;;  %v2196_v11 = vcvt.f32.s32 %v16242_v38  ;;  %v16243_v17 = vld [vmem:[#allocation230_spill] sm:$0xff]  ;;  %v2183_v46 = vshll.u32 %v2182_v54, 16  ;;  %v3078_v0 = vcvt.f32.s32 %v12533_v25  ;;  %v16268_v54 = vld [vmem:[#allocation63_spill] sm:$0xff] }
 0x51f   :  { %v3024_v19 = vadd.s32 %v3023_v39, %v3021_v37  ;;  %2417 = vmin.xlane.f32.xlu1 %v16228_v34  ;;  %v16241_v39 = vld [vmem:[#allocation103_spill] sm:$0xff]  ;;  %v3051_v37 = vshll.u32 %v3050_v58, 16  ;;  %v16259_v38 = vld [vmem:[#allocation282_spill] sm:$0xff] }
 0x520   :  { %v2166_v50 = vpop.xlane.xlu1 %2165  ;;  %v2197_v55 = vshll.u32 %v2196_v11, 16 }
 0x521   :  { %v4455_v8 = vsel %vm16231_vm9, %v3024_v19, %v4327_v48  ;;  %v2167_v53 = vcvt.f32.s32 %v2166_v50  ;;  %v16244_v48 = vld [vmem:[#allocation227_spill] sm:$0xff]  ;;  %v4329_v50 = vld [vmem:[#allocation3 + $0x2c0] sm:$0xff] }
 0x522   :  { %4583 = vst.msk [vmem:[#allocation3 + $0x2b0] sm:$0xff] %vm47_vm0, %v4455_v8  ;;  %vm16245_vm5 = vcmp.lt.f32.partialorder %v16243_v17, %v16244_v48  ;;  %v3092_v8 = vcvt.f32.s32 %v12544_v44  ;;  %v3079_v48 = vshll.u32 %v3078_v0, 16 }
 0x523   :  { %v2170_v23 = vadd.s32 %v2169_v4, %v2167_v53  ;;  %2403 = vmin.xlane.f32.xlu1 %v16232_v29  ;;  %v16247_v53 = vld [vmem:[#allocation235_spill] sm:$0xff] }
 0x524   :  { %v3062_v42 = vpop.xlane.xlu1 %3061 }
 0x525   :  { %v4394_v33 = vsel %vm16236_vm13, %v2170_v23, %v4266_v5  ;;  %v3063_v1 = vcvt.f32.s32 %v3062_v42  ;;  %v16248_v5 = vld [vmem:[#allocation232_spill] sm:$0xff]  ;;  %v4268_v42 = vld [vmem:[#allocation3 + $0xd8] sm:$0xff] }
 0x526   :  { %4522 = vst.msk [vmem:[#allocation3 + $0xc8] sm:$0xff] %vm47_vm0, %v4394_v33  ;;  %vm16249_vm14 = vcmp.lt.f32.partialorder %v16247_v53, %v16248_v5  ;;  %v3093_v33 = vshll.u32 %v3092_v8, 16  ;;  %v3120_v5 = vcvt.f32.s32 %v12576_v40 }
 0x527   :  { %v3066_v7 = vadd.s32 %v3065_v12, %v3063_v1  ;;  %2445 = vmin.xlane.f32.xlu1 %v16237_v62  ;;  %v16252_v1 = vld [vmem:[#allocation240_spill] sm:$0xff]  ;;  %v4332_v62 = vld [vmem:[#allocation3 + $0x2d8] sm:$0xff] }
 0x528   :  { %v2152_v6 = vpop.xlane.xlu1 %2151 }
 0x529   :  { %v4458_v27 = vsel %vm16240_vm3, %v3066_v7, %v4330_v20  ;;  %v2153_v61 = vcvt.f32.s32 %v2152_v6  ;;  %v16253_v20 = vld [vmem:[#allocation236_spill] sm:$0xff] }
 0x52a   :  { %4586 = vst.msk [vmem:[#allocation3 + $0x2c8] sm:$0xff] %vm47_vm0, %v4458_v27  ;;  %vm16254_vm15 = vcmp.lt.f32.partialorder %v16252_v1, %v16253_v20  ;;  %v16256_v27 = vld [vmem:[#allocation245_spill] sm:$0xff]  ;;  %v16269_v1 = vld [vmem:[#allocation402_spill] sm:$0xff] }
 0x52b   :  { %v2156_v22 = vadd.s32 %v2155_v15, %v2153_v61  ;;  %2431 = vmin.xlane.f32.xlu1 %v16241_v39  ;;  %v16255_v15 = vld [vmem:[#allocation277_spill] sm:$0xff]  ;;  %v16257_v61 = vld [vmem:[#allocation242_spill] sm:$0xff]  ;;  %v2210_v20 = vcvt.f32.s32 %v16269_v1 }
 0x52c   :  { %v3048_v52 = vpop.xlane.xlu1 %3047  ;;  %vm16258_vm4 = vcmp.lt.f32.partialorder %v16256_v27, %v16257_v61  ;;  %v4267_v39 = vld [vmem:[#allocation3 + $0xd0] sm:$0xff]  ;;  %v3106_v61 = vcvt.f32.s32 %v12565_v49 }
 0x52d   :  { %v4393_v19 = vsel %vm16245_vm5, %v2156_v22, %v4265_v35  ;;  %v3049_v30 = vcvt.f32.s32 %v3048_v52  ;;  %v6446_v34 = vld [vmem:[#allocation3 + $0xc8] sm:$0xff]  ;;  %v2211_v27 = vshll.u32 %v2210_v20, 16  ;;  %v16286_v20 = vld [vmem:[#allocation327_spill] sm:$0xff] }
 0x52e   :  { %4521 = vst.msk [vmem:[#allocation3 + $0xc0] sm:$0xff] %vm47_vm0, %v4393_v19  ;;  %6625 = vperm.xlu0 %7686, %v6446_v34   ;;  %v12837_v19 = vpop.xlane.xlu0 %3281  ;;  %v16262_v34 = vld [vmem:[#allocation237_spill] sm:$0xff] }
 0x52f   :  { %v3052_v4 = vadd.s32 %v3051_v37, %v3049_v30  ;;  %2473 = vmin.xlane.f32.xlu1 %v16246_v36  ;;  %v16260_v37 = vld [vmem:[#allocation411_spill] sm:$0xff]  ;;  %v16261_v30 = vld [vmem:[#allocation241_spill] sm:$0xff]  ;;  %v4331_v36 = vld [vmem:[#allocation3 + $0x2d0] sm:$0xff] }
 0x530   :  { %v2194_v26 = vpop.xlane.xlu1 %2193  ;;  %v2224_v17 = vcvt.f32.s32 %v16260_v37  ;;  %vm16263_vm11 = vcmp.lt.f32.partialorder %v16261_v30, %v16262_v34  ;;  %v16278_v30 = vld [vmem:[#allocation412_spill] sm:$0xff] }
 0x531   :  { %v4457_v23 = vsel %vm16249_vm14, %v3052_v4, %v4329_v50  ;;  %v2195_v29 = vcvt.f32.s32 %v2194_v26  ;;  %v2252_v34 = vcvt.f32.s32 %v16278_v30 }
 0x532   :  { %4585 = vst.msk [vmem:[#allocation3 + $0x2c0] sm:$0xff] %vm47_vm0, %v4457_v23  ;;  %v2225_v53 = vshll.u32 %v2224_v17, 16  ;;  %v16265_v23 = vld [vmem:[#allocation246_spill] sm:$0xff]  ;;  %v16277_v17 = vld [vmem:[#allocation75_spill] sm:$0xff] }
 0x533   :  { %v2198_v63 = vadd.s32 %v2197_v55, %v2195_v29  ;;  %2459 = vmin.xlane.f32.xlu1 %v16250_v18  ;;  %v16264_v55 = vld [vmem:[#allocation287_spill] sm:$0xff]  ;;  %v4270_v18 = vld [vmem:[#allocation3 + $0xe8] sm:$0xff] }
 0x534   :  { %v3090_v12 = vpop.xlane.xlu1 %3089  ;;  %v16266_v29 = vld [vmem:[#allocation243_spill] sm:$0xff] }
 0x535   :  { %v4396_v7 = vsel %vm16254_vm15, %v2198_v63, %v4268_v42  ;;  %v3091_v44 = vcvt.f32.s32 %v3090_v12  ;;  %vm16267_vm10 = vcmp.lt.f32.partialorder %v16265_v23, %v16266_v29  ;;  %v12849_v12 = vpop.xlane.xlu0 %3295  ;;  %v2253_v29 = vshll.u32 %v2252_v34, 16 }
 0x536   :  { %4524 = vst.msk [vmem:[#allocation3 + $0xd8] sm:$0xff] %vm47_vm0, %v4396_v7  ;;  %v3121_v7 = vshll.u32 %v3120_v5, 16  ;;  %v16282_v5 = vld [vmem:[#allocation317_spill] sm:$0xff] }
 0x537   :  { %v3094_v6 = vadd.s32 %v3093_v33, %v3091_v44  ;;  %2501 = vmin.xlane.f32.xlu1 %v16255_v15  ;;  %v16270_v44 = vld [vmem:[#allocation15_spill] sm:$0xff]  ;;  %v4334_v15 = vld [vmem:[#allocation3 + $0x2e8] sm:$0xff] }
 0x538   :  { %v2180_v58 = vpop.xlane.xlu1 %2179 }
 0x539   :  { %v4460_v35 = vsel %vm16258_vm4, %v3094_v6, %v4332_v62  ;;  %v2181_v22 = vcvt.f32.s32 %v2180_v58  ;;  %v16271_v62 = vld [vmem:[#allocation247_spill] sm:$0xff] }
 0x53a   :  { %4588 = vst.msk [vmem:[#allocation3 + $0x2d8] sm:$0xff] %vm47_vm0, %v4460_v35  ;;  %vm16272_vm6 = vcmp.lt.f32.partialorder %v16270_v44, %v16271_v62  ;;  %v12859_v35 = vpop.xlane.xlu0 %3309  ;;  %v16287_v44 = vld [vmem:[#allocation35_spill] sm:$0xff] }
 0x53b   :  { %v2184_v52 = vadd.s32 %v2183_v46, %v2181_v22  ;;  %2487 = vmin.xlane.f32.xlu1 %v16259_v38  ;;  %v16273_v46 = vld [vmem:[#allocation302_spill] sm:$0xff]  ;;  %v16274_v22 = vld [vmem:[#allocation17_spill] sm:$0xff]  ;;  %v2238_v62 = vcvt.f32.s32 %v16287_v44 }
 0x53c   :  { %v3076_v11 = vpop.xlane.xlu1 %3075  ;;  %v4274_v44 = vld [vmem:[#allocation3 + $0x108] sm:$0xff] }
 0x53d   :  { %v4395_v25 = vsel %vm16263_vm11, %v2184_v52, %v4267_v39  ;;  %v3077_v50 = vcvt.f32.s32 %v3076_v11  ;;  %v6448_v4 = vld [vmem:[#allocation3 + $0xd8] sm:$0xff]  ;;  %v16275_v39 = vld [vmem:[#allocation250_spill] sm:$0xff]  ;;  %v4269_v11 = vld [vmem:[#allocation3 + $0xe0] sm:$0xff] }
 0x53e   :  { %4523 = vst.msk [vmem:[#allocation3 + $0xd0] sm:$0xff] %vm47_vm0, %v4395_v25  ;;  %6631 = vperm.xlu0 %7686, %v6448_v4   ;;  %vm16276_vm2 = vcmp.lt.f32.partialorder %v16274_v22, %v16275_v39  ;;  %v3107_v25 = vshll.u32 %v3106_v61, 16  ;;  %v16280_v4 = vld [vmem:[#allocation248_spill] sm:$0xff]  ;;  %v2239_v39 = vshll.u32 %v2238_v62, 16 }
 0x53f   :  { %v3080_v26 = vadd.s32 %v3079_v48, %v3077_v50  ;;  %2529 = vmin.xlane.f32.xlu1 %v16264_v55  ;;  %v16279_v50 = vld [vmem:[#allocation249_spill] sm:$0xff]  ;;  %v4333_v55 = vld [vmem:[#allocation3 + $0x2e0] sm:$0xff] }
 0x540   :  { %v2222_v8 = vpop.xlane.xlu1 %2221  ;;  %vm16281_vm8 = vcmp.lt.f32.partialorder %v16279_v50, %v16280_v4  ;;  %v16291_v61 = vld [vmem:[#allocation84_spill] sm:$0xff] }
 0x541   :  { %v4459_v42 = vsel %vm16267_vm10, %v3080_v26, %v4331_v36  ;;  %v2223_v63 = vcvt.f32.s32 %v2222_v8  ;;  %v12871_v8 = vpop.xlane.xlu0 %3323  ;;  %v16296_v4 = vld [vmem:[#allocation40_spill] sm:$0xff] }
 0x542   :  { %4587 = vst.msk [vmem:[#allocation3 + $0x2d0] sm:$0xff] %vm47_vm0, %v4459_v42  ;;  %v3148_v42 = vcvt.f32.s32 %v12608_v9 }
 0x543   :  { %v2226_v56 = vadd.s32 %v2225_v53, %v2223_v63  ;;  %2515 = vmin.xlane.f32.xlu1 %v16268_v54  ;;  %v16283_v63 = vld [vmem:[#allocation252_spill] sm:$0xff] }
 0x544   :  { %v3118_v33 = vpop.xlane.xlu1 %3117 }
 0x545   :  { %v4398_v40 = vsel %vm16272_vm6, %v2226_v56, %v4270_v18  ;;  %v3119_v6 = vcvt.f32.s32 %v3118_v33  ;;  %v16284_v18 = vld [vmem:[#allocation251_spill] sm:$0xff] }
 0x546   :  { %4526 = vst.msk [vmem:[#allocation3 + $0xe8] sm:$0xff] %vm47_vm0, %v4398_v40  ;;  %vm16285_vm1 = vcmp.lt.f32.partialorder %v16283_v63, %v16284_v18  ;;  %v4272_v33 = vld [vmem:[#allocation3 + $0xf8] sm:$0xff]  ;;  %v3149_v40 = vshll.u32 %v3148_v42, 16  ;;  %v16300_v42 = vld [vmem:[#allocation96_spill] sm:$0xff] }
 0x547   :  { %v3122_v58 = vadd.s32 %v3121_v7, %v3119_v6  ;;  %2557 = vmin.xlane.f32.xlu1 %v16273_v46  ;;  %v12881_v6 = vpop.xlane.xlu0 %3337 }
 0x548   :  { %v2208_v0 = vpop.xlane.xlu1 %2207 }
 0x549   :  { %v4462_v52 = vsel %vm16276_vm2, %v3122_v58, %v4334_v15  ;;  %v2209_v38 = vcvt.f32.s32 %v2208_v0  ;;  %v16288_v15 = vld [vmem:[#allocation16_spill] sm:$0xff]  ;;  %v16289_v58 = vld [vmem:[#allocation253_spill] sm:$0xff]  ;;  %v4336_v0 = vld [vmem:[#allocation3 + $0x2f8] sm:$0xff] }
 0x54a   :  { %4590 = vst.msk [vmem:[#allocation3 + $0x2e8] sm:$0xff] %vm47_vm0, %v4462_v52  ;;  %vm16290_vm7 = vcmp.lt.f32.partialorder %v16288_v15, %v16289_v58  ;;  %v3134_v52 = vcvt.f32.s32 %v12597_v2  ;;  %v16305_v58 = vld [vmem:[#allocation89_spill] sm:$0xff] }
 0x54b   :  { %v2212_v37 = vadd.s32 %v2211_v27, %v2209_v38  ;;  %2543 = vmin.xlane.f32.xlu1 %v16277_v17  ;;  %v16292_v38 = vld [vmem:[#allocation18_spill] sm:$0xff]  ;;  %v12893_v30 = vpop.xlane.xlu0 %3351 }
 0x54c   :  { %v3104_v48 = vpop.xlane.xlu1 %3103 }
 0x54d   :  { %v4397_v49 = vsel %vm16281_vm8, %v2212_v37, %v4269_v11  ;;  %v3105_v36 = vcvt.f32.s32 %v3104_v48  ;;  %v6450_v26 = vld [vmem:[#allocation3 + $0xe8] sm:$0xff]  ;;  %v16293_v11 = vld [vmem:[#allocation256_spill] sm:$0xff]  ;;  %v4271_v48 = vld [vmem:[#allocation3 + $0xf0] sm:$0xff] }
 0x54e   :  { %4525 = vst.msk [vmem:[#allocation3 + $0xe0] sm:$0xff] %vm47_vm0, %v4397_v49  ;;  %6637 = vperm.xlu0 %7686, %v6450_v26   ;;  %vm16294_vm12 = vcmp.lt.f32.partialorder %v16292_v38, %v16293_v11  ;;  %v2280_v49 = vcvt.f32.s32 %v16296_v4  ;;  %v16297_v26 = vld [vmem:[#allocation255_spill] sm:$0xff]  ;;  %v4273_v4 = vld [vmem:[#allocation3 + $0x100] sm:$0xff] }
 0x54f   :  { %v3108_v53 = vadd.s32 %v3107_v25, %v3105_v36  ;;  %2585 = vmin.xlane.f32.xlu1 %v16282_v5  ;;  %v16295_v25 = vld [vmem:[#allocation86_spill] sm:$0xff]  ;;  %v3135_v36 = vshll.u32 %v3134_v52, 16  ;;  %v16309_v38 = vld [vmem:[#allocation375_spill] sm:$0xff] }
 0x550   :  { %v2250_v23 = vpop.xlane.xlu1 %2249  ;;  %v2281_v18 = vshll.u32 %v2280_v49, 16 }
 0x551   :  { %v4461_v56 = vsel %vm16285_vm1, %v3108_v53, %v4333_v55  ;;  %v2251_v54 = vcvt.f32.s32 %v2250_v23  ;;  %v16298_v55 = vld [vmem:[#allocation254_spill] sm:$0xff] }
 0x552   :  { %4589 = vst.msk [vmem:[#allocation3 + $0x2e0] sm:$0xff] %vm47_vm0, %v4461_v56  ;;  %vm16299_vm9 = vcmp.lt.f32.partialorder %v16297_v26, %v16298_v55  ;;  %v4335_v23 = vld [vmem:[#allocation3 + $0x2f0] sm:$0xff]  ;;  %v3176_v56 = vcvt.f32.s32 %v12640_v3  ;;  %v16314_v55 = vld [vmem:[#allocation92_spill] sm:$0xff] }
 0x553   :  { %v2254_v1 = vadd.s32 %v2253_v29, %v2251_v54  ;;  %2571 = vmin.xlane.f32.xlu1 %v16286_v20  ;;  %v12903_v54 = vpop.xlane.xlu0 %3365 }
 0x554   :  { %v3146_v7 = vpop.xlane.xlu1 %3145 }
 0x555   :  { %v4400_v9 = vsel %vm16290_vm7, %v2254_v1, %v4272_v33  ;;  %v3147_v46 = vcvt.f32.s32 %v3146_v7  ;;  %v16301_v33 = vld [vmem:[#allocation258_spill] sm:$0xff]  ;;  %v16302_v1 = vld [vmem:[#allocation257_spill] sm:$0xff] }
 0x556   :  { %4528 = vst.msk [vmem:[#allocation3 + $0xf8] sm:$0xff] %vm47_vm0, %v4400_v9  ;;  %vm16303_vm13 = vcmp.lt.f32.partialorder %v16301_v33, %v16302_v1  ;;  %v2266_v9 = vcvt.f32.s32 %v16305_v58  ;;  %v16318_v33 = vld [vmem:[#allocation418_spill] sm:$0xff] }
 0x557   :  { %v3150_v27 = vadd.s32 %v3149_v40, %v3147_v46  ;;  %2613 = vmin.xlane.f32.xlu1 %v16291_v61  ;;  %v16304_v40 = vld [vmem:[#allocation77_spill] sm:$0xff]  ;;  %v3177_v46 = vshll.u32 %v3176_v56, 16 }
 0x558   :  { %v2236_v22 = vpop.xlane.xlu1 %2235 }
 0x559   :  { %v4464_v37 = vsel %vm16294_vm12, %v3150_v27, %v4336_v0  ;;  %v2237_v17 = vcvt.f32.s32 %v2236_v22  ;;  %v16306_v0 = vld [vmem:[#allocation20_spill] sm:$0xff]  ;;  %v16307_v27 = vld [vmem:[#allocation259_spill] sm:$0xff]  ;;  %v4338_v22 = vld [vmem:[#allocation3 + $0x308] sm:$0xff] }
 0x55a   :  { %4592 = vst.msk [vmem:[#allocation3 + $0x2f8] sm:$0xff] %vm47_vm0, %v4464_v37  ;;  %vm16308_vm3 = vcmp.lt.f32.partialorder %v16306_v0, %v16307_v27  ;;  %v2267_v37 = vshll.u32 %v2266_v9, 16 }
 0x55b   :  { %v2240_v34 = vadd.s32 %v2239_v39, %v2237_v17  ;;  %2599 = vmin.xlane.f32.xlu1 %v16295_v25  ;;  %v12915_v39 = vpop.xlane.xlu0 %3379  ;;  %v3162_v17 = vcvt.f32.s32 %v12629_v60 }
 0x55c   :  { %v3132_v50 = vpop.xlane.xlu1 %3131 }
 0x55d   :  { %v4399_v2 = vsel %vm16299_vm9, %v2240_v34, %v4271_v48  ;;  %v3133_v53 = vcvt.f32.s32 %v3132_v50  ;;  %v6452_v5 = vld [vmem:[#allocation3 + $0xf8] sm:$0xff]  ;;  %v16311_v34 = vld [vmem:[#allocation262_spill] sm:$0xff] }
 0x55e   :  { %4527 = vst.msk [vmem:[#allocation3 + $0xf0] sm:$0xff] %vm47_vm0, %v4399_v2  ;;  %6643 = vperm.xlu0 %7686, %v6452_v5   ;;  %v16310_v48 = vld [vmem:[#allocation19_spill] sm:$0xff]  ;;  %v2308_v2 = vcvt.f32.s32 %v16314_v55 }
 0x55f   :  { %v3136_v29 = vadd.s32 %v3135_v36, %v3133_v53  ;;  %2641 = vmin.xlane.f32.xlu1 %v16300_v42  ;;  %vm16312_vm5 = vcmp.lt.f32.partialorder %v16310_v48, %v16311_v34  ;;  %v16313_v36 = vld [vmem:[#allocation417_spill] sm:$0xff]  ;;  %v3163_v53 = vshll.u32 %v3162_v17, 16  ;;  %v12925_v5 = vpop.xlane.xlu0 %3393 }
 0x560   :  { %v2278_v63 = vpop.xlane.xlu1 %2277  ;;  %v16327_v48 = vld [vmem:[#allocation21_spill] sm:$0xff] }
 0x561   :  { %v4463_v20 = vsel %vm16303_vm13, %v3136_v29, %v4335_v23  ;;  %v2279_v7 = vcvt.f32.s32 %v2278_v63  ;;  %v16315_v23 = vld [vmem:[#allocation261_spill] sm:$0xff]  ;;  %v16316_v29 = vld [vmem:[#allocation260_spill] sm:$0xff] }
 0x562   :  { %4591 = vst.msk [vmem:[#allocation3 + $0x2f0] sm:$0xff] %vm47_vm0, %v4463_v20  ;;  %vm16317_vm14 = vcmp.lt.f32.partialorder %v16315_v23, %v16316_v29  ;;  %v16319_v20 = vld [vmem:[#allocation23_spill] sm:$0xff]  ;;  %v16328_v34 = vld [vmem:[#allocation265_spill] sm:$0xff] }
 0x563   :  { %v2282_v62 = vadd.s32 %v2281_v18, %v2279_v7  ;;  %2627 = vmin.xlane.f32.xlu1 %v16304_v40  ;;  %v4337_v18 = vld [vmem:[#allocation3 + $0x300] sm:$0xff]  ;;  %v3277_v7 = vand.u32 65535, %v16319_v20  ;;  %v12938_v0 = vpop.xlane.xlu0 %3407  ;;  %vm16329_vm11 = vcmp.lt.f32.partialorder %v16327_v48, %v16328_v34 }
 0x564   :  { %v3174_v15 = vpop.xlane.xlu1 %3173  ;;  %v16320_v40 = vld [vmem:[#allocation264_spill] sm:$0xff] }
 0x565   :  { %v4402_v3 = vsel %vm16308_vm3, %v2282_v62, %v4274_v44  ;;  %v3175_v61 = vcvt.f32.s32 %v3174_v15  ;;  %v2309_v44 = vshll.u32 %v2308_v2, 16  ;;  %v3204_v62 = vcvt.f32.s32 %v12672_v14  ;;  %v16321_v15 = vld [vmem:[#allocation263_spill] sm:$0xff] }
 0x566   :  { %4530 = vst.msk [vmem:[#allocation3 + $0x108] sm:$0xff] %vm47_vm0, %v4402_v3  ;;  %vm16322_vm15 = vcmp.lt.f32.partialorder %v16320_v40, %v16321_v15  ;;  %v16323_v3 = vld [vmem:[#allocation419_spill] sm:$0xff]  ;;  %v16336_v15 = vld [vmem:[#allocation421_spill] sm:$0xff] }
 0x567   :  { %v3178_v52 = vadd.s32 %v3177_v46, %v3175_v61  ;;  %2669 = vmin.xlane.f32.xlu1 %v16309_v38  ;;  %v4276_v46 = vld [vmem:[#allocation3 + $0x118] sm:$0xff]  ;;  %v3205_v17 = vshll.u32 %v3204_v62, 16 }
 0x568   :  { %v2264_v11 = vpop.xlane.xlu1 %2263  ;;  %v16324_v61 = vld [vmem:[#allocation131_spill] sm:$0xff] }
 0x569   :  { %v4466_v25 = vsel %vm16312_vm5, %v3178_v52, %v4338_v22  ;;  %v2265_v50 = vcvt.f32.s32 %v2264_v11  ;;  %vm3283_vm4 = vcmp.eq.f32.partialorder %v16324_v61, %v12837_v19  ;;  %v3279_v52 = vcvt.s32.f32 %v3277_v7  ;;  %v16325_v38 = vld [vmem:[#allocation395_spill] sm:$0xff]  ;;  %v16326_v11 = vld [vmem:[#allocation44_spill] sm:$0xff] }
 0x56a   :  { %4594 = vst.msk [vmem:[#allocation3 + $0x308] sm:$0xff] %vm47_vm0, %v4466_v25  ;;  %v3291_v14 = vand.u32 65535, %v16325_v38  ;;  %v4339_v38 = vld [vmem:[#allocation3 + $0x310] sm:$0xff] }
 0x56b   :  { %v2268_v49 = vadd.s32 %v2267_v37, %v2265_v50  ;;  %2655 = vmin.xlane.f32.xlu1 %v16313_v36  ;;  %v2294_v37 = vcvt.f32.s32 %v16326_v11 }
 0x56c   :  { %v3160_v26 = vpop.xlane.xlu1 %3159  ;;  %v3293_v2 = vcvt.s32.f32 %v3291_v14 }
 0x56d   :  { %v4401_v60 = vsel %vm16317_vm14, %v2268_v49, %v4273_v4  ;;  %v3161_v42 = vcvt.f32.s32 %v3160_v26  ;;  %v6454_v63 = vld [vmem:[#allocation3 + $0x108] sm:$0xff]  ;;  %v4340_v4 = vld [vmem:[#allocation3 + $0x318] sm:$0xff]  ;;  %v3284_v49 = vsel %vm3283_vm4, %v3279_v52, inf  ;;  %v16330_v26 = vld [vmem:[#allocation144_spill] sm:$0xff]  ;;  %v2295_v29 = vshll.u32 %v2294_v37, 16 }
 0x56e   :  { %4529 = vst.msk [vmem:[#allocation3 + $0x100] sm:$0xff] %vm47_vm0, %v4401_v60  ;;  %6649 = vperm.xlu0 %7686, %v6454_v63   ;;  %vm3297_vm10 = vcmp.eq.f32.partialorder %v16330_v26, %v12849_v12  ;;  %v3190_v60 = vcvt.f32.s32 %v12661_v51  ;;  %v16332_v63 = vld [vmem:[#allocation22_spill] sm:$0xff]  ;;  %v3319_v51 = vand.u32 65535, %v16336_v15  ;;  %v16344_v26 = vld [vmem:[#allocation269_spill] sm:$0xff] }
 0x56f   :  { %v3164_v56 = vadd.s32 %v3163_v53, %v3161_v42  ;;  %2697 = vmin.xlane.f32.xlu1 %v16318_v33  ;;  %v16331_v53 = vld [vmem:[#allocation420_spill] sm:$0xff]  ;;  %v12953_v42 = vpop.xlane.xlu0 %3421  ;;  %v3298_v20 = vsel %vm3297_vm10, %v3293_v2, inf }
 0x570   :  { %v2306_v1 = vpop.xlane.xlu1 %2305  ;;  %v3305_v23 = vand.u32 65535, %v16331_v53  ;;  %v3321_v34 = vcvt.s32.f32 %v3319_v51  ;;  %v4278_v53 = vld [vmem:[#allocation3 + $0x128] sm:$0xff] }
 0x571   :  { %v4465_v58 = vsel %vm16322_vm15, %v3164_v56, %v4337_v18  ;;  %v2307_v9 = vcvt.f32.s32 %v2306_v1  ;;  %v16333_v18 = vld [vmem:[#allocation268_spill] sm:$0xff]  ;;  %v4275_v1 = vld [vmem:[#allocation3 + $0x110] sm:$0xff]  ;;  %v4342_v51 = vld [vmem:[#allocation3 + $0x328] sm:$0xff] }
 0x572   :  { %4593 = vst.msk [vmem:[#allocation3 + $0x300] sm:$0xff] %vm47_vm0, %v4465_v58  ;;  %vm16334_vm6 = vcmp.lt.f32.partialorder %v16332_v63, %v16333_v18  ;;  %v3307_v40 = vcvt.s32.f32 %v3305_v23  ;;  %v16337_v58 = vld [vmem:[#allocation94_spill] sm:$0xff] }
 0x573   :  { %v2310_v27 = vadd.s32 %v2309_v44, %v2307_v9  ;;  %2683 = vmin.xlane.f32.xlu1 %v16323_v3  ;;  %v16335_v44 = vld [vmem:[#allocation143_spill] sm:$0xff]  ;;  %v2336_v9 = vcvt.f32.s32 %v16337_v58  ;;  %v16339_v3 = vld [vmem:[#allocation266_spill] sm:$0xff]  ;;  %v12967_v11 = vpop.xlane.xlu0 %3435 }
 0x574   :  { %v3202_v22 = vpop.xlane.xlu1 %3201  ;;  %vm3311_vm2 = vcmp.eq.f32.partialorder %v16335_v44, %v12859_v35  ;;  %v16349_v44 = vld [vmem:[#allocation24_spill] sm:$0xff] }
 0x575   :  { %v4404_v25 = vsel %vm16329_vm11, %v2310_v27, %v4276_v46  ;;  %v3203_v50 = vcvt.f32.s32 %v3202_v22  ;;  %v3191_v46 = vshll.u32 %v3190_v60, 16  ;;  %v16338_v27 = vld [vmem:[#allocation267_spill] sm:$0xff]  ;;  %v3312_v14 = vsel %vm3311_vm2, %v3307_v40, inf }
 0x576   :  { %4532 = vst.msk [vmem:[#allocation3 + $0x118] sm:$0xff] %vm47_vm0, %v4404_v25  ;;  %vm16340_vm8 = vcmp.lt.f32.partialorder %v16338_v27, %v16339_v3  ;;  %v16342_v25 = vld [vmem:[#allocation114_spill] sm:$0xff]  ;;  %v16346_v60 = vld [vmem:[#allocation155_spill] sm:$0xff] }
 0x577   :  { %v3206_v36 = vadd.s32 %v3205_v17, %v3203_v50  ;;  %3285 = vmin.xlane.f32.xlu1 %v3284_v49  ;;  %v16341_v17 = vld [vmem:[#allocation156_spill] sm:$0xff]  ;;  %v3333_v50 = vand.u32 65535, %v16342_v25  ;;  %v3232_v49 = vcvt.f32.s32 %v12704_v24  ;;  %vm3339_vm12 = vcmp.eq.f32.partialorder %v16346_v60, %v12881_v6  ;;  %v16361_v60 = vld [vmem:[#allocation274_spill] sm:$0xff] }
 0x578   :  { %v2292_v55 = vpop.xlane.xlu1 %2291  ;;  %vm3325_vm1 = vcmp.eq.f32.partialorder %v16341_v17, %v12871_v8 }
 0x579   :  { %v4468_v56 = vsel %vm16334_vm6, %v3206_v36, %v4340_v4  ;;  %v2293_v33 = vcvt.f32.s32 %v2292_v55  ;;  %v2337_v4 = vshll.u32 %v2336_v9, 16  ;;  %v16343_v36 = vld [vmem:[#allocation271_spill] sm:$0xff]  ;;  %v3326_v23 = vsel %vm3325_vm1, %v3321_v34, inf  ;;  %v4277_v34 = vld [vmem:[#allocation3 + $0x120] sm:$0xff] }
 0x57a   :  { %4596 = vst.msk [vmem:[#allocation3 + $0x318] sm:$0xff] %vm47_vm0, %v4468_v56  ;;  %vm16345_vm7 = vcmp.lt.f32.partialorder %v16343_v36, %v16344_v26  ;;  %v3335_v18 = vcvt.s32.f32 %v3333_v50  ;;  %v16347_v56 = vld [vmem:[#allocation125_spill] sm:$0xff]  ;;  %vm3409_vm6 = vcmp.eq.f32.partialorder %v12298_v13, %v12938_v0  ;;  %v16378_v13 = vld [vmem:[#allocation192_spill] sm:$0xff] }
 0x57b   :  { %v2296_v7 = vadd.s32 %v2295_v29, %v2293_v33  ;;  %3299 = vmin.xlane.f32.xlu1 %v3298_v20  ;;  %v3347_v33 = vand.u32 65535, %v16347_v56  ;;  %v3233_v20 = vshll.u32 %v3232_v49, 16  ;;  %v16357_v49 = vld [vmem:[#allocation167_spill] sm:$0xff] }
 0x57c   :  { %v3188_v62 = vpop.xlane.xlu1 %3187  ;;  %v3340_v58 = vsel %vm3339_vm12, %v3335_v18, inf  ;;  %vm3367_vm5 = vcmp.eq.f32.partialorder %v16357_v49, %v12903_v54  ;;  %v16371_v49 = vld [vmem:[#allocation26_spill] sm:$0xff] }
 0x57d   :  { %v4403_v61 = vsel %vm16340_vm8, %v2296_v7, %v4275_v1  ;;  %v3189_v22 = vcvt.f32.s32 %v3188_v62  ;;  %v6456_v52 = vld [vmem:[#allocation3 + $0x118] sm:$0xff]  ;;  %v16348_v1 = vld [vmem:[#allocation104_spill] sm:$0xff]  ;;  %v12981_v7 = vpop.xlane.xlu0 %3449  ;;  %v16350_v62 = vld [vmem:[#allocation273_spill] sm:$0xff]  ;;  %v3349_v3 = vcvt.s32.f32 %v3347_v33  ;;  %vm3423_vm8 = vcmp.eq.f32.partialorder %v16378_v13, %v12953_v42 }
 0x57e   :  { %4531 = vst.msk [vmem:[#allocation3 + $0x110] sm:$0xff] %vm47_vm0, %v4403_v61  ;;  %6655 = vperm.xlu0 %7686, %v6456_v52   ;;  %v2322_v24 = vcvt.f32.s32 %v16348_v1  ;;  %vm16351_vm9 = vcmp.lt.f32.partialorder %v16349_v44, %v16350_v62  ;;  %v16353_v61 = vld [vmem:[#allocation126_spill] sm:$0xff]  ;;  %v4341_v33 = vld [vmem:[#allocation3 + $0x320] sm:$0xff]  ;;  %v3274_v13 = vcvt.f32.s32 %v12772_v57 }
 0x57f   :  { %v3192_v37 = vadd.s32 %v3191_v46, %v3189_v22  ;;  %3313 = vmin.xlane.f32.xlu1 %v3312_v14  ;;  %v16352_v46 = vld [vmem:[#allocation168_spill] sm:$0xff]  ;;  %v3361_v22 = vand.u32 65535, %v16353_v61  ;;  %v16354_v14 = vld [vmem:[#allocation25_spill] sm:$0xff] }
 0x580   :  { %v2334_v48 = vpop.xlane.xlu1 %2333  ;;  %vm3353_vm13 = vcmp.eq.f32.partialorder %v16352_v46, %v12893_v30  ;;  %v2323_v52 = vshll.u32 %v2322_v24, 16  ;;  %v16365_v46 = vld [vmem:[#allocation281_spill] sm:$0xff] }
 0x581   :  { %v4467_v55 = vsel %vm16345_vm7, %v3192_v37, %v4339_v38  ;;  %v2335_v2 = vcvt.f32.s32 %v2334_v48  ;;  %v3218_v38 = vcvt.f32.s32 %v12693_v16  ;;  %v16355_v37 = vld [vmem:[#allocation278_spill] sm:$0xff]  ;;  %v3354_v25 = vsel %vm3353_vm13, %v3349_v3, inf  ;;  %v12995_v50 = vpop.xlane.xlu0 %3463 }
 0x582   :  { %4595 = vst.msk [vmem:[#allocation3 + $0x310] sm:$0xff] %vm47_vm0, %v4467_v55  ;;  %vm16356_vm3 = vcmp.lt.f32.partialorder %v16354_v14, %v16355_v37  ;;  %v3363_v26 = vcvt.s32.f32 %v3361_v22  ;;  %v16358_v55 = vld [vmem:[#allocation397_spill] sm:$0xff]  ;;  %v4280_v22 = vld [vmem:[#allocation3 + $0x138] sm:$0xff] }
 0x583   :  { %v2338_v29 = vadd.s32 %v2337_v4, %v2335_v2  ;;  %3327 = vmin.xlane.f32.xlu1 %v3326_v23  ;;  %v3375_v16 = vand.u32 65535, %v16358_v55  ;;  %v16359_v2 = vld [vmem:[#allocation48_spill] sm:$0xff]  ;;  %v3219_v23 = vshll.u32 %v3218_v38, 16  ;;  %v16368_v14 = vld [vmem:[#allocation413_spill] sm:$0xff] }
 0x584   :  { %v3230_v63 = vpop.xlane.xlu1 %3229  ;;  %v3368_v1 = vsel %vm3367_vm5, %v3363_v26, inf  ;;  %vm3395_vm11 = vcmp.eq.f32.partialorder %v16368_v14, %v12925_v5 }
 0x585   :  { %v4406_v40 = vsel %vm16351_vm9, %v2338_v29, %v4278_v53  ;;  %v3231_v15 = vcvt.f32.s32 %v3230_v63  ;;  %v2364_v53 = vcvt.f32.s32 %v16359_v2  ;;  %v16360_v29 = vld [vmem:[#allocation276_spill] sm:$0xff]  ;;  %v3377_v62 = vcvt.s32.f32 %v3375_v16  ;;  %v4344_v16 = vld [vmem:[#allocation3 + $0x338] sm:$0xff] }
 0x586   :  { %4534 = vst.msk [vmem:[#allocation3 + $0x128] sm:$0xff] %vm47_vm0, %v4406_v40  ;;  %vm16362_vm14 = vcmp.lt.f32.partialorder %v16360_v29, %v16361_v60  ;;  %v16364_v40 = vld [vmem:[#allocation137_spill] sm:$0xff] }
 0x587   :  { %v3234_v9 = vadd.s32 %v3233_v20, %v3231_v15  ;;  %3341 = vmin.xlane.f32.xlu1 %v3340_v58  ;;  %v16363_v20 = vld [vmem:[#allocation32_spill] sm:$0xff]  ;;  %v3389_v15 = vand.u32 65535, %v16364_v40  ;;  %v3260_v58 = vcvt.f32.s32 %v12736_v59 }
 0x588   :  { %v2320_v27 = vpop.xlane.xlu1 %2319  ;;  %vm3381_vm15 = vcmp.eq.f32.partialorder %v16363_v20, %v12915_v39 }
 0x589   :  { %v4470_v17 = vsel %vm16356_vm3, %v3234_v9, %v4342_v51  ;;  %v2321_v48 = vcvt.f32.s32 %v2320_v27  ;;  %v2365_v51 = vshll.u32 %v2364_v53, 16  ;;  %v13009_v9 = vpop.xlane.xlu0 %3477  ;;  %v16366_v27 = vld [vmem:[#allocation279_spill] sm:$0xff]  ;;  %vm3465_vm3 = vcmp.eq.f32.partialorder %v12346_v45, %v12995_v50  ;;  %v16400_v45 = vld [vmem:[#allocation150_spill] sm:$0xff] }
 0x58a   :  { %4598 = vst.msk [vmem:[#allocation3 + $0x328] sm:$0xff] %vm47_vm0, %v4470_v17  ;;  %vm16367_vm4 = vcmp.lt.f32.partialorder %v16365_v46, %v16366_v27  ;;  %v3391_v17 = vcvt.s32.f32 %v3389_v15  ;;  %v16379_v46 = vld [vmem:[#allocation138_spill] sm:$0xff] }
 0x58b   :  { %v2324_v4 = vadd.s32 %v2323_v52, %v2321_v48  ;;  %3355 = vmin.xlane.f32.xlu1 %v3354_v25  ;;  %v3382_v52 = vsel %vm3381_vm15, %v3377_v62, inf  ;;  %v16369_v48 = vld [vmem:[#allocation180_spill] sm:$0xff]  ;;  %v4279_v62 = vld [vmem:[#allocation3 + $0x130] sm:$0xff]  ;;  %v3431_v27 = vand.u32 65535, %v16379_v46 }
 0x58c   :  { %v3216_v36 = vpop.xlane.xlu1 %3215  ;;  %v3403_v59 = vand.u32 65535, %v16369_v48  ;;  %v3396_v2 = vsel %vm3395_vm11, %v3391_v17, inf  ;;  %v4343_v48 = vld [vmem:[#allocation3 + $0x330] sm:$0xff] }
 0x58d   :  { %v4405_v63 = vsel %vm16362_vm14, %v2324_v4, %v4277_v34  ;;  %v3217_v18 = vcvt.f32.s32 %v3216_v36  ;;  %v6458_v56 = vld [vmem:[#allocation3 + $0x128] sm:$0xff]  ;;  %v16370_v34 = vld [vmem:[#allocation95_spill] sm:$0xff]  ;;  %v3261_v4 = vshll.u32 %v3260_v58, 16  ;;  %v13023_v53 = vpop.xlane.xlu0 %3491  ;;  %vm3479_vm14 = vcmp.eq.f32.partialorder %v16400_v45, %v13009_v9 }
 0x58e   :  { %4533 = vst.msk [vmem:[#allocation3 + $0x120] sm:$0xff] %vm47_vm0, %v4405_v63  ;;  %6661 = vperm.xlu0 %7686, %v6458_v56   ;;  %v2350_v25 = vcvt.f32.s32 %v16370_v34  ;;  %v16372_v36 = vld [vmem:[#allocation283_spill] sm:$0xff]  ;;  %v3405_v60 = vcvt.s32.f32 %v3403_v59 }
 0x58f   :  { %v3220_v24 = vadd.s32 %v3219_v23, %v3217_v18  ;;  %3369 = vmin.xlane.f32.xlu1 %v3368_v1  ;;  %vm16373_vm10 = vcmp.lt.f32.partialorder %v16371_v49, %v16372_v36  ;;  %v16374_v63 = vld [vmem:[#allocation179_spill] sm:$0xff]  ;;  %v16375_v1 = vld [vmem:[#allocation29_spill] sm:$0xff]  ;;  %v3433_v49 = vcvt.s32.f32 %v3431_v27 }
 0x590   :  { %v2362_v44 = vpop.xlane.xlu1 %2361  ;;  %v3417_v18 = vand.u32 65535, %v16374_v63  ;;  %v2351_v56 = vshll.u32 %v2350_v25, 16  ;;  %v3410_v40 = vsel %vm3409_vm6, %v3405_v60, inf  ;;  %v16384_v25 = vld [vmem:[#allocation191_spill] sm:$0xff]  ;;  %v16385_v36 = vld [vmem:[#allocation405_spill] sm:$0xff] }
 0x591   :  { %v4469_v3 = vsel %vm16367_vm4, %v3220_v24, %v4341_v33  ;;  %v2363_v61 = vcvt.f32.s32 %v2362_v44  ;;  %v3246_v33 = vcvt.f32.s32 %v12725_v32  ;;  %v16376_v24 = vld [vmem:[#allocation288_spill] sm:$0xff]  ;;  %vm3437_vm7 = vcmp.eq.f32.partialorder %v16384_v25, %v12967_v11  ;;  %v16398_v25 = vld [vmem:[#allocation294_spill] sm:$0xff] }
 0x592   :  { %4597 = vst.msk [vmem:[#allocation3 + $0x320] sm:$0xff] %vm47_vm0, %v4469_v3  ;;  %vm16377_vm2 = vcmp.lt.f32.partialorder %v16375_v1, %v16376_v24  ;;  %v3419_v58 = vcvt.s32.f32 %v3417_v18  ;;  %v16380_v3 = vld [vmem:[#allocation105_spill] sm:$0xff]  ;;  %v16390_v24 = vld [vmem:[#allocation415_spill] sm:$0xff]  ;;  %vm3493_vm4 = vcmp.eq.f32.partialorder %v12372_v31, %v13023_v53  ;;  %v16411_v31 = vld [vmem:[#allocation72_spill] sm:$0xff] }
 0x593   :  { %v2366_v38 = vadd.s32 %v2365_v51, %v2363_v61  ;;  %3383 = vmin.xlane.f32.xlu1 %v3382_v52  ;;  %v2392_v32 = vcvt.f32.s32 %v16380_v3  ;;  %v3247_v61 = vshll.u32 %v3246_v33, 16  ;;  %v16381_v52 = vld [vmem:[#allocation286_spill] sm:$0xff]  ;;  %v4282_v18 = vld [vmem:[#allocation3 + $0x148] sm:$0xff]  ;;  %vm3451_vm9 = vcmp.eq.f32.partialorder %v16390_v24, %v12981_v7  ;;  %v4281_v3 = vld [vmem:[#allocation3 + $0x140] sm:$0xff] }
 0x594   :  { %v3258_v37 = vpop.xlane.xlu1 %3257  ;;  %v3424_v59 = vsel %vm3423_vm8, %v3419_v58, inf  ;;  %v16393_v58 = vld [vmem:[#allocation293_spill] sm:$0xff] }
 0x595   :  { %v4408_v26 = vsel %vm16373_vm10, %v2366_v38, %v4280_v22  ;;  %v3259_v55 = vcvt.f32.s32 %v3258_v37  ;;  %v13037_v22 = vpop.xlane.xlu0 %3505  ;;  %v16382_v38 = vld [vmem:[#allocation284_spill] sm:$0xff] }
 0x596   :  { %4536 = vst.msk [vmem:[#allocation3 + $0x138] sm:$0xff] %vm47_vm0, %v4408_v26  ;;  %vm16383_vm1 = vcmp.lt.f32.partialorder %v16381_v52, %v16382_v38  ;;  %v3445_v26 = vand.u32 65535, %v16385_v36  ;;  %v4345_v36 = vld [vmem:[#allocation3 + $0x340] sm:$0xff]  ;;  %vm3507_vm10 = vcmp.eq.f32.partialorder %v16411_v31, %v13037_v22  ;;  %v16424_v31 = vld [vmem:[#allocation314_spill] sm:$0xff] }
 0x597   :  { %v3262_v23 = vadd.s32 %v3261_v4, %v3259_v55  ;;  %3397 = vmin.xlane.f32.xlu1 %v3396_v2  ;;  %v2393_v55 = vshll.u32 %v2392_v32, 16 }
 0x598   :  { %v2348_v29 = vpop.xlane.xlu1 %2347 }
 0x599   :  { %v4472_v20 = vsel %vm16377_vm2, %v3262_v23, %v4344_v16  ;;  %v2349_v44 = vcvt.f32.s32 %v2348_v29  ;;  %v16386_v16 = vld [vmem:[#allocation90_spill] sm:$0xff]  ;;  %v16387_v23 = vld [vmem:[#allocation291_spill] sm:$0xff]  ;;  %v16388_v29 = vld [vmem:[#allocation289_spill] sm:$0xff]  ;;  %v13051_v33 = vpop.xlane.xlu0 %3519 }
 0x59a   :  { %4600 = vst.msk [vmem:[#allocation3 + $0x338] sm:$0xff] %vm47_vm0, %v4472_v20  ;;  %v2378_v2 = vcvt.f32.s32 %v16386_v16  ;;  %vm16389_vm12 = vcmp.lt.f32.partialorder %v16387_v23, %v16388_v29  ;;  %v16401_v23 = vld [vmem:[#allocation69_spill] sm:$0xff]  ;;  %vm3521_vm2 = vcmp.eq.f32.partialorder %v12394_v21, %v13051_v33 }
 0x59b   :  { %v2352_v15 = vadd.s32 %v2351_v56, %v2349_v44  ;;  %3411 = vmin.xlane.f32.xlu1 %v3410_v40  ;;  %v3438_v56 = vsel %vm3437_vm7, %v3433_v49, inf  ;;  %v3447_v44 = vcvt.s32.f32 %v3445_v26  ;;  %v3487_v29 = vand.u32 65535, %v16401_v23 }
 0x59c   :  { %v3244_v51 = vpop.xlane.xlu1 %3243 }
 0x59d   :  { %v4407_v14 = vsel %vm16383_vm1, %v2352_v15, %v4279_v62  ;;  %v3245_v37 = vcvt.f32.s32 %v3244_v51  ;;  %v6460_v17 = vld [vmem:[#allocation3 + $0x138] sm:$0xff]  ;;  %v16391_v62 = vld [vmem:[#allocation149_spill] sm:$0xff]  ;;  %v2379_v15 = vshll.u32 %v2378_v2, 16  ;;  %v16392_v51 = vld [vmem:[#allocation30_spill] sm:$0xff]  ;;  %v3452_v32 = vsel %vm3451_vm9, %v3447_v44, inf }
 0x59e   :  { %4535 = vst.msk [vmem:[#allocation3 + $0x130] sm:$0xff] %vm47_vm0, %v4407_v14  ;;  %6667 = vperm.xlu0 %7686, %v6460_v17   ;;  %v3459_v40 = vand.u32 65535, %v16391_v62  ;;  %vm16394_vm13 = vcmp.lt.f32.partialorder %v16392_v51, %v16393_v58  ;;  %v16395_v14 = vld [vmem:[#allocation203_spill] sm:$0xff]  ;;  %v3489_v58 = vcvt.s32.f32 %v3487_v29 }
 0x59f   :  { %v3248_v34 = vadd.s32 %v3247_v61, %v3245_v37  ;;  %3425 = vmin.xlane.f32.xlu1 %v3424_v59  ;;  %v3473_v37 = vand.u32 65535, %v16395_v14  ;;  %v16396_v17 = vld [vmem:[#allocation107_spill] sm:$0xff]  ;;  %v13065_v59 = vpop.xlane.xlu0 %3533 }
 0x5a0   :  { %v2390_v4 = vpop.xlane.xlu1 %2389  ;;  %v3461_v38 = vcvt.s32.f32 %v3459_v40  ;;  %v2420_v57 = vcvt.f32.s32 %v16396_v17  ;;  %v4284_v62 = vld [vmem:[#allocation3 + $0x158] sm:$0xff]  ;;  %v4283_v17 = vld [vmem:[#allocation3 + $0x150] sm:$0xff]  ;;  %vm3535_vm1 = vcmp.eq.f32.partialorder %v12408_v28, %v13065_v59  ;;  %v16426_v28 = vld [vmem:[#allocation76_spill] sm:$0xff] }
 0x5a1   :  { %v4471_v60 = vsel %vm16389_vm12, %v3248_v34, %v4343_v48  ;;  %v2391_v63 = vcvt.f32.s32 %v2390_v4  ;;  %v3275_v48 = vshll.u32 %v3274_v13, 16  ;;  %v16397_v34 = vld [vmem:[#allocation296_spill] sm:$0xff]  ;;  %v3475_v2 = vcvt.s32.f32 %v3473_v37 }
 0x5a2   :  { %4599 = vst.msk [vmem:[#allocation3 + $0x330] sm:$0xff] %vm47_vm0, %v4471_v60  ;;  %vm16399_vm5 = vcmp.lt.f32.partialorder %v16397_v34, %v16398_v25  ;;  %v3466_v26 = vsel %vm3465_vm3, %v3461_v38, inf  ;;  %v2421_v60 = vshll.u32 %v2420_v57, 16  ;;  %v16409_v38 = vld [vmem:[#allocation303_spill] sm:$0xff]  ;;  %v3494_v57 = vsel %vm3493_vm4, %v3489_v58, inf }
 0x5a3   :  { %v2394_v1 = vadd.s32 %v2393_v55, %v2391_v63  ;;  %3439 = vmin.xlane.f32.xlu1 %v3438_v56  ;;  %v16402_v63 = vld [vmem:[#allocation52_spill] sm:$0xff]  ;;  %v16403_v56 = vld [vmem:[#allocation301_spill] sm:$0xff]  ;;  %v3480_v40 = vsel %vm3479_vm14, %v3475_v2, inf }
 0x5a4   :  { %v2376_v20 = vpop.xlane.xlu1 %2375  ;;  %v16415_v2 = vld [vmem:[#allocation304_spill] sm:$0xff] }
 0x5a5   :  { %v4410_v46 = vsel %vm16394_vm13, %v2394_v1, %v4282_v18  ;;  %v2377_v27 = vcvt.f32.s32 %v2376_v20  ;;  %v2406_v18 = vcvt.f32.s32 %v16402_v63  ;;  %v16404_v1 = vld [vmem:[#allocation299_spill] sm:$0xff] }
 0x5a6   :  { %4538 = vst.msk [vmem:[#allocation3 + $0x148] sm:$0xff] %vm47_vm0, %v4410_v46  ;;  %vm16405_vm15 = vcmp.lt.f32.partialorder %v16403_v56, %v16404_v1  ;;  %v16406_v46 = vld [vmem:[#allocation213_spill] sm:$0xff] }
 0x5a7   :  { %v2380_v61 = vadd.s32 %v2379_v15, %v2377_v27  ;;  %3453 = vmin.xlane.f32.xlu1 %v3452_v32  ;;  %v13079_v15 = vpop.xlane.xlu0 %3547  ;;  %v3501_v27 = vand.u32 65535, %v16406_v46  ;;  %v16407_v32 = vld [vmem:[#allocation110_spill] sm:$0xff] }
 0x5a8   :  { %v3272_v52 = vpop.xlane.xlu1 %3271  ;;  %vm3549_vm12 = vcmp.eq.f32.partialorder %v16426_v28, %v13079_v15 }
 0x5a9   :  { %v4409_v4 = vsel %vm16399_vm5, %v2380_v61, %v4281_v3  ;;  %v3273_v49 = vcvt.f32.s32 %v3272_v52  ;;  %v2407_v3 = vshll.u32 %v2406_v18, 16  ;;  %v2448_v61 = vcvt.f32.s32 %v16407_v32  ;;  %v16408_v52 = vld [vmem:[#allocation34_spill] sm:$0xff] }
 0x5aa   :  { %4537 = vst.msk [vmem:[#allocation3 + $0x140] sm:$0xff] %vm47_vm0, %v4409_v4  ;;  %vm16410_vm11 = vcmp.lt.f32.partialorder %v16408_v52, %v16409_v38  ;;  %v3503_v25 = vcvt.s32.f32 %v3501_v27  ;;  %v16412_v4 = vld [vmem:[#allocation414_spill] sm:$0xff] }
 0x5ab   :  { %v3276_v55 = vadd.s32 %v3275_v48, %v3273_v49  ;;  %3467 = vmin.xlane.f32.xlu1 %v3466_v26  ;;  %v3515_v49 = vand.u32 65535, %v16412_v4  ;;  %v16413_v26 = vld [vmem:[#allocation51_spill] sm:$0xff]  ;;  %v13093_v45 = vpop.xlane.xlu0 %3561 }
 0x5ac   :  { %v2418_v16 = vpop.xlane.xlu1 %2417  ;;  %v3508_v63 = vsel %vm3507_vm10, %v3503_v25, inf  ;;  %v4288_v4 = vld [vmem:[#allocation3 + $0x178] sm:$0xff]  ;;  %vm3563_vm13 = vcmp.eq.f32.partialorder %v12432_v10, %v13093_v45 }
 0x5ad   :  { %v4473_v24 = vsel %vm16405_vm15, %v3276_v55, %v4345_v36  ;;  %v2419_v20 = vcvt.f32.s32 %v2418_v16  ;;  %v6462_v44 = vld [vmem:[#allocation3 + $0x148] sm:$0xff]  ;;  %v2449_v36 = vshll.u32 %v2448_v61, 16  ;;  %v2434_v55 = vcvt.f32.s32 %v16413_v26  ;;  %v16414_v16 = vld [vmem:[#allocation306_spill] sm:$0xff] }
 0x5ae   :  { %4601 = vst.msk [vmem:[#allocation3 + $0x340] sm:$0xff] %vm47_vm0, %v4473_v24  ;;  %6673 = vperm.xlu0 %7686, %v6462_v44   ;;  %vm16416_vm6 = vcmp.lt.f32.partialorder %v16414_v16, %v16415_v2  ;;  %v3517_v1 = vcvt.s32.f32 %v3515_v49  ;;  %v16417_v24 = vld [vmem:[#allocation161_spill] sm:$0xff] }
 0x5af   :  { %v2422_v13 = vadd.s32 %v2421_v60, %v2419_v20  ;;  %3481 = vmin.xlane.f32.xlu1 %v3480_v40  ;;  %v4286_v60 = vld [vmem:[#allocation3 + $0x168] sm:$0xff]  ;;  %v3529_v20 = vand.u32 65535, %v16417_v24  ;;  %v2435_v44 = vshll.u32 %v2434_v55, 16  ;;  %v13107_v61 = vpop.xlane.xlu0 %3575 }
 0x5b0   :  { %v2404_v51 = vpop.xlane.xlu1 %2403  ;;  %v3522_v32 = vsel %vm3521_vm2, %v3517_v1, inf  ;;  %vm3577_vm5 = vcmp.eq.f32.partialorder %v12440_v43, %v13107_v61 }
 0x5b1   :  { %v4412_v14 = vsel %vm16410_vm11, %v2422_v13, %v4284_v62  ;;  %v2405_v37 = vcvt.f32.s32 %v2404_v51  ;;  %v16418_v62 = vld [vmem:[#allocation115_spill] sm:$0xff]  ;;  %v16419_v13 = vld [vmem:[#allocation38_spill] sm:$0xff]  ;;  %v16420_v51 = vld [vmem:[#allocation313_spill] sm:$0xff]  ;;  %v3531_v38 = vcvt.s32.f32 %v3529_v20 }
 0x5b2   :  { %4540 = vst.msk [vmem:[#allocation3 + $0x158] sm:$0xff] %vm47_vm0, %v4412_v14  ;;  %v2476_v40 = vcvt.f32.s32 %v16418_v62  ;;  %vm16421_vm8 = vcmp.lt.f32.partialorder %v16419_v13, %v16420_v51  ;;  %v3543_v14 = vand.u32 65535, %v12400_v47  ;;  %v16427_v47 = vld [vmem:[#allocation223_spill] sm:$0xff]  ;;  %v4287_v20 = vld [vmem:[#allocation3 + $0x170] sm:$0xff]  ;;  %v3571_v51 = vand.u32 65535, %v12424_v41 }
 0x5b3   :  { %v2408_v48 = vadd.s32 %v2407_v3, %v2405_v37  ;;  %3495 = vmin.xlane.f32.xlu1 %v3494_v57  ;;  %v4285_v3 = vld [vmem:[#allocation3 + $0x160] sm:$0xff]  ;;  %v3536_v49 = vsel %vm3535_vm1, %v3531_v38, inf  ;;  %v3557_v16 = vand.u32 65535, %v16427_v47 }
 0x5b4   :  { %v2446_v34 = vpop.xlane.xlu1 %2445  ;;  %v2477_v37 = vshll.u32 %v2476_v40, 16  ;;  %v3545_v55 = vcvt.s32.f32 %v3543_v14  ;;  %v4290_v14 = vld [vmem:[#allocation3 + $0x188] sm:$0xff]  ;;  %v3573_v41 = vcvt.s32.f32 %v3571_v51  ;;  %v4289_v47 = vld [vmem:[#allocation3 + $0x180] sm:$0xff] }
 0x5b5   :  { %v4411_v23 = vsel %vm16416_vm6, %v2408_v48, %v4283_v17  ;;  %v2447_v29 = vcvt.f32.s32 %v2446_v34  ;;  %v16422_v17 = vld [vmem:[#allocation56_spill] sm:$0xff]  ;;  %v3559_v13 = vcvt.s32.f32 %v3557_v16 }
 0x5b6   :  { %4539 = vst.msk [vmem:[#allocation3 + $0x150] sm:$0xff] %vm47_vm0, %v4411_v23  ;;  %v2462_v57 = vcvt.f32.s32 %v16422_v17  ;;  %v16423_v48 = vld [vmem:[#allocation316_spill] sm:$0xff]  ;;  %v16428_v23 = vld [vmem:[#allocation55_spill] sm:$0xff]  ;;  %v3578_v43 = vsel %vm3577_vm5, %v3573_v41, inf }
 0x5b7   :  { %v2450_v18 = vadd.s32 %v2449_v36, %v2447_v29  ;;  %3509 = vmin.xlane.f32.xlu1 %v3508_v63  ;;  %vm16425_vm7 = vcmp.lt.f32.partialorder %v16423_v48, %v16424_v31  ;;  %v2504_v29 = vcvt.f32.s32 %v16428_v23  ;;  %v16429_v63 = vld [vmem:[#allocation42_spill] sm:$0xff] }
 0x5b8   :  { %v2432_v56 = vpop.xlane.xlu1 %2431  ;;  %v2463_v2 = vshll.u32 %v2462_v57, 16  ;;  %v16436_v57 = vld [vmem:[#allocation162_spill] sm:$0xff] }
 0x5b9   :  { %v4414_v58 = vsel %vm16421_vm8, %v2450_v18, %v4286_v60  ;;  %v2433_v46 = vcvt.f32.s32 %v2432_v56  ;;  %v6464_v27 = vld [vmem:[#allocation3 + $0x158] sm:$0xff]  ;;  %v13121_v60 = vpop.xlane.xlu0 %3589  ;;  %v3585_v48 = vand.u32 65535, %v16436_v57 }
 0x5ba   :  { %4542 = vst.msk [vmem:[#allocation3 + $0x168] sm:$0xff] %vm47_vm0, %v4414_v58  ;;  %6679 = vperm.xlu0 %7686, %v6464_v27   ;;  %v16430_v18 = vld [vmem:[#allocation323_spill] sm:$0xff]  ;;  %v2505_v58 = vshll.u32 %v2504_v29, 16 }
 0x5bb   :  { %v2436_v21 = vadd.s32 %v2435_v44, %v2433_v46  ;;  %3523 = vmin.xlane.f32.xlu1 %v3522_v32  ;;  %vm16431_vm9 = vcmp.lt.f32.partialorder %v16429_v63, %v16430_v18  ;;  %v3550_v44 = vsel %vm3549_vm12, %v3545_v55, inf  ;;  %v16432_v46 = vld [vmem:[#allocation60_spill] sm:$0xff]  ;;  %v16433_v32 = vld [vmem:[#allocation326_spill] sm:$0xff]  ;;  %v3587_v29 = vcvt.s32.f32 %v3585_v48 }
 0x5bc   :  { %v2474_v52 = vpop.xlane.xlu1 %2473  ;;  %v2490_v27 = vcvt.f32.s32 %v16432_v46  ;;  %v16442_v18 = vld [vmem:[#allocation64_spill] sm:$0xff] }
 0x5bd   :  { %v4413_v34 = vsel %vm16425_vm7, %v2436_v21, %v4285_v3  ;;  %v2475_v25 = vcvt.f32.s32 %v2474_v52  ;;  %v13131_v3 = vpop.permute.xlu0 %6550  ;;  %v16434_v21 = vld [vmem:[#allocation324_spill] sm:$0xff] }
 0x5be   :  { %4541 = vst.msk [vmem:[#allocation3 + $0x160] sm:$0xff] %vm47_vm0, %v4413_v34  ;;  %vm16435_vm3 = vcmp.lt.f32.partialorder %v16433_v32, %v16434_v21  ;;  %v2491_v31 = vshll.u32 %v2490_v27, 16  ;;  %v16437_v34 = vld [vmem:[#allocation59_spill] sm:$0xff]  ;;  %v16446_v27 = vld [vmem:[#allocation297_spill] sm:$0xff] }
 0x5bf   :  { %v2478_v36 = vadd.s32 %v2477_v37, %v2475_v25  ;;  %3537 = vmin.xlane.f32.xlu1 %v3536_v49  ;;  %v3564_v37 = vsel %vm3563_vm13, %v3559_v13, inf  ;;  %v2532_v25 = vcvt.f32.s32 %v16437_v34  ;;  %v16438_v49 = vld [vmem:[#allocation46_spill] sm:$0xff]  ;;  %v2560_v32 = vcvt.f32.s32 %v16446_v27  ;;  %v16459_v27 = vld [vmem:[#allocation356_spill] sm:$0xff] }
 0x5c0   :  { %v2460_v26 = vpop.xlane.xlu1 %2459 }
 0x5c1   :  { %v4416_v56 = vsel %vm16431_vm9, %v2478_v36, %v4288_v4  ;;  %v2461_v1 = vcvt.f32.s32 %v2460_v26  ;;  %v6466_v24 = vld [vmem:[#allocation3 + $0x168] sm:$0xff]  ;;  %v13141_v4 = vpop.permute.xlu0 %6577  ;;  %v2533_v63 = vshll.u32 %v2532_v25, 16  ;;  %v2561_v48 = vshll.u32 %v2560_v32, 16  ;;  %v16460_v32 = vld [vmem:[#allocation354_spill] sm:$0xff] }
 0x5c2   :  { %4544 = vst.msk [vmem:[#allocation3 + $0x178] sm:$0xff] %vm47_vm0, %v4416_v56  ;;  %6685 = vperm.xlu0 %7686, %v6466_v24   ;;  %v16439_v36 = vld [vmem:[#allocation333_spill] sm:$0xff]  ;;  %v2518_v56 = vcvt.f32.s32 %v16442_v18  ;;  %v16443_v24 = vld [vmem:[#allocation336_spill] sm:$0xff]  ;;  %vm16461_vm2 = vcmp.lt.f32.partialorder %v16459_v27, %v16460_v32  ;;  %v16470_v27 = vld [vmem:[#allocation347_spill] sm:$0xff] }
 0x5c3   :  { %v2464_v62 = vadd.s32 %v2463_v2, %v2461_v1  ;;  %3551 = vmin.xlane.f32.xlu1 %v3550_v44  ;;  %vm16440_vm14 = vcmp.lt.f32.partialorder %v16438_v49, %v16439_v36  ;;  %v16441_v2 = vld [vmem:[#allocation233_spill] sm:$0xff]  ;;  %v16451_v49 = vld [vmem:[#allocation346_spill] sm:$0xff]  ;;  %v16452_v36 = vld [vmem:[#allocation344_spill] sm:$0xff]  ;;  %v2644_v32 = vcvt.f32.s32 %v16470_v27 }
 0x5c4   :  { %v2502_v40 = vpop.xlane.xlu1 %2501  ;;  %vm3591_vm15 = vcmp.eq.f32.partialorder %v16441_v2, %v13121_v60  ;;  %v2519_v46 = vshll.u32 %v2518_v56, 16  ;;  %vm16453_vm10 = vcmp.lt.f32.partialorder %v16451_v49, %v16452_v36  ;;  %v16454_v2 = vld [vmem:[#allocation312_spill] sm:$0xff]  ;;  %v16456_v18 = vld [vmem:[#allocation353_spill] sm:$0xff]  ;;  %v16464_v49 = vld [vmem:[#allocation363_spill] sm:$0xff] }
 0x5c5   :  { %v4415_v52 = vsel %vm16435_vm3, %v2464_v62, %v4287_v20  ;;  %v2503_v38 = vcvt.f32.s32 %v2502_v40  ;;  %v13150_v1 = vpop.permute.xlu0 %6583  ;;  %v16444_v20 = vld [vmem:[#allocation334_spill] sm:$0xff]  ;;  %v4292_v40 = vld [vmem:[#allocation3 + $0x198] sm:$0xff]  ;;  %v3592_v13 = vsel %vm3591_vm15, %v3587_v29, inf }
 0x5c6   :  { %4543 = vst.msk [vmem:[#allocation3 + $0x170] sm:$0xff] %vm47_vm0, %v4415_v52  ;;  %vm16445_vm4 = vcmp.lt.f32.partialorder %v16443_v24, %v16444_v20  ;;  %v16447_v52 = vld [vmem:[#allocation50_spill] sm:$0xff] }
 0x5c7   :  { %v2506_v17 = vadd.s32 %v2505_v58, %v2503_v38  ;;  %3565 = vmin.xlane.f32.xlu1 %v3564_v37  ;;  %v16448_v38 = vld [vmem:[#allocation343_spill] sm:$0xff] }
 0x5c8   :  { %v2488_v10 = vpop.xlane.xlu1 %2487  ;;  %vm16449_vm11 = vcmp.lt.f32.partialorder %v16447_v52, %v16448_v38 }
 0x5c9   :  { %v4418_v28 = vsel %vm16440_vm14, %v2506_v17, %v4290_v14  ;;  %v2489_v26 = vcvt.f32.s32 %v2488_v10  ;;  %v6468_v55 = vld [vmem:[#allocation3 + $0x178] sm:$0xff]  ;;  %v13157_v21 = vpop.permute.xlu0 %6589  ;;  %v4291_v10 = vld [vmem:[#allocation3 + $0x190] sm:$0xff] }
 0x5ca   :  { %4546 = vst.msk [vmem:[#allocation3 + $0x188] sm:$0xff] %vm47_vm0, %v4418_v28  ;;  %6691 = vperm.xlu0 %7686, %v6468_v55   ;;  %v4294_v55 = vld [vmem:[#allocation3 + $0x1a8] sm:$0xff] }
 0x5cb   :  { %v2492_v16 = vadd.s32 %v2491_v31, %v2489_v26  ;;  %3579 = vmin.xlane.f32.xlu1 %v3578_v43  ;;  %v16450_v31 = vld [vmem:[#allocation67_spill] sm:$0xff] }
 0x5cc   :  { %v2530_v23 = vpop.xlane.xlu1 %2529  ;;  %v2546_v34 = vcvt.f32.s32 %v16450_v31 }
 0x5cd   :  { %v4417_v44 = vsel %vm16445_vm4, %v2492_v16, %v4289_v47  ;;  %v2531_v62 = vcvt.f32.s32 %v2530_v23  ;;  %v13164_v25 = vpop.permute.xlu0 %6595  ;;  %v2588_v23 = vcvt.f32.s32 %v16454_v2 }
 0x5ce   :  { %4545 = vst.msk [vmem:[#allocation3 + $0x180] sm:$0xff] %vm47_vm0, %v4417_v44  ;;  %v2547_v16 = vshll.u32 %v2546_v34, 16  ;;  %v4293_v44 = vld [vmem:[#allocation3 + $0x1a0] sm:$0xff]  ;;  %v16463_v34 = vld [vmem:[#allocation58_spill] sm:$0xff] }
 0x5cf   :  { %v2534_v51 = vadd.s32 %v2533_v63, %v2531_v62  ;;  %3593 = vmin.xlane.f32.xlu1 %v3592_v13  ;;  %v16455_v63 = vld [vmem:[#allocation54_spill] sm:$0xff]  ;;  %v2589_v13 = vshll.u32 %v2588_v23, 16  ;;  %vm16465_vm8 = vcmp.lt.f32.partialorder %v16463_v34, %v16464_v49  ;;  %v16466_v23 = vld [vmem:[#allocation337_spill] sm:$0xff] }
 0x5d0   :  { %v2516_v58 = vpop.xlane.xlu1 %2515  ;;  %vm16457_vm6 = vcmp.lt.f32.partialorder %v16455_v63, %v16456_v18  ;;  %v2602_v63 = vcvt.f32.s32 %v16466_v23  ;;  %v16474_v34 = vld [vmem:[#allocation357_spill] sm:$0xff] }
 0x5d1   :  { %v4420_v14 = vsel %vm16449_vm11, %v2534_v51, %v4292_v40  ;;  %v2517_v37 = vcvt.f32.s32 %v2516_v58  ;;  %v6470_v17 = vld [vmem:[#allocation3 + $0x188] sm:$0xff]  ;;  %v13171_v29 = vpop.permute.xlu0 %6601  ;;  %v16458_v51 = vld [vmem:[#allocation83_spill] sm:$0xff]  ;;  %v2630_v49 = vcvt.f32.s32 %v16474_v34  ;;  %v16483_v34 = vld [vmem:[#allocation120_spill] sm:$0xff] }
 0x5d2   :  { %4548 = vst.msk [vmem:[#allocation3 + $0x198] sm:$0xff] %vm47_vm0, %v4420_v14  ;;  %6697 = vperm.xlu0 %7686, %v6470_v17   ;;  %v2574_v58 = vcvt.f32.s32 %v16458_v51  ;;  %v4296_v14 = vld [vmem:[#allocation3 + $0x1b8] sm:$0xff]  ;;  %v6422_v17 = vld [vmem:[#allocation3 + $0x8] sm:$0xff] }
 0x5d3   :  { %v2520_v41 = vadd.s32 %v2519_v46, %v2517_v37 }
 0x5d4   :  { %v2558_v57 = vpop.xlane.xlu1 %2557 }
 0x5d5   :  { %v4419_v28 = vsel %vm16453_vm10, %v2520_v41, %v4291_v10  ;;  %v2559_v26 = vcvt.f32.s32 %v2558_v57  ;;  %v13178_v46 = vpop.permute.xlu0 %6607  ;;  %v2575_v41 = vshll.u32 %v2574_v58, 16  ;;  %v16462_v57 = vld [vmem:[#allocation85_spill] sm:$0xff]  ;;  %v2603_v58 = vshll.u32 %v2602_v63, 16 }
 0x5d6   :  { %4547 = vst.msk [vmem:[#allocation3 + $0x190] sm:$0xff] %vm47_vm0, %v4419_v28  ;;  %v6426_v63 = vld [vmem:[#allocation3 + $0x28] sm:$0xff] }
 0x5d7   :  { %v2562_v47 = vadd.s32 %v2561_v48, %v2559_v26  ;;  %v2616_v48 = vcvt.f32.s32 %v16462_v57 }
 0x5d8   :  { %v2544_v43 = vpop.xlane.xlu1 %2543 }
 0x5d9   :  { %v4422_v56 = vsel %vm16457_vm6, %v2562_v47, %v4294_v55  ;;  %v2545_v24 = vcvt.f32.s32 %v2544_v43  ;;  %v6472_v20 = vld [vmem:[#allocation3 + $0x198] sm:$0xff]  ;;  %v13185_v31 = vpop.permute.xlu0 %6613  ;;  %v4295_v55 = vld [vmem:[#allocation3 + $0x1b0] sm:$0xff]  ;;  %v2617_v2 = vshll.u32 %v2616_v48, 16  ;;  %v6425_v48 = vld [vmem:[#allocation3 + $0x20] sm:$0xff] }
 0x5da   :  { %4550 = vst.msk [vmem:[#allocation3 + $0x1a8] sm:$0xff] %vm47_vm0, %v4422_v56  ;;  %6703 = vperm.xlu0 %7686, %v6472_v20   ;;  %v6423_v43 = vld [vmem:[#allocation3 + $0x10] sm:$0xff] }
 0x5db   :  { %v2548_v62 = vadd.s32 %v2547_v16, %v2545_v24  ;;  %v16467_v56 = vld [vmem:[#allocation366_spill] sm:$0xff]  ;;  %v16468_v24 = vld [vmem:[#allocation364_spill] sm:$0xff] }
 0x5dc   :  { %v2586_v40 = vpop.xlane.xlu1 %2585  ;;  %vm16469_vm1 = vcmp.lt.f32.partialorder %v16467_v56, %v16468_v24  ;;  %v2631_v56 = vshll.u32 %v2630_v49, 16  ;;  %v2658_v49 = vcvt.f32.s32 %v16483_v34 }
 0x5dd   :  { %v4421_v52 = vsel %vm16461_vm2, %v2548_v62, %v4293_v44  ;;  %v2587_v38 = vcvt.f32.s32 %v2586_v40  ;;  %v13192_v18 = vpop.permute.xlu0 %6619  ;;  %v4298_v62 = vld [vmem:[#allocation3 + $0x1c8] sm:$0xff] }
 0x5de   :  { %4549 = vst.msk [vmem:[#allocation3 + $0x1a0] sm:$0xff] %vm47_vm0, %v4421_v52 }
 0x5df   :  { %v2590_v37 = vadd.s32 %v2589_v13, %v2587_v38  ;;  %v6424_v13 = vld [vmem:[#allocation3 + $0x18] sm:$0xff]  ;;  %v16471_v38 = vld [vmem:[#allocation62_spill] sm:$0xff] }
 0x5e0   :  { %v2572_v10 = vpop.xlane.xlu1 %2571  ;;  %6553 = vperm.xlu1 %7687, %v6422_v17  }
 0x5e1   :  { %v4424_v36 = vsel %vm16465_vm8, %v2590_v37, %v4296_v14  ;;  %v2573_v28 = vcvt.f32.s32 %v2572_v10  ;;  %v6474_v26 = vld [vmem:[#allocation3 + $0x1a8] sm:$0xff]  ;;  %v13199_v52 = vpop.permute.xlu0 %6625 }
 0x5e2   :  { %4552 = vst.msk [vmem:[#allocation3 + $0x1b8] sm:$0xff] %vm47_vm0, %v4424_v36  ;;  %6709 = vperm.xlu0 %7686, %v6474_v26   ;;  %v16472_v14 = vld [vmem:[#allocation373_spill] sm:$0xff] }
 0x5e3   :  { %v2576_v47 = vadd.s32 %v2575_v41, %v2573_v28  ;;  %vm16473_vm7 = vcmp.lt.f32.partialorder %v16471_v38, %v16472_v14  ;;  %v4297_v41 = vld [vmem:[#allocation3 + $0x1c0] sm:$0xff]  ;;  %v2645_v28 = vshll.u32 %v2644_v32, 16  ;;  %v4299_v14 = vld [vmem:[#allocation3 + $0x1d0] sm:$0xff] }
 0x5e4   :  { %v2614_v16 = vpop.xlane.xlu1 %2613  ;;  %6556 = vperm.xlu1 %7687, %v6423_v43  }
 0x5e5   :  { %v4423_v20 = vsel %vm16469_vm1, %v2576_v47, %v4295_v55  ;;  %v2615_v44 = vcvt.f32.s32 %v2614_v16  ;;  %v13206_v26 = vpop.permute.xlu0 %6631  ;;  %v16475_v55 = vld [vmem:[#allocation376_spill] sm:$0xff]  ;;  %v16476_v47 = vld [vmem:[#allocation374_spill] sm:$0xff] }
 0x5e6   :  { %4551 = vst.msk [vmem:[#allocation3 + $0x1b0] sm:$0xff] %vm47_vm0, %v4423_v20  ;;  %vm16477_vm12 = vcmp.lt.f32.partialorder %v16475_v55, %v16476_v47  ;;  %v16478_v20 = vld [vmem:[#allocation228_spill] sm:$0xff] }
 0x5e7   :  { %v2618_v40 = vadd.s32 %v2617_v2, %v2615_v44  ;;  %v4300_v2 = vld [vmem:[#allocation3 + $0x1d8] sm:$0xff]  ;;  %v2672_v44 = vcvt.f32.s32 %v16478_v20  ;;  %v16485_v55 = vld [vmem:[#allocation384_spill] sm:$0xff]  ;;  %v2659_v20 = vshll.u32 %v2658_v49, 16 }
 0x5e8   :  { %v2600_v51 = vpop.xlane.xlu1 %2599  ;;  %6559 = vperm.xlu1 %7687, %v6424_v13   ;;  %v16494_v49 = vld [vmem:[#allocation132_spill] sm:$0xff] }
 0x5e9   :  { %v4426_v37 = vsel %vm16473_vm7, %v2618_v40, %v4298_v62  ;;  %v2601_v17 = vcvt.f32.s32 %v2600_v51  ;;  %v6476_v10 = vld [vmem:[#allocation3 + $0x1b8] sm:$0xff]  ;;  %v16479_v62 = vlaneseq  ;;  %v13216_v13 = vpop.permute.xlu0 %6637  ;;  %v16480_v51 = vld [vmem:[#allocation66_spill] sm:$0xff] }
 0x5ea   :  { %4554 = vst.msk [vmem:[#allocation3 + $0x1c8] sm:$0xff] %vm47_vm0, %v4426_v37  ;;  %6715 = vperm.xlu0 %7686, %v6476_v10   ;;  %v6427_v10 = vld [vmem:[#allocation3 + $0x30] sm:$0xff] }
 0x5eb   :  { %v2604_v57 = vadd.s32 %v2603_v58, %v2601_v17  ;;  %v13214_v40 = vshrl.u32 %v16479_v62, 7  ;;  %v16481_v58 = vld [vmem:[#allocation383_spill] sm:$0xff] }
 0x5ec   :  { %v2642_v36 = vpop.xlane.xlu1 %2641  ;;  %6562 = vperm.xlu1 %7687, %v6425_v48   ;;  %vm16482_vm9 = vcmp.lt.f32.partialorder %v16480_v51, %v16481_v58  ;;  %v2673_v48 = vshll.u32 %v2672_v44, 16  ;;  %v16487_v44 = vld [vmem:[#allocation119_spill] sm:$0xff] }
 0x5ed   :  { %v4425_v43 = vsel %vm16477_vm12, %v2604_v57, %v4297_v41  ;;  %v2643_v16 = vcvt.f32.s32 %v2642_v36  ;;  %v4662_v37 = vadd.s32 264, %v13214_v40  ;;  %v4664_v41 = vadd.s32 280, %v13214_v40  ;;  %v13225_v36 = vpop.permute.xlu0 %6643  ;;  %v16488_v58 = vld [vmem:[#allocation71_spill] sm:$0xff] }
 0x5ee   :  { %4553 = vst.msk [vmem:[#allocation3 + $0x1c0] sm:$0xff] %vm47_vm0, %v4425_v43  ;;  %v2700_v62 = vcvt.f32.s32 %v16487_v44  ;;  %v6431_v44 = vld [vmem:[#allocation3 + $0x50] sm:$0xff] }
 0x5ef   :  { %v2646_v23 = vadd.s32 %v2645_v28, %v2643_v16  ;;  %v16484_v28 = vld [vmem:[#allocation386_spill] sm:$0xff]  ;;  %v4302_v16 = vld [vmem:[#allocation3 + $0x1e8] sm:$0xff] }
 0x5f0   :  { %v2628_v24 = vpop.xlane.xlu1 %2627  ;;  %6565 = vperm.xlu1 %7687, %v6426_v63   ;;  %vm16486_vm13 = vcmp.lt.f32.partialorder %v16484_v28, %v16485_v55  ;;  %v6428_v63 = vld [vmem:[#allocation3 + $0x38] sm:$0xff]  ;;  %v2701_v34 = vshll.u32 %v2700_v62, 16  ;;  %v2686_v28 = vcvt.f32.s32 %v16494_v49  ;;  %v16495_v55 = vld [vmem:[#allocation396_spill] sm:$0xff] }
 0x5f1   :  { %v4428_v27 = vsel %vm16482_vm9, %v2646_v23, %v4300_v2  ;;  %v2629_v32 = vcvt.f32.s32 %v2628_v24  ;;  %v6478_v38 = vld [vmem:[#allocation3 + $0x1c8] sm:$0xff]  ;;  %v4992_v2 = vand.u32 127, %v4662_v37  ;;  %v6650_v51 = vpop.permute.xlu0 %6649  ;;  %v16491_v37 = vld [vmem:[#allocation238_spill] sm:$0xff] }
 0x5f2   :  { %4556 = vst.msk [vmem:[#allocation3 + $0x1d8] sm:$0xff] %vm47_vm0, %v4428_v27  ;;  %6721 = vperm.xlu0 %7686, %v6478_v38   ;;  %v16489_v27 = vld [vmem:[#allocation393_spill] sm:$0xff]  ;;  %v2687_v62 = vshll.u32 %v2686_v28, 16  ;;  %v3302_v28 = vcvt.f32.s32 %v12849_v12 }
 0x5f3   :  { %v2632_v17 = vadd.s32 %v2631_v56, %v2629_v32  ;;  %v5006_v56 = vand.u32 127, %v4664_v41  ;;  %vm16490_vm3 = vcmp.lt.f32.partialorder %v16488_v58, %v16489_v27  ;;  %vm13237_vm5 = vcmp.eq.s32.totalorder %v4992_v2, %v16491_v37 }
 0x5f4   :  { %v2670_v57 = vpop.xlane.xlu1 %2669  ;;  %6568 = vperm.xlu1 %7687, %v6427_v10   ;;  %v6966_v2 = vsel %vm13237_vm5, %v6650_v51, 0  ;;  %v3288_v27 = vcvt.f32.s32 %v12837_v19  ;;  %v4303_v51 = vld [vmem:[#allocation3 + $0x1f0] sm:$0xff] }
 0x5f5   :  { %v4427_v47 = vsel %vm16486_vm13, %v2632_v17, %v4299_v14  ;;  %v2671_v43 = vcvt.f32.s32 %v2670_v57  ;;  %v4301_v17 = vld [vmem:[#allocation3 + $0x1e0] sm:$0xff]  ;;  %vm6328_vm14 = vcmp.eq.s32.totalorder %v5006_v56, %v16491_v37  ;;  %v16501_v19 = vld [vmem:[#allocation406_spill] sm:$0xff] }
 0x5f6   :  { %4555 = vst.msk [vmem:[#allocation3 + $0x1d0] sm:$0xff] %vm47_vm0, %v4427_v47  ;;  %v6429_v57 = vld [vmem:[#allocation3 + $0x40] sm:$0xff]  ;;  %v16496_v47 = vld [vmem:[#allocation394_spill] sm:$0xff]  ;;  %v3289_v49 = vshll.u32 %v3288_v27, 16 }
 0x5f7   :  { %v2674_v23 = vadd.s32 %v2673_v48, %v2671_v43  ;;  %vm16497_vm15 = vcmp.lt.f32.partialorder %v16495_v55, %v16496_v47  ;;  %v16502_v55 = vld [vmem:[#allocation404_spill] sm:$0xff] }
 0x5f8   :  { %v2656_v24 = vpop.xlane.xlu1 %2655  ;;  %6571 = vperm.xlu1 %7687, %v6428_v63   ;;  %v4304_v63 = vld [vmem:[#allocation3 + $0x1f8] sm:$0xff]  ;;  %vm16503_vm11 = vcmp.lt.f32.partialorder %v16501_v19, %v16502_v55 }
 0x5f9   :  { %v4430_v32 = vsel %vm16490_vm3, %v2674_v23, %v4302_v16  ;;  %v2657_v38 = vcvt.f32.s32 %v2656_v24  ;;  %v6480_v14 = vld [vmem:[#allocation3 + $0x1d8] sm:$0xff] }
 0x5fa   :  { %4558 = vst.msk [vmem:[#allocation3 + $0x1e8] sm:$0xff] %vm47_vm0, %v4430_v32  ;;  %6727 = vperm.xlu0 %7686, %v6480_v14   ;;  %v16498_v32 = vld [vmem:[#allocation79_spill] sm:$0xff] }
 0x5fb   :  { %v2660_v41 = vadd.s32 %v2659_v20, %v2657_v38  ;;  %v16499_v38 = vld [vmem:[#allocation403_spill] sm:$0xff] }
 0x5fc   :  { %v2698_v48 = vpop.xlane.xlu1 %2697  ;;  %6574 = vperm.xlu1 %7687, %v6429_v57   ;;  %vm16500_vm4 = vcmp.lt.f32.partialorder %v16498_v32, %v16499_v38  ;;  %v6433_v57 = vld [vmem:[#allocation3 + $0x60] sm:$0xff]  ;;  %v4347_v38 = vld [vmem:[#allocation3 + $0x350] sm:$0xff]  ;;  %v4348_v19 = vld [vmem:[#allocation3 + $0x358] sm:$0xff] }
 0x5fd   :  { %v4429_v43 = vsel %vm16497_vm15, %v2660_v41, %v4301_v17  ;;  %v2699_v16 = vcvt.f32.s32 %v2698_v48  ;;  %v6656_v23 = vpop.permute.xlu0 %6655  ;;  %v4666_v48 = vadd.s32 296, %v13214_v40 }
 0x5fe   :  { %4557 = vst.msk [vmem:[#allocation3 + $0x1e0] sm:$0xff] %vm47_vm0, %v4429_v43  ;;  %v6968_v24 = vsel %vm6328_vm14, %v6656_v23, 0 }
 0x5ff   :  { %v2702_v20 = vadd.s32 %v2701_v34, %v2699_v16  ;;  %v7103_v56 = vadd.s32 %v6968_v24, %v6966_v2  ;;  %v4346_v16 = vld [vmem:[#allocation3 + $0x348] sm:$0xff]  ;;  %v6435_v2 = vld [vmem:[#allocation3 + $0x70] sm:$0xff] }
 0x600   :  { %v2684_v58 = vpop.xlane.xlu1 %2683  ;;  %6580 = vperm.xlu1 %7687, %v6431_v44   ;;  %v3316_v44 = vcvt.f32.s32 %v12859_v35  ;;  %v16507_v35 = vld [vmem:[#allocation311_spill] sm:$0xff] }
 0x601   :  { %v4432_v14 = vsel %vm16500_vm4, %v2702_v20, %v4304_v63  ;;  %v2685_v17 = vcvt.f32.s32 %v2684_v58  ;;  %v6482_v41 = vld [vmem:[#allocation3 + $0x1e8] sm:$0xff]  ;;  %v5020_v63 = vand.u32 127, %v4666_v48  ;;  %v3303_v20 = vshll.u32 %v3302_v28, 16 }
 0x602   :  { %4560 = vst.msk [vmem:[#allocation3 + $0x1f8] sm:$0xff] %vm47_vm0, %v4432_v14  ;;  %6733 = vperm.xlu0 %7686, %v6482_v41   ;;  %v16504_v58 = vld [vmem:[#allocation33_spill] sm:$0xff] }
 0x603   :  { %v2688_v10 = vadd.s32 %v2687_v62, %v2685_v17  ;;  %v16505_v62 = vld [vmem:[#allocation298_spill] sm:$0xff]  ;;  %v6437_v17 = vld [vmem:[#allocation3 + $0x80] sm:$0xff]  ;;  %vm6330_vm6 = vcmp.eq.s32.totalorder %v5020_v63, %v16491_v37  ;;  %v6486_v28 = vld [vmem:[#allocation3 + $0x208] sm:$0xff] }
 0x604   :  { %v3286_v34 = vpop.xlane.xlu1 %3285  ;;  %6586 = vperm.xlu1 %7687, %v6433_v57   ;;  %vm16506_vm10 = vcmp.lt.f32.partialorder %v16504_v58, %v16505_v62  ;;  %v16508_v57 = vld [vmem:[#allocation309_spill] sm:$0xff]  ;;  %v6488_v58 = vld [vmem:[#allocation3 + $0x218] sm:$0xff]  ;;  %v4349_v62 = vld [vmem:[#allocation3 + $0x360] sm:$0xff] }
 0x605   :  { %v4431_v47 = vsel %vm16503_vm11, %v2688_v10, %v4303_v51  ;;  %v3287_v43 = vcvt.f32.s32 %v3286_v34  ;;  %v3317_v51 = vshll.u32 %v3316_v44, 16  ;;  %v3330_v10 = vcvt.f32.s32 %v12871_v8  ;;  %v16510_v63 = vld [vmem:[#allocation37_spill] sm:$0xff] }
 0x606   :  { %4559 = vst.msk [vmem:[#allocation3 + $0x1f0] sm:$0xff] %vm47_vm0, %v4431_v47  ;;  %vm16509_vm2 = vcmp.lt.f32.partialorder %v16507_v35, %v16508_v57  ;;  %v3344_v8 = vcvt.f32.s32 %v12881_v6  ;;  %v16513_v6 = vld [vmem:[#allocation321_spill] sm:$0xff] }
 0x607   :  { %v3290_v23 = vadd.s32 %v3289_v49, %v3287_v43  ;;  %v4350_v35 = vld [vmem:[#allocation3 + $0x368] sm:$0xff] }
 0x608   :  { %v3300_v24 = vpop.xlane.xlu1 %3299  ;;  %6592 = vperm.xlu1 %7687, %v6435_v2   ;;  %v3331_v2 = vshll.u32 %v3330_v10, 16  ;;  %v6490_v10 = vld [vmem:[#allocation3 + $0x228] sm:$0xff] }
 0x609   :  { %v4474_v12 = vsel %vm16506_vm10, %v3290_v23, %v4346_v16  ;;  %v3301_v27 = vcvt.f32.s32 %v3300_v24  ;;  %v6484_v32 = vld [vmem:[#allocation3 + $0x1f8] sm:$0xff]  ;;  %v6439_v16 = vld [vmem:[#allocation3 + $0x90] sm:$0xff]  ;;  %v16511_v24 = vld [vmem:[#allocation308_spill] sm:$0xff] }
 0x60a   :  { %4602 = vst.msk [vmem:[#allocation3 + $0x348] sm:$0xff] %vm47_vm0, %v4474_v12  ;;  %6739 = vperm.xlu0 %7686, %v6484_v32   ;;  %vm16512_vm8 = vcmp.lt.f32.partialorder %v16510_v63, %v16511_v24  ;;  %v6445_v63 = vld [vmem:[#allocation3 + $0xc0] sm:$0xff] }
 0x60b   :  { %v3304_v14 = vadd.s32 %v3303_v20, %v3301_v27  ;;  %v6441_v27 = vld [vmem:[#allocation3 + $0xa0] sm:$0xff] }
 0x60c   :  { %v3314_v41 = vpop.xlane.xlu1 %3313  ;;  %6598 = vperm.xlu1 %7687, %v6437_v17   ;;  %v16514_v17 = vld [vmem:[#allocation319_spill] sm:$0xff] }
 0x60d   :  { %v4475_v48 = vsel %vm16509_vm2, %v3304_v14, %v4347_v38  ;;  %v3315_v34 = vcvt.f32.s32 %v3314_v41  ;;  %v6662_v49 = vpop.permute.xlu0 %6661  ;;  %v3345_v38 = vshll.u32 %v3344_v8, 16  ;;  %v3358_v14 = vcvt.f32.s32 %v12893_v30  ;;  %v16517_v30 = vld [vmem:[#allocation318_spill] sm:$0xff] }
 0x60e   :  { %4603 = vst.msk [vmem:[#allocation3 + $0x350] sm:$0xff] %vm47_vm0, %v4475_v48  ;;  %v6970_v55 = vsel %vm6330_vm6, %v6662_v49, 0  ;;  %6745 = vperm.xlu0 %7686, %v6486_v28   ;;  %vm16515_vm1 = vcmp.lt.f32.partialorder %v16513_v6, %v16514_v17  ;;  %v6443_v48 = vld [vmem:[#allocation3 + $0xb0] sm:$0xff] }
 0x60f   :  { %v3318_v47 = vadd.s32 %v3317_v51, %v3315_v34  ;;  %v7104_v43 = vadd.s32 %v7103_v56, %v6970_v55  ;;  %v4668_v56 = vadd.s32 312, %v13214_v40  ;;  %v3359_v28 = vshll.u32 %v3358_v14, 16  ;;  %v16516_v55 = vld [vmem:[#allocation41_spill] sm:$0xff]  ;;  %v6447_v17 = vld [vmem:[#allocation3 + $0xd0] sm:$0xff] }
 0x610   :  { %v3328_v23 = vpop.xlane.xlu1 %3327  ;;  %6604 = vperm.xlu1 %7687, %v6439_v16   ;;  %vm16518_vm7 = vcmp.lt.f32.partialorder %v16516_v55, %v16517_v30 }
 0x611   :  { %v4476_v20 = vsel %vm16512_vm8, %v3318_v47, %v4348_v19  ;;  %v3329_v44 = vcvt.f32.s32 %v3328_v23  ;;  %v5034_v34 = vand.u32 127, %v4668_v56  ;;  %v3372_v19 = vcvt.f32.s32 %v12903_v54  ;;  %v6492_v23 = vld [vmem:[#allocation3 + $0x238] sm:$0xff]  ;;  %v6494_v56 = vld [vmem:[#allocation3 + $0x248] sm:$0xff] }
 0x612   :  { %4604 = vst.msk [vmem:[#allocation3 + $0x358] sm:$0xff] %vm47_vm0, %v4476_v20  ;;  %6751 = vperm.xlu0 %7686, %v6488_v58   ;;  %v16519_v54 = vld [vmem:[#allocation331_spill] sm:$0xff]  ;;  %v16520_v58 = vld [vmem:[#allocation329_spill] sm:$0xff] }
 0x613   :  { %v3332_v12 = vadd.s32 %v3331_v2, %v3329_v44  ;;  %v4351_v2 = vld [vmem:[#allocation3 + $0x370] sm:$0xff]  ;;  %vm6332_vm12 = vcmp.eq.s32.totalorder %v5034_v34, %v16491_v37  ;;  %v3373_v20 = vshll.u32 %v3372_v19, 16  ;;  %v3386_v44 = vcvt.f32.s32 %v12915_v39  ;;  %v6496_v34 = vld [vmem:[#allocation3 + $0x258] sm:$0xff]  ;;  %v6449_v19 = vld [vmem:[#allocation3 + $0xe0] sm:$0xff] }
 0x614   :  { %v3342_v32 = vpop.xlane.xlu1 %3341  ;;  %6610 = vperm.xlu1 %7687, %v6441_v27   ;;  %vm16521_vm9 = vcmp.lt.f32.partialorder %v16519_v54, %v16520_v58  ;;  %v3400_v39 = vcvt.f32.s32 %v12925_v5  ;;  %v16525_v5 = vld [vmem:[#allocation341_spill] sm:$0xff] }
 0x615   :  { %v4477_v41 = vsel %vm16515_vm1, %v3332_v12, %v4349_v62  ;;  %v3343_v51 = vcvt.f32.s32 %v3342_v32  ;;  %v4352_v32 = vld [vmem:[#allocation3 + $0x378] sm:$0xff] }
 0x616   :  { %4605 = vst.msk [vmem:[#allocation3 + $0x360] sm:$0xff] %vm47_vm0, %v4477_v41  ;;  %6757 = vperm.xlu0 %7686, %v6490_v10   ;;  %v16522_v10 = vld [vmem:[#allocation45_spill] sm:$0xff]  ;;  %v3401_v30 = vshll.u32 %v3400_v39, 16  ;;  %v3442_v39 = vcvt.f32.s32 %v12967_v11 }
 0x617   :  { %v3346_v57 = vadd.s32 %v3345_v38, %v3343_v51  ;;  %v3387_v51 = vshll.u32 %v3386_v44, 16 }
 0x618   :  { %v3356_v49 = vpop.xlane.xlu1 %3355  ;;  %6616 = vperm.xlu1 %7687, %v6443_v48   ;;  %v3443_v11 = vshll.u32 %v3442_v39, 16  ;;  %v16540_v39 = vld [vmem:[#allocation57_spill] sm:$0xff] }
 0x619   :  { %v4478_v47 = vsel %vm16518_vm7, %v3346_v57, %v4350_v35  ;;  %v3357_v16 = vcvt.f32.s32 %v3356_v49  ;;  %v16523_v35 = vld [vmem:[#allocation328_spill] sm:$0xff] }
 0x61a   :  { %4606 = vst.msk [vmem:[#allocation3 + $0x368] sm:$0xff] %vm47_vm0, %v4478_v47  ;;  %6763 = vperm.xlu0 %7686, %v6492_v23   ;;  %vm16524_vm13 = vcmp.lt.f32.partialorder %v16522_v10, %v16523_v35  ;;  %v4353_v49 = vld [vmem:[#allocation3 + $0x380] sm:$0xff]  ;;  %v3414_v47 = vcvt.f32.s32 %v12938_v0  ;;  %v16529_v0 = vld [vmem:[#allocation338_spill] sm:$0xff]  ;;  %v16532_v10 = vld [vmem:[#allocation349_spill] sm:$0xff] }
 0x61b   :  { %v3360_v8 = vadd.s32 %v3359_v28, %v3357_v16  ;;  %v16526_v16 = vld [vmem:[#allocation339_spill] sm:$0xff] }
 0x61c   :  { %v3370_v24 = vpop.xlane.xlu1 %3369  ;;  %6622 = vperm.xlu1 %7687, %v6445_v63   ;;  %vm16527_vm3 = vcmp.lt.f32.partialorder %v16525_v5, %v16526_v16  ;;  %v4354_v63 = vld [vmem:[#allocation3 + $0x388] sm:$0xff]  ;;  %v3415_v58 = vshll.u32 %v3414_v47, 16  ;;  %v3456_v5 = vcvt.f32.s32 %v12981_v7  ;;  %v16538_v7 = vld [vmem:[#allocation359_spill] sm:$0xff] }
 0x61d   :  { %v4479_v62 = vsel %vm16521_vm9, %v3360_v8, %v4351_v2  ;;  %v3371_v12 = vcvt.f32.s32 %v3370_v24  ;;  %v6668_v27 = vpop.permute.xlu0 %6667  ;;  %v6498_v8 = vld [vmem:[#allocation3 + $0x268] sm:$0xff] }
 0x61e   :  { %4607 = vst.msk [vmem:[#allocation3 + $0x370] sm:$0xff] %vm47_vm0, %v4479_v62  ;;  %v6972_v38 = vsel %vm6332_vm12, %v6668_v27, 0  ;;  %6769 = vperm.xlu0 %7686, %v6494_v56   ;;  %v3428_v62 = vcvt.f32.s32 %v12953_v42  ;;  %v16531_v42 = vld [vmem:[#allocation351_spill] sm:$0xff]  ;;  %v16534_v16 = vld [vmem:[#allocation53_spill] sm:$0xff] }
 0x61f   :  { %v3374_v14 = vadd.s32 %v3373_v20, %v3371_v12  ;;  %v7105_v6 = vadd.s32 %v7104_v43, %v6972_v38  ;;  %v4670_v43 = vadd.s32 328, %v13214_v40  ;;  %v6451_v20 = vld [vmem:[#allocation3 + $0xf0] sm:$0xff]  ;;  %v16528_v12 = vld [vmem:[#allocation49_spill] sm:$0xff]  ;;  %vm16533_vm15 = vcmp.lt.f32.partialorder %v16531_v42, %v16532_v10 }
 0x620   :  { %v3384_v41 = vpop.xlane.xlu1 %3383  ;;  %6628 = vperm.xlu1 %7687, %v6447_v17   ;;  %vm16530_vm5 = vcmp.lt.f32.partialorder %v16528_v12, %v16529_v0  ;;  %v4355_v38 = vld [vmem:[#allocation3 + $0x390] sm:$0xff]  ;;  %v6453_v17 = vld [vmem:[#allocation3 + $0x100] sm:$0xff]  ;;  %v16537_v12 = vld [vmem:[#allocation361_spill] sm:$0xff] }
 0x621   :  { %v4480_v57 = vsel %vm16524_vm13, %v3374_v14, %v4352_v32  ;;  %v3385_v48 = vcvt.f32.s32 %v3384_v41  ;;  %v5048_v44 = vand.u32 127, %v4670_v43  ;;  %v6500_v32 = vld [vmem:[#allocation3 + $0x278] sm:$0xff]  ;;  %vm16539_vm11 = vcmp.lt.f32.partialorder %v16537_v12, %v16538_v7  ;;  %v16541_v42 = vld [vmem:[#allocation358_spill] sm:$0xff] }
 0x622   :  { %4608 = vst.msk [vmem:[#allocation3 + $0x378] sm:$0xff] %vm47_vm0, %v4480_v57  ;;  %6775 = vperm.xlu0 %7686, %v6496_v34   ;;  %v6502_v34 = vld [vmem:[#allocation3 + $0x288] sm:$0xff]  ;;  %vm16542_vm6 = vcmp.lt.f32.partialorder %v16540_v39, %v16541_v42  ;;  %v16550_v39 = vld [vmem:[#allocation379_spill] sm:$0xff] }
 0x623   :  { %v3388_v28 = vadd.s32 %v3387_v51, %v3385_v48  ;;  %vm6334_vm14 = vcmp.eq.s32.totalorder %v5048_v44, %v16491_v37  ;;  %v3429_v51 = vshll.u32 %v3428_v62, 16  ;;  %v3470_v62 = vcvt.f32.s32 %v12995_v50 }
 0x624   :  { %v3398_v55 = vpop.xlane.xlu1 %3397  ;;  %6634 = vperm.xlu1 %7687, %v6449_v19   ;;  %v3484_v50 = vcvt.f32.s32 %v13009_v9  ;;  %v3498_v9 = vcvt.f32.s32 %v13023_v53  ;;  %v3512_v53 = vcvt.f32.s32 %v13037_v22  ;;  %v3526_v22 = vcvt.f32.s32 %v13051_v33  ;;  %v16552_v33 = vld [vmem:[#allocation65_spill] sm:$0xff] }
 0x625   :  { %v4481_v23 = vsel %vm16527_vm3, %v3388_v28, %v4353_v49  ;;  %v3399_v2 = vcvt.f32.s32 %v3398_v55  ;;  %v4356_v49 = vld [vmem:[#allocation3 + $0x398] sm:$0xff]  ;;  %v6455_v55 = vld [vmem:[#allocation3 + $0x110] sm:$0xff] }
 0x626   :  { %4609 = vst.msk [vmem:[#allocation3 + $0x380] sm:$0xff] %vm47_vm0, %v4481_v23  ;;  %6781 = vperm.xlu0 %7686, %v6498_v8   ;;  %v16535_v23 = vld [vmem:[#allocation348_spill] sm:$0xff] }
 0x627   :  { %v3402_v24 = vadd.s32 %v3401_v30, %v3399_v2  ;;  %v4672_v30 = vadd.s32 344, %v13214_v40  ;;  %vm16536_vm4 = vcmp.lt.f32.partialorder %v16534_v16, %v16535_v23  ;;  %v16544_v16 = vld [vmem:[#allocation369_spill] sm:$0xff] }
 0x628   :  { %v3412_v54 = vpop.xlane.xlu1 %3411  ;;  %6640 = vperm.xlu1 %7687, %v6451_v20  }
 0x629   :  { %v4482_v27 = vsel %vm16530_vm5, %v3402_v24, %v4354_v63  ;;  %v3413_v56 = vcvt.f32.s32 %v3412_v54  ;;  %v6504_v63 = vld [vmem:[#allocation3 + $0x298] sm:$0xff]  ;;  %v4357_v24 = vld [vmem:[#allocation3 + $0x3a0] sm:$0xff]  ;;  %v5062_v44 = vand.u32 127, %v4672_v30 }
 0x62a   :  { %4610 = vst.msk [vmem:[#allocation3 + $0x388] sm:$0xff] %vm47_vm0, %v4482_v27  ;;  %6787 = vperm.xlu0 %7686, %v6500_v32   ;;  %v4358_v32 = vld [vmem:[#allocation3 + $0x3a8] sm:$0xff] }
 0x62b   :  { %v3416_v14 = vadd.s32 %v3415_v58, %v3413_v56  ;;  %v3457_v58 = vshll.u32 %v3456_v5, 16  ;;  %v6506_v56 = vld [vmem:[#allocation3 + $0x2a8] sm:$0xff]  ;;  %vm6336_vm10 = vcmp.eq.s32.totalorder %v5062_v44, %v16491_v37  ;;  %v16543_v5 = vld [vmem:[#allocation371_spill] sm:$0xff]  ;;  %v3499_v44 = vshll.u32 %v3498_v9, 16 }
 0x62c   :  { %v3426_v41 = vpop.xlane.xlu1 %3425  ;;  %6646 = vperm.xlu1 %7687, %v6453_v17   ;;  %v4674_v17 = vadd.s32 360, %v13214_v40  ;;  %vm16545_vm2 = vcmp.lt.f32.partialorder %v16543_v5, %v16544_v16  ;;  %v6516_v9 = vld [vmem:[#allocation3 + $0x2f8] sm:$0xff]  ;;  %v4363_v5 = vld [vmem:[#allocation3 + $0x3d0] sm:$0xff] }
 0x62d   :  { %v4483_v35 = vsel %vm16533_vm15, %v3416_v14, %v4355_v38  ;;  %v3427_v57 = vcvt.f32.s32 %v3426_v41  ;;  %v6674_v48 = vpop.permute.xlu0 %6673  ;;  %v6459_v14 = vld [vmem:[#allocation3 + $0x130] sm:$0xff] }
 0x62e   :  { %4611 = vst.msk [vmem:[#allocation3 + $0x390] sm:$0xff] %vm47_vm0, %v4483_v35  ;;  %v6974_v28 = vsel %vm6334_vm14, %v6674_v48, 0  ;;  %6793 = vperm.xlu0 %7686, %v6502_v34   ;;  %v6508_v48 = vld [vmem:[#allocation3 + $0x2b8] sm:$0xff]  ;;  %v4359_v34 = vld [vmem:[#allocation3 + $0x3b0] sm:$0xff]  ;;  %v5076_v30 = vand.u32 127, %v4674_v17 }
 0x62f   :  { %v3430_v19 = vadd.s32 %v3429_v51, %v3427_v57  ;;  %v7106_v43 = vadd.s32 %v7105_v6, %v6974_v28  ;;  %v6457_v6 = vld [vmem:[#allocation3 + $0x120] sm:$0xff]  ;;  %v3471_v51 = vshll.u32 %v3470_v62, 16 }
 0x630   :  { %v3440_v47 = vpop.xlane.xlu1 %3439  ;;  %6652 = vperm.xlu1 %7687, %v6455_v55   ;;  %v6461_v55 = vld [vmem:[#allocation3 + $0x140] sm:$0xff]  ;;  %vm6338_vm8 = vcmp.eq.s32.totalorder %v5076_v30, %v16491_v37 }
 0x631   :  { %v4484_v2 = vsel %vm16536_vm4, %v3430_v19, %v4356_v49  ;;  %v3441_v8 = vcvt.f32.s32 %v3440_v47 }
 0x632   :  { %4612 = vst.msk [vmem:[#allocation3 + $0x398] sm:$0xff] %vm47_vm0, %v4484_v2  ;;  %6799 = vperm.xlu0 %7686, %v6504_v63   ;;  %v4360_v63 = vld [vmem:[#allocation3 + $0x3b8] sm:$0xff] }
 0x633   :  { %v3444_v20 = vadd.s32 %v3443_v11, %v3441_v8  ;;  %v3485_v11 = vshll.u32 %v3484_v50, 16  ;;  %v6510_v8 = vld [vmem:[#allocation3 + $0x2c8] sm:$0xff] }
 0x634   :  { %v3454_v54 = vpop.xlane.xlu1 %3453  ;;  %6658 = vperm.xlu1 %7687, %v6457_v6   ;;  %v16549_v50 = vld [vmem:[#allocation381_spill] sm:$0xff] }
 0x635   :  { %v4485_v0 = vsel %vm16539_vm11, %v3444_v20, %v4357_v24  ;;  %v3455_v27 = vcvt.f32.s32 %v3454_v54  ;;  %v6463_v20 = vld [vmem:[#allocation3 + $0x150] sm:$0xff]  ;;  %v16546_v54 = vld [vmem:[#allocation61_spill] sm:$0xff]  ;;  %vm16551_vm7 = vcmp.lt.f32.partialorder %v16549_v50, %v16550_v39  ;;  %v6473_v50 = vld [vmem:[#allocation3 + $0x1a0] sm:$0xff] }
 0x636   :  { %4613 = vst.msk [vmem:[#allocation3 + $0x3a0] sm:$0xff] %vm47_vm0, %v4485_v0  ;;  %6805 = vperm.xlu0 %7686, %v6506_v56   ;;  %v6512_v0 = vld [vmem:[#allocation3 + $0x2d8] sm:$0xff] }
 0x637   :  { %v3458_v38 = vadd.s32 %v3457_v58, %v3455_v27  ;;  %v16547_v58 = vld [vmem:[#allocation368_spill] sm:$0xff] }
 0x638   :  { %v3468_v41 = vpop.xlane.xlu1 %3467  ;;  %6664 = vperm.xlu1 %7687, %v6459_v14   ;;  %vm16548_vm1 = vcmp.lt.f32.partialorder %v16546_v54, %v16547_v58  ;;  %v4361_v27 = vld [vmem:[#allocation3 + $0x3c0] sm:$0xff]  ;;  %v4364_v54 = vld [vmem:[#allocation3 + $0x3d8] sm:$0xff] }
 0x639   :  { %v4486_v10 = vsel %vm16542_vm6, %v3458_v38, %v4358_v32  ;;  %v3469_v35 = vcvt.f32.s32 %v3468_v41  ;;  %v6680_v57 = vpop.permute.xlu0 %6679  ;;  %v6465_v14 = vld [vmem:[#allocation3 + $0x160] sm:$0xff] }
 0x63a   :  { %4614 = vst.msk [vmem:[#allocation3 + $0x3a8] sm:$0xff] %vm47_vm0, %v4486_v10  ;;  %v6976_v49 = vsel %vm6336_vm10, %v6680_v57, 0  ;;  %6811 = vperm.xlu0 %7686, %v6508_v48   ;;  %v4362_v57 = vld [vmem:[#allocation3 + $0x3c8] sm:$0xff] }
 0x63b   :  { %v3472_v28 = vadd.s32 %v3471_v51, %v3469_v35  ;;  %v7107_v19 = vadd.s32 %v7106_v43, %v6976_v49  ;;  %v4676_v43 = vadd.s32 376, %v13214_v40  ;;  %v3513_v51 = vshll.u32 %v3512_v53, 16  ;;  %v6514_v35 = vld [vmem:[#allocation3 + $0x2e8] sm:$0xff] }
 0x63c   :  { %v3482_v47 = vpop.xlane.xlu1 %3481  ;;  %6670 = vperm.xlu1 %7687, %v6461_v55   ;;  %v16553_v55 = vld [vmem:[#allocation378_spill] sm:$0xff]  ;;  %v6518_v53 = vld [vmem:[#allocation3 + $0x308] sm:$0xff] }
 0x63d   :  { %v4487_v23 = vsel %vm16545_vm2, %v3472_v28, %v4359_v34  ;;  %v3483_v2 = vcvt.f32.s32 %v3482_v47  ;;  %v5090_v17 = vand.u32 127, %v4676_v43  ;;  %v6467_v34 = vld [vmem:[#allocation3 + $0x170] sm:$0xff]  ;;  %v3527_v28 = vshll.u32 %v3526_v22, 16  ;;  %v16556_v43 = vld [vmem:[#allocation389_spill] sm:$0xff] }
 0x63e   :  { %4615 = vst.msk [vmem:[#allocation3 + $0x3b0] sm:$0xff] %vm47_vm0, %v4487_v23  ;;  %6817 = vperm.xlu0 %7686, %v6510_v8   ;;  %vm16554_vm9 = vcmp.lt.f32.partialorder %v16552_v33, %v16553_v55  ;;  %v6469_v8 = vld [vmem:[#allocation3 + $0x180] sm:$0xff] }
 0x63f   :  { %v3486_v24 = vadd.s32 %v3485_v11, %v3483_v2  ;;  %vm6340_vm12 = vcmp.eq.s32.totalorder %v5090_v17, %v16491_v37  ;;  %v6520_v17 = vld [vmem:[#allocation3 + $0x318] sm:$0xff] }
 0x640   :  { %v3496_v6 = vpop.xlane.xlu1 %3495  ;;  %6676 = vperm.xlu1 %7687, %v6463_v20   ;;  %v16555_v20 = vld [vmem:[#allocation391_spill] sm:$0xff] }
 0x641   :  { %v4488_v62 = vsel %vm16548_vm1, %v3486_v24, %v4360_v63  ;;  %v3497_v12 = vcvt.f32.s32 %v3496_v6  ;;  %v6686_v7 = vpop.permute.xlu0 %6685  ;;  %vm16557_vm13 = vcmp.lt.f32.partialorder %v16555_v20, %v16556_v43  ;;  %v4367_v43 = vld [vmem:[#allocation3 + $0x3f0] sm:$0xff] }
 0x642   :  { %4616 = vst.msk [vmem:[#allocation3 + $0x3b8] sm:$0xff] %vm47_vm0, %v4488_v62  ;;  %v6978_v56 = vsel %vm6338_vm8, %v6686_v7, 0  ;;  %6823 = vperm.xlu0 %7686, %v6512_v0   ;;  %v6471_v62 = vld [vmem:[#allocation3 + $0x190] sm:$0xff]  ;;  %v4680_v7 = vadd.s32 408, %v13214_v40 }
 0x643   :  { %v3500_v32 = vadd.s32 %v3499_v44, %v3497_v12  ;;  %v7108_v38 = vadd.s32 %v7107_v19, %v6978_v56  ;;  %v3540_v19 = vcvt.f32.s32 %v13065_v59  ;;  %v3554_v59 = vcvt.f32.s32 %v13079_v15  ;;  %v16558_v56 = vld [vmem:[#allocation70_spill] sm:$0xff] }
 0x644   :  { %v3510_v41 = vpop.xlane.xlu1 %3509  ;;  %6682 = vperm.xlu1 %7687, %v6465_v14   ;;  %v4678_v12 = vadd.s32 392, %v13214_v40  ;;  %v3568_v15 = vcvt.f32.s32 %v13093_v45  ;;  %v5118_v39 = vand.u32 127, %v4680_v7  ;;  %v16561_v45 = vld [vmem:[#allocation401_spill] sm:$0xff]  ;;  %v16572_v7 = vld [vmem:[#allocation408_spill] sm:$0xff] }
 0x645   :  { %v4489_v42 = vsel %vm16551_vm7, %v3500_v32, %v4361_v27  ;;  %v3511_v10 = vcvt.f32.s32 %v3510_v41  ;;  %v3541_v24 = vshll.u32 %v3540_v19, 16  ;;  %v3555_v27 = vshll.u32 %v3554_v59, 16  ;;  %v16559_v32 = vld [vmem:[#allocation388_spill] sm:$0xff]  ;;  %v4366_v19 = vld [vmem:[#allocation3 + $0x3e8] sm:$0xff]  ;;  %v6535_v59 = vld [vmem:[#allocation3 + $0x390] sm:$0xff] }
 0x646   :  { %4617 = vst.msk [vmem:[#allocation3 + $0x3c0] sm:$0xff] %vm47_vm0, %v4489_v42  ;;  %6829 = vperm.xlu0 %7686, %v6514_v35   ;;  %vm16560_vm3 = vcmp.lt.f32.partialorder %v16558_v56, %v16559_v32  ;;  %v4365_v41 = vld [vmem:[#allocation3 + $0x3e0] sm:$0xff]  ;;  %v5104_v22 = vand.u32 127, %v4678_v12  ;;  %v3582_v35 = vcvt.f32.s32 %v13107_v61  ;;  %vm13381_vm15 = vcmp.eq.s32.totalorder %v5118_v39, %v16491_v37  ;;  %v16571_v12 = vld [vmem:[#allocation410_spill] sm:$0xff]  ;;  %v4368_v56 = vld [vmem:[#allocation3 + $0x3f8] sm:$0xff] }
 0x647   :  { %v3514_v48 = vadd.s32 %v3513_v51, %v3511_v10  ;;  %v3569_v10 = vshll.u32 %v3568_v15, 16  ;;  %vm16573_vm11 = vcmp.lt.f32.partialorder %v16571_v12, %v16572_v7  ;;  %v6537_v15 = vld [vmem:[#allocation3 + $0x3a0] sm:$0xff]  ;;  %v6538_v39 = vld [vmem:[#allocation3 + $0x3a8] sm:$0xff] }
 0x648   :  { %v3524_v49 = vpop.xlane.xlu1 %3523  ;;  %6688 = vperm.xlu1 %7687, %v6467_v34   ;;  %vm13376_vm14 = vcmp.eq.s32.totalorder %v5104_v22, %v16491_v37  ;;  %v6485_v61 = vld [vmem:[#allocation3 + $0x200] sm:$0xff] }
 0x649   :  { %v4490_v30 = vsel %vm16554_vm9, %v3514_v48, %v4362_v57  ;;  %v3525_v47 = vcvt.f32.s32 %v3524_v49  ;;  %v6692_v11 = vpop.permute.xlu0 %6691  ;;  %v16562_v57 = vld [vmem:[#allocation399_spill] sm:$0xff] }
 0x64a   :  { %4618 = vst.msk [vmem:[#allocation3 + $0x3c8] sm:$0xff] %vm47_vm0, %v4490_v30  ;;  %v6980_v16 = vsel %vm6340_vm12, %v6692_v11, 0  ;;  %6835 = vperm.xlu0 %7686, %v6516_v9   ;;  %vm16563_vm5 = vcmp.lt.f32.partialorder %v16561_v45, %v16562_v57  ;;  %v6475_v30 = vld [vmem:[#allocation3 + $0x1b0] sm:$0xff]  ;;  %v3583_v9 = vshll.u32 %v3582_v35, 16  ;;  %v6481_v35 = vld [vmem:[#allocation3 + $0x1e0] sm:$0xff]  ;;  %v6540_v33 = vld [vmem:[#allocation3 + $0x3b8] sm:$0xff] }
 0x64b   :  { %v3528_v23 = vadd.s32 %v3527_v28, %v3525_v47  ;;  %v13356_v2 = vadd.s32 %v7108_v38, %v6980_v16  ;;  %v6533_v28 = vld [vmem:[#allocation3 + $0x380] sm:$0xff]  ;;  %v4682_v47 = vadd.s32 424, %v13214_v40  ;;  %v16568_v16 = vld [vmem:[#allocation78_spill] sm:$0xff] }
 0x64c   :  { %v3538_v63 = vpop.xlane.xlu1 %3537  ;;  %6694 = vperm.xlu1 %7687, %v6469_v8  }
 0x64d   :  { %v4491_v6 = vsel %vm16557_vm13, %v3528_v23, %v4363_v5  ;;  %v3539_v44 = vcvt.f32.s32 %v3538_v63  ;;  %v3596_v5 = vcvt.f32.s32 %v13121_v60  ;;  %v16569_v23 = vld [vmem:[#allocation398_spill] sm:$0xff]  ;;  %v6477_v60 = vld [vmem:[#allocation3 + $0x1c0] sm:$0xff] }
 0x64e   :  { %4619 = vst.msk [vmem:[#allocation3 + $0x3d0] sm:$0xff] %vm47_vm0, %v4491_v6  ;;  %6841 = vperm.xlu0 %7686, %v6518_v53   ;;  %vm16570_vm4 = vcmp.lt.f32.partialorder %v16568_v16, %v16569_v23  ;;  %v4688_v16 = vadd.s32 472, %v13214_v40  ;;  %v4648_v23 = vadd.s32 152, %v13214_v40 }
 0x64f   :  { %v3542_v58 = vadd.s32 %v3541_v24, %v3539_v44 }
 0x650   :  { %v3552_v0 = vpop.xlane.xlu1 %3551  ;;  %6700 = vperm.xlu1 %7687, %v6471_v62   ;;  %v3597_v62 = vshll.u32 %v3596_v5, 16  ;;  %v6487_v5 = vld [vmem:[#allocation3 + $0x210] sm:$0xff] }
 0x651   :  { %v4492_v38 = vsel %vm16560_vm3, %v3542_v58, %v4364_v54  ;;  %v3553_v14 = vcvt.f32.s32 %v3552_v0  ;;  %v6698_v34 = vpop.permute.xlu0 %6697  ;;  %v5132_v54 = vand.u32 127, %v4682_v47 }
 0x652   :  { %4620 = vst.msk [vmem:[#allocation3 + $0x3d8] sm:$0xff] %vm47_vm0, %v4492_v38  ;;  %6847 = vperm.xlu0 %7686, %v6520_v17   ;;  %v6982_v20 = vsel %vm13376_vm14, %v6698_v34, 0  ;;  %v6479_v38 = vld [vmem:[#allocation3 + $0x1d0] sm:$0xff] }
 0x653   :  { %v3556_v51 = vadd.s32 %v3555_v27, %v3553_v14  ;;  %vm6346_vm10 = vcmp.eq.s32.totalorder %v5132_v54, %v16491_v37  ;;  %v4684_v14 = vadd.s32 440, %v13214_v40  ;;  %v6483_v34 = vld [vmem:[#allocation3 + $0x1f0] sm:$0xff]  ;;  %v4652_v54 = vadd.s32 184, %v13214_v40 }
 0x654   :  { %v3566_v42 = vpop.xlane.xlu1 %3565  ;;  %6706 = vperm.xlu1 %7687, %v6473_v50  }
 0x655   :  { %v4493_v48 = vsel %vm16563_vm5, %v3556_v51, %v4365_v41  ;;  %v3567_v49 = vcvt.f32.s32 %v3566_v42  ;;  %v16574_v41 = vld [vmem:[#allocation409_spill] sm:$0xff]  ;;  %v16575_v51 = vld [vmem:[#allocation407_spill] sm:$0xff]  ;;  %v5146_v45 = vand.u32 127, %v4684_v14  ;;  %v6543_v12 = vld [vmem:[#allocation3 + $0x3d0] sm:$0xff]  ;;  %v4656_v14 = vadd.s32 216, %v13214_v40 }
 0x656   :  { %4621 = vst.msk [vmem:[#allocation3 + $0x3e0] sm:$0xff] %vm47_vm0, %v4493_v48  ;;  %6886 = vperm.xlu0 %7686, %v6533_v28   ;;  %vm16576_vm6 = vcmp.lt.f32.partialorder %v16574_v41, %v16575_v51  ;;  %v6539_v48 = vld [vmem:[#allocation3 + $0x3b0] sm:$0xff] }
 0x657   :  { %v3570_v55 = vadd.s32 %v3569_v10, %v3567_v49  ;;  %vm6348_vm2 = vcmp.eq.s32.totalorder %v5146_v45, %v16491_v37  ;;  %v4686_v49 = vadd.s32 456, %v13214_v40 }
 0x658   :  { %v3580_v11 = vpop.xlane.xlu1 %3579  ;;  %6712 = vperm.xlu1 %7687, %v6475_v30  }
 0x659   :  { %v4494_v8 = vsel %vm16570_vm4, %v3570_v55, %v4366_v19  ;;  %v3581_v63 = vcvt.f32.s32 %v3580_v11  ;;  %v6704_v24 = vpop.permute.xlu0 %6703  ;;  %v5160_v47 = vand.u32 127, %v4686_v49 }
 0x65a   :  { %4622 = vst.msk [vmem:[#allocation3 + $0x3e8] sm:$0xff] %vm47_vm0, %v4494_v8  ;;  %v6984_v6 = vsel %vm13381_vm15, %v6704_v24, 0  ;;  %6892 = vperm.xlu0 %7686, %v6535_v59   ;;  %v6542_v59 = vld [vmem:[#allocation3 + $0x3c8] sm:$0xff] }
 0x65b   :  { %v3584_v44 = vadd.s32 %v3583_v9, %v3581_v63  ;;  %v7124_v53 = vadd.s32 %v6984_v6, %v6982_v20  ;;  %v6541_v9 = vld [vmem:[#allocation3 + $0x3c0] sm:$0xff]  ;;  %v4646_v63 = vadd.s32 136, %v13214_v40  ;;  %v4650_v20 = vadd.s32 168, %v13214_v40 }
 0x65c   :  { %v3594_v58 = vpop.xlane.xlu1 %3593  ;;  %6718 = vperm.xlu1 %7687, %v6477_v60   ;;  %v4894_v60 = vand.u32 127, %v4648_v23 }
 0x65d   :  { %v4495_v0 = vsel %vm16573_vm11, %v3584_v44, %v4367_v43  ;;  %v3595_v27 = vcvt.f32.s32 %v3594_v58  ;;  %v6489_v44 = vld [vmem:[#allocation3 + $0x220] sm:$0xff]  ;;  %v4908_v7 = vand.u32 127, %v4650_v20 }
 0x65e   :  { %4623 = vst.msk [vmem:[#allocation3 + $0x3f0] sm:$0xff] %vm47_vm0, %v4495_v0  ;;  %6898 = vperm.xlu0 %7686, %v6537_v15   ;;  %v4654_v0 = vadd.s32 200, %v13214_v40  ;;  %vm13433_vm1 = vcmp.eq.s32.totalorder %v4894_v60, %v16491_v37  ;;  %v4630_v15 = vadd.s32 8, %v13214_v40 }
 0x65f   :  { %v3598_v32 = vadd.s32 %v3597_v62, %v3595_v27  ;;  %v4880_v62 = vand.u32 127, %v4646_v63  ;;  %v6491_v27 = vld [vmem:[#allocation3 + $0x230] sm:$0xff]  ;;  %vm13446_vm12 = vcmp.eq.s32.totalorder %v4908_v7, %v16491_v37  ;;  %v6952_v45 = vsel %vm13433_vm1, %v13178_v46, 0 }
 0x660   :  { %6724 = vperm.xlu1 %7687, %v6479_v38   ;;  %v13401_v17 = vpop.permute.xlu1 %6553  ;;  %v4922_v38 = vand.u32 127, %v4652_v54  ;;  %v6954_v46 = vsel %vm13446_vm12, %v13185_v31, 0  ;;  %v4692_v31 = vadd.s32 504, %v13214_v40 }
 0x661   :  { %v4496_v22 = vsel %vm16576_vm6, %v3598_v32, %v4368_v56  ;;  %v6710_v50 = vpop.permute.xlu0 %6709  ;;  %v4690_v56 = vadd.s32 488, %v13214_v40  ;;  %vm13441_vm7 = vcmp.eq.s32.totalorder %v4880_v62, %v16491_v37 }
 0x662   :  { %4624 = vst.msk [vmem:[#allocation3 + $0x3f8] sm:$0xff] %vm47_vm0, %v4496_v22  ;;  %v6986_v42 = vsel %vm6346_vm10, %v6710_v50, 0  ;;  %6901 = vperm.xlu0 %7686, %v6538_v39   ;;  %vm6350_vm0 = vcmp.eq.s32.totalorder %v5160_v47, %v16491_v37  ;;  %v6544_v50 = vld [vmem:[#allocation3 + $0x3d8] sm:$0xff]  ;;  %vm13457_vm9 = vcmp.eq.s32.totalorder %v4922_v38, %v16491_v37  ;;  %v6545_v47 = vld [vmem:[#allocation3 + $0x3e0] sm:$0xff]  ;;  %v5202_v7 = vand.u32 127, %v4692_v31 }
 0x663   :  { %v7125_v10 = vadd.s32 %v7124_v53, %v6986_v42  ;;  %v5174_v53 = vand.u32 127, %v4688_v16  ;;  %v4936_v42 = vand.u32 127, %v4654_v0  ;;  %v5188_v49 = vand.u32 127, %v4690_v56 }
 0x664   :  { %6730 = vperm.xlu1 %7687, %v6481_v35   ;;  %v13407_v57 = vpop.permute.xlu1 %6556  ;;  %v6956_v23 = vsel %vm13457_vm9, %v13192_v18, 0  ;;  %v13500_v0 = vadd.s32 72, %v13214_v40  ;;  %v4631_v38 = vadd.s32 16, %v13214_v40  ;;  %v4634_v39 = vadd.s32 40, %v13214_v40 }
 0x665   :  { %vm13427_vm8 = vcmp.eq.s32.totalorder %v5174_v53, %v16491_v37  ;;  %vm13471_vm13 = vcmp.eq.s32.totalorder %v4936_v42, %v16491_v37  ;;  %vm6354_vm3 = vcmp.eq.s32.totalorder %v5188_v49, %v16491_v37  ;;  %v4635_v42 = vadd.s32 48, %v13214_v40 }
 0x666   :  { %6904 = vperm.xlu0 %7686, %v6539_v48   ;;  %v6958_v20 = vsel %vm13471_vm13, %v13199_v52, 0  ;;  %v4761_v52 = vand.u32 127, %v13214_v40  ;;  %vm13519_vm4 = vcmp.eq.s32.totalorder %v5202_v7, %v16491_v37  ;;  %v4637_v53 = vadd.s32 64, %v13214_v40 }
 0x667   :  { %v4647_v7 = vadd.s32 144, %v13214_v40 }
 0x668   :  { %6736 = vperm.xlu1 %7687, %v6483_v34   ;;  %v13411_v28 = vpop.permute.xlu1 %6559  ;;  %v6493_v34 = vld [vmem:[#allocation3 + $0x240] sm:$0xff]  ;;  %vm13526_vm11 = vcmp.eq.s32.totalorder %v4761_v52, %v16491_v37 }
 0x669   :  { %v6716_v19 = vpop.permute.xlu0 %6715 }
 0x66a   :  { %v6988_v55 = vsel %vm6348_vm2, %v6716_v19, 0  ;;  %6907 = vperm.xlu0 %7686, %v6540_v33   ;;  %v4950_v33 = vand.u32 127, %v4656_v14  ;;  %v6547_v14 = vld [vmem:[#allocation3 + $0x3f0] sm:$0xff]  ;;  %v4768_v19 = vand.u32 127, %v4630_v15 }
 0x66b   :  { %v7126_v30 = vadd.s32 %v7125_v10, %v6988_v55  ;;  %v4658_v10 = vadd.s32 232, %v13214_v40 }
 0x66c   :  { %6742 = vperm.xlu1 %7687, %v6485_v61   ;;  %v13413_v11 = vpop.permute.xlu1 %6562  ;;  %v4660_v61 = vadd.s32 248, %v13214_v40  ;;  %vm13481_vm5 = vcmp.eq.s32.totalorder %v4950_v33, %v16491_v37  ;;  %vm13548_vm10 = vcmp.eq.s32.totalorder %v4768_v19, %v16491_v37  ;;  %v4651_v19 = vadd.s32 176, %v13214_v40 }
 0x66d   :  { %v4964_v16 = vand.u32 127, %v4658_v10  ;;  %v6960_v54 = vsel %vm13481_vm5, %v13206_v26, 0  ;;  %v6499_v10 = vld [vmem:[#allocation3 + $0x270] sm:$0xff] }
 0x66e   :  { %6910 = vperm.xlu0 %7686, %v6541_v9  }
 0x66f   :  { %vm13491_vm14 = vcmp.eq.s32.totalorder %v4964_v16, %v16491_v37 }
 0x670   :  { %6748 = vperm.xlu1 %7687, %v6487_v5   ;;  %v13418_v8 = vpop.permute.xlu1 %6565  ;;  %v6962_v32 = vsel %vm13491_vm14, %v13216_v13, 0  ;;  %v4698_v5 = vadd.s32 552, %v13214_v40  ;;  %v4649_v13 = vadd.s32 160, %v13214_v40 }
 0x671   :  { %v6722_v24 = vpop.permute.xlu0 %6721 }
 0x672   :  { %v6990_v43 = vsel %vm6350_vm0, %v6722_v24, 0  ;;  %6913 = vperm.xlu0 %7686, %v6542_v59   ;;  %v5244_v52 = vand.u32 127, %v4698_v5 }
 0x673   :  { %v7127_v6 = vadd.s32 %v7126_v30, %v6990_v43  ;;  %v6950_v30 = vsel %vm13441_vm7, %v13171_v29, 0  ;;  %v6495_v29 = vld [vmem:[#allocation3 + $0x250] sm:$0xff]  ;;  %v4978_v43 = vand.u32 127, %v4660_v61  ;;  %v4636_v61 = vadd.s32 56, %v13214_v40 }
 0x674   :  { %6754 = vperm.xlu1 %7687, %v6489_v44   ;;  %v13423_v58 = vpop.permute.xlu1 %6568  ;;  %v7082_v9 = vadd.s32 %v6952_v45, %v6950_v30  ;;  %v4696_v45 = vadd.s32 536, %v13214_v40  ;;  %vm13608_vm13 = vcmp.eq.s32.totalorder %v5244_v52, %v16491_v37 }
 0x675   :  { %vm13509_vm15 = vcmp.eq.s32.totalorder %v4978_v43, %v16491_v37 }
 0x676   :  { %6916 = vperm.xlu0 %7686, %v6543_v12   ;;  %v7083_v63 = vadd.s32 %v7082_v9, %v6954_v46  ;;  %v6497_v12 = vld [vmem:[#allocation3 + $0x260] sm:$0xff]  ;;  %v6964_v30 = vsel %vm13509_vm15, %v13225_v36, 0  ;;  %v4775_v46 = vand.u32 127, %v4631_v38  ;;  %v6548_v9 = vld [vmem:[#allocation3 + $0x3f8] sm:$0xff]  ;;  %v5230_v36 = vand.u32 127, %v4696_v45 }
 0x678   :  { %6760 = vperm.xlu1 %7687, %v6491_v27   ;;  %v13438_v41 = vpop.permute.xlu1 %6571  ;;  %v7084_v44 = vadd.s32 %v7083_v63, %v6956_v23  ;;  %v4803_v63 = vand.u32 127, %v4635_v42  ;;  %vm13558_vm6 = vcmp.eq.s32.totalorder %v4775_v46, %v16491_v37  ;;  %vm13588_vm12 = vcmp.eq.s32.totalorder %v5230_v36, %v16491_v37 }
 0x679   :  { %v6728_v22 = vpop.permute.xlu0 %6727  ;;  %v13597_v42 = vadd.s32 80, %v13214_v40 }
 0x67a   :  { %v6992_v35 = vsel %vm13427_vm8, %v6728_v22, 0  ;;  %6919 = vperm.xlu0 %7686, %v6544_v50   ;;  %v7085_v27 = vadd.s32 %v7084_v44, %v6958_v20  ;;  %v4632_v22 = vadd.s32 24, %v13214_v40  ;;  %v4633_v50 = vadd.s32 32, %v13214_v40  ;;  %v6501_v20 = vld [vmem:[#allocation3 + $0x280] sm:$0xff]  ;;  %v6511_v44 = vld [vmem:[#allocation3 + $0x2d0] sm:$0xff] }
 0x67b   :  { %v7128_v48 = vadd.s32 %v7127_v6, %v6992_v35  ;;  %v6546_v6 = vld [vmem:[#allocation3 + $0x3e8] sm:$0xff]  ;;  %v4694_v35 = vadd.s32 520, %v13214_v40  ;;  %vm13578_vm1 = vcmp.eq.s32.totalorder %v4803_v63, %v16491_v37  ;;  %v4901_v63 = vand.u32 127, %v4649_v13 }
 0x67c   :  { %6766 = vperm.xlu1 %7687, %v6493_v34   ;;  %v13461_v55 = vpop.permute.xlu1 %6574  ;;  %v7086_v51 = vadd.s32 %v7085_v27, %v6960_v54  ;;  %v4824_v34 = vand.u32 127, %v13500_v0  ;;  %v4782_v16 = vand.u32 127, %v4632_v22  ;;  %v4789_v23 = vand.u32 127, %v4633_v50  ;;  %v6507_v27 = vld [vmem:[#allocation3 + $0x2b0] sm:$0xff] }
 0x67d   :  { %v5216_v43 = vand.u32 127, %v4694_v35  ;;  %v4810_v54 = vand.u32 127, %v4636_v61  ;;  %v4700_v22 = vadd.s32 568, %v13214_v40  ;;  %v6934_v50 = vsel %vm13548_vm10, %v13401_v17, 0 }
 0x67e   :  { %6922 = vperm.xlu0 %7686, %v6545_v47   ;;  %v7087_v49 = vadd.s32 %v7086_v51, %v6962_v32  ;;  %vm13563_vm2 = vcmp.eq.s32.totalorder %v4782_v16, %v16491_v37  ;;  %vm13568_vm0 = vcmp.eq.s32.totalorder %v4789_v23, %v16491_v37  ;;  %v6505_v16 = vld [vmem:[#allocation3 + $0x2a0] sm:$0xff]  ;;  %v6939_v0 = vsel %vm13578_vm1, %v13423_v58, 0  ;;  %v6515_v58 = vld [vmem:[#allocation3 + $0x2f0] sm:$0xff] }
 0x67f   :  { %vm13583_vm7 = vcmp.eq.s32.totalorder %v5216_v43, %v16491_v37  ;;  %vm13603_vm9 = vcmp.eq.s32.totalorder %v4810_v54, %v16491_v37  ;;  %v5258_v23 = vand.u32 127, %v4700_v22  ;;  %v4704_v43 = vadd.s32 600, %v13214_v40 }
 0x680   :  { %6772 = vperm.xlu1 %7687, %v6495_v29   ;;  %v13485_v59 = vpop.permute.xlu1 %6580  ;;  %v4796_v29 = vand.u32 127, %v4634_v39  ;;  %v4817_v39 = vand.u32 127, %v4637_v53  ;;  %v6937_v54 = vsel %vm13568_vm0, %v13413_v11, 0  ;;  %v4655_v22 = vadd.s32 208, %v13214_v40 }
 0x681   :  { %v6734_v18 = vpop.permute.xlu0 %6733  ;;  %vm13648_vm15 = vcmp.eq.s32.totalorder %v5258_v23, %v16491_v37  ;;  %v6940_v26 = vsel %vm13603_vm9, %v13438_v41, 0 }
 0x682   :  { %v6994_v60 = vsel %vm6354_vm3, %v6734_v18, 0  ;;  %6925 = vperm.xlu0 %7686, %v6546_v6   ;;  %v6933_v18 = vsel %vm13526_vm11, %v13131_v3, 0  ;;  %v13545_v6 = vadd.s32 %v7087_v49, %v6964_v30  ;;  %vm13573_vm8 = vcmp.eq.s32.totalorder %v4796_v29, %v16491_v37 }
 0x683   :  { %v7129_v62 = vadd.s32 %v7128_v48, %v6994_v60  ;;  %v4887_v48 = vand.u32 127, %v4647_v7  ;;  %v6935_v30 = vsel %vm13558_vm6, %v13407_v57, 0  ;;  %v4702_v29 = vadd.s32 584, %v13214_v40 }
 0x684   :  { %6778 = vperm.xlu1 %7687, %v6497_v12   ;;  %v13503_v56 = vpop.permute.xlu1 %6586  ;;  %vm13626_vm3 = vcmp.eq.s32.totalorder %v4817_v39, %v16491_v37  ;;  %v6938_v11 = vsel %vm13573_vm8, %v13418_v8, 0  ;;  %vm13664_vm11 = vcmp.eq.s32.totalorder %v4824_v34, %v16491_v37 }
 0x685   :  { %vm13641_vm14 = vcmp.eq.s32.totalorder %v4887_v48, %v16491_v37  ;;  %v6941_v41 = vsel %vm13626_vm3, %v13461_v55, 0 }
 0x686   :  { %6928 = vperm.xlu0 %7686, %v6547_v14   ;;  %v6503_v14 = vld [vmem:[#allocation3 + $0x290] sm:$0xff] }
 0x688   :  { %6784 = vperm.xlu1 %7687, %v6499_v10   ;;  %v13531_v33 = vpop.permute.xlu1 %6592 }
 0x689   :  { %v6740_v47 = vpop.permute.xlu0 %6739 }
 0x68a   :  { %v6996_v31 = vsel %vm13519_vm4, %v6740_v47, 0  ;;  %6931 = vperm.xlu0 %7686, %v6548_v9   ;;  %v4653_v47 = vadd.s32 192, %v13214_v40  ;;  %v7061_v9 = vadd.s32 %v6934_v50, %v6933_v18  ;;  %v4831_v18 = vand.u32 127, %v13597_v42 }
 0x68b   :  { %v13540_v24 = vadd.s32 %v7129_v62, %v6996_v31  ;;  %v4645_v62 = vadd.s32 128, %v13214_v40  ;;  %v6936_v31 = vsel %vm13563_vm2, %v13411_v28, 0  ;;  %v4915_v28 = vand.u32 127, %v4651_v19 }
 0x68c   :  { %6790 = vperm.xlu1 %7687, %v6501_v20   ;;  %v13553_v60 = vpop.permute.xlu1 %6598  ;;  %v7062_v36 = vadd.s32 %v7061_v9, %v6935_v30  ;;  %v4929_v7 = vand.u32 127, %v4653_v47  ;;  %vm13656_vm4 = vcmp.eq.s32.totalorder %v4901_v63, %v16491_v37  ;;  %v5286_v50 = vand.u32 127, %v4704_v43  ;;  %v6509_v30 = vld [vmem:[#allocation3 + $0x2c0] sm:$0xff] }
 0x68d   :  { %v6746_v12 = vpop.permute.xlu0 %6745  ;;  %v4873_v45 = vand.u32 127, %v4645_v62  ;;  %vm13672_vm10 = vcmp.eq.s32.totalorder %v4915_v28, %v16491_v37  ;;  %v4943_v47 = vand.u32 127, %v4655_v22  ;;  %vm13718_vm8 = vcmp.eq.s32.totalorder %v4831_v18, %v16491_v37 }
 0x68e   :  { %v6998_v46 = vsel %vm13583_vm7, %v6746_v12, 0  ;;  %v7063_v52 = vadd.s32 %v7062_v36, %v6936_v31  ;;  %vm13683_vm6 = vcmp.eq.s32.totalorder %v4929_v7, %v16491_v37  ;;  %vm13701_vm0 = vcmp.eq.s32.totalorder %v5286_v50, %v16491_v37 }
 0x68f   :  { %vm13633_vm5 = vcmp.eq.s32.totalorder %v4873_v45, %v16491_v37  ;;  %v4657_v45 = vadd.s32 224, %v13214_v40  ;;  %vm13723_vm1 = vcmp.eq.s32.totalorder %v4943_v47, %v16491_v37  ;;  %v4641_v18 = vadd.s32 96, %v13214_v40 }
 0x690   :  { %6796 = vperm.xlu1 %7687, %v6503_v14   ;;  %v13599_v10 = vpop.permute.xlu1 %6604  ;;  %v5272_v14 = vand.u32 127, %v4702_v29  ;;  %v7064_v42 = vadd.s32 %v7063_v52, %v6937_v54  ;;  %v6949_v8 = vsel %vm13633_vm5, %v13553_v60, 0  ;;  %v4706_v60 = vadd.s32 616, %v13214_v40 }
 0x691   :  { %v6752_v49 = vpop.permute.xlu0 %6751  ;;  %v6951_v17 = vsel %vm13641_vm14, %v13599_v10, 0  ;;  %v4957_v23 = vand.u32 127, %v4657_v45  ;;  %v4659_v29 = vadd.s32 240, %v13214_v40  ;;  %v6943_v39 = vsel %vm13718_vm8, %v13485_v59, 0 }
 0x692   :  { %v7000_v61 = vsel %vm13588_vm12, %v6752_v49, 0  ;;  %v7065_v49 = vadd.s32 %v7064_v42, %v6938_v11  ;;  %vm13692_vm2 = vcmp.eq.s32.totalorder %v5272_v14, %v16491_v37  ;;  %v5300_v31 = vand.u32 127, %v4706_v60 }
 0x693   :  { %v7145_v5 = vadd.s32 %v7000_v61, %v6998_v46  ;;  %v7089_v46 = vadd.s32 %v13545_v6, %v6949_v8  ;;  %v4971_v52 = vand.u32 127, %v4659_v29  ;;  %vm13734_vm7 = vcmp.eq.s32.totalorder %v4957_v23, %v16491_v37 }
 0x694   :  { %6802 = vperm.xlu1 %7687, %v6505_v16   ;;  %v6611_v20 = vpop.permute.xlu1 %6610  ;;  %v7066_v10 = vadd.s32 %v7065_v49, %v6939_v0  ;;  %vm13741_vm12 = vcmp.eq.s32.totalorder %v5300_v31, %v16491_v37  ;;  %v6942_v42 = vsel %vm13664_vm11, %v13141_v4, 0  ;;  %v4643_v31 = vadd.s32 112, %v13214_v40 }
 0x695   :  { %v6758_v53 = vpop.permute.xlu0 %6757  ;;  %v7090_v6 = vadd.s32 %v7089_v46, %v6951_v17  ;;  %vm13751_vm9 = vcmp.eq.s32.totalorder %v4971_v52, %v16491_v37  ;;  %v4663_v17 = vadd.s32 272, %v13214_v40  ;;  %v4642_v46 = vadd.s32 104, %v13214_v40 }
 0x696   :  { %v7002_v12 = vsel %vm13608_vm13, %v6758_v53, 0  ;;  %v7067_v63 = vadd.s32 %v7066_v10, %v6940_v26  ;;  %v4640_v53 = vadd.s32 88, %v13214_v40 }
 0x697   :  { %v7146_v3 = vadd.s32 %v7145_v5, %v7002_v12  ;;  %v6953_v5 = vsel %vm13656_vm4, %v6611_v20, 0  ;;  %v4708_v20 = vadd.s32 632, %v13214_v40 }
 0x698   :  { %6808 = vperm.xlu1 %7687, %v6507_v27   ;;  %v6617_v51 = vpop.permute.xlu1 %6616  ;;  %v7091_v55 = vadd.s32 %v7090_v6, %v6953_v5  ;;  %v7068_v62 = vadd.s32 %v7067_v63, %v6941_v41  ;;  %v4838_v8 = vand.u32 127, %v4640_v53  ;;  %v4999_v41 = vand.u32 127, %v4663_v17 }
 0x699   :  { %v6764_v13 = vpop.permute.xlu0 %6763  ;;  %v6955_v43 = vsel %vm13672_vm10, %v6617_v51, 0  ;;  %v6513_v51 = vld [vmem:[#allocation3 + $0x2e0] sm:$0xff]  ;;  %v5314_v50 = vand.u32 127, %v4708_v20  ;;  %v4665_v6 = vadd.s32 288, %v13214_v40 }
 0x69a   :  { %v7004_v34 = vsel %vm13648_vm15, %v6764_v13, 0  ;;  %v7092_v27 = vadd.s32 %v7091_v55, %v6955_v43  ;;  %v7069_v45 = vadd.s32 %v7068_v62, %v6942_v42  ;;  %vm13768_vm3 = vcmp.eq.s32.totalorder %v4838_v8, %v16491_v37  ;;  %v6517_v43 = vld [vmem:[#allocation3 + $0x300] sm:$0xff] }
 0x69b   :  { %v7147_v19 = vadd.s32 %v7146_v3, %v7004_v34  ;;  %v4661_v3 = vadd.s32 256, %v13214_v40  ;;  %vm13762_vm13 = vcmp.eq.s32.totalorder %v5314_v50, %v16491_v37  ;;  %v4667_v55 = vadd.s32 304, %v13214_v40 }
 0x69c   :  { %6814 = vperm.xlu1 %7687, %v6509_v30   ;;  %v6623_v61 = vpop.permute.xlu1 %6622  ;;  %v7070_v9 = vadd.s32 %v7069_v45, %v6943_v39  ;;  %vm6327_vm15 = vcmp.eq.s32.totalorder %v4999_v41, %v16491_v37  ;;  %v5013_v62 = vand.u32 127, %v4665_v6  ;;  %v4671_v45 = vadd.s32 336, %v13214_v40  ;;  %v6523_v41 = vld [vmem:[#allocation3 + $0x330] sm:$0xff] }
 0x69d   :  { %v6770_v16 = vpop.permute.xlu0 %6769  ;;  %v6957_v12 = vsel %vm13683_vm6, %v6623_v61, 0  ;;  %v4985_v60 = vand.u32 127, %v4661_v3  ;;  %v4644_v3 = vadd.s32 120, %v13214_v40 }
 0x69e   :  { %v7006_v35 = vsel %vm13692_vm2, %v6770_v16, 0  ;;  %v7093_v32 = vadd.s32 %v7092_v27, %v6957_v12  ;;  %v4859_v12 = vand.u32 127, %v4643_v31  ;;  %vm6329_vm11 = vcmp.eq.s32.totalorder %v5013_v62, %v16491_v37 }
 0x69f   :  { %v7148_v36 = vadd.s32 %v7147_v19, %v7006_v35  ;;  %v4845_v19 = vand.u32 127, %v4641_v18  ;;  %vm13775_vm5 = vcmp.eq.s32.totalorder %v4985_v60, %v16491_v37  ;;  %v4866_v22 = vand.u32 127, %v4644_v3 }
 0x6a0   :  { %6820 = vperm.xlu1 %7687, %v6511_v44   ;;  %v6629_v54 = vpop.permute.xlu1 %6628  ;;  %v4852_v44 = vand.u32 127, %v4642_v46  ;;  %vm13812_vm10 = vcmp.eq.s32.totalorder %v4859_v12, %v16491_v37  ;;  %v5055_v39 = vand.u32 127, %v4671_v45  ;;  %v4675_v46 = vadd.s32 368, %v13214_v40 }
 0x6a1   :  { %v6776_v7 = vpop.permute.xlu0 %6775  ;;  %v6959_v11 = vsel %vm13723_vm1, %v6629_v54, 0  ;;  %vm13785_vm14 = vcmp.eq.s32.totalorder %v4845_v19, %v16491_v37  ;;  %v6947_v8 = vsel %vm13812_vm10, %v13531_v33, 0  ;;  %vm6308_vm2 = vcmp.eq.s32.totalorder %v4866_v22, %v16491_v37 }
 0x6a2   :  { %v7008_v38 = vsel %vm13701_vm0, %v6776_v7, 0  ;;  %v7094_v4 = vadd.s32 %v7093_v32, %v6959_v11  ;;  %v6945_v57 = vsel %vm13785_vm14, %v13503_v56, 0  ;;  %vm13804_vm4 = vcmp.eq.s32.totalorder %v4852_v44, %v16491_v37  ;;  %v6521_v11 = vld [vmem:[#allocation3 + $0x320] sm:$0xff] }
 0x6a3   :  { %v7149_v15 = vadd.s32 %v7148_v36, %v7008_v38  ;;  %v6944_v36 = vsel %vm13768_vm3, %v13150_v1, 0  ;;  %v6519_v1 = vld [vmem:[#allocation3 + $0x310] sm:$0xff]  ;;  %v5027_v38 = vand.u32 127, %v4667_v55  ;;  %v6948_v33 = vsel %vm6308_vm2, %v13164_v25, 0  ;;  %v6525_v7 = vld [vmem:[#allocation3 + $0x340] sm:$0xff] }
 0x6a4   :  { %6826 = vperm.xlu1 %7687, %v6513_v51   ;;  %v6635_v13 = vpop.permute.xlu1 %6634  ;;  %v7071_v53 = vadd.s32 %v7070_v9, %v6944_v36  ;;  %vm6335_vm8 = vcmp.eq.s32.totalorder %v5055_v39, %v16491_v37  ;;  %v5083_v25 = vand.u32 127, %v4675_v46  ;;  %v4677_v16 = vadd.s32 384, %v13214_v40 }
 0x6a5   :  { %v6961_v0 = vsel %vm13734_vm7, %v6635_v13, 0  ;;  %v6782_v34 = vpop.permute.xlu0 %6781  ;;  %vm6331_vm6 = vcmp.eq.s32.totalorder %v5027_v38, %v16491_v37  ;;  %v4679_v44 = vadd.s32 400, %v13214_v40  ;;  %v4681_v62 = vadd.s32 416, %v13214_v40 }
 0x6a6   :  { %v7010_v49 = vsel %vm13741_vm12, %v6782_v34, 0  ;;  %v7095_v61 = vadd.s32 %v7094_v4, %v6961_v0  ;;  %v7072_v18 = vadd.s32 %v7071_v53, %v6945_v57  ;;  %v6534_v0 = vld [vmem:[#allocation3 + $0x388] sm:$0xff]  ;;  %v4673_v4 = vadd.s32 352, %v13214_v40  ;;  %v6524_v53 = vld [vmem:[#allocation3 + $0x338] sm:$0xff] }
 0x6a7   :  { %v7150_v30 = vadd.s32 %v7149_v15, %v7010_v49  ;;  %v6946_v15 = vsel %vm13804_vm4, %v13157_v21, 0  ;;  %v6536_v49 = vld [vmem:[#allocation3 + $0x398] sm:$0xff]  ;;  %vm6339_vm7 = vcmp.eq.s32.totalorder %v5083_v25, %v16491_v37  ;;  %v5097_v36 = vand.u32 127, %v4677_v16 }
 0x6a8   :  { %6832 = vperm.xlu1 %7687, %v6515_v58   ;;  %v6641_v47 = vpop.permute.xlu1 %6640  ;;  %v7073_v50 = vadd.s32 %v7072_v18, %v6946_v15  ;;  %v5069_v26 = vand.u32 127, %v4673_v4  ;;  %v4683_v38 = vadd.s32 432, %v13214_v40  ;;  %v5125_v14 = vand.u32 127, %v4681_v62  ;;  %v6526_v15 = vld [vmem:[#allocation3 + $0x348] sm:$0xff] }
 0x6a9   :  { %v6963_v10 = vsel %vm13751_vm9, %v6641_v47, 0  ;;  %v6788_v5 = vpop.permute.xlu0 %6787  ;;  %v6522_v47 = vld [vmem:[#allocation3 + $0x328] sm:$0xff]  ;;  %vm6341_vm12 = vcmp.eq.s32.totalorder %v5097_v36, %v16491_v37  ;;  %vm7229_vm3 = vcmask 1041409   ;;  %vm7231_vm14 = vcmask 1042434  }
 0x6aa   :  { %v13779_v23 = vadd.s32 %v7095_v61, %v6963_v10  ;;  %v7012_v29 = vsel %vm13762_vm13, %v6788_v5, 0  ;;  %v7074_v21 = vadd.s32 %v7073_v50, %v6947_v8  ;;  %vm6337_vm1 = vcmp.eq.s32.totalorder %v5069_v26, %v16491_v37 }
 0x6ab   :  { %v13790_v63 = vadd.s32 %v7150_v30, %v7012_v29  ;;  %vm6345_vm13 = vcmp.eq.s32.totalorder %v5125_v14, %v16491_v37  ;;  %v4695_v62 = vadd.s32 528, %v13214_v40 }
 0x6ac   :  { %6838 = vperm.xlu1 %7687, %v6517_v43   ;;  %v6647_v20 = vpop.permute.xlu1 %6646  ;;  %v7075_v19 = vadd.s32 %v7074_v21, %v6948_v33  ;;  %v7097_v61 = vrot.slane %v13779_v23, 4 }
 0x6ad   :  { %v6965_v28 = vsel %vm13775_vm5, %v6647_v20, 0 }
 0x6ae   :  { %v7110_v54 = vadd.s32 %v13356_v2, %v6965_v28  ;;  %v4669_v2 = vadd.s32 320, %v13214_v40  ;;  %v7076_v9 = vrot.slane %v7075_v19, 4  ;;  %v7098_v29 = vadd.s32 %v7097_v61, %v13779_v23 }
 0x6af   :  { %v5111_v23 = vand.u32 127, %v4679_v44 }
 0x6b0   :  { %6844 = vperm.xlu1 %7687, %v6519_v1   ;;  %v6653_v52 = vpop.permute.xlu1 %6652  ;;  %v5041_v13 = vand.u32 127, %v4669_v2  ;;  %v7077_v35 = vadd.s32 %v7076_v9, %v7075_v19  ;;  %v7099_v20 = vrot.slane %v7098_v29, 2  ;;  %v13838_v1 = vpop.permute.xlu0 %6793  ;;  %v4689_v9 = vadd.s32 480, %v13214_v40 }
 0x6b1   :  { %v6967_v27 = vsel %vm6327_vm15, %v6653_v52, 0  ;;  %vm6343_vm9 = vcmp.eq.s32.totalorder %v5111_v23, %v16491_v37 }
 0x6b2   :  { %v7111_v56 = vadd.s32 %v7110_v54, %v6967_v27  ;;  %vm6333_vm0 = vcmp.eq.s32.totalorder %v5041_v13, %v16491_v37  ;;  %v7078_v55 = vrot.slane %v7077_v35, 2  ;;  %v7100_v12 = vadd.s32 %v7099_v20, %v7098_v29 }
 0x6b3   :  { %v4693_v20 = vadd.s32 512, %v13214_v40 }
 0x6b4   :  { %6850 = vperm.xlu1 %7687, %v6521_v11   ;;  %v6659_v51 = vpop.permute.xlu1 %6658  ;;  %v7079_v18 = vadd.s32 %v7078_v55, %v7077_v35  ;;  %v7101_v11 = vrot.slane %v7100_v12, 1  ;;  %v6530_v35 = vld [vmem:[#allocation3 + $0x368] sm:$0xff] }
 0x6b5   :  { %v6969_v42 = vsel %vm6329_vm11, %v6659_v51, 0  ;;  %v5209_v23 = vand.u32 127, %v4693_v20 }
 0x6b6   :  { %v7112_v32 = vadd.s32 %v7111_v56, %v6969_v42  ;;  %v7080_v50 = vrot.slane %v7079_v18, 1  ;;  %v13843_v42 = vpop.permute.xlu0 %6799 }
 0x6b8   :  { %6889 = vperm.xlu1 %7687, %v6534_v0   ;;  %v6665_v34 = vpop.permute.xlu1 %6664  ;;  %v4685_v0 = vadd.s32 448, %v13214_v40 }
 0x6b9   :  { %v6971_v48 = vsel %vm6331_vm6, %v6665_v34, 0  ;;  %v6527_v34 = vld [vmem:[#allocation3 + $0x350] sm:$0xff]  ;;  %vm6357_vm6 = vcmp.eq.s32.totalorder %v5209_v23, %v16491_v37 }
 0x6ba   :  { %v7113_v60 = vadd.s32 %v7112_v32, %v6971_v48  ;;  %v5139_v32 = vand.u32 127, %v4683_v38  ;;  %v5153_v33 = vand.u32 127, %v4685_v0  ;;  %v4697_v38 = vadd.s32 544, %v13214_v40 }
 0x6bc   :  { %6895 = vperm.xlu1 %7687, %v6536_v49   ;;  %v6671_v17 = vpop.permute.xlu1 %6670  ;;  %vm6347_vm5 = vcmp.eq.s32.totalorder %v5139_v32, %v16491_v37  ;;  %vm6349_vm15 = vcmp.eq.s32.totalorder %v5153_v33, %v16491_v37 }
 0x6bd   :  { %v6973_v30 = vsel %vm6333_vm0, %v6671_v17, 0  ;;  %v4687_v17 = vadd.s32 464, %v13214_v40 }
 0x6be   :  { %v7114_v58 = vadd.s32 %v7113_v60, %v6973_v30  ;;  %v7081_v60 = vadd.s32 %v7080_v50, %v7079_v18  ;;  %v13849_v30 = vpop.permute.xlu0 %6805 }
 0x6c0   :  { %6853 = vperm.xlu1 %7687, %v6522_v47   ;;  %v6677_v59 = vpop.permute.xlu1 %6676 }
 0x6c1   :  { %v6975_v10 = vsel %vm6335_vm8, %v6677_v59, 0  ;;  %v5167_v59 = vand.u32 127, %v4687_v17 }
 0x6c2   :  { %v7115_v5 = vadd.s32 %v7114_v58, %v6975_v10  ;;  %v6528_v58 = vld [vmem:[#allocation3 + $0x358] sm:$0xff]  ;;  %v6529_v10 = vld [vmem:[#allocation3 + $0x360] sm:$0xff]  ;;  %v13855_v25 = vpop.permute.xlu0 %6811 }
 0x6c3   :  { %vm6351_vm4 = vcmp.eq.s32.totalorder %v5167_v59, %v16491_v37 }
 0x6c4   :  { %6856 = vperm.xlu1 %7687, %v6523_v41   ;;  %v6683_v6 = vpop.permute.xlu1 %6682  ;;  %v5181_v41 = vand.u32 127, %v4689_v9  ;;  %v4718_v9 = vadd.s32 712, %v13214_v40 }
 0x6c5   :  { %v6977_v31 = vsel %vm6337_vm1, %v6683_v6, 0  ;;  %v4691_v6 = vadd.s32 496, %v13214_v40  ;;  %vm7233_vm1 = vcmask 1043459  }
 0x6c6   :  { %v7116_v43 = vadd.s32 %v7115_v5, %v6977_v31  ;;  %vm6353_vm11 = vcmp.eq.s32.totalorder %v5181_v41, %v16491_v37  ;;  %v5384_v20 = vand.u32 127, %v4718_v9  ;;  %v4713_v9 = vadd.s32 672, %v13214_v40 }
 0x6c7   :  { %v5195_v44 = vand.u32 127, %v4691_v6 }
 0x6c8   :  { %6859 = vperm.xlu1 %7687, %v6524_v53   ;;  %v6689_v28 = vpop.permute.xlu1 %6688  ;;  %v13861_v53 = vpop.permute.xlu0 %6817 }
 0x6c9   :  { %v6979_v57 = vsel %vm6339_vm7, %v6689_v28, 0  ;;  %v6531_v28 = vld [vmem:[#allocation3 + $0x370] sm:$0xff]  ;;  %vm6355_vm10 = vcmp.eq.s32.totalorder %v5195_v44, %v16491_v37 }
 0x6ca   :  { %v7117_v54 = vadd.s32 %v7116_v43, %v6979_v57 }
 0x6cc   :  { %v7118_v52 = vrot.slane %v7117_v54, 4  ;;  %6862 = vperm.xlu1 %7687, %v6525_v7   ;;  %v6695_v3 = vpop.permute.xlu1 %6694 }
 0x6cd   :  { %v6981_v27 = vsel %vm6341_vm12, %v6695_v3, 0 }
 0x6ce   :  { %v7119_v56 = vadd.s32 %v7118_v52, %v7117_v54  ;;  %v7131_v2 = vadd.s32 %v13540_v24, %v6981_v27  ;;  %v7102_v24 = vadd.s32 %v7101_v11, %v7100_v12  ;;  %v6532_v12 = vld [vmem:[#allocation3 + $0x378] sm:$0xff]  ;;  %v13865_v52 = vpop.permute.xlu0 %6823  ;;  %v5223_v27 = vand.u32 127, %v4695_v62 }
 0x6cf   :  { %v4699_v11 = vadd.s32 560, %v13214_v40  ;;  %v4724_v62 = vadd.s32 760, %v13214_v40 }
 0x6d0   :  { %v7120_v51 = vrot.slane %v7119_v56, 2  ;;  %6865 = vperm.xlu1 %7687, %v6526_v15   ;;  %v6701_v22 = vpop.permute.xlu1 %6700  ;;  %v7230_v19 = vsel %vm7229_vm3, %v7102_v24, %v7081_v60  ;;  %vm6359_vm2 = vcmp.eq.s32.totalorder %v5223_v27, %v16491_v37  ;;  %v4714_v60 = vadd.s32 680, %v13214_v40 }
 0x6d1   :  { %v6983_v8 = vsel %vm6343_vm9, %v6701_v22, 0  ;;  %v5237_v22 = vand.u32 127, %v4697_v38  ;;  %v5251_v0 = vand.u32 127, %v4699_v11  ;;  %v4707_v27 = vadd.s32 624, %v13214_v40 }
 0x6d2   :  { %v7121_v13 = vadd.s32 %v7120_v51, %v7119_v56  ;;  %v7132_v45 = vadd.s32 %v7131_v2, %v6983_v8  ;;  %v13872_v50 = vpop.permute.xlu0 %6829  ;;  %v4712_v8 = vadd.s32 664, %v13214_v40  ;;  %v5356_v59 = vand.u32 127, %v4714_v60 }
 0x6d3   :  { %vm6361_vm0 = vcmp.eq.s32.totalorder %v5237_v22, %v16491_v37  ;;  %vm6363_vm8 = vcmp.eq.s32.totalorder %v5251_v0, %v16491_v37 }
 0x6d4   :  { %v7122_v21 = vrot.slane %v7121_v13, 1  ;;  %6868 = vperm.xlu1 %7687, %v6527_v34   ;;  %v6707_v48 = vpop.permute.xlu1 %6706 }
 0x6d5   :  { %v6985_v39 = vsel %vm6345_vm13, %v6707_v48, 0  ;;  %v4710_v48 = vadd.s32 648, %v13214_v40  ;;  %vm13904_vm13 = vcmp.eq.s32.totalorder %v5356_v59, %v16491_v37 }
 0x6d6   :  { %v7123_v4 = vadd.s32 %v7122_v21, %v7121_v13  ;;  %v7133_v49 = vadd.s32 %v7132_v45, %v6985_v39  ;;  %v4701_v21 = vadd.s32 576, %v13214_v40  ;;  %v13880_v33 = vpop.permute.xlu0 %6835  ;;  %v7018_v38 = vsel %vm13904_vm13, %v13849_v30, 0 }
 0x6d8   :  { %6871 = vperm.xlu1 %7687, %v6528_v58   ;;  %v6713_v26 = vpop.permute.xlu1 %6712  ;;  %v13851_v46 = vsel %vm7231_vm14, %v7123_v4, %v7230_v19  ;;  %vm13931_vm14 = vcmp.eq.s32.totalorder %v5384_v20, %v16491_v37 }
 0x6d9   :  { %v6987_v61 = vsel %vm6347_vm5, %v6713_v26, 0  ;;  %v5265_v26 = vand.u32 127, %v4701_v21  ;;  %v7022_v0 = vsel %vm13931_vm14, %v13861_v53, 0 }
 0x6da   :  { %v7134_v47 = vadd.s32 %v7133_v49, %v6987_v61  ;;  %v4716_v49 = vadd.s32 696, %v13214_v40  ;;  %v4703_v61 = vadd.s32 592, %v13214_v40 }
 0x6db   :  { %vm6365_vm12 = vcmp.eq.s32.totalorder %v5265_v26, %v16491_v37 }
 0x6dc   :  { %6874 = vperm.xlu1 %7687, %v6529_v10   ;;  %v6719_v5 = vpop.permute.xlu1 %6718  ;;  %v4720_v10 = vadd.s32 728, %v13214_v40  ;;  %v5370_v41 = vand.u32 127, %v4716_v49 }
 0x6dd   :  { %v6989_v16 = vsel %vm6349_vm15, %v6719_v5, 0 }
 0x6de   :  { %v7135_v29 = vadd.s32 %v7134_v47, %v6989_v16  ;;  %v5328_v47 = vand.u32 127, %v4710_v48  ;;  %vm13913_vm3 = vcmp.eq.s32.totalorder %v5370_v41, %v16491_v37 }
 0x6e0   :  { %6877 = vperm.xlu1 %7687, %v6530_v35   ;;  %v6725_v31 = vpop.permute.xlu1 %6724  ;;  %vm13897_vm9 = vcmp.eq.s32.totalorder %v5328_v47, %v16491_v37 }
 0x6e1   :  { %v6991_v43 = vsel %vm6351_vm4, %v6725_v31, 0  ;;  %v5279_v31 = vand.u32 127, %v4703_v61 }
 0x6e2   :  { %v7136_v36 = vadd.s32 %v7135_v29, %v6991_v43  ;;  %v4705_v43 = vadd.s32 608, %v13214_v40 }
 0x6e3   :  { %vm13919_vm5 = vcmp.eq.s32.totalorder %v5279_v31, %v16491_v37 }
 0x6e4   :  { %6880 = vperm.xlu1 %7687, %v6531_v28   ;;  %v6731_v55 = vpop.permute.xlu1 %6730  ;;  %v5398_v28 = vand.u32 127, %v4720_v10 }
 0x6e5   :  { %v6993_v57 = vsel %vm6353_vm11, %v6731_v55, 0  ;;  %v4722_v55 = vadd.s32 744, %v13214_v40 }
 0x6e6   :  { %v7137_v54 = vadd.s32 %v7136_v36, %v6993_v57  ;;  %vm13936_vm15 = vcmp.eq.s32.totalorder %v5398_v28, %v16491_v37 }
 0x6e7   :  { %v5412_v11 = vand.u32 127, %v4722_v55  ;;  %v7024_v21 = vsel %vm13936_vm15, %v13865_v52, 0 }
 0x6e8   :  { %6883 = vperm.xlu1 %7687, %v6532_v12   ;;  %v6737_v7 = vpop.permute.xlu1 %6736 }
 0x6e9   :  { %v6995_v3 = vsel %vm6355_vm10, %v6737_v7, 0  ;;  %vm13953_vm11 = vcmp.eq.s32.totalorder %v5412_v11, %v16491_v37 }
 0x6ea   :  { %v7138_v18 = vadd.s32 %v7137_v54, %v6995_v3  ;;  %v7026_v49 = vsel %vm13953_vm11, %v13872_v50, 0 }
 0x6ec   :  { %v7139_v56 = vrot.slane %v7138_v18, 4  ;;  %v6743_v2 = vpop.permute.xlu1 %6742 }
 0x6ed   :  { %v6997_v14 = vsel %vm6357_vm6, %v6743_v2, 0 }
 0x6ee   :  { %v7140_v15 = vadd.s32 %v7139_v56, %v7138_v18  ;;  %v7152_v51 = vadd.s32 %v13790_v63, %v6997_v14  ;;  %v5342_v63 = vand.u32 127, %v4712_v8  ;;  %v5293_v18 = vand.u32 127, %v4705_v43 }
 0x6ef   :  { %v4709_v8 = vadd.s32 640, %v13214_v40 }
 0x6f0   :  { %v7141_v32 = vrot.slane %v7140_v15, 2  ;;  %v6749_v13 = vpop.permute.xlu1 %6748  ;;  %vm13890_vm7 = vcmp.eq.s32.totalorder %v5342_v63, %v16491_v37  ;;  %vm6369_vm4 = vcmp.eq.s32.totalorder %v5293_v18, %v16491_v37 }
 0x6f1   :  { %v6999_v45 = vsel %vm6359_vm2, %v6749_v13, 0  ;;  %v7016_v54 = vsel %vm13890_vm7, %v13843_v42, 0  ;;  %v7014_v42 = vsel %vm13897_vm9, %v13838_v1, 0  ;;  %v7020_v1 = vsel %vm13913_vm3, %v13855_v25, 0 }
 0x6f2   :  { %v7142_v24 = vadd.s32 %v7141_v32, %v7140_v15  ;;  %v7153_v34 = vadd.s32 %v7152_v51, %v6999_v45  ;;  %v7166_v56 = vadd.s32 %v7016_v54, %v7014_v42  ;;  %v5426_v51 = vand.u32 127, %v4724_v62 }
 0x6f3   :  { %v5307_v45 = vand.u32 127, %v4707_v27  ;;  %v5321_v60 = vand.u32 127, %v4709_v8  ;;  %vm7235_vm7 = vcmask 1044484   ;;  %v4719_v27 = vadd.s32 720, %v13214_v40 }
 0x6f4   :  { %v7143_v39 = vrot.slane %v7142_v24, 1  ;;  %v6755_v4 = vpop.permute.xlu1 %6754  ;;  %v7167_v32 = vadd.s32 %v7166_v56, %v7018_v38  ;;  %vm13961_vm10 = vcmp.eq.s32.totalorder %v5426_v51, %v16491_v37 }
 0x6f5   :  { %v7001_v17 = vsel %vm6361_vm0, %v6755_v4, 0  ;;  %vm6371_vm6 = vcmp.eq.s32.totalorder %v5307_v45, %v16491_v37  ;;  %v4711_v4 = vadd.s32 656, %v13214_v40  ;;  %vm6373_vm2 = vcmp.eq.s32.totalorder %v5321_v60, %v16491_v37 }
 0x6f6   :  { %v7144_v19 = vadd.s32 %v7143_v39, %v7142_v24  ;;  %v7154_v58 = vadd.s32 %v7153_v34, %v7001_v17  ;;  %v7168_v24 = vadd.s32 %v7167_v32, %v7020_v1  ;;  %v5391_v11 = vand.u32 127, %v4719_v27 }
 0x6f7   :  { %v5335_v59 = vand.u32 127, %v4711_v4  ;;  %v4723_v32 = vadd.s32 752, %v13214_v40 }
 0x6f8   :  { %v6761_v5 = vpop.permute.xlu1 %6760  ;;  %v13887_v16 = vsel %vm7233_vm1, %v7144_v19, %v13851_v46  ;;  %v13901_v46 = vpop.permute.xlu0 %6841  ;;  %v7169_v39 = vadd.s32 %v7168_v24, %v7022_v0  ;;  %vm6383_vm9 = vcmp.eq.s32.totalorder %v5391_v11, %v16491_v37 }
 0x6f9   :  { %v7003_v6 = vsel %vm6363_vm8, %v6761_v5, 0  ;;  %vm6375_vm0 = vcmp.eq.s32.totalorder %v5335_v59, %v16491_v37  ;;  %v5419_v24 = vand.u32 127, %v4723_v32 }
 0x6fa   :  { %v7155_v35 = vadd.s32 %v7154_v58, %v7003_v6  ;;  %v7170_v52 = vadd.s32 %v7169_v39, %v7024_v21  ;;  %v7028_v58 = vsel %vm13961_vm10, %v13880_v33, 0  ;;  %v4715_v6 = vadd.s32 688, %v13214_v40 }
 0x6fb   :  { %v5349_v33 = vand.u32 127, %v4713_v9  ;;  %vm6387_vm3 = vcmp.eq.s32.totalorder %v5419_v24, %v16491_v37 }
 0x6fc   :  { %v6767_v57 = vpop.permute.xlu1 %6766  ;;  %v13943_v22 = vpop.permute.xlu0 %6847  ;;  %v7171_v61 = vadd.s32 %v7170_v52, %v7026_v49  ;;  %v5363_v20 = vand.u32 127, %v4715_v6  ;;  %v4726_v6 = vadd.s32 776, %v13214_v40 }
 0x6fd   :  { %v7005_v12 = vsel %vm6365_vm12, %v6767_v57, 0  ;;  %vm6377_vm8 = vcmp.eq.s32.totalorder %v5349_v33, %v16491_v37  ;;  %v4717_v57 = vadd.s32 704, %v13214_v40 }
 0x6fe   :  { %v7156_v7 = vadd.s32 %v7155_v35, %v7005_v12  ;;  %v7172_v10 = vadd.s32 %v7171_v61, %v7028_v58  ;;  %vm6379_vm1 = vcmp.eq.s32.totalorder %v5363_v20, %v16491_v37  ;;  %v4747_v20 = vadd.s32 944, %v13214_v40 }
 0x6ff   :  { %v5377_v18 = vand.u32 127, %v4717_v57  ;;  %v4730_v57 = vadd.s32 808, %v13214_v40 }
 0x700   :  { %v6773_v15 = vpop.permute.xlu1 %6772  ;;  %v13970_v17 = vpop.permute.xlu0 %6886 }
 0x701   :  { %v7007_v30 = vsel %vm13919_vm5, %v6773_v15, 0  ;;  %vm6381_vm12 = vcmp.eq.s32.totalorder %v5377_v18, %v16491_v37  ;;  %v4721_v15 = vadd.s32 736, %v13214_v40  ;;  %vm7237_vm5 = vcmask 1045509  }
 0x702   :  { %v7157_v13 = vadd.s32 %v7156_v7, %v7007_v30  ;;  %v4750_v18 = vadd.s32 968, %v13214_v40 }
 0x703   :  { %v5405_v8 = vand.u32 127, %v4721_v15 }
 0x704   :  { %v6779_v34 = vpop.permute.xlu1 %6778  ;;  %v13977_v50 = vpop.permute.xlu0 %6892 }
 0x705   :  { %v7009_v63 = vsel %vm6369_vm4, %v6779_v34, 0  ;;  %vm6385_vm13 = vcmp.eq.s32.totalorder %v5405_v8, %v16491_v37 }
 0x706   :  { %v7158_v53 = vadd.s32 %v7157_v13, %v7009_v63 }
 0x708   :  { %v6785_v19 = vpop.permute.xlu1 %6784  ;;  %v13983_v54 = vpop.permute.xlu0 %6898 }
 0x709   :  { %v7011_v26 = vsel %vm6371_vm6, %v6785_v19, 0 }
 0x70a   :  { %v7159_v47 = vadd.s32 %v7158_v53, %v7011_v26 }
 0x70c   :  { %v7160_v5 = vrot.slane %v7159_v47, 4  ;;  %v6791_v29 = vpop.permute.xlu1 %6790  ;;  %v13988_v56 = vpop.permute.xlu0 %6901 }
 0x70d   :  { %v7013_v41 = vsel %vm6373_vm2, %v6791_v29, 0  ;;  %v4745_v29 = vadd.s32 928, %v13214_v40 }
 0x70e   :  { %v7161_v35 = vadd.s32 %v7160_v5, %v7159_v47  ;;  %v7173_v31 = vadd.s32 %v7172_v10, %v7013_v41  ;;  %v4743_v47 = vadd.s32 912, %v13214_v40  ;;  %v4741_v5 = vadd.s32 896, %v13214_v40 }
 0x710   :  { %v7162_v43 = vrot.slane %v7161_v35, 2  ;;  %v6797_v36 = vpop.permute.xlu1 %6796  ;;  %v13994_v13 = vpop.permute.xlu0 %6904 }
 0x711   :  { %v7015_v44 = vsel %vm6375_vm0, %v6797_v36, 0  ;;  %v5545_v36 = vand.u32 127, %v4741_v5 }
 0x712   :  { %v7163_v28 = vadd.s32 %v7162_v43, %v7161_v35  ;;  %v7174_v55 = vadd.s32 %v7173_v31, %v7015_v44  ;;  %v5559_v35 = vand.u32 127, %v4743_v47  ;;  %v4746_v43 = vadd.s32 936, %v13214_v40 }
 0x713   :  { %v5573_v44 = vand.u32 127, %v4745_v29  ;;  %vm14038_vm15 = vcmp.eq.s32.totalorder %v5545_v36, %v16491_v37 }
 0x714   :  { %v7164_v23 = vrot.slane %v7163_v28, 1  ;;  %v6803_v62 = vpop.permute.xlu1 %6802  ;;  %v13997_v34 = vpop.permute.xlu0 %6907  ;;  %vm14024_vm14 = vcmp.eq.s32.totalorder %v5559_v35, %v16491_v37  ;;  %v4729_v35 = vadd.s32 800, %v13214_v40 }
 0x715   :  { %v7017_v12 = vsel %vm6377_vm8, %v6803_v62, 0  ;;  %vm14043_vm4 = vcmp.eq.s32.totalorder %v5573_v44, %v16491_v37 }
 0x716   :  { %v7165_v7 = vadd.s32 %v7164_v23, %v7163_v28  ;;  %v7175_v3 = vadd.s32 %v7174_v55, %v7017_v12  ;;  %v5440_v28 = vand.u32 127, %v4726_v6  ;;  %v4728_v55 = vadd.s32 792, %v13214_v40 }
 0x717   :  { %v4725_v23 = vadd.s32 768, %v13214_v40  ;;  %v5580_v12 = vand.u32 127, %v4746_v43  ;;  %v7049_v24 = vsel %vm14043_vm4, %v13983_v54, 0 }
 0x718   :  { %v6809_v42 = vpop.permute.xlu1 %6808  ;;  %v7236_v38 = vsel %vm7235_vm7, %v7165_v7, %v13887_v16  ;;  %v14000_v53 = vpop.permute.xlu0 %6910  ;;  %v4748_v7 = vadd.s32 952, %v13214_v40  ;;  %vm14048_vm11 = vcmp.eq.s32.totalorder %v5440_v28, %v16491_v37  ;;  %v5454_v15 = vand.u32 127, %v4728_v55 }
 0x719   :  { %v7019_v2 = vsel %vm6379_vm1, %v6809_v42, 0  ;;  %v4727_v42 = vadd.s32 784, %v13214_v40  ;;  %vm14058_vm10 = vcmp.eq.s32.totalorder %v5580_v12, %v16491_v37  ;;  %v7030_v12 = vsel %vm14048_vm11, %v13901_v46, 0 }
 0x71a   :  { %v7176_v14 = vadd.s32 %v7175_v3, %v7019_v2  ;;  %v4749_v3 = vadd.s32 960, %v13214_v40  ;;  %v5594_v32 = vand.u32 127, %v4748_v7  ;;  %vm14079_vm2 = vcmp.eq.s32.totalorder %v5454_v15, %v16491_v37 }
 0x71b   :  { %v7050_v54 = vsel %vm14058_vm10, %v13988_v56, 0  ;;  %v4731_v2 = vadd.s32 816, %v13214_v40  ;;  %v4735_v56 = vadd.s32 848, %v13214_v40 }
 0x71c   :  { %v6815_v1 = vpop.permute.xlu1 %6814  ;;  %v14006_v26 = vpop.permute.xlu0 %6913  ;;  %vm14096_vm8 = vcmp.eq.s32.totalorder %v5594_v32, %v16491_v37 }
 0x71d   :  { %v7021_v51 = vsel %vm6381_vm12, %v6815_v1, 0  ;;  %v7047_v1 = vsel %vm14024_vm14, %v13977_v50, 0  ;;  %v4751_v50 = vadd.s32 976, %v13214_v40  ;;  %v7052_v28 = vsel %vm14096_vm8, %v13997_v34, 0 }
 0x71e   :  { %v7177_v30 = vadd.s32 %v7176_v14, %v7021_v51  ;;  %v5587_v14 = vand.u32 127, %v4747_v20  ;;  %v5433_v51 = vand.u32 127, %v4725_v23 }
 0x71f   :  { %v5615_v29 = vand.u32 127, %v4751_v50  ;;  %v5475_v50 = vand.u32 127, %v4731_v2 }
 0x720   :  { %v6821_v16 = vpop.permute.xlu1 %6820  ;;  %v14013_v41 = vpop.permute.xlu0 %6916  ;;  %vm14070_vm6 = vcmp.eq.s32.totalorder %v5587_v14, %v16491_v37  ;;  %vm14089_vm0 = vcmp.eq.s32.totalorder %v5433_v51, %v16491_v37  ;;  %v4732_v51 = vadd.s32 824, %v13214_v40 }
 0x721   :  { %v7023_v45 = vsel %vm6383_vm9, %v6821_v16, 0  ;;  %v5601_v16 = vand.u32 127, %v4749_v3  ;;  %v7051_v5 = vsel %vm14070_vm6, %v13994_v13, 0  ;;  %vm14140_vm9 = vcmp.eq.s32.totalorder %v5615_v29, %v16491_v37 }
 0x722   :  { %v7178_v0 = vadd.s32 %v7177_v30, %v7023_v45  ;;  %v5608_v45 = vand.u32 127, %v4750_v18  ;;  %v4756_v18 = vadd.s32 1016, %v13214_v40  ;;  %vm14206_vm10 = vcmp.eq.s32.totalorder %v5475_v50, %v16491_v37 }
 0x723   :  { %vm14101_vm1 = vcmp.eq.s32.totalorder %v5601_v16, %v16491_v37 }
 0x724   :  { %v6827_v25 = vpop.permute.xlu1 %6826  ;;  %v14034_v27 = vpop.permute.xlu0 %6919  ;;  %vm14106_vm7 = vcmp.eq.s32.totalorder %v5608_v45, %v16491_v37  ;;  %v7053_v34 = vsel %vm14101_vm1, %v14000_v53, 0  ;;  %v4739_v45 = vadd.s32 880, %v13214_v40 }
 0x725   :  { %v7025_v21 = vsel %vm6385_vm13, %v6827_v25, 0  ;;  %v5447_v25 = vand.u32 127, %v4727_v42  ;;  %v7054_v53 = vsel %vm14106_vm7, %v14006_v26, 0  ;;  %v7055_v26 = vsel %vm14140_vm9, %v14013_v41, 0 }
 0x726   :  { %v7179_v48 = vadd.s32 %v7178_v0, %v7025_v21  ;;  %v7045_v0 = vsel %vm14038_vm15, %v13970_v17, 0 }
 0x727   :  { %v7208_v21 = vadd.s32 %v7047_v1, %v7045_v0  ;;  %vm14114_vm12 = vcmp.eq.s32.totalorder %v5447_v25, %v16491_v37  ;;  %v5468_v1 = vand.u32 127, %v4730_v57  ;;  %v5650_v0 = vand.u32 127, %v4756_v18 }
 0x728   :  { %v6833_v63 = vpop.permute.xlu1 %6832  ;;  %v4733_v25 = vadd.s32 832, %v13214_v40 }
 0x729   :  { %v7027_v60 = vsel %vm6387_vm3, %v6833_v63, 0  ;;  %v4752_v63 = vadd.s32 984, %v13214_v40  ;;  %v7209_v47 = vadd.s32 %v7208_v21, %v7049_v24  ;;  %v7032_v21 = vsel %vm14079_vm2, %v13943_v22, 0 }
 0x72a   :  { %v7180_v39 = vadd.s32 %v7179_v48, %v7027_v60  ;;  %v4753_v60 = vadd.s32 992, %v13214_v40  ;;  %vm14188_vm4 = vcmp.eq.s32.totalorder %v5468_v1, %v16491_v37  ;;  %vm14201_vm11 = vcmp.eq.s32.totalorder %v5650_v0, %v16491_v37 }
 0x72b   :  { %v7210_v43 = vadd.s32 %v7209_v47, %v7050_v54  ;;  %v5622_v36 = vand.u32 127, %v4752_v63  ;;  %v4734_v54 = vadd.s32 840, %v13214_v40  ;;  %v5489_v29 = vand.u32 127, %v4733_v25 }
 0x72c   :  { %v7181_v4 = vrot.slane %v7180_v39, 4  ;;  %v14002_v49 = vpop.permute.xlu1 %6838  ;;  %v5629_v44 = vand.u32 127, %v4753_v60  ;;  %v4742_v60 = vadd.s32 904, %v13214_v40 }
 0x72d   :  { %v7029_v20 = vsel %vm14089_vm0, %v14002_v49, 0  ;;  %v7211_v7 = vadd.s32 %v7210_v43, %v7051_v5  ;;  %vm14145_vm13 = vcmp.eq.s32.totalorder %v5622_v36, %v16491_v37  ;;  %v5496_v43 = vand.u32 127, %v4734_v54 }
 0x72e   :  { %v7182_v52 = vadd.s32 %v7181_v4, %v7180_v39  ;;  %v14076_v39 = vpop.permute.xlu0 %6922  ;;  %v4754_v4 = vadd.s32 1000, %v13214_v40  ;;  %v7187_v42 = vadd.s32 %v7030_v12, %v7029_v20  ;;  %vm14150_vm3 = vcmp.eq.s32.totalorder %v5629_v44, %v16491_v37 }
 0x72f   :  { %v7212_v14 = vadd.s32 %v7211_v7, %v7052_v28  ;;  %v7056_v41 = vsel %vm14145_vm13, %v14034_v27, 0  ;;  %v7057_v27 = vsel %vm14150_vm3, %v14076_v39, 0  ;;  %v5552_v6 = vand.u32 127, %v4742_v60 }
 0x730   :  { %v7183_v19 = vrot.slane %v7182_v52, 2  ;;  %v14004_v58 = vpop.permute.xlu1 %6844  ;;  %v5636_v13 = vand.u32 127, %v4754_v4  ;;  %v4736_v28 = vadd.s32 856, %v13214_v40  ;;  %v5503_v12 = vand.u32 127, %v4735_v56 }
 0x731   :  { %v7031_v49 = vsel %vm14114_vm12, %v14004_v58, 0  ;;  %v7213_v32 = vadd.s32 %v7212_v14, %v7053_v34  ;;  %vm14227_vm2 = vcmp.eq.s32.totalorder %v5489_v29, %v16491_v37  ;;  %vm14233_vm0 = vcmp.eq.s32.totalorder %v5552_v6, %v16491_v37 }
 0x732   :  { %v7184_v61 = vadd.s32 %v7183_v19, %v7182_v52  ;;  %v4755_v52 = vadd.s32 1008, %v13214_v40  ;;  %v6926_v3 = vpop.permute.xlu0 %6925  ;;  %v7188_v15 = vadd.s32 %v7187_v42, %v7031_v49  ;;  %v5482_v19 = vand.u32 127, %v4732_v51 }
 0x733   :  { %v7214_v48 = vadd.s32 %v7213_v32, %v7054_v53  ;;  %v4737_v49 = vadd.s32 864, %v13214_v40  ;;  %vm14241_vm8 = vcmp.eq.s32.totalorder %v5496_v43, %v16491_v37  ;;  %v5510_v46 = vand.u32 127, %v4736_v28 }
 0x734   :  { %v7185_v59 = vrot.slane %v7184_v61, 1  ;;  %v14009_v9 = vpop.permute.xlu1 %6850  ;;  %v5643_v55 = vand.u32 127, %v4755_v52  ;;  %v7189_v4 = vadd.s32 %v7188_v15, %v7032_v21  ;;  %vm14216_vm6 = vcmp.eq.s32.totalorder %v5482_v19, %v16491_v37 }
 0x735   :  { %v7215_v17 = vadd.s32 %v7214_v48, %v7055_v26  ;;  %v4738_v58 = vadd.s32 872, %v13214_v40  ;;  %vm14257_vm7 = vcmp.eq.s32.totalorder %v5503_v12, %v16491_v37  ;;  %v5517_v16 = vand.u32 127, %v4737_v49 }
 0x736   :  { %v7186_v10 = vadd.s32 %v7185_v59, %v7184_v61  ;;  %vm14166_vm14 = vcmp.eq.s32.totalorder %v5643_v55, %v16491_v37  ;;  %v6929_v63 = vpop.permute.xlu0 %6928  ;;  %v4744_v59 = vadd.s32 920, %v13214_v40  ;;  %vm6400_vm12 = vcmp.eq.s32.totalorder %v5510_v46, %v16491_v37 }
 0x737   :  { %v7059_v7 = vsel %vm14166_vm14, %v6929_v63, 0  ;;  %v5524_v25 = vand.u32 127, %v4738_v58  ;;  %vm6401_vm9 = vcmp.eq.s32.totalorder %v5517_v16, %v16491_v37  ;;  %v5531_v63 = vand.u32 127, %v4739_v45 }
 0x738   :  { %v14016_v31 = vpop.permute.xlu1 %6889  ;;  %v14018_v33 = vsel %vm7237_vm5, %v7186_v10, %v7236_v38  ;;  %v5461_v38 = vand.u32 127, %v4729_v35  ;;  %vm14161_vm5 = vcmp.eq.s32.totalorder %v5636_v13, %v16491_v37  ;;  %v5566_v57 = vand.u32 127, %v4744_v59 }
 0x739   :  { %v7058_v39 = vsel %vm14161_vm5, %v6926_v3, 0  ;;  %v7046_v51 = vsel %vm14233_vm0, %v14016_v31, 0  ;;  %v4740_v60 = vadd.s32 888, %v13214_v40  ;;  %vm6402_vm13 = vcmp.eq.s32.totalorder %v5524_v25, %v16491_v37 }
 0x73a   :  { %vm14174_vm15 = vcmp.eq.s32.totalorder %v5461_v38, %v16491_v37  ;;  %v6932_v55 = vpop.permute.xlu0 %6931  ;;  %vm14249_vm1 = vcmp.eq.s32.totalorder %v5566_v57, %v16491_v37  ;;  %vm6403_vm3 = vcmp.eq.s32.totalorder %v5531_v63, %v16491_v37  ;;  %vm7239_vm14 = vcmask 1046534  }
 0x73b   :  { %v7033_v22 = vsel %vm14174_vm15, %v14009_v9, 0  ;;  %v7216_v9 = vadd.s32 %v7215_v17, %v7056_v41  ;;  %v7060_v2 = vsel %vm14201_vm11, %v6932_v55, 0  ;;  %vm7241_vm15 = vcmask 1047559  }
 0x73c   :  { %v14029_v62 = vpop.permute.xlu1 %6895  ;;  %v7190_v36 = vadd.s32 %v7189_v4, %v7033_v22 }
 0x73d   :  { %v7217_v13 = vadd.s32 %v7216_v9, %v7057_v27 }
 0x73f   :  { %v7218_v34 = vadd.s32 %v7217_v13, %v7058_v39 }
 0x740   :  { %v14055_v30 = vpop.permute.xlu1 %6853 }
 0x741   :  { %v7034_v35 = vsel %vm14188_vm4, %v14055_v30, 0  ;;  %v7219_v53 = vadd.s32 %v7218_v34, %v7059_v7 }
 0x742   :  { %v7191_v3 = vadd.s32 %v7190_v36, %v7034_v35 }
 0x743   :  { %v7220_v0 = vadd.s32 %v7219_v53, %v7060_v2 }
 0x744   :  { %v14093_v61 = vpop.permute.xlu1 %6856 }
 0x745   :  { %v7035_v30 = vsel %vm14206_vm10, %v14093_v61, 0  ;;  %v7221_v21 = vadd.s32 %v7220_v0, %v7046_v51 }
 0x746   :  { %v7192_v14 = vadd.s32 %v7191_v3, %v7035_v30 }
 0x748   :  { %v14126_v23 = vpop.permute.xlu1 %6859 }
 0x749   :  { %v7036_v61 = vsel %vm14216_vm6, %v14126_v23, 0 }
 0x74a   :  { %v7193_v32 = vadd.s32 %v7192_v14, %v7036_v61 }
 0x74c   :  { %v14158_v8 = vpop.permute.xlu1 %6862 }
 0x74d   :  { %v7037_v23 = vsel %vm14227_vm2, %v14158_v8, 0  ;;  %v7048_v8 = vsel %vm14249_vm1, %v14029_v62, 0 }
 0x74e   :  { %v7194_v24 = vadd.s32 %v7193_v32, %v7037_v23  ;;  %v7222_v54 = vadd.s32 %v7221_v21, %v7048_v8 }
 0x750   :  { %v6866_v47 = vpop.permute.xlu1 %6865  ;;  %v7223_v22 = vrot.slane %v7222_v54, 4 }
 0x751   :  { %v7038_v26 = vsel %vm14241_vm8, %v6866_v47, 0  ;;  %v5538_v47 = vand.u32 127, %v4740_v60 }
 0x752   :  { %v7195_v48 = vadd.s32 %v7194_v24, %v7038_v26  ;;  %v7224_v40 = vadd.s32 %v7223_v22, %v7222_v54 }
 0x753   :  { %vm6404_vm5 = vcmp.eq.s32.totalorder %v5538_v47, %v16491_v37 }
 0x754   :  { %v6869_v20 = vpop.permute.xlu1 %6868  ;;  %v7225_v35 = vrot.slane %v7224_v40, 2 }
 0x755   :  { %v7039_v31 = vsel %vm14257_vm7, %v6869_v20, 0 }
 0x756   :  { %v7196_v4 = vadd.s32 %v7195_v48, %v7039_v31  ;;  %v7226_v36 = vadd.s32 %v7225_v35, %v7224_v40 }
 0x758   :  { %v6872_v11 = vpop.permute.xlu1 %6871  ;;  %v7227_v28 = vrot.slane %v7226_v36, 1 }
 0x759   :  { %v7040_v41 = vsel %vm6400_vm12, %v6872_v11, 0 }
 0x75a   :  { %v7197_v19 = vadd.s32 %v7196_v4, %v7040_v41  ;;  %v7228_v57 = vadd.s32 %v7227_v28, %v7226_v36 }
 0x75c   :  { %v6875_v50 = vpop.permute.xlu1 %6874 }
 0x75d   :  { %v7041_v52 = vsel %vm6401_vm9, %v6875_v50, 0 }
 0x75e   :  { %v7198_v59 = vadd.s32 %v7197_v19, %v7041_v52 }
 0x760   :  { %v6878_v62 = vpop.permute.xlu1 %6877 }
 0x761   :  { %v7042_v17 = vsel %vm6402_vm13, %v6878_v62, 0 }
 0x762   :  { %v7199_v10 = vadd.s32 %v7198_v59, %v7042_v17 }
 0x764   :  { %v6881_v56 = vpop.permute.xlu1 %6880 }
 0x765   :  { %v7043_v27 = vsel %vm6403_vm3, %v6881_v56, 0 }
 0x766   :  { %v7200_v5 = vadd.s32 %v7199_v10, %v7043_v27 }
 0x768   :  { %v6884_v29 = vpop.permute.xlu1 %6883 }
 0x769   :  { %v7044_v9 = vsel %vm6404_vm5, %v6884_v29, 0 }
 0x76a   :  { %v7201_v6 = vadd.s32 %v7200_v5, %v7044_v9 }
 0x76c   :  { %v7202_v43 = vrot.slane %v7201_v6, 4 }
 0x76e   :  { %v7203_v39 = vadd.s32 %v7202_v43, %v7201_v6 }
 0x770   :  { %v7204_v44 = vrot.slane %v7203_v39, 2 }
 0x772   :  { %v7205_v20 = vadd.s32 %v7204_v44, %v7203_v39 }
 0x774   :  { %v7206_v13 = vrot.slane %v7205_v20, 1 }
 0x776   :  { %v7207_v55 = vadd.s32 %v7206_v13, %v7205_v20 }
 0x778   :  { %v7240_v37 = vsel %vm7239_vm14, %v7207_v55, %v14018_v33 }
 0x779   :  { %v7242_v30 = vsel %vm7241_vm15, %v7228_v57, %v7240_v37 }
 0x77a   :  { %7243 = vst [vmem:[#allocation9] sm:$0xff] %v7242_v30 }
 0x77b   :  { %7744 = shalt.err (!%p7741_p6)
}
 0x77c   :  { %s7745_s17 = scalar_lea.hbm %s14294_s3, 128 }
 0x77d   :  { %p7746_p7 = scmp.ne.s32.totalorder %s14294_s3, %s7745_s17  ;;  %p7749_p8 = scmp.lt.u32.totalorder %s7745_s17, %s14294_s3 }
 0x77f   :  { %p7751_p9 = pnand %p7749_p8, %p7746_p7 }
 0x781   :  { %7754 = shalt.err (!%p7751_p9)
}
 0x782   :  { %7253 = dma.vmem_to_hbm [thread:$0]  %s7251_s13, 128, %s14294_s3, [#allocation6]  }
 0x783   :  { %7759 = dma.done.wait [#allocation6], 128  }
 0x784   :  { %7760 = vsyncadd [#allocation6], 4294967168 }
 0x785   :  { %7257 = vsyncpa [#allocation5], 1 }
 0x786   :  { %7258 = vsyncpa [#allocation8], 1 }
 0x787   :  { %7259 = vsyncpa [#allocation6], 1 }

</bundles_post_ra>
